<compile_context>
chip_gen: v7x
topology: tpu7x:2x2x1
jax: 0.10.0
libtpu: 0.0.40
codegen_flags: <defaults>
</compile_context>

<pallas_src>
import functools

import jax
import jax.numpy as jnp
from jax import lax
from jax.experimental import pallas as pl
from jax.experimental.pallas import tpu as pltpu


# ----------------------------------------------------------------------------
# Small helpers
# ----------------------------------------------------------------------------
def _silu(y):
    return y * jax.nn.sigmoid(y)


def _pad_rows(x2d, tile_m):
    """Fallback: pad the row (M) dimension up to a multiple of tile_m."""
    m = x2d.shape[0]
    mp = -(-m // tile_m) * tile_m
    if mp != m:
        x2d = jnp.pad(x2d, ((0, mp - m), (0, 0)))
    return x2d


def _pick_tile_m(m, target):
    """Largest multiple-of-8 divisor of m that is <= target (avoids HBM row padding)."""
    target = max(8, min(target, m))
    cand = (target // 8) * 8
    while cand >= 8:
        if m % cand == 0:
            return cand
        cand -= 8
    return min(target, m)          # fallback: rows will be zero-padded


def _pick_strip(h, target=16):
    """Largest row strip (<= target) dividing H that yields >= 2 strips per image."""
    for cand in (32, 16, 8):
        if cand <= target and h % cand == 0 and h // cand >= 2:
            return cand
    return h


def _vmem_limit_bytes(need):
    # Explicit scoped-VMEM budget (defaults are 16 MiB on v5e, 32 MiB on v6e/v7x).
    # Clamped to 48 MiB so it is always safe on v7x's 64 MiB/TC; on v6e (128 MiB)
    # this cap can be raised for even larger strips/tiles.
    return int(min(max(2 * need, 8 << 20), 48 << 20))


# ----------------------------------------------------------------------------
# Fused 1x1-conv kernel (used for cv1 and for cv2-over-implicit-concat)
# ----------------------------------------------------------------------------
def _make_1x1_kernel(n_in):
    """SiLU(concat_K(x_0..x_{n-1}) @ W + b) with a lane-dense output tile."""
    def kernel(*args):
        x_refs = args[:n_in]
        w_ref, b_ref, o_ref = args[n_in], args[n_in + 1], args[n_in + 2]
        if n_in == 1:
            xk = x_refs[0][...]
        else:
            # Fuse the channel concat in VMEM -> one deep-K MXU matmul.
            xk = jnp.concatenate([r[...] for r in x_refs], axis=-1)
        y = jnp.dot(xk, w_ref[...], preferred_element_type=jnp.float32)
        o_ref[...] = _silu(y + b_ref[...]).astype(o_ref.dtype)
    return kernel


def fused_1x1(xs_2d, w, b, *, tile_m=1024):
    """y = SiLU(concat(xs_2d, axis=-1) @ w + b).  xs_2d: list of (M, k_i); w: (sum k_i, Cout)."""
    n_in = len(xs_2d)
    M = xs_2d[0].shape[0]
    widths = [int(x.shape[1]) for x in xs_2d]
    k_tot = sum(widths)
    Cout = int(w.shape[1])
    dtype = xs_2d[0].dtype
    esize = jnp.dtype(dtype).itemsize

    tile = _pick_tile_m(M, tile_m)
    xs_p = [_pad_rows(x, tile) for x in xs_2d]
    Mp = xs_p[0].shape[0]

    need = (2 * tile * (k_tot + Cout) + k_tot * Cout + tile * k_tot) * esize \
           + 4 * tile * Cout + 4 * Cout
    cost = pl.CostEstimate(
        flops=2 * Mp * k_tot * Cout,
        transcendentals=Mp * Cout,
        bytes_accessed=(Mp * k_tot + k_tot * Cout + Mp * Cout) * esize,
    )
    out = pl.pallas_call(
        _make_1x1_kernel(n_in),
        out_shape=jax.ShapeDtypeStruct((Mp, Cout), dtype),
        grid=(Mp // tile,),
        in_specs=[pl.BlockSpec((tile, k), lambda i: (i, 0)) for k in widths]
                 + [pl.BlockSpec((k_tot, Cout), lambda i: (0, 0)),
                    pl.BlockSpec((1, Cout), lambda i: (0, 0))],
        out_specs=pl.BlockSpec((tile, Cout), lambda i: (i, 0)),
        compiler_params=pltpu.CompilerParams(
            dimension_semantics=("parallel",),
            vmem_limit_bytes=_vmem_limit_bytes(need)),
        cost_estimate=cost,
    )(*xs_p, w, b)
    return out if Mp == M else out[:M]


# ----------------------------------------------------------------------------
# Fused Bottleneck kernel: 1x1 conv+SiLU -> 3x3 'same' conv+SiLU -> optional residual
# ----------------------------------------------------------------------------
def _make_bottleneck_kernel(shortcut):
    def kernel(xs_ref, xt_ref, xb_ref, w1_ref, b1_ref, w2_ref, b2_ref, o_ref, hp_ref):
        # xs_ref: (1, strip, W, cin)   strip rows of the input
        # xt_ref/xb_ref: (1, 1, W, cin)  halo row above / below (clamped at borders)
        # w1: (cin, c)  folded 1x1 weight   w2: (9c, c)  folded 3x3 weight (dy,dx,cin order)
        # hp_ref: (strip+2, Wp, c) VMEM scratch holding the zero-bordered 1x1 output
        strip, W, c = o_ref.shape[1], o_ref.shape[2], o_ref.shape[3]
        cin = xs_ref.shape[3]
        s = pl.program_id(1)
        last = pl.num_programs(1) - 1

        # --- 1x1 conv + SiLU over the strip AND its two halo rows (one matmul) ------
        xin = jnp.concatenate([xt_ref[0], xs_ref[0], xb_ref[0]], axis=0)   # (strip+2, W, cin)
        h = jnp.dot(xin.reshape((strip + 2) * W, cin), w1_ref[...],
                    preferred_element_type=jnp.float32)
        h = _silu(h + b1_ref[...])                                         # f32 epilogue

        # --- stage into the zero-bordered VMEM scratch (SAME padding, no HBM pad) ---
        # NOTE: in the bf16 path the 1x1 intermediate is stored in bf16 here; the
        # 3x3 matmul still accumulates in f32.
        hp_ref[:, 1:W + 1, :] = h.reshape(strip + 2, W, c).astype(hp_ref.dtype)
        zcol = jnp.zeros((strip + 2, 1, c), hp_ref.dtype)
        hp_ref[:, 0:1, :] = zcol                       # only the 1-px border is zeroed
        hp_ref[:, W + 1:W + 2, :] = zcol
        zrow = jnp.zeros((1, hp_ref.shape[1], c), hp_ref.dtype)

        @pl.when(s == 0)                               # top image border: true zero pad
        def _():
            hp_ref[0:1, :, :] = zrow

        @pl.when(s == last)                            # bottom image border
        def _():
            hp_ref[strip + 1:strip + 2, :, :] = zrow

        # --- 3x3 conv as ONE K=9c matmul (im2col over the 9 taps, all in VMEM) ------
        patches = jnp.concatenate(
            [hp_ref[dy:dy + strip, dx:dx + W, :].reshape(strip * W, c)
             for dy in range(3) for dx in range(3)], axis=-1)              # (strip*W, 9c)
        y = jnp.dot(patches, w2_ref[...], preferred_element_type=jnp.float32)
        y = _silu(y + b2_ref[...])

        if shortcut:
            # Fused residual; if the input is the 2c-wide cv1 slab, add its y_b half.
            y = y + xs_ref[0].reshape(strip * W, cin)[:, cin - c:].astype(jnp.float32)

        o_ref[0] = y.reshape(strip, W, c).astype(o_ref.dtype)
    return kernel


def bottleneck_fused(x_src, w1, b1, w2, b2, *, c, shortcut, strip=None):
    """Fused Bottleneck over a (batch, row-strip) grid.

    x_src is (N, H, W, c), or the lane-dense (N, H, W, 2c) cv1 output for the first
    block (in which case w1 is the zero-padded (2c, c) weight that selects y_b)."""
    N, H, W, cin = x_src.shape
    if strip is None:
        strip = _pick_strip(H)
    if H % strip != 0:
        strip = H
    n_strips = H // strip
    dtype = x_src.dtype
    esize = jnp.dtype(dtype).itemsize
    Wp = -(-(W + 2) // 8) * 8                 # scratch width padded to a sublane multiple
    STRIP = strip

    need = (2 * (strip * W * cin + 2 * W * cin + strip * W * c)
            + cin * c + 9 * c * c
            + (strip + 2) * Wp * c
            + (strip + 2) * W * cin
            + strip * W * 9 * c) * esize \
           + 4 * ((strip + 2) * W * c + strip * W * c + 2 * c)
    cost = pl.CostEstimate(
        flops=2 * N * H * W * c * (cin + 9 * c),
        transcendentals=2 * N * H * W * c,
        bytes_accessed=(N * H * W * (cin + c) + N * n_strips * 2 * W * cin
                        + (cin + 9 * c) * c) * esize,
    )
    return pl.pallas_call(
        _make_bottleneck_kernel(shortcut),
        out_shape=jax.ShapeDtypeStruct((N, H, W, c), dtype),
        grid=(N, n_strips),
        in_specs=[
            pl.BlockSpec((1, strip, W, cin), lambda b, s: (b, s, 0, 0)),
            # Halo rows above/below the strip (clamped at the image border; the kernel
            # overwrites the border rows with true zero padding anyway).
            pl.BlockSpec((1, 1, W, cin),
                         lambda b, s: (b, jnp.maximum(s * STRIP - 1, 0), 0, 0)),
            pl.BlockSpec((1, 1, W, cin),
                         lambda b, s: (b, jnp.minimum((s + 1) * STRIP, H - 1), 0, 0)),
            pl.BlockSpec((cin, c), lambda b, s: (0, 0)),
            pl.BlockSpec((1, c), lambda b, s: (0, 0)),
            pl.BlockSpec((9 * c, c), lambda b, s: (0, 0)),
            pl.BlockSpec((1, c), lambda b, s: (0, 0)),
        ],
        out_specs=pl.BlockSpec((1, strip, W, c), lambda b, s: (b, s, 0, 0)),
        scratch_shapes=[pltpu.VMEM((strip + 2, Wp, c), dtype)],
        compiler_params=pltpu.CompilerParams(
            dimension_semantics=("parallel", "parallel"),
            vmem_limit_bytes=_vmem_limit_bytes(need)),
        cost_estimate=cost,
    )(x_src, x_src, x_src, w1, b1, w2, b2)


# ----------------------------------------------------------------------------
# Parameter construction (synthetic BN params, mirroring the PyTorch module)
# ----------------------------------------------------------------------------
def _fold_bn(key, cout, eps=1e-5):
    k1, k2, k3, k4 = jax.random.split(key, 4)
    gamma = 1.0 + 0.1 * jax.random.normal(k1, (cout,), jnp.float32)
    beta = 0.1 * jax.random.normal(k2, (cout,), jnp.float32)
    mean = 0.1 * jax.random.normal(k3, (cout,), jnp.float32)
    var = 1.0 + 0.5 * jax.random.uniform(k4, (cout,), jnp.float32)
    scale = gamma / jnp.sqrt(var + eps)
    bias = beta - mean * scale
    return scale, bias


def make_c2f_params(key, in_channels, out_channels, n, expansion=0.5):
    c = int(out_channels * expansion)
    keys = jax.random.split(key, 4 + 4 * n)
    params = {}
    params["cv1_w"] = 0.2 * jax.random.normal(keys[0], (in_channels, 2 * c), jnp.float32)
    params["cv1_scale"], params["cv1_bias"] = _fold_bn(keys[1], 2 * c)
    params["cv2_w"] = 0.2 * jax.random.normal(keys[2], ((2 + n) * c, out_channels), jnp.float32)
    params["cv2_scale"], params["cv2_bias"] = _fold_bn(keys[3], out_channels)
    params["m"] = []
    for i in range(n):
        ka, kb, kc, kd = keys[4 + 4 * i: 8 + 4 * i]
        blk = {
            "conv1_w": 0.2 * jax.random.normal(ka, (c, c), jnp.float32),
            "conv2_w": 0.2 * jax.random.normal(kc, (3, 3, c, c), jnp.float32),
        }
        blk["conv1_scale"], blk["conv1_bias"] = _fold_bn(kb, c)
        blk["conv2_scale"], blk["conv2_bias"] = _fold_bn(kd, c)
        params["m"].append(blk)
    return params


def fold_c2f_params(params, compute_dtype=jnp.float32):
    """Fold BatchNorm (inference) into the conv weights ONCE and pack for the kernels.

    Weights go to compute_dtype; biases stay f32 for the in-kernel epilogues."""
    cd = jnp.dtype(compute_dtype)
    c = params["cv1_w"].shape[1] // 2
    fp = {
        "cv1_w": (params["cv1_w"] * params["cv1_scale"][None, :]).astype(cd),
        "cv1_b": params["cv1_bias"].reshape(1, -1).astype(jnp.float32),
        "cv2_w": (params["cv2_w"] * params["cv2_scale"][None, :]).astype(cd),
        "cv2_b": params["cv2_bias"].reshape(1, -1).astype(jnp.float32),
        "m": [],
    }
    for i, blk in enumerate(params["m"]):
        w1 = blk["conv1_w"] * blk["conv1_scale"][None, :]
        if i == 0:
            # First Bottleneck consumes the lane-dense (.., 2c) cv1 output directly:
            # zero rows for the y_a half select y_b through the weight (no lane slice).
            w1 = jnp.concatenate([jnp.zeros((c, c), w1.dtype), w1], axis=0)
        w2 = (blk["conv2_w"] * blk["conv2_scale"][None, None, None, :]).reshape(9 * c, c)
        fp["m"].append({
            "w1": w1.astype(cd),
            "b1": blk["conv1_bias"].reshape(1, -1).astype(jnp.float32),
            "w2": w2.astype(cd),
            "b2": blk["conv2_bias"].reshape(1, -1).astype(jnp.float32),
        })
    return fp


# ----------------------------------------------------------------------------
# C2f forward (matches PyTorch C2f.forward semantics)
# ----------------------------------------------------------------------------
def c2f_forward_nhwc(x_nhwc, fp, n, shortcut=False, *, tile_m=1024, strip=None):
    c = fp["cv1_w"].shape[1] // 2              # static (from weight shapes)
    cd = fp["cv1_w"].dtype
    N, H, W, Cin = x_nhwc.shape
    M = N * H * W
    x2 = x_nhwc.astype(cd).reshape(M, Cin)

    # cv1: one lane-dense (M, 2c) output == torch.cat([y_a, y_b], dim=1)
    y01 = fused_1x1([x2], fp["cv1_w"], fp["cv1_b"], tile_m=tile_m)
    chunks = [y01]

    h = y01.reshape(N, H, W, 2 * c)
    for i in range(n):
        blk = fp["m"][i]
        h = bottleneck_fused(h, blk["w1"], blk["b1"], blk["w2"], blk["b2"],
                             c=c, shortcut=shortcut, strip=strip)
        chunks.append(h.reshape(M, c))

    # cv2 over the implicit concat [y_a, y_b, h_1, ..., h_n] (never materialized in HBM)
    out = fused_1x1(chunks, fp["cv2_w"], fp["cv2_b"], tile_m=tile_m)
    return out.reshape(N, H, W, -1)


def c2f_forward(x_nchw, fp, n, shortcut=False, *, tile_m=1024, strip=None):
    # NCHW boundary to mirror the PyTorch module; data stays NHWC inside.
    x = jnp.transpose(x_nchw, (0, 2, 3, 1))
    out = c2f_forward_nhwc(x, fp, n, shortcut, tile_m=tile_m, strip=strip)
    return jnp.transpose(out, (0, 3, 1, 2))


# ----------------------------------------------------------------------------
# Pure-JAX reference (lax.conv) for correctness check
# ----------------------------------------------------------------------------
def _ref_conv_bn_silu(x_nhwc, w_hwio, scale, bias):
    y = lax.conv_general_dilated(
        x_nhwc, w_hwio, window_strides=(1, 1), padding="SAME",
        dimension_numbers=("NHWC", "HWIO", "NHWC"))
    y = y * scale + bias
    return y * jax.nn.sigmoid(y)


def c2f_reference(x_nchw, params, n, shortcut=False):
    x = jnp.transpose(x_nchw, (0, 2, 3, 1))
    c = params["cv1_w"].shape[1] // 2
    cin = x.shape[-1]
    y1 = _ref_conv_bn_silu(x, params["cv1_w"].reshape(1, 1, cin, 2 * c),
                           params["cv1_scale"], params["cv1_bias"])
    ys = [y1[..., :c], y1[..., c:]]
    for i in range(n):
        p = params["m"][i]
        h = _ref_conv_bn_silu(ys[-1], p["conv1_w"].reshape(1, 1, c, c),
                              p["conv1_scale"], p["conv1_bias"])
        h = _ref_conv_bn_silu(h, p["conv2_w"], p["conv2_scale"], p["conv2_bias"])
        if shortcut:
            h = ys[-1] + h
        ys.append(h)
    ycat = jnp.concatenate(ys, axis=-1)
    cc = ycat.shape[-1]
    out = _ref_conv_bn_silu(ycat, params["cv2_w"].reshape(1, 1, cc, -1),
                            params["cv2_scale"], params["cv2_bias"])
    return jnp.transpose(out, (0, 3, 1, 2))


# ----------------------------------------------------------------------------
if __name__ == "__main__":
    # Small config: C2f(in=8, out=8, n=2) -> hidden c = 4; H=16 -> 2 row strips of 8.
    N, Cin, H, W = 2, 8, 16, 16
    Cout, n_blocks = 8, 2

    key = jax.random.PRNGKey(0)
    kx, kp = jax.random.split(key)
    x = jax.random.normal(kx, (N, Cin, H, W), jnp.float32)   # NCHW like PyTorch
    params = make_c2f_params(kp, Cin, Cout, n_blocks)

    ref = jax.block_until_ready(c2f_reference(x, params, n_blocks, shortcut=False))
    ref_sc = jax.block_until_ready(c2f_reference(x, params, n_blocks, shortcut=True))

    # f32, shortcut=False (C2f default) -- tight tolerance.
    fp32 = fold_c2f_params(params, compute_dtype=jnp.float32)
    fwd = jax.jit(functools.partial(c2f_forward, n=n_blocks, shortcut=False))
    out = jax.block_until_ready(fwd(x, fp32))
    assert out.shape == (N, Cout, H, W), out.shape
    err = float(jnp.max(jnp.abs(out - ref)))
    assert err < 2e-3, err

    # f32, shortcut=True -- exercises the fused in-kernel residual path.
    fwd_sc = jax.jit(functools.partial(c2f_forward, n=n_blocks, shortcut=True))
    out_sc = jax.block_until_ready(fwd_sc(x, fp32))
    err_sc = float(jnp.max(jnp.abs(out_sc - ref_sc)))
    assert err_sc < 2e-3, err_sc

    # bf16 storage + bf16 MXU (f32 accumulation / epilogue) -- loose tolerance.
    fbf16 = fold_c2f_params(params, compute_dtype=jnp.bfloat16)
    fwd_bf = jax.jit(functools.partial(c2f_forward, n=n_blocks, shortcut=False))
    out_bf = jax.block_until_ready(fwd_bf(x, fbf16)).astype(jnp.float32)
    err_bf = float(jnp.max(jnp.abs(out_bf - ref)))
    assert err_bf < 0.1, err_bf

    print("KERNEL_OK")
</pallas_src>

<mosaic_0001>
module attributes {stable_mosaic.version = 11 : i64} {
  func.func @kernel(%arg0: i32, %arg1: memref<512x8xf32, #tpu.memory_space<vmem>>, %arg2: memref<8x8xf32, #tpu.memory_space<vmem>>, %arg3: memref<1x8xf32, #tpu.memory_space<vmem>>, %arg4: memref<512x8xf32, #tpu.memory_space<vmem>>) attributes {dimension_semantics = [#tpu.dimension_semantics<parallel>], iteration_bounds = array<i64: 1>, scalar_prefetch = 0 : i64, scratch_operands = 0 : i64, tpu.core_type = #tpu.core_type<tc>, window_params = [{transform_indices = @transform_0, window_bounds = array<i64: 512, 8>}, {pipeline_mode = #tpu.pipeline_mode<synchronous>, transform_indices = @transform_1, window_bounds = array<i64: 8, 8>}, {pipeline_mode = #tpu.pipeline_mode<synchronous>, transform_indices = @transform_2, window_bounds = array<i64: 1, 8>}, {transform_indices = @transform_3, window_bounds = array<i64: 512, 8>}]} {
    %c0 = arith.constant 0 : index
    %c0_0 = arith.constant 0 : index
    %0 = vector.load %arg1[%c0, %c0_0] : memref<512x8xf32, #tpu.memory_space<vmem>>, vector<512x8xf32>
    %c0_1 = arith.constant 0 : index
    %c0_2 = arith.constant 0 : index
    %1 = vector.load %arg2[%c0_1, %c0_2] : memref<8x8xf32, #tpu.memory_space<vmem>>, vector<8x8xf32>
    %cst = arith.constant dense<0.000000e+00> : vector<512x8xf32>
    %2 = tpu.matmul %0, %1, %cst {dimension_numbers = #tpu.dot_dimension_numbers<[1], [0], [0], [1], [0, 0, 1, 1], [], []>} : vector<512x8xf32>, vector<8x8xf32>, vector<512x8xf32> -> vector<512x8xf32>
    %c0_3 = arith.constant 0 : index
    %c0_4 = arith.constant 0 : index
    %3 = vector.load %arg3[%c0_3, %c0_4] : memref<1x8xf32, #tpu.memory_space<vmem>>, vector<1x8xf32>
    %4 = vector.broadcast %3 : vector<1x8xf32> to vector<512x8xf32>
    %5 = arith.addf %2, %4 : vector<512x8xf32>
    %6 = arith.negf %5 : vector<512x8xf32>
    %7 = math.exp %6 : vector<512x8xf32>
    %cst_5 = arith.constant 1.000000e+00 : f32
    %8 = vector.broadcast %cst_5 : f32 to vector<512x8xf32>
    %9 = arith.addf %8, %7 : vector<512x8xf32>
    %10 = arith.divf %8, %9 : vector<512x8xf32>
    %11 = arith.mulf %5, %10 : vector<512x8xf32>
    %c0_6 = arith.constant 0 : index
    %c0_7 = arith.constant 0 : index
    %12 = vector.load %arg4[%c0_6, %c0_7] : memref<512x8xf32, #tpu.memory_space<vmem>>, vector<512x8xf32>
    tpu.vector_store %arg4[%c0_6, %c0_7], %11 {strides = array<i32>} : memref<512x8xf32, #tpu.memory_space<vmem>>, vector<512x8xf32>,
    return
  }
  func.func @transform_0(%arg0: i32) -> (i32, i32) {
    %c0_i32 = arith.constant 0 : i32
    %c0_i32_0 = arith.constant 0 : i32
    return %arg0, %c0_i32 : i32, i32
  }
  func.func @transform_1(%arg0: i32) -> (i32, i32) {
    %c0_i32 = arith.constant 0 : i32
    %c0_i32_0 = arith.constant 0 : i32
    %c0_i32_1 = arith.constant 0 : i32
    return %c0_i32, %c0_i32_0 : i32, i32
  }
  func.func @transform_2(%arg0: i32) -> (i32, i32) {
    %c0_i32 = arith.constant 0 : i32
    %c0_i32_0 = arith.constant 0 : i32
    %c0_i32_1 = arith.constant 0 : i32
    return %c0_i32, %c0_i32_0 : i32, i32
  }
  func.func @transform_3(%arg0: i32) -> (i32, i32) {
    %c0_i32 = arith.constant 0 : i32
    %c0_i32_0 = arith.constant 0 : i32
    return %arg0, %c0_i32 : i32, i32
  }
}

module attributes {stable_mosaic.version = 11 : i64} {
  func.func @kernel(%arg0: i32, %arg1: i32, %arg2: memref<1x8x16x8xf32, #tpu.memory_space<vmem>>, %arg3: memref<1x1x16x8xf32, #tpu.memory_space<vmem>>, %arg4: memref<1x1x16x8xf32, #tpu.memory_space<vmem>>, %arg5: memref<8x4xf32, #tpu.memory_space<vmem>>, %arg6: memref<1x4xf32, #tpu.memory_space<vmem>>, %arg7: memref<36x4xf32, #tpu.memory_space<vmem>>, %arg8: memref<1x4xf32, #tpu.memory_space<vmem>>, %arg9: memref<1x8x16x4xf32, #tpu.memory_space<vmem>>, %arg10: memref<10x24x4xf32, #tpu.memory_space<vmem>>) attributes {dimension_semantics = [#tpu.dimension_semantics<parallel>, #tpu.dimension_semantics<parallel>], iteration_bounds = array<i64: 2, 2>, scalar_prefetch = 0 : i64, scratch_operands = 1 : i64, tpu.core_type = #tpu.core_type<tc>, window_params = [{transform_indices = @transform_0, window_bounds = array<i64: 1, 8, 16, 8>}, {transform_indices = @transform_1, window_bounds = array<i64: 1, 1, 16, 8>}, {transform_indices = @transform_2, window_bounds = array<i64: 1, 1, 16, 8>}, {pipeline_mode = #tpu.pipeline_mode<synchronous>, transform_indices = @transform_3, window_bounds = array<i64: 8, 4>}, {pipeline_mode = #tpu.pipeline_mode<synchronous>, transform_indices = @transform_4, window_bounds = array<i64: 1, 4>}, {pipeline_mode = #tpu.pipeline_mode<synchronous>, transform_indices = @transform_5, window_bounds = array<i64: 36, 4>}, {pipeline_mode = #tpu.pipeline_mode<synchronous>, transform_indices = @transform_6, window_bounds = array<i64: 1, 4>}, {transform_indices = @transform_7, window_bounds = array<i64: 1, 8, 16, 4>}]} {
    %c0 = arith.constant 0 : index
    %c0_0 = arith.constant 0 : index
    %c0_1 = arith.constant 0 : index
    %c0_2 = arith.constant 0 : index
    %0 = vector.load %arg3[%c0, %c0_0, %c0_1, %c0_2] : memref<1x1x16x8xf32, #tpu.memory_space<vmem>>, vector<1x1x16x8xf32>
    %1 = vector.shape_cast %0 : vector<1x1x16x8xf32> to vector<1x16x8xf32>
    %c0_3 = arith.constant 0 : index
    %c0_4 = arith.constant 0 : index
    %c0_5 = arith.constant 0 : index
    %c0_6 = arith.constant 0 : index
    %2 = vector.load %arg2[%c0_3, %c0_4, %c0_5, %c0_6] : memref<1x8x16x8xf32, #tpu.memory_space<vmem>>, vector<1x8x16x8xf32>
    %3 = vector.shape_cast %2 : vector<1x8x16x8xf32> to vector<8x16x8xf32>
    %c0_7 = arith.constant 0 : index
    %c0_8 = arith.constant 0 : index
    %c0_9 = arith.constant 0 : index
    %c0_10 = arith.constant 0 : index
    %4 = vector.load %arg4[%c0_7, %c0_8, %c0_9, %c0_10] : memref<1x1x16x8xf32, #tpu.memory_space<vmem>>, vector<1x1x16x8xf32>
    %5 = vector.shape_cast %4 : vector<1x1x16x8xf32> to vector<1x16x8xf32>
    %6 = tpu.concatenate %1, %3, %5 in 0 : vector<1x16x8xf32>, vector<8x16x8xf32>, vector<1x16x8xf32> -> vector<10x16x8xf32>
    %7 = vector.shape_cast %6 : vector<10x16x8xf32> to vector<160x8xf32>
    %c0_11 = arith.constant 0 : index
    %c0_12 = arith.constant 0 : index
    %8 = vector.load %arg5[%c0_11, %c0_12] : memref<8x4xf32, #tpu.memory_space<vmem>>, vector<8x4xf32>
    %cst = arith.constant dense<0.000000e+00> : vector<160x4xf32>
    %9 = tpu.matmul %7, %8, %cst {dimension_numbers = #tpu.dot_dimension_numbers<[1], [0], [0], [1], [0, 0, 1, 1], [], []>} : vector<160x8xf32>, vector<8x4xf32>, vector<160x4xf32> -> vector<160x4xf32>
    %c0_13 = arith.constant 0 : index
    %c0_14 = arith.constant 0 : index
    %10 = vector.load %arg6[%c0_13, %c0_14] : memref<1x4xf32, #tpu.memory_space<vmem>>, vector<1x4xf32>
    %11 = vector.broadcast %10 : vector<1x4xf32> to vector<160x4xf32>
    %12 = arith.addf %9, %11 : vector<160x4xf32>
    %13 = arith.negf %12 : vector<160x4xf32>
    %14 = math.exp %13 : vector<160x4xf32>
    %cst_15 = arith.constant 1.000000e+00 : f32
    %15 = vector.broadcast %cst_15 : f32 to vector<160x4xf32>
    %16 = arith.addf %15, %14 : vector<160x4xf32>
    %17 = arith.divf %15, %16 : vector<160x4xf32>
    %18 = arith.mulf %12, %17 : vector<160x4xf32>
    %19 = vector.shape_cast %18 : vector<160x4xf32> to vector<10x16x4xf32>
    %c0_16 = arith.constant 0 : index
    %c1 = arith.constant 1 : index
    %c0_17 = arith.constant 0 : index
    %20 = vector.load %arg10[%c0_16, %c1, %c0_17] : memref<10x24x4xf32, #tpu.memory_space<vmem>>, vector<10x16x4xf32>
    tpu.vector_store %arg10[%c0_16, %c1, %c0_17], %19 {strides = array<i32>} : memref<10x24x4xf32, #tpu.memory_space<vmem>>, vector<10x16x4xf32>,
    %cst_18 = arith.constant 0.000000e+00 : f32
    %21 = vector.broadcast %cst_18 : f32 to vector<10x1x4xf32>
    %c0_19 = arith.constant 0 : index
    %c0_20 = arith.constant 0 : index
    %c0_21 = arith.constant 0 : index
    %22 = vector.load %arg10[%c0_19, %c0_20, %c0_21] : memref<10x24x4xf32, #tpu.memory_space<vmem>>, vector<10x1x4xf32>
    tpu.vector_store %arg10[%c0_19, %c0_20, %c0_21], %21 {strides = array<i32>} : memref<10x24x4xf32, #tpu.memory_space<vmem>>, vector<10x1x4xf32>,
    %c0_22 = arith.constant 0 : index
    %c17 = arith.constant 17 : index
    %c0_23 = arith.constant 0 : index
    %23 = vector.load %arg10[%c0_22, %c17, %c0_23] : memref<10x24x4xf32, #tpu.memory_space<vmem>>, vector<10x1x4xf32>
    tpu.vector_store %arg10[%c0_22, %c17, %c0_23], %21 {strides = array<i32>} : memref<10x24x4xf32, #tpu.memory_space<vmem>>, vector<10x1x4xf32>,
    %cst_24 = arith.constant 0.000000e+00 : f32
    %24 = vector.broadcast %cst_24 : f32 to vector<1x24x4xf32>
    %c0_i32 = arith.constant 0 : i32
    %25 = arith.cmpi eq, %arg1, %c0_i32 : i32
    %26 = arith.extui %25 : i1 to i32
    %c0_i32_25 = arith.constant 0 : i32
    %27 = arith.cmpi ne, %26, %c0_i32_25 : i32
    scf.if %27 {
      %c0_63 = arith.constant 0 : index
      %c0_64 = arith.constant 0 : index
      %c0_65 = arith.constant 0 : index
      %65 = vector.load %arg10[%c0_63, %c0_64, %c0_65] : memref<10x24x4xf32, #tpu.memory_space<vmem>>, vector<1x24x4xf32>
      tpu.vector_store %arg10[%c0_63, %c0_64, %c0_65], %24 {strides = array<i32>} : memref<10x24x4xf32, #tpu.memory_space<vmem>>, vector<1x24x4xf32>,
    } else {
    }
    %c1_i32 = arith.constant 1 : i32
    %28 = arith.cmpi eq, %arg1, %c1_i32 : i32
    %29 = arith.extui %28 : i1 to i32
    %c0_i32_26 = arith.constant 0 : i32
    %30 = arith.cmpi ne, %29, %c0_i32_26 : i32
    scf.if %30 {
      %c9 = arith.constant 9 : index
      %c0_63 = arith.constant 0 : index
      %c0_64 = arith.constant 0 : index
      %65 = vector.load %arg10[%c9, %c0_63, %c0_64] : memref<10x24x4xf32, #tpu.memory_space<vmem>>, vector<1x24x4xf32>
      tpu.vector_store %arg10[%c9, %c0_63, %c0_64], %24 {strides = array<i32>} : memref<10x24x4xf32, #tpu.memory_space<vmem>>, vector<1x24x4xf32>,
    } else {
    }
    %c0_27 = arith.constant 0 : index
    %c0_28 = arith.constant 0 : index
    %c0_29 = arith.constant 0 : index
    %31 = vector.load %arg10[%c0_27, %c0_28, %c0_29] : memref<10x24x4xf32, #tpu.memory_space<vmem>>, vector<8x16x4xf32>
    %32 = vector.shape_cast %31 : vector<8x16x4xf32> to vector<128x4xf32>
    %c0_30 = arith.constant 0 : index
    %c1_31 = arith.constant 1 : index
    %c0_32 = arith.constant 0 : index
    %33 = vector.load %arg10[%c0_30, %c1_31, %c0_32] : memref<10x24x4xf32, #tpu.memory_space<vmem>>, vector<8x16x4xf32>
    %34 = vector.shape_cast %33 : vector<8x16x4xf32> to vector<128x4xf32>
    %c0_33 = arith.constant 0 : index
    %c2 = arith.constant 2 : index
    %c0_34 = arith.constant 0 : index
    %35 = vector.load %arg10[%c0_33, %c2, %c0_34] : memref<10x24x4xf32, #tpu.memory_space<vmem>>, vector<8x16x4xf32>
    %36 = vector.shape_cast %35 : vector<8x16x4xf32> to vector<128x4xf32>
    %c1_35 = arith.constant 1 : index
    %c0_36 = arith.constant 0 : index
    %c0_37 = arith.constant 0 : index
    %37 = vector.load %arg10[%c1_35, %c0_36, %c0_37] : memref<10x24x4xf32, #tpu.memory_space<vmem>>, vector<8x16x4xf32>
    %38 = vector.shape_cast %37 : vector<8x16x4xf32> to vector<128x4xf32>
    %c1_38 = arith.constant 1 : index
    %c1_39 = arith.constant 1 : index
    %c0_40 = arith.constant 0 : index
    %39 = vector.load %arg10[%c1_38, %c1_39, %c0_40] : memref<10x24x4xf32, #tpu.memory_space<vmem>>, vector<8x16x4xf32>
    %40 = vector.shape_cast %39 : vector<8x16x4xf32> to vector<128x4xf32>
    %c1_41 = arith.constant 1 : index
    %c2_42 = arith.constant 2 : index
    %c0_43 = arith.constant 0 : index
    %41 = vector.load %arg10[%c1_41, %c2_42, %c0_43] : memref<10x24x4xf32, #tpu.memory_space<vmem>>, vector<8x16x4xf32>
    %42 = vector.shape_cast %41 : vector<8x16x4xf32> to vector<128x4xf32>
    %c2_44 = arith.constant 2 : index
    %c0_45 = arith.constant 0 : index
    %c0_46 = arith.constant 0 : index
    %43 = vector.load %arg10[%c2_44, %c0_45, %c0_46] : memref<10x24x4xf32, #tpu.memory_space<vmem>>, vector<8x16x4xf32>
    %44 = vector.shape_cast %43 : vector<8x16x4xf32> to vector<128x4xf32>
    %c2_47 = arith.constant 2 : index
    %c1_48 = arith.constant 1 : index
    %c0_49 = arith.constant 0 : index
    %45 = vector.load %arg10[%c2_47, %c1_48, %c0_49] : memref<10x24x4xf32, #tpu.memory_space<vmem>>, vector<8x16x4xf32>
    %46 = vector.shape_cast %45 : vector<8x16x4xf32> to vector<128x4xf32>
    %c2_50 = arith.constant 2 : index
    %c2_51 = arith.constant 2 : index
    %c0_52 = arith.constant 0 : index
    %47 = vector.load %arg10[%c2_50, %c2_51, %c0_52] : memref<10x24x4xf32, #tpu.memory_space<vmem>>, vector<8x16x4xf32>
    %48 = vector.shape_cast %47 : vector<8x16x4xf32> to vector<128x4xf32>
    %49 = tpu.concatenate %32, %34, %36, %38, %40, %42, %44, %46, %48 in 1 : vector<128x4xf32>, vector<128x4xf32>, vector<128x4xf32>, vector<128x4xf32>, vector<128x4xf32>, vector<128x4xf32>, vector<128x4xf32>, vector<128x4xf32>, vector<128x4xf32> -> vector<128x36xf32>
    %c0_53 = arith.constant 0 : index
    %c0_54 = arith.constant 0 : index
    %50 = vector.load %arg7[%c0_53, %c0_54] : memref<36x4xf32, #tpu.memory_space<vmem>>, vector<36x4xf32>
    %cst_55 = arith.constant dense<0.000000e+00> : vector<128x4xf32>
    %51 = tpu.matmul %49, %50, %cst_55 {dimension_numbers = #tpu.dot_dimension_numbers<[1], [0], [0], [1], [0, 0, 1, 1], [], []>} : vector<128x36xf32>, vector<36x4xf32>, vector<128x4xf32> -> vector<128x4xf32>
    %c0_56 = arith.constant 0 : index
    %c0_57 = arith.constant 0 : index
    %52 = vector.load %arg8[%c0_56, %c0_57] : memref<1x4xf32, #tpu.memory_space<vmem>>, vector<1x4xf32>
    %53 = vector.broadcast %52 : vector<1x4xf32> to vector<128x4xf32>
    %54 = arith.addf %51, %53 : vector<128x4xf32>
    %55 = arith.negf %54 : vector<128x4xf32>
    %56 = math.exp %55 : vector<128x4xf32>
    %cst_58 = arith.constant 1.000000e+00 : f32
    %57 = vector.broadcast %cst_58 : f32 to vector<128x4xf32>
    %58 = arith.addf %57, %56 : vector<128x4xf32>
    %59 = arith.divf %57, %58 : vector<128x4xf32>
    %60 = arith.mulf %54, %59 : vector<128x4xf32>
    %61 = vector.shape_cast %60 : vector<128x4xf32> to vector<8x16x4xf32>
    %c0_59 = arith.constant 0 : index
    %c0_60 = arith.constant 0 : index
    %c0_61 = arith.constant 0 : index
    %c0_62 = arith.constant 0 : index
    %62 = vector.load %arg9[%c0_59, %c0_60, %c0_61, %c0_62] : memref<1x8x16x4xf32, #tpu.memory_space<vmem>>, vector<1x8x16x4xf32>
    %63 = vector.shape_cast %62 : vector<1x8x16x4xf32> to vector<8x16x4xf32>
    %64 = vector.shape_cast %61 : vector<8x16x4xf32> to vector<1x8x16x4xf32>
    tpu.vector_store %arg9[%c0_59, %c0_60, %c0_61, %c0_62], %64 {strides = array<i32>} : memref<1x8x16x4xf32, #tpu.memory_space<vmem>>, vector<1x8x16x4xf32>,
    return
  }
  func.func @transform_0(%arg0: i32, %arg1: i32) -> (i32, i32, i32, i32) {
    %c0_i32 = arith.constant 0 : i32
    %c0_i32_0 = arith.constant 0 : i32
    %c0_i32_1 = arith.constant 0 : i32
    return %arg0, %arg1, %c0_i32, %c0_i32_0 : i32, i32, i32, i32
  }
  func.func @transform_1(%arg0: i32, %arg1: i32) -> (i32, i32, i32, i32) {
    %c8_i32 = arith.constant 8 : i32
    %0 = arith.muli %arg1, %c8_i32 : i32
    %c1_i32 = arith.constant 1 : i32
    %1 = arith.subi %0, %c1_i32 : i32
    %c0_i32 = arith.constant 0 : i32
    %2 = arith.maxsi %1, %c0_i32 : i32
    %c0_i32_0 = arith.constant 0 : i32
    %c0_i32_1 = arith.constant 0 : i32
    %c0_i32_2 = arith.constant 0 : i32
    return %arg0, %2, %c0_i32_0, %c0_i32_1 : i32, i32, i32, i32
  }
  func.func @transform_2(%arg0: i32, %arg1: i32) -> (i32, i32, i32, i32) {
    %c1_i32 = arith.constant 1 : i32
    %0 = arith.addi %arg1, %c1_i32 : i32
    %c8_i32 = arith.constant 8 : i32
    %1 = arith.muli %0, %c8_i32 : i32
    %c15_i32 = arith.constant 15 : i32
    %2 = arith.minsi %1, %c15_i32 : i32
    %c0_i32 = arith.constant 0 : i32
    %c0_i32_0 = arith.constant 0 : i32
    %c0_i32_1 = arith.constant 0 : i32
    return %arg0, %2, %c0_i32, %c0_i32_0 : i32, i32, i32, i32
  }
  func.func @transform_3(%arg0: i32, %arg1: i32) -> (i32, i32) {
    %c0_i32 = arith.constant 0 : i32
    %c0_i32_0 = arith.constant 0 : i32
    %c0_i32_1 = arith.constant 0 : i32
    return %c0_i32, %c0_i32_0 : i32, i32
  }
  func.func @transform_4(%arg0: i32, %arg1: i32) -> (i32, i32) {
    %c0_i32 = arith.constant 0 : i32
    %c0_i32_0 = arith.constant 0 : i32
    %c0_i32_1 = arith.constant 0 : i32
    return %c0_i32, %c0_i32_0 : i32, i32
  }
  func.func @transform_5(%arg0: i32, %arg1: i32) -> (i32, i32) {
    %c0_i32 = arith.constant 0 : i32
    %c0_i32_0 = arith.constant 0 : i32
    %c0_i32_1 = arith.constant 0 : i32
    return %c0_i32, %c0_i32_0 : i32, i32
  }
  func.func @transform_6(%arg0: i32, %arg1: i32) -> (i32, i32) {
    %c0_i32 = arith.constant 0 : i32
    %c0_i32_0 = arith.constant 0 : i32
    %c0_i32_1 = arith.constant 0 : i32
    return %c0_i32, %c0_i32_0 : i32, i32
  }
  func.func @transform_7(%arg0: i32, %arg1: i32) -> (i32, i32, i32, i32) {
    %c0_i32 = arith.constant 0 : i32
    %c0_i32_0 = arith.constant 0 : i32
    %c0_i32_1 = arith.constant 0 : i32
    return %arg0, %arg1, %c0_i32, %c0_i32_0 : i32, i32, i32, i32
  }
}

module attributes {stable_mosaic.version = 11 : i64} {
  func.func @kernel(%arg0: i32, %arg1: i32, %arg2: memref<1x8x16x4xf32, #tpu.memory_space<vmem>>, %arg3: memref<1x1x16x4xf32, #tpu.memory_space<vmem>>, %arg4: memref<1x1x16x4xf32, #tpu.memory_space<vmem>>, %arg5: memref<4x4xf32, #tpu.memory_space<vmem>>, %arg6: memref<1x4xf32, #tpu.memory_space<vmem>>, %arg7: memref<36x4xf32, #tpu.memory_space<vmem>>, %arg8: memref<1x4xf32, #tpu.memory_space<vmem>>, %arg9: memref<1x8x16x4xf32, #tpu.memory_space<vmem>>, %arg10: memref<10x24x4xf32, #tpu.memory_space<vmem>>) attributes {dimension_semantics = [#tpu.dimension_semantics<parallel>, #tpu.dimension_semantics<parallel>], iteration_bounds = array<i64: 2, 2>, scalar_prefetch = 0 : i64, scratch_operands = 1 : i64, tpu.core_type = #tpu.core_type<tc>, window_params = [{transform_indices = @transform_0, window_bounds = array<i64: 1, 8, 16, 4>}, {transform_indices = @transform_1, window_bounds = array<i64: 1, 1, 16, 4>}, {transform_indices = @transform_2, window_bounds = array<i64: 1, 1, 16, 4>}, {pipeline_mode = #tpu.pipeline_mode<synchronous>, transform_indices = @transform_3, window_bounds = array<i64: 4, 4>}, {pipeline_mode = #tpu.pipeline_mode<synchronous>, transform_indices = @transform_4, window_bounds = array<i64: 1, 4>}, {pipeline_mode = #tpu.pipeline_mode<synchronous>, transform_indices = @transform_5, window_bounds = array<i64: 36, 4>}, {pipeline_mode = #tpu.pipeline_mode<synchronous>, transform_indices = @transform_6, window_bounds = array<i64: 1, 4>}, {transform_indices = @transform_7, window_bounds = array<i64: 1, 8, 16, 4>}]} {
    %c0 = arith.constant 0 : index
    %c0_0 = arith.constant 0 : index
    %c0_1 = arith.constant 0 : index
    %c0_2 = arith.constant 0 : index
    %0 = vector.load %arg3[%c0, %c0_0, %c0_1, %c0_2] : memref<1x1x16x4xf32, #tpu.memory_space<vmem>>, vector<1x1x16x4xf32>
    %1 = vector.shape_cast %0 : vector<1x1x16x4xf32> to vector<1x16x4xf32>
    %c0_3 = arith.constant 0 : index
    %c0_4 = arith.constant 0 : index
    %c0_5 = arith.constant 0 : index
    %c0_6 = arith.constant 0 : index
    %2 = vector.load %arg2[%c0_3, %c0_4, %c0_5, %c0_6] : memref<1x8x16x4xf32, #tpu.memory_space<vmem>>, vector<1x8x16x4xf32>
    %3 = vector.shape_cast %2 : vector<1x8x16x4xf32> to vector<8x16x4xf32>
    %c0_7 = arith.constant 0 : index
    %c0_8 = arith.constant 0 : index
    %c0_9 = arith.constant 0 : index
    %c0_10 = arith.constant 0 : index
    %4 = vector.load %arg4[%c0_7, %c0_8, %c0_9, %c0_10] : memref<1x1x16x4xf32, #tpu.memory_space<vmem>>, vector<1x1x16x4xf32>
    %5 = vector.shape_cast %4 : vector<1x1x16x4xf32> to vector<1x16x4xf32>
    %6 = tpu.concatenate %1, %3, %5 in 0 : vector<1x16x4xf32>, vector<8x16x4xf32>, vector<1x16x4xf32> -> vector<10x16x4xf32>
    %7 = vector.shape_cast %6 : vector<10x16x4xf32> to vector<160x4xf32>
    %c0_11 = arith.constant 0 : index
    %c0_12 = arith.constant 0 : index
    %8 = vector.load %arg5[%c0_11, %c0_12] : memref<4x4xf32, #tpu.memory_space<vmem>>, vector<4x4xf32>
    %cst = arith.constant dense<0.000000e+00> : vector<160x4xf32>
    %9 = tpu.matmul %7, %8, %cst {dimension_numbers = #tpu.dot_dimension_numbers<[1], [0], [0], [1], [0, 0, 1, 1], [], []>} : vector<160x4xf32>, vector<4x4xf32>, vector<160x4xf32> -> vector<160x4xf32>
    %c0_13 = arith.constant 0 : index
    %c0_14 = arith.constant 0 : index
    %10 = vector.load %arg6[%c0_13, %c0_14] : memref<1x4xf32, #tpu.memory_space<vmem>>, vector<1x4xf32>
    %11 = vector.broadcast %10 : vector<1x4xf32> to vector<160x4xf32>
    %12 = arith.addf %9, %11 : vector<160x4xf32>
    %13 = arith.negf %12 : vector<160x4xf32>
    %14 = math.exp %13 : vector<160x4xf32>
    %cst_15 = arith.constant 1.000000e+00 : f32
    %15 = vector.broadcast %cst_15 : f32 to vector<160x4xf32>
    %16 = arith.addf %15, %14 : vector<160x4xf32>
    %17 = arith.divf %15, %16 : vector<160x4xf32>
    %18 = arith.mulf %12, %17 : vector<160x4xf32>
    %19 = vector.shape_cast %18 : vector<160x4xf32> to vector<10x16x4xf32>
    %c0_16 = arith.constant 0 : index
    %c1 = arith.constant 1 : index
    %c0_17 = arith.constant 0 : index
    %20 = vector.load %arg10[%c0_16, %c1, %c0_17] : memref<10x24x4xf32, #tpu.memory_space<vmem>>, vector<10x16x4xf32>
    tpu.vector_store %arg10[%c0_16, %c1, %c0_17], %19 {strides = array<i32>} : memref<10x24x4xf32, #tpu.memory_space<vmem>>, vector<10x16x4xf32>,
    %cst_18 = arith.constant 0.000000e+00 : f32
    %21 = vector.broadcast %cst_18 : f32 to vector<10x1x4xf32>
    %c0_19 = arith.constant 0 : index
    %c0_20 = arith.constant 0 : index
    %c0_21 = arith.constant 0 : index
    %22 = vector.load %arg10[%c0_19, %c0_20, %c0_21] : memref<10x24x4xf32, #tpu.memory_space<vmem>>, vector<10x1x4xf32>
    tpu.vector_store %arg10[%c0_19, %c0_20, %c0_21], %21 {strides = array<i32>} : memref<10x24x4xf32, #tpu.memory_space<vmem>>, vector<10x1x4xf32>,
    %c0_22 = arith.constant 0 : index
    %c17 = arith.constant 17 : index
    %c0_23 = arith.constant 0 : index
    %23 = vector.load %arg10[%c0_22, %c17, %c0_23] : memref<10x24x4xf32, #tpu.memory_space<vmem>>, vector<10x1x4xf32>
    tpu.vector_store %arg10[%c0_22, %c17, %c0_23], %21 {strides = array<i32>} : memref<10x24x4xf32, #tpu.memory_space<vmem>>, vector<10x1x4xf32>,
    %cst_24 = arith.constant 0.000000e+00 : f32
    %24 = vector.broadcast %cst_24 : f32 to vector<1x24x4xf32>
    %c0_i32 = arith.constant 0 : i32
    %25 = arith.cmpi eq, %arg1, %c0_i32 : i32
    %26 = arith.extui %25 : i1 to i32
    %c0_i32_25 = arith.constant 0 : i32
    %27 = arith.cmpi ne, %26, %c0_i32_25 : i32
    scf.if %27 {
      %c0_63 = arith.constant 0 : index
      %c0_64 = arith.constant 0 : index
      %c0_65 = arith.constant 0 : index
      %65 = vector.load %arg10[%c0_63, %c0_64, %c0_65] : memref<10x24x4xf32, #tpu.memory_space<vmem>>, vector<1x24x4xf32>
      tpu.vector_store %arg10[%c0_63, %c0_64, %c0_65], %24 {strides = array<i32>} : memref<10x24x4xf32, #tpu.memory_space<vmem>>, vector<1x24x4xf32>,
    } else {
    }
    %c1_i32 = arith.constant 1 : i32
    %28 = arith.cmpi eq, %arg1, %c1_i32 : i32
    %29 = arith.extui %28 : i1 to i32
    %c0_i32_26 = arith.constant 0 : i32
    %30 = arith.cmpi ne, %29, %c0_i32_26 : i32
    scf.if %30 {
      %c9 = arith.constant 9 : index
      %c0_63 = arith.constant 0 : index
      %c0_64 = arith.constant 0 : index
      %65 = vector.load %arg10[%c9, %c0_63, %c0_64] : memref<10x24x4xf32, #tpu.memory_space<vmem>>, vector<1x24x4xf32>
      tpu.vector_store %arg10[%c9, %c0_63, %c0_64], %24 {strides = array<i32>} : memref<10x24x4xf32, #tpu.memory_space<vmem>>, vector<1x24x4xf32>,
    } else {
    }
    %c0_27 = arith.constant 0 : index
    %c0_28 = arith.constant 0 : index
    %c0_29 = arith.constant 0 : index
    %31 = vector.load %arg10[%c0_27, %c0_28, %c0_29] : memref<10x24x4xf32, #tpu.memory_space<vmem>>, vector<8x16x4xf32>
    %32 = vector.shape_cast %31 : vector<8x16x4xf32> to vector<128x4xf32>
    %c0_30 = arith.constant 0 : index
    %c1_31 = arith.constant 1 : index
    %c0_32 = arith.constant 0 : index
    %33 = vector.load %arg10[%c0_30, %c1_31, %c0_32] : memref<10x24x4xf32, #tpu.memory_space<vmem>>, vector<8x16x4xf32>
    %34 = vector.shape_cast %33 : vector<8x16x4xf32> to vector<128x4xf32>
    %c0_33 = arith.constant 0 : index
    %c2 = arith.constant 2 : index
    %c0_34 = arith.constant 0 : index
    %35 = vector.load %arg10[%c0_33, %c2, %c0_34] : memref<10x24x4xf32, #tpu.memory_space<vmem>>, vector<8x16x4xf32>
    %36 = vector.shape_cast %35 : vector<8x16x4xf32> to vector<128x4xf32>
    %c1_35 = arith.constant 1 : index
    %c0_36 = arith.constant 0 : index
    %c0_37 = arith.constant 0 : index
    %37 = vector.load %arg10[%c1_35, %c0_36, %c0_37] : memref<10x24x4xf32, #tpu.memory_space<vmem>>, vector<8x16x4xf32>
    %38 = vector.shape_cast %37 : vector<8x16x4xf32> to vector<128x4xf32>
    %c1_38 = arith.constant 1 : index
    %c1_39 = arith.constant 1 : index
    %c0_40 = arith.constant 0 : index
    %39 = vector.load %arg10[%c1_38, %c1_39, %c0_40] : memref<10x24x4xf32, #tpu.memory_space<vmem>>, vector<8x16x4xf32>
    %40 = vector.shape_cast %39 : vector<8x16x4xf32> to vector<128x4xf32>
    %c1_41 = arith.constant 1 : index
    %c2_42 = arith.constant 2 : index
    %c0_43 = arith.constant 0 : index
    %41 = vector.load %arg10[%c1_41, %c2_42, %c0_43] : memref<10x24x4xf32, #tpu.memory_space<vmem>>, vector<8x16x4xf32>
    %42 = vector.shape_cast %41 : vector<8x16x4xf32> to vector<128x4xf32>
    %c2_44 = arith.constant 2 : index
    %c0_45 = arith.constant 0 : index
    %c0_46 = arith.constant 0 : index
    %43 = vector.load %arg10[%c2_44, %c0_45, %c0_46] : memref<10x24x4xf32, #tpu.memory_space<vmem>>, vector<8x16x4xf32>
    %44 = vector.shape_cast %43 : vector<8x16x4xf32> to vector<128x4xf32>
    %c2_47 = arith.constant 2 : index
    %c1_48 = arith.constant 1 : index
    %c0_49 = arith.constant 0 : index
    %45 = vector.load %arg10[%c2_47, %c1_48, %c0_49] : memref<10x24x4xf32, #tpu.memory_space<vmem>>, vector<8x16x4xf32>
    %46 = vector.shape_cast %45 : vector<8x16x4xf32> to vector<128x4xf32>
    %c2_50 = arith.constant 2 : index
    %c2_51 = arith.constant 2 : index
    %c0_52 = arith.constant 0 : index
    %47 = vector.load %arg10[%c2_50, %c2_51, %c0_52] : memref<10x24x4xf32, #tpu.memory_space<vmem>>, vector<8x16x4xf32>
    %48 = vector.shape_cast %47 : vector<8x16x4xf32> to vector<128x4xf32>
    %49 = tpu.concatenate %32, %34, %36, %38, %40, %42, %44, %46, %48 in 1 : vector<128x4xf32>, vector<128x4xf32>, vector<128x4xf32>, vector<128x4xf32>, vector<128x4xf32>, vector<128x4xf32>, vector<128x4xf32>, vector<128x4xf32>, vector<128x4xf32> -> vector<128x36xf32>
    %c0_53 = arith.constant 0 : index
    %c0_54 = arith.constant 0 : index
    %50 = vector.load %arg7[%c0_53, %c0_54] : memref<36x4xf32, #tpu.memory_space<vmem>>, vector<36x4xf32>
    %cst_55 = arith.constant dense<0.000000e+00> : vector<128x4xf32>
    %51 = tpu.matmul %49, %50, %cst_55 {dimension_numbers = #tpu.dot_dimension_numbers<[1], [0], [0], [1], [0, 0, 1, 1], [], []>} : vector<128x36xf32>, vector<36x4xf32>, vector<128x4xf32> -> vector<128x4xf32>
    %c0_56 = arith.constant 0 : index
    %c0_57 = arith.constant 0 : index
    %52 = vector.load %arg8[%c0_56, %c0_57] : memref<1x4xf32, #tpu.memory_space<vmem>>, vector<1x4xf32>
    %53 = vector.broadcast %52 : vector<1x4xf32> to vector<128x4xf32>
    %54 = arith.addf %51, %53 : vector<128x4xf32>
    %55 = arith.negf %54 : vector<128x4xf32>
    %56 = math.exp %55 : vector<128x4xf32>
    %cst_58 = arith.constant 1.000000e+00 : f32
    %57 = vector.broadcast %cst_58 : f32 to vector<128x4xf32>
    %58 = arith.addf %57, %56 : vector<128x4xf32>
    %59 = arith.divf %57, %58 : vector<128x4xf32>
    %60 = arith.mulf %54, %59 : vector<128x4xf32>
    %61 = vector.shape_cast %60 : vector<128x4xf32> to vector<8x16x4xf32>
    %c0_59 = arith.constant 0 : index
    %c0_60 = arith.constant 0 : index
    %c0_61 = arith.constant 0 : index
    %c0_62 = arith.constant 0 : index
    %62 = vector.load %arg9[%c0_59, %c0_60, %c0_61, %c0_62] : memref<1x8x16x4xf32, #tpu.memory_space<vmem>>, vector<1x8x16x4xf32>
    %63 = vector.shape_cast %62 : vector<1x8x16x4xf32> to vector<8x16x4xf32>
    %64 = vector.shape_cast %61 : vector<8x16x4xf32> to vector<1x8x16x4xf32>
    tpu.vector_store %arg9[%c0_59, %c0_60, %c0_61, %c0_62], %64 {strides = array<i32>} : memref<1x8x16x4xf32, #tpu.memory_space<vmem>>, vector<1x8x16x4xf32>,
    return
  }
  func.func @transform_0(%arg0: i32, %arg1: i32) -> (i32, i32, i32, i32) {
    %c0_i32 = arith.constant 0 : i32
    %c0_i32_0 = arith.constant 0 : i32
    %c0_i32_1 = arith.constant 0 : i32
    return %arg0, %arg1, %c0_i32, %c0_i32_0 : i32, i32, i32, i32
  }
  func.func @transform_1(%arg0: i32, %arg1: i32) -> (i32, i32, i32, i32) {
    %c8_i32 = arith.constant 8 : i32
    %0 = arith.muli %arg1, %c8_i32 : i32
    %c1_i32 = arith.constant 1 : i32
    %1 = arith.subi %0, %c1_i32 : i32
    %c0_i32 = arith.constant 0 : i32
    %2 = arith.maxsi %1, %c0_i32 : i32
    %c0_i32_0 = arith.constant 0 : i32
    %c0_i32_1 = arith.constant 0 : i32
    %c0_i32_2 = arith.constant 0 : i32
    return %arg0, %2, %c0_i32_0, %c0_i32_1 : i32, i32, i32, i32
  }
  func.func @transform_2(%arg0: i32, %arg1: i32) -> (i32, i32, i32, i32) {
    %c1_i32 = arith.constant 1 : i32
    %0 = arith.addi %arg1, %c1_i32 : i32
    %c8_i32 = arith.constant 8 : i32
    %1 = arith.muli %0, %c8_i32 : i32
    %c15_i32 = arith.constant 15 : i32
    %2 = arith.minsi %1, %c15_i32 : i32
    %c0_i32 = arith.constant 0 : i32
    %c0_i32_0 = arith.constant 0 : i32
    %c0_i32_1 = arith.constant 0 : i32
    return %arg0, %2, %c0_i32, %c0_i32_0 : i32, i32, i32, i32
  }
  func.func @transform_3(%arg0: i32, %arg1: i32) -> (i32, i32) {
    %c0_i32 = arith.constant 0 : i32
    %c0_i32_0 = arith.constant 0 : i32
    %c0_i32_1 = arith.constant 0 : i32
    return %c0_i32, %c0_i32_0 : i32, i32
  }
  func.func @transform_4(%arg0: i32, %arg1: i32) -> (i32, i32) {
    %c0_i32 = arith.constant 0 : i32
    %c0_i32_0 = arith.constant 0 : i32
    %c0_i32_1 = arith.constant 0 : i32
    return %c0_i32, %c0_i32_0 : i32, i32
  }
  func.func @transform_5(%arg0: i32, %arg1: i32) -> (i32, i32) {
    %c0_i32 = arith.constant 0 : i32
    %c0_i32_0 = arith.constant 0 : i32
    %c0_i32_1 = arith.constant 0 : i32
    return %c0_i32, %c0_i32_0 : i32, i32
  }
  func.func @transform_6(%arg0: i32, %arg1: i32) -> (i32, i32) {
    %c0_i32 = arith.constant 0 : i32
    %c0_i32_0 = arith.constant 0 : i32
    %c0_i32_1 = arith.constant 0 : i32
    return %c0_i32, %c0_i32_0 : i32, i32
  }
  func.func @transform_7(%arg0: i32, %arg1: i32) -> (i32, i32, i32, i32) {
    %c0_i32 = arith.constant 0 : i32
    %c0_i32_0 = arith.constant 0 : i32
    %c0_i32_1 = arith.constant 0 : i32
    return %arg0, %arg1, %c0_i32, %c0_i32_0 : i32, i32, i32, i32
  }
}

module attributes {stable_mosaic.version = 11 : i64} {
  func.func @kernel(%arg0: i32, %arg1: memref<512x8xf32, #tpu.memory_space<vmem>>, %arg2: memref<512x4xf32, #tpu.memory_space<vmem>>, %arg3: memref<512x4xf32, #tpu.memory_space<vmem>>, %arg4: memref<16x8xf32, #tpu.memory_space<vmem>>, %arg5: memref<1x8xf32, #tpu.memory_space<vmem>>, %arg6: memref<512x8xf32, #tpu.memory_space<vmem>>) attributes {dimension_semantics = [#tpu.dimension_semantics<parallel>], iteration_bounds = array<i64: 1>, scalar_prefetch = 0 : i64, scratch_operands = 0 : i64, tpu.core_type = #tpu.core_type<tc>, window_params = [{transform_indices = @transform_0, window_bounds = array<i64: 512, 8>}, {transform_indices = @transform_1, window_bounds = array<i64: 512, 4>}, {transform_indices = @transform_2, window_bounds = array<i64: 512, 4>}, {pipeline_mode = #tpu.pipeline_mode<synchronous>, transform_indices = @transform_3, window_bounds = array<i64: 16, 8>}, {pipeline_mode = #tpu.pipeline_mode<synchronous>, transform_indices = @transform_4, window_bounds = array<i64: 1, 8>}, {transform_indices = @transform_5, window_bounds = array<i64: 512, 8>}]} {
    %c0 = arith.constant 0 : index
    %c0_0 = arith.constant 0 : index
    %0 = vector.load %arg1[%c0, %c0_0] : memref<512x8xf32, #tpu.memory_space<vmem>>, vector<512x8xf32>
    %c0_1 = arith.constant 0 : index
    %c0_2 = arith.constant 0 : index
    %1 = vector.load %arg2[%c0_1, %c0_2] : memref<512x4xf32, #tpu.memory_space<vmem>>, vector<512x4xf32>
    %c0_3 = arith.constant 0 : index
    %c0_4 = arith.constant 0 : index
    %2 = vector.load %arg3[%c0_3, %c0_4] : memref<512x4xf32, #tpu.memory_space<vmem>>, vector<512x4xf32>
    %3 = tpu.concatenate %0, %1, %2 in 1 : vector<512x8xf32>, vector<512x4xf32>, vector<512x4xf32> -> vector<512x16xf32>
    %c0_5 = arith.constant 0 : index
    %c0_6 = arith.constant 0 : index
    %4 = vector.load %arg4[%c0_5, %c0_6] : memref<16x8xf32, #tpu.memory_space<vmem>>, vector<16x8xf32>
    %cst = arith.constant dense<0.000000e+00> : vector<512x8xf32>
    %5 = tpu.matmul %3, %4, %cst {dimension_numbers = #tpu.dot_dimension_numbers<[1], [0], [0], [1], [0, 0, 1, 1], [], []>} : vector<512x16xf32>, vector<16x8xf32>, vector<512x8xf32> -> vector<512x8xf32>
    %c0_7 = arith.constant 0 : index
    %c0_8 = arith.constant 0 : index
    %6 = vector.load %arg5[%c0_7, %c0_8] : memref<1x8xf32, #tpu.memory_space<vmem>>, vector<1x8xf32>
    %7 = vector.broadcast %6 : vector<1x8xf32> to vector<512x8xf32>
    %8 = arith.addf %5, %7 : vector<512x8xf32>
    %9 = arith.negf %8 : vector<512x8xf32>
    %10 = math.exp %9 : vector<512x8xf32>
    %cst_9 = arith.constant 1.000000e+00 : f32
    %11 = vector.broadcast %cst_9 : f32 to vector<512x8xf32>
    %12 = arith.addf %11, %10 : vector<512x8xf32>
    %13 = arith.divf %11, %12 : vector<512x8xf32>
    %14 = arith.mulf %8, %13 : vector<512x8xf32>
    %c0_10 = arith.constant 0 : index
    %c0_11 = arith.constant 0 : index
    %15 = vector.load %arg6[%c0_10, %c0_11] : memref<512x8xf32, #tpu.memory_space<vmem>>, vector<512x8xf32>
    tpu.vector_store %arg6[%c0_10, %c0_11], %14 {strides = array<i32>} : memref<512x8xf32, #tpu.memory_space<vmem>>, vector<512x8xf32>,
    return
  }
  func.func @transform_0(%arg0: i32) -> (i32, i32) {
    %c0_i32 = arith.constant 0 : i32
    %c0_i32_0 = arith.constant 0 : i32
    return %arg0, %c0_i32 : i32, i32
  }
  func.func @transform_1(%arg0: i32) -> (i32, i32) {
    %c0_i32 = arith.constant 0 : i32
    %c0_i32_0 = arith.constant 0 : i32
    return %arg0, %c0_i32 : i32, i32
  }
  func.func @transform_2(%arg0: i32) -> (i32, i32) {
    %c0_i32 = arith.constant 0 : i32
    %c0_i32_0 = arith.constant 0 : i32
    return %arg0, %c0_i32 : i32, i32
  }
  func.func @transform_3(%arg0: i32) -> (i32, i32) {
    %c0_i32 = arith.constant 0 : i32
    %c0_i32_0 = arith.constant 0 : i32
    %c0_i32_1 = arith.constant 0 : i32
    return %c0_i32, %c0_i32_0 : i32, i32
  }
  func.func @transform_4(%arg0: i32) -> (i32, i32) {
    %c0_i32 = arith.constant 0 : i32
    %c0_i32_0 = arith.constant 0 : i32
    %c0_i32_1 = arith.constant 0 : i32
    return %c0_i32, %c0_i32_0 : i32, i32
  }
  func.func @transform_5(%arg0: i32) -> (i32, i32) {
    %c0_i32 = arith.constant 0 : i32
    %c0_i32_0 = arith.constant 0 : i32
    return %arg0, %c0_i32 : i32, i32
  }
}

</mosaic_0001>

<bundles_post_ra>
// kernel: c2f_forward.4
= control target key start
LH: loop header
LB: loop body
LE: loop exit
PB: predicated region body
PF: predicated region fallthrough
CT: control target
= control target key end

     0   :  { %vm86_vm0 = vcmask 64512   ;;  %s2653_s1 = inlined_call_operand.vmem [shape: f32[8,8], index: 1, kind: input, shape index: {}]   ;;  %s2654_s0 = inlined_call_operand.vmem [shape: f32[512,8], index: 0, kind: input, shape index: {}]   ;;  %s2655_s2 = inlined_call_operand.vmem [shape: f32[1,8], index: 2, kind: input, shape index: {}]   ;;  %s2656_s3 = inlined_call_operand.vmem [shape: f32[512,8], index: 3, kind: output, shape index: {}]  }
   0x1   :  { %v78_v0 = vld [vmem:[%s2653_s1] sm:$0xff]  ;;  %v15_v3 = vld [vmem:[%s2654_s0 + $0x8] sm:$0xff]  ;;  %v16_v5 = vld [vmem:[%s2654_s0 + $0x10] sm:$0xff] }
   0x2   :  { %v14_v1 = vld [vmem:[%s2654_s0] sm:$0xff]  ;;  %1374 = vmatprep.subr.mxu0 %v78_v0  ;;  %1472 = vmatprep.subr.mxu1 %v78_v0  ;;  %v47_v4 = vld [vmem:[%s2654_s0 + $0x108] sm:$0xff]  ;;  %v48_v6 = vld [vmem:[%s2654_s0 + $0x110] sm:$0xff] }
   0x3   :  { %v46_v2 = vld [vmem:[%s2654_s0 + $0x100] sm:$0xff]  ;;  %1375 = vmatpush3.msra.mxu0 %v78_v0  ;;  %1473 = vmatpush3.msra.mxu1 %v78_v0  ;;  %v17_v7 = vld [vmem:[%s2654_s0 + $0x18] sm:$0xff]  ;;  %v19_v11 = vld [vmem:[%s2654_s0 + $0x28] sm:$0xff] }
   0x4   :  { %1376 = vmatprep.mubr.msk.f32.mxu0 %vm86_vm0, %v14_v1  ;;  %1424 = vmatprep.mubr.msk.f32.mxu1 %vm86_vm0, %v46_v2  ;;  %v49_v8 = vld [vmem:[%s2654_s0 + $0x118] sm:$0xff]  ;;  %v18_v9 = vld [vmem:[%s2654_s0 + $0x20] sm:$0xff]  ;;  %v51_v12 = vld [vmem:[%s2654_s0 + $0x128] sm:$0xff] }
   0x5   :  { %1377 = vmatmul.mubr.msk.f32.vlgmr.msra.gmra.mrb[0].mxu0 %vm86_vm0, %v15_v3  ;;  %1425 = vmatmul.mubr.msk.f32.vlgmr.msra.gmra.mrb[0].mxu1 %vm86_vm0, %v47_v4  ;;  %v50_v10 = vld [vmem:[%s2654_s0 + $0x120] sm:$0xff]  ;;  %v20_v13 = vld [vmem:[%s2654_s0 + $0x30] sm:$0xff]  ;;  %v21_v15 = vld [vmem:[%s2654_s0 + $0x38] sm:$0xff] }
   0x6   :  { %1379 = vmatprep.mubr.msk.f32.mxu0 %vm86_vm0, %v16_v5  ;;  %1427 = vmatprep.mubr.msk.f32.mxu1 %vm86_vm0, %v48_v6  ;;  %v52_v14 = vld [vmem:[%s2654_s0 + $0x130] sm:$0xff]  ;;  %v53_v16 = vld [vmem:[%s2654_s0 + $0x138] sm:$0xff]  ;;  %v22_v17 = vld [vmem:[%s2654_s0 + $0x40] sm:$0xff] }
   0x7   :  { %v54_v18 = vld [vmem:[%s2654_s0 + $0x140] sm:$0xff]  ;;  %v23_v19 = vld [vmem:[%s2654_s0 + $0x48] sm:$0xff]  ;;  %v24_v21 = vld [vmem:[%s2654_s0 + $0x50] sm:$0xff] }
   0x8   :  { %v55_v20 = vld [vmem:[%s2654_s0 + $0x148] sm:$0xff]  ;;  %v56_v22 = vld [vmem:[%s2654_s0 + $0x150] sm:$0xff]  ;;  %v25_v23 = vld [vmem:[%s2654_s0 + $0x58] sm:$0xff] }
   0x9   :  { %1380 = vmatmul.mubr.msk.f32.gmra.mrb[2].mxu0 %vm86_vm0, %v17_v7  ;;  %1428 = vmatmul.mubr.msk.f32.gmra.mrb[2].mxu1 %vm86_vm0, %v49_v8  ;;  %v57_v24 = vld [vmem:[%s2654_s0 + $0x158] sm:$0xff]  ;;  %v26_v25 = vld [vmem:[%s2654_s0 + $0x60] sm:$0xff]  ;;  %v27_v27 = vld [vmem:[%s2654_s0 + $0x68] sm:$0xff] }
   0xa   :  { %1382 = vmatprep.mubr.msk.f32.mxu0 %vm86_vm0, %v18_v9  ;;  %1430 = vmatprep.mubr.msk.f32.mxu1 %vm86_vm0, %v50_v10  ;;  %v58_v26 = vld [vmem:[%s2654_s0 + $0x160] sm:$0xff]  ;;  %v59_v28 = vld [vmem:[%s2654_s0 + $0x168] sm:$0xff]  ;;  %v28_v29 = vld [vmem:[%s2654_s0 + $0x70] sm:$0xff] }
   0xb   :  { %v60_v30 = vld [vmem:[%s2654_s0 + $0x170] sm:$0xff]  ;;  %v29_v31 = vld [vmem:[%s2654_s0 + $0x78] sm:$0xff]  ;;  %v30_v33 = vld [vmem:[%s2654_s0 + $0x80] sm:$0xff] }
   0xc   :  { %v61_v32 = vld [vmem:[%s2654_s0 + $0x178] sm:$0xff]  ;;  %v62_v34 = vld [vmem:[%s2654_s0 + $0x180] sm:$0xff]  ;;  %v31_v35 = vld [vmem:[%s2654_s0 + $0x88] sm:$0xff] }
   0xd   :  { %1383 = vmatmul.mubr.msk.f32.gmra.mrb[4].mxu0 %vm86_vm0, %v19_v11  ;;  %1431 = vmatmul.mubr.msk.f32.gmra.mrb[4].mxu1 %vm86_vm0, %v51_v12  ;;  %v63_v36 = vld [vmem:[%s2654_s0 + $0x188] sm:$0xff]  ;;  %v32_v37 = vld [vmem:[%s2654_s0 + $0x90] sm:$0xff]  ;;  %v33_v39 = vld [vmem:[%s2654_s0 + $0x98] sm:$0xff] }
   0xe   :  { %1385 = vmatprep.mubr.msk.f32.mxu0 %vm86_vm0, %v20_v13  ;;  %1433 = vmatprep.mubr.msk.f32.mxu1 %vm86_vm0, %v52_v14  ;;  %v64_v38 = vld [vmem:[%s2654_s0 + $0x190] sm:$0xff]  ;;  %v65_v40 = vld [vmem:[%s2654_s0 + $0x198] sm:$0xff]  ;;  %v34_v41 = vld [vmem:[%s2654_s0 + $0xa0] sm:$0xff] }
   0xf   :  { %v66_v42 = vld [vmem:[%s2654_s0 + $0x1a0] sm:$0xff]  ;;  %v35_v43 = vld [vmem:[%s2654_s0 + $0xa8] sm:$0xff]  ;;  %v36_v45 = vld [vmem:[%s2654_s0 + $0xb0] sm:$0xff] }
  0x10   :  { %v67_v44 = vld [vmem:[%s2654_s0 + $0x1a8] sm:$0xff]  ;;  %v68_v46 = vld [vmem:[%s2654_s0 + $0x1b0] sm:$0xff]  ;;  %v37_v47 = vld [vmem:[%s2654_s0 + $0xb8] sm:$0xff] }
  0x11   :  { %1386 = vmatmul.mubr.msk.f32.gmra.mrb[6].mxu0 %vm86_vm0, %v21_v15  ;;  %1434 = vmatmul.mubr.msk.f32.gmra.mrb[6].mxu1 %vm86_vm0, %v53_v16  ;;  %v69_v48 = vld [vmem:[%s2654_s0 + $0x1b8] sm:$0xff]  ;;  %v38_v49 = vld [vmem:[%s2654_s0 + $0xc0] sm:$0xff]  ;;  %v39_v51 = vld [vmem:[%s2654_s0 + $0xc8] sm:$0xff] }
  0x12   :  { %1388 = vmatprep.mubr.msk.f32.mxu0 %vm86_vm0, %v22_v17  ;;  %1436 = vmatprep.mubr.msk.f32.mxu1 %vm86_vm0, %v54_v18  ;;  %v70_v50 = vld [vmem:[%s2654_s0 + $0x1c0] sm:$0xff]  ;;  %v71_v52 = vld [vmem:[%s2654_s0 + $0x1c8] sm:$0xff]  ;;  %v40_v53 = vld [vmem:[%s2654_s0 + $0xd0] sm:$0xff] }
  0x13   :  { %v72_v54 = vld [vmem:[%s2654_s0 + $0x1d0] sm:$0xff]  ;;  %v41_v55 = vld [vmem:[%s2654_s0 + $0xd8] sm:$0xff]  ;;  %v42_v57 = vld [vmem:[%s2654_s0 + $0xe0] sm:$0xff] }
  0x14   :  { %v73_v56 = vld [vmem:[%s2654_s0 + $0x1d8] sm:$0xff]  ;;  %v74_v58 = vld [vmem:[%s2654_s0 + $0x1e0] sm:$0xff]  ;;  %v43_v59 = vld [vmem:[%s2654_s0 + $0xe8] sm:$0xff] }
  0x15   :  { %1389 = vmatmul.mubr.msk.f32.gmra.mrb[8].mxu0 %vm86_vm0, %v23_v19  ;;  %1437 = vmatmul.mubr.msk.f32.gmra.mrb[8].mxu1 %vm86_vm0, %v55_v20  ;;  %v75_v60 = vld [vmem:[%s2654_s0 + $0x1e8] sm:$0xff]  ;;  %v44_v61 = vld [vmem:[%s2654_s0 + $0xf0] sm:$0xff]  ;;  %v45_v63 = vld [vmem:[%s2654_s0 + $0xf8] sm:$0xff] }
  0x16   :  { %1391 = vmatprep.mubr.msk.f32.mxu0 %vm86_vm0, %v24_v21  ;;  %1439 = vmatprep.mubr.msk.f32.mxu1 %vm86_vm0, %v56_v22  ;;  %v76_v62 = vld [vmem:[%s2654_s0 + $0x1f0] sm:$0xff]  ;;  %v77_v0 = vld [vmem:[%s2654_s0 + $0x1f8] sm:$0xff]  ;;  %v2012_v1 = vld [vmem:[%s2655_s2] ss:$0 sm:$0xff] }
  0x19   :  { %1392 = vmatmul.mubr.msk.f32.gmra.mrb[10].mxu0 %vm86_vm0, %v25_v23  ;;  %1440 = vmatmul.mubr.msk.f32.gmra.mrb[10].mxu1 %vm86_vm0, %v57_v24 }
  0x1a   :  { %1394 = vmatprep.mubr.msk.f32.mxu0 %vm86_vm0, %v26_v25  ;;  %1442 = vmatprep.mubr.msk.f32.mxu1 %vm86_vm0, %v58_v26 }
  0x1d   :  { %1395 = vmatmul.mubr.msk.f32.gmra.mrb[12].mxu0 %vm86_vm0, %v27_v27  ;;  %1443 = vmatmul.mubr.msk.f32.gmra.mrb[12].mxu1 %vm86_vm0, %v59_v28 }
  0x1e   :  { %1397 = vmatprep.mubr.msk.f32.mxu0 %vm86_vm0, %v28_v29  ;;  %1445 = vmatprep.mubr.msk.f32.mxu1 %vm86_vm0, %v60_v30 }
  0x21   :  { %1398 = vmatmul.mubr.msk.f32.gmra.mrb[14].mxu0 %vm86_vm0, %v29_v31  ;;  %1446 = vmatmul.mubr.msk.f32.gmra.mrb[14].mxu1 %vm86_vm0, %v61_v32 }
  0x22   :  { %1400 = vmatprep.mubr.msk.f32.mxu0 %vm86_vm0, %v30_v33  ;;  %1448 = vmatprep.mubr.msk.f32.mxu1 %vm86_vm0, %v62_v34 }
  0x25   :  { %1401 = vmatmul.mubr.msk.f32.gmra.mrb[16].mxu0 %vm86_vm0, %v31_v35  ;;  %1449 = vmatmul.mubr.msk.f32.gmra.mrb[16].mxu1 %vm86_vm0, %v63_v36 }
  0x26   :  { %1403 = vmatprep.mubr.msk.f32.mxu0 %vm86_vm0, %v32_v37  ;;  %1451 = vmatprep.mubr.msk.f32.mxu1 %vm86_vm0, %v64_v38 }
  0x29   :  { %1404 = vmatmul.mubr.msk.f32.gmra.mrb[18].mxu0 %vm86_vm0, %v33_v39  ;;  %1452 = vmatmul.mubr.msk.f32.gmra.mrb[18].mxu1 %vm86_vm0, %v65_v40 }
  0x2a   :  { %1406 = vmatprep.mubr.msk.f32.mxu0 %vm86_vm0, %v34_v41  ;;  %1454 = vmatprep.mubr.msk.f32.mxu1 %vm86_vm0, %v66_v42 }
  0x2d   :  { %1407 = vmatmul.mubr.msk.f32.gmra.mrb[20].mxu0 %vm86_vm0, %v35_v43  ;;  %1455 = vmatmul.mubr.msk.f32.gmra.mrb[20].mxu1 %vm86_vm0, %v67_v44 }
  0x2e   :  { %1409 = vmatprep.mubr.msk.f32.mxu0 %vm86_vm0, %v36_v45  ;;  %1457 = vmatprep.mubr.msk.f32.mxu1 %vm86_vm0, %v68_v46 }
  0x31   :  { %1410 = vmatmul.mubr.msk.f32.gmra.mrb[22].mxu0 %vm86_vm0, %v37_v47  ;;  %1458 = vmatmul.mubr.msk.f32.gmra.mrb[22].mxu1 %vm86_vm0, %v69_v48 }
  0x32   :  { %1412 = vmatprep.mubr.msk.f32.mxu0 %vm86_vm0, %v38_v49  ;;  %1460 = vmatprep.mubr.msk.f32.mxu1 %vm86_vm0, %v70_v50 }
  0x35   :  { %1413 = vmatmul.mubr.msk.f32.gmra.mrb[24].mxu0 %vm86_vm0, %v39_v51  ;;  %1461 = vmatmul.mubr.msk.f32.gmra.mrb[24].mxu1 %vm86_vm0, %v71_v52 }
  0x36   :  { %1415 = vmatprep.mubr.msk.f32.mxu0 %vm86_vm0, %v40_v53  ;;  %1463 = vmatprep.mubr.msk.f32.mxu1 %vm86_vm0, %v72_v54 }
  0x39   :  { %1416 = vmatmul.mubr.msk.f32.gmra.mrb[26].mxu0 %vm86_vm0, %v41_v55  ;;  %1464 = vmatmul.mubr.msk.f32.gmra.mrb[26].mxu1 %vm86_vm0, %v73_v56 }
  0x3a   :  { %1418 = vmatprep.mubr.msk.f32.mxu0 %vm86_vm0, %v42_v57  ;;  %1466 = vmatprep.mubr.msk.f32.mxu1 %vm86_vm0, %v74_v58 }
  0x3d   :  { %1419 = vmatmul.mubr.msk.f32.gmra.mrb[28].mxu0 %vm86_vm0, %v43_v59  ;;  %1467 = vmatmul.mubr.msk.f32.gmra.mrb[28].mxu1 %vm86_vm0, %v75_v60 }
  0x3e   :  { %1421 = vmatprep.mubr.msk.f32.mxu0 %vm86_vm0, %v44_v61  ;;  %1469 = vmatprep.mubr.msk.f32.mxu1 %vm86_vm0, %v76_v62 }
  0x41   :  { %1422 = vmatmul.mubr.msk.f32.gmra.mrb[30].mxu0 %vm86_vm0, %v45_v63  ;;  %1470 = vmatmul.mubr.msk.f32.gmra.mrb[30].mxu1 %vm86_vm0, %v77_v0 }
  0xd8   :  { %v1378_v2 = vpop.f32.mrb[0].mxu0  ;;  %v1426_v3 = vpop.f32.mrb[0].mxu1 }
  0xd9   :  { %v2015_v4 = vadd.f32 %v1378_v2, %v2012_v1  ;;  %v2018_v5 = vadd.f32 %v1426_v3, %v2012_v1  ;;  %v345_v6 = vpop.f32.mrb[1].mxu0  ;;  %v505_v7 = vpop.f32.mrb[1].mxu1 }
  0xda   :  { %v2021_v8 = vadd.f32 %v2012_v1, %v345_v6  ;;  %v2024_v9 = vadd.f32 %v2012_v1, %v505_v7 }
  0xdb   :  { %v1246_v10 = vmul.f32 -1.442695, %v2015_v4  ;;  %v1278_v11 = vmul.f32 -1.442695, %v2018_v5 }
  0xdc   :  { %v1245_v12 = vmul.f32 -1.442695, %v2021_v8  ;;  %v1277_v13 = vmul.f32 -1.442695, %v2024_v9  ;;  %v1381_v14 = vpop.f32.mrb[2].mxu0  ;;  %v1429_v15 = vpop.f32.mrb[2].mxu1 }
  0xdd   :  { %1474 = vpow2.f32 %v1246_v10  ;;  %v2031_v16 = vadd.f32 %v1381_v14, %v2012_v1  ;;  %v2034_v17 = vadd.f32 %v1429_v15, %v2012_v1  ;;  %v355_v18 = vpop.f32.mrb[3].mxu0  ;;  %v515_v19 = vpop.f32.mrb[3].mxu1 }
  0xde   :  { %1476 = vpow2.f32 %v1278_v11  ;;  %v2037_v20 = vadd.f32 %v2012_v1, %v355_v18  ;;  %v2040_v21 = vadd.f32 %v2012_v1, %v515_v19 }
  0xdf   :  { %1478 = vpow2.f32 %v1245_v12  ;;  %v1248_v22 = vmul.f32 -1.442695, %v2031_v16  ;;  %v1280_v23 = vmul.f32 -1.442695, %v2034_v17 }
  0xe0   :  { %1480 = vpow2.f32 %v1277_v13  ;;  %v1247_v24 = vmul.f32 -1.442695, %v2037_v20  ;;  %v1279_v25 = vmul.f32 -1.442695, %v2040_v21  ;;  %v1384_v26 = vpop.f32.mrb[4].mxu0  ;;  %v1432_v27 = vpop.f32.mrb[4].mxu1 }
  0xe1   :  { %1482 = vpow2.f32 %v1248_v22  ;;  %v2047_v28 = vadd.f32 %v1384_v26, %v2012_v1  ;;  %v2050_v29 = vadd.f32 %v1432_v27, %v2012_v1  ;;  %v365_v30 = vpop.f32.mrb[5].mxu0  ;;  %v525_v31 = vpop.f32.mrb[5].mxu1 }
  0xe2   :  { %1484 = vpow2.f32 %v1280_v23  ;;  %v2053_v32 = vadd.f32 %v2012_v1, %v365_v30  ;;  %v2056_v33 = vadd.f32 %v2012_v1, %v525_v31 }
  0xe3   :  { %1486 = vpow2.f32 %v1247_v24  ;;  %v1250_v34 = vmul.f32 -1.442695, %v2047_v28  ;;  %v1282_v35 = vmul.f32 -1.442695, %v2050_v29 }
  0xe4   :  { %1488 = vpow2.f32 %v1279_v25  ;;  %v1249_v36 = vmul.f32 -1.442695, %v2053_v32  ;;  %v1281_v37 = vmul.f32 -1.442695, %v2056_v33  ;;  %v1387_v38 = vpop.f32.mrb[6].mxu0  ;;  %v1435_v39 = vpop.f32.mrb[6].mxu1 }
  0xe5   :  { %1490 = vpow2.f32 %v1250_v34  ;;  %v2063_v40 = vadd.f32 %v1387_v38, %v2012_v1  ;;  %v375_v41 = vpop.f32.mrb[7].mxu0  ;;  %v535_v42 = vpop.f32.mrb[7].mxu1  ;;  %v2069_v10 = vadd.f32 %v1435_v39, %v2012_v1 }
  0xe6   :  { %1492 = vpow2.f32 %v1282_v35  ;;  %v2072_v13 = vadd.f32 %v2012_v1, %v375_v41  ;;  %v2077_v19 = vadd.f32 %v2012_v1, %v535_v42 }
  0xe7   :  { %v1475_v43 = vpop.eup %1474  ;;  %1494 = vpow2.f32 %v1249_v36  ;;  %v1252_v44 = vmul.f32 -1.442695, %v2063_v40  ;;  %v1284_v34 = vmul.f32 -1.442695, %v2069_v10 }
  0xe8   :  { %v1477_v45 = vpop.eup %1476  ;;  %v857_v46 = vadd.f32 1.0, %v1475_v43  ;;  %1496 = vpow2.f32 %v1281_v37  ;;  %v1390_v47 = vpop.f32.mrb[8].mxu0  ;;  %v1251_v38 = vmul.f32 -1.442695, %v2072_v13 }
  0xe9   :  { %v1479_v48 = vpop.eup %1478  ;;  %v889_v49 = vadd.f32 1.0, %v1477_v45  ;;  %1498 = vpow2.f32 %v1252_v44  ;;  %v1438_v50 = vpop.f32.mrb[8].mxu1  ;;  %v2084_v26 = vadd.f32 %v1390_v47, %v2012_v1  ;;  %v1283_v44 = vmul.f32 -1.442695, %v2077_v19 }
  0xea   :  { %v385_v51 = vpop.f32.mrb[9].mxu0  ;;  %v1481_v52 = vpop.eup %1480  ;;  %1500 = vrcp.f32 %v857_v46  ;;  %v856_v53 = vadd.f32 1.0, %v1479_v48  ;;  %v2090_v35 = vadd.f32 %v1438_v50, %v2012_v1 }
  0xeb   :  { %v545_v54 = vpop.f32.mrb[9].mxu1  ;;  %v1483_v55 = vpop.eup %1482  ;;  %1502 = vrcp.f32 %v889_v49  ;;  %v888_v56 = vadd.f32 1.0, %v1481_v52  ;;  %v2094_v39 = vadd.f32 %v2012_v1, %v385_v51  ;;  %v1254_v50 = vmul.f32 -1.442695, %v2084_v26 }
  0xec   :  { %v1485_v57 = vpop.eup %1484  ;;  %1504 = vrcp.f32 %v856_v53  ;;  %v859_v58 = vadd.f32 1.0, %v1483_v55  ;;  %v1393_v59 = vpop.f32.mrb[10].mxu0  ;;  %v2101_v45 = vadd.f32 %v2012_v1, %v545_v54  ;;  %v1286_v54 = vmul.f32 -1.442695, %v2090_v35 }
  0xed   :  { %v1487_v60 = vpop.eup %1486  ;;  %1506 = vrcp.f32 %v888_v56  ;;  %v891_v61 = vadd.f32 1.0, %v1485_v57  ;;  %v1441_v62 = vpop.f32.mrb[10].mxu1  ;;  %v2110_v51 = vadd.f32 %v1393_v59, %v2012_v1  ;;  %v1253_v57 = vmul.f32 -1.442695, %v2094_v39 }
  0xee   :  { %v395_v63 = vpop.f32.mrb[11].mxu0  ;;  %v1489_v0 = vpop.eup %1488  ;;  %1508 = vrcp.f32 %v859_v58  ;;  %v858_v2 = vadd.f32 1.0, %v1487_v60 }
  0xef   :  { %v2066_v3 = vpop.f32.mrb[11].mxu1  ;;  %v1491_v6 = vpop.eup %1490  ;;  %1510 = vrcp.f32 %v891_v61  ;;  %v890_v7 = vadd.f32 1.0, %v1489_v0  ;;  %v2130_v58 = vadd.f32 %v2012_v1, %v395_v63 }
  0xf0   :  { %v1493_v11 = vpop.eup %1492  ;;  %1512 = vrcp.f32 %v858_v2  ;;  %v861_v12 = vadd.f32 1.0, %v1491_v6  ;;  %v2074_v14 = vpop.f32.mrb[12].mxu0 }
  0xf1   :  { %v1495_v15 = vpop.eup %1494  ;;  %1514 = vrcp.f32 %v890_v7  ;;  %v893_v18 = vadd.f32 1.0, %v1493_v11  ;;  %v2079_v22 = vpop.f32.mrb[12].mxu1  ;;  %v2158_v7 = vadd.f32 %v2074_v14, %v2012_v1 }
  0xf2   :  { %v2081_v23 = vpop.f32.mrb[13].mxu0  ;;  %v1497_v24 = vpop.eup %1496  ;;  %1516 = vrcp.f32 %v861_v12  ;;  %v860_v25 = vadd.f32 1.0, %v1495_v15 }
  0xf3   :  { %v2086_v27 = vpop.f32.mrb[13].mxu1  ;;  %v1499_v30 = vpop.eup %1498  ;;  %1518 = vrcp.f32 %v893_v18  ;;  %v892_v31 = vadd.f32 1.0, %v1497_v24  ;;  %v1255_v18 = vmul.f32 -1.442695, %v2130_v58 }
  0xf4   :  { %v1501_v36 = vpop.eup %1500  ;;  %1520 = vrcp.f32 %v860_v25  ;;  %v863_v37 = vadd.f32 1.0, %v1499_v30  ;;  %v2096_v41 = vpop.f32.mrb[14].mxu0 }
  0xf5   :  { %v1503_v42 = vpop.eup %1502  ;;  %v1049_v43 = vmul.f32 %v1501_v36, %v2015_v4  ;;  %1522 = vrcp.f32 %v892_v31  ;;  %v2103_v46 = vpop.f32.mrb[14].mxu1 }
  0xf6   :  { %v2105_v47 = vpop.f32.mrb[15].mxu0  ;;  %v1505_v48 = vpop.eup %1504  ;;  %v1081_v49 = vmul.f32 %v1503_v42, %v2018_v5  ;;  %1524 = vrcp.f32 %v863_v37  ;;  %v2121_v5 = vadd.f32 %v1441_v62, %v2012_v1  ;;  %v2144_v62 = vadd.f32 %v2012_v1, %v2066_v3 }
  0xf7   :  { %v2112_v4 = vpop.f32.mrb[15].mxu1  ;;  %v1507_v52 = vpop.eup %1506  ;;  %1113 = vst.msk [vmem:[%s2656_s3 + $0x8] sm:$0xff] %vm86_vm0, %v1049_v43  ;;  %v1048_v53 = vmul.f32 %v1505_v48, %v2021_v8  ;;  %1526 = vpow2.f32 %v1284_v34 }
  0xf8   :  { %v1509_v55 = vpop.eup %1508  ;;  %1145 = vst.msk [vmem:[%s2656_s3 + $0x108] sm:$0xff] %vm86_vm0, %v1081_v49  ;;  %v1080_v56 = vmul.f32 %v1507_v52, %v2024_v9  ;;  %1528 = vpow2.f32 %v1251_v38  ;;  %v2132_v8 = vpop.f32.mrb[16].mxu0  ;;  %v1285_v9 = vmul.f32 -1.442695, %v2101_v45  ;;  %v1288_v12 = vmul.f32 -1.442695, %v2121_v5 }
  0xf9   :  { %v2134_v59 = vpop.f32.mrb[16].mxu1  ;;  %v1511_v60 = vpop.eup %1510  ;;  %1112 = vst.msk [vmem:[%s2656_s3] sm:$0xff] %vm86_vm0, %v1048_v53  ;;  %v1051_v61 = vmul.f32 %v1509_v55, %v2031_v16  ;;  %1530 = vpow2.f32 %v1283_v44  ;;  %v1256_v16 = vmul.f32 -1.442695, %v2110_v51  ;;  %v1287_v30 = vmul.f32 -1.442695, %v2144_v62 }
  0xfa   :  { %v2146_v63 = vpop.f32.mrb[17].mxu0  ;;  %v2148_v0 = vpop.f32.mrb[17].mxu1  ;;  %1144 = vst.msk [vmem:[%s2656_s3 + $0x100] sm:$0xff] %vm86_vm0, %v1080_v56  ;;  %v1083_v6 = vmul.f32 %v1511_v60, %v2034_v17  ;;  %1532 = vpow2.f32 %v1254_v50  ;;  %v2168_v17 = vadd.f32 %v2079_v22, %v2012_v1  ;;  %v2215_v49 = vadd.f32 %v2012_v1, %v2086_v27 }
  0xfb   :  { %v1513_v2 = vpop.eup %1512  ;;  %1115 = vst.msk [vmem:[%s2656_s3 + $0x18] sm:$0xff] %vm86_vm0, %v1051_v61  ;;  %1534 = vpow2.f32 %v1286_v54 }
  0xfc   :  { %v1515_v3 = vpop.eup %1514  ;;  %v1050_v11 = vmul.f32 %v1513_v2, %v2037_v20  ;;  %1147 = vst.msk [vmem:[%s2656_s3 + $0x118] sm:$0xff] %vm86_vm0, %v1083_v6  ;;  %1536 = vpow2.f32 %v1253_v57  ;;  %v2176_v24 = vpop.f32.mrb[18].mxu0  ;;  %v1290_v43 = vmul.f32 -1.442695, %v2168_v17 }
  0xfd   :  { %v1517_v15 = vpop.eup %1516  ;;  %v1082_v14 = vmul.f32 %v1515_v3, %v2040_v21  ;;  %v2178_v20 = vpop.f32.mrb[18].mxu1  ;;  %1538 = vpow2.f32 %v1285_v9  ;;  %v2188_v21 = vadd.f32 %v2012_v1, %v2081_v23  ;;  %v2246_v3 = vmul.f32 -1.442695, %v2215_v49 }
  0xfe   :  { %v1519_v25 = vpop.eup %1518  ;;  %1114 = vst.msk [vmem:[%s2656_s3 + $0x10] sm:$0xff] %vm86_vm0, %v1050_v11  ;;  %v1053_v22 = vmul.f32 %v1517_v15, %v2047_v28  ;;  %v435_v31 = vpop.f32.mrb[19].mxu0  ;;  %1540 = vpow2.f32 %v1256_v16  ;;  %v1258_v28 = vmul.f32 -1.442695, %v2158_v7  ;;  %v2250_v11 = vadd.f32 %v2096_v41, %v2012_v1 }
  0xff   :  { %v595_v34 = vpop.f32.mrb[19].mxu1  ;;  %v1521_v36 = vpop.eup %1520  ;;  %1146 = vst.msk [vmem:[%s2656_s3 + $0x110] sm:$0xff] %vm86_vm0, %v1082_v14  ;;  %v1085_v37 = vmul.f32 %v1519_v25, %v2050_v29  ;;  %v2197_v38 = vadd.f32 %v2012_v1, %v435_v31  ;;  %1542 = vpow2.f32 %v1288_v12  ;;  %v2240_v9 = vmul.f32 -1.442695, %v2188_v21 }
 0x100   :  { %v1523_v42 = vpop.eup %1522  ;;  %1117 = vst.msk [vmem:[%s2656_s3 + $0x28] sm:$0xff] %vm86_vm0, %v1053_v22  ;;  %v1052_v23 = vmul.f32 %v1521_v36, %v2053_v32  ;;  %v2206_v44 = vadd.f32 %v2012_v1, %v595_v34  ;;  %1544 = vpow2.f32 %v1255_v18  ;;  %v1408_v32 = vpop.f32.mrb[20].mxu0  ;;  %v2254_v18 = vadd.f32 %v2103_v46, %v2012_v1 }
 0x101   :  { %v1525_v29 = vpop.eup %1524  ;;  %1149 = vst.msk [vmem:[%s2656_s3 + $0x128] sm:$0xff] %vm86_vm0, %v1085_v37  ;;  %v1084_v48 = vmul.f32 %v1523_v42, %v2056_v33  ;;  %v1456_v50 = vpop.f32.mrb[20].mxu1  ;;  %1546 = vpow2.f32 %v1287_v30  ;;  %v2223_v54 = vadd.f32 %v1408_v32, %v2012_v1  ;;  %v2267_v46 = vadd.f32 %v2012_v1, %v2105_v47 }
 0x102   :  { %v1527_v52 = vpop.eup %1526  ;;  %1116 = vst.msk [vmem:[%s2656_s3 + $0x20] sm:$0xff] %vm86_vm0, %v1052_v23  ;;  %v1055_v53 = vmul.f32 %v1525_v29, %v2063_v40  ;;  %v445_v33 = vpop.f32.mrb[21].mxu0  ;;  %1548 = vpow2.f32 %v1258_v28  ;;  %v2230_v57 = vadd.f32 %v1456_v50, %v2012_v1  ;;  %v2277_v32 = vadd.f32 %v2012_v1, %v2112_v4 }
 0x103   :  { %v605_v55 = vpop.f32.mrb[21].mxu1  ;;  %v1529_v56 = vpop.eup %1528  ;;  %1148 = vst.msk [vmem:[%s2656_s3 + $0x120] sm:$0xff] %vm86_vm0, %v1084_v48  ;;  %v895_v27 = vadd.f32 1.0, %v1527_v52  ;;  %v2233_v60 = vadd.f32 %v2012_v1, %v445_v33  ;;  %1550 = vpow2.f32 %v1290_v43  ;;  %v2273_v48 = vmul.f32 -1.442695, %v2250_v11 }
 0x104   :  { %v1531_v40 = vpop.eup %1530  ;;  %1119 = vst.msk [vmem:[%s2656_s3 + $0x38] sm:$0xff] %vm86_vm0, %v1055_v53  ;;  %v862_v61 = vadd.f32 1.0, %v1529_v56  ;;  %v2243_v2 = vadd.f32 %v2012_v1, %v605_v55  ;;  %v1411_v12 = vpop.f32.mrb[22].mxu0  ;;  %v2280_v47 = vmul.f32 -1.442695, %v2254_v18 }
 0x105   :  { %v1533_v6 = vpop.eup %1532  ;;  %1552 = vrcp.f32 %v895_v27  ;;  %v894_v16 = vadd.f32 1.0, %v1531_v40  ;;  %v2257_v25 = vadd.f32 %v1411_v12, %v2012_v1  ;;  %v1459_v22 = vpop.f32.mrb[22].mxu1 }
 0x106   :  { %v1535_v15 = vpop.eup %1534  ;;  %1554 = vrcp.f32 %v862_v61  ;;  %v865_v14 = vadd.f32 1.0, %v1533_v6  ;;  %v455_v30 = vpop.f32.mrb[23].mxu0  ;;  %v2260_v36 = vadd.f32 %v1459_v22, %v2012_v1 }
 0x107   :  { %v1537_v31 = vpop.eup %1536  ;;  %1556 = vrcp.f32 %v894_v16  ;;  %v897_v34 = vadd.f32 1.0, %v1535_v15  ;;  %v2263_v41 = vadd.f32 %v2012_v1, %v455_v30  ;;  %v615_v37 = vpop.f32.mrb[23].mxu1  ;;  %v2292_v15 = vmul.f32 -1.442695, %v2267_v46 }
 0x108   :  { %v1539_v28 = vpop.eup %1538  ;;  %1558 = vrcp.f32 %v865_v14  ;;  %v864_v42 = vadd.f32 1.0, %v1537_v31  ;;  %v2270_v23 = vadd.f32 %v2012_v1, %v615_v37  ;;  %v1414_v50 = vpop.f32.mrb[24].mxu0  ;;  %v2298_v31 = vmul.f32 -1.442695, %v2277_v32 }
 0x109   :  { %v1541_v43 = vpop.eup %1540  ;;  %1560 = vrcp.f32 %v897_v34  ;;  %v896_v29 = vadd.f32 1.0, %v1539_v28  ;;  %v2283_v33 = vadd.f32 %v1414_v50, %v2012_v1  ;;  %v1462_v55 = vpop.f32.mrb[24].mxu1  ;;  %v2302_v34 = vadd.f32 %v2132_v8, %v2012_v1 }
 0x10a   :  { %v1543_v52 = vpop.eup %1542  ;;  %1562 = vrcp.f32 %v864_v42  ;;  %v867_v53 = vadd.f32 1.0, %v1541_v43  ;;  %v465_v56 = vpop.f32.mrb[25].mxu0  ;;  %v2286_v61 = vadd.f32 %v1462_v55, %v2012_v1  ;;  %v2306_v43 = vadd.f32 %v2134_v59, %v2012_v1 }
 0x10b   :  { %v1545_v27 = vpop.eup %1544  ;;  %1564 = vrcp.f32 %v896_v29  ;;  %v899_v40 = vadd.f32 1.0, %v1543_v52  ;;  %v2289_v4 = vadd.f32 %v2012_v1, %v465_v56  ;;  %v625_v6 = vpop.f32.mrb[25].mxu1  ;;  %v2320_v59 = vadd.f32 %v2012_v1, %v2146_v63 }
 0x10c   :  { %v1547_v16 = vpop.eup %1546  ;;  %1566 = vrcp.f32 %v867_v53  ;;  %v866_v12 = vadd.f32 1.0, %v1545_v27  ;;  %v2295_v14 = vadd.f32 %v2012_v1, %v625_v6  ;;  %v1417_v37 = vpop.f32.mrb[26].mxu0 }
 0x10d   :  { %v1549_v22 = vpop.eup %1548  ;;  %1568 = vrcp.f32 %v899_v40  ;;  %v898_v30 = vadd.f32 1.0, %v1547_v16  ;;  %v2309_v29 = vadd.f32 %v1417_v37, %v2012_v1  ;;  %v1465_v50 = vpop.f32.mrb[26].mxu1  ;;  %v2329_v37 = vadd.f32 %v2012_v1, %v2148_v0 }
 0x10e   :  { %v1551_v28 = vpop.eup %1550  ;;  %1570 = vrcp.f32 %v866_v12  ;;  %v869_v42 = vadd.f32 1.0, %v1549_v22  ;;  %v475_v52 = vpop.f32.mrb[27].mxu0  ;;  %v2312_v56 = vadd.f32 %v1465_v50, %v2012_v1 }
 0x10f   :  { %v1553_v53 = vpop.eup %1552  ;;  %1572 = vrcp.f32 %v898_v30  ;;  %v901_v55 = vadd.f32 1.0, %v1551_v28  ;;  %v2315_v8 = vadd.f32 %v2012_v1, %v475_v52  ;;  %v635_v27 = vpop.f32.mrb[27].mxu1  ;;  %v1262_v30 = vmul.f32 -1.442695, %v2302_v34 }
 0x110   :  { %v1555_v40 = vpop.eup %1554  ;;  %v1087_v6 = vmul.f32 %v1553_v53, %v2069_v10  ;;  %1574 = vrcp.f32 %v869_v42  ;;  %v2323_v16 = vadd.f32 %v2012_v1, %v635_v27  ;;  %v1420_v28 = vpop.f32.mrb[28].mxu0 }
 0x111   :  { %v1557_v12 = vpop.eup %1556  ;;  %v1054_v22 = vmul.f32 %v1555_v40, %v2072_v13  ;;  %1576 = vrcp.f32 %v901_v55  ;;  %v1468_v10 = vpop.f32.mrb[28].mxu1  ;;  %v1294_v13 = vmul.f32 -1.442695, %v2306_v43  ;;  %v2339_v50 = vadd.f32 %v1420_v28, %v2012_v1 }
 0x112   :  { %v1559_v42 = vpop.eup %1558  ;;  %1151 = vst.msk [vmem:[%s2656_s3 + $0x138] sm:$0xff] %vm86_vm0, %v1087_v6  ;;  %v1086_v63 = vmul.f32 %v1557_v12, %v2077_v19  ;;  %1578 = vpow2.f32 %v2240_v9  ;;  %v485_v52 = vpop.f32.mrb[29].mxu0  ;;  %v2348_v19 = vadd.f32 %v1468_v10, %v2012_v1 }
 0x113   :  { %v645_v0 = vpop.f32.mrb[29].mxu1  ;;  %v1561_v53 = vpop.eup %1560  ;;  %1118 = vst.msk [vmem:[%s2656_s3 + $0x30] sm:$0xff] %vm86_vm0, %v1054_v22  ;;  %v1057_v55 = vmul.f32 %v1559_v42, %v2084_v26  ;;  %1580 = vpow2.f32 %v2246_v3  ;;  %v2351_v9 = vadd.f32 %v2012_v1, %v485_v52  ;;  %v2361_v26 = vadd.f32 %v2176_v24, %v2012_v1 }
 0x114   :  { %v1563_v27 = vpop.eup %1562  ;;  %1150 = vst.msk [vmem:[%s2656_s3 + $0x130] sm:$0xff] %vm86_vm0, %v1086_v63  ;;  %v1089_v40 = vmul.f32 %v1561_v53, %v2090_v35  ;;  %1582 = vpow2.f32 %v2273_v48  ;;  %v2364_v3 = vadd.f32 %v2012_v1, %v645_v0  ;;  %v1261_v35 = vmul.f32 -1.442695, %v2320_v59  ;;  %v1423_v24 = vpop.f32.mrb[30].mxu0 }
 0x115   :  { %v1565_v6 = vpop.eup %1564  ;;  %1121 = vst.msk [vmem:[%s2656_s3 + $0x48] sm:$0xff] %vm86_vm0, %v1057_v55  ;;  %v1056_v12 = vmul.f32 %v1563_v27, %v2094_v39  ;;  %1584 = vpow2.f32 %v2280_v47  ;;  %v2375_v48 = vadd.f32 %v2178_v20, %v2012_v1  ;;  %v1471_v22 = vpop.f32.mrb[30].mxu1  ;;  %v1293_v39 = vmul.f32 -1.442695, %v2329_v37 }
 0x116   :  { %v1567_v28 = vpop.eup %1566  ;;  %1153 = vst.msk [vmem:[%s2656_s3 + $0x148] sm:$0xff] %vm86_vm0, %v1089_v40  ;;  %v1088_v10 = vmul.f32 %v1565_v6, %v2101_v45  ;;  %1586 = vpow2.f32 %v2292_v15  ;;  %v2385_v47 = vadd.f32 %v1423_v24, %v2012_v1  ;;  %v495_v42 = vpop.f32.mrb[31].mxu0  ;;  %v2394_v45 = vadd.f32 %v1471_v22, %v2012_v1 }
 0x117   :  { %v655_v20 = vpop.f32.mrb[31].mxu1  ;;  %v1569_v63 = vpop.eup %1568  ;;  %1120 = vst.msk [vmem:[%s2656_s3 + $0x40] sm:$0xff] %vm86_vm0, %v1056_v12  ;;  %v1059_v52 = vmul.f32 %v1567_v28, %v2110_v51  ;;  %1588 = vpow2.f32 %v2298_v31  ;;  %v2397_v15 = vadd.f32 %v2012_v1, %v495_v42  ;;  %v1264_v55 = vmul.f32 -1.442695, %v2361_v26 }
 0x118   :  { %v1571_v0 = vpop.eup %1570  ;;  %1152 = vst.msk [vmem:[%s2656_s3 + $0x140] sm:$0xff] %vm86_vm0, %v1088_v10  ;;  %v1091_v53 = vmul.f32 %v1569_v63, %v2121_v5  ;;  %1590 = vpow2.f32 %v1262_v30  ;;  %v2406_v51 = vadd.f32 %v2012_v1, %v655_v20  ;;  %v1296_v40 = vmul.f32 -1.442695, %v2375_v48 }
 0x119   :  { %v1573_v31 = vpop.eup %1572  ;;  %1123 = vst.msk [vmem:[%s2656_s3 + $0x58] sm:$0xff] %vm86_vm0, %v1059_v52  ;;  %v1058_v27 = vmul.f32 %v1571_v0, %v2130_v58  ;;  %1592 = vpow2.f32 %v1294_v13  ;;  %v1263_v5 = vmul.f32 -1.442695, %v2197_v38 }
 0x11a   :  { %v1575_v6 = vpop.eup %1574  ;;  %1155 = vst.msk [vmem:[%s2656_s3 + $0x158] sm:$0xff] %vm86_vm0, %v1091_v53  ;;  %v1090_v1 = vmul.f32 %v1573_v31, %v2144_v62  ;;  %1594 = vpow2.f32 %v1261_v35 }
 0x11b   :  { %v1577_v30 = vpop.eup %1576  ;;  %1122 = vst.msk [vmem:[%s2656_s3 + $0x50] sm:$0xff] %vm86_vm0, %v1058_v27  ;;  %v1061_v58 = vmul.f32 %v1575_v6, %v2158_v7  ;;  %1596 = vpow2.f32 %v1293_v39 }
 0x11c   :  { %v1579_v13 = vpop.eup %1578  ;;  %1154 = vst.msk [vmem:[%s2656_s3 + $0x150] sm:$0xff] %vm86_vm0, %v1090_v1  ;;  %v1093_v62 = vmul.f32 %v1577_v30, %v2168_v17  ;;  %1598 = vpow2.f32 %v1264_v55 }
 0x11d   :  { %v1581_v12 = vpop.eup %1580  ;;  %1125 = vst.msk [vmem:[%s2656_s3 + $0x68] sm:$0xff] %vm86_vm0, %v1061_v58  ;;  %v868_v35 = vadd.f32 1.0, %v1579_v13  ;;  %1600 = vpow2.f32 %v1296_v40  ;;  %v1295_v13 = vmul.f32 -1.442695, %v2206_v44 }
 0x11e   :  { %v1583_v24 = vpop.eup %1582  ;;  %1157 = vst.msk [vmem:[%s2656_s3 + $0x168] sm:$0xff] %vm86_vm0, %v1093_v62  ;;  %v900_v7 = vadd.f32 1.0, %v1581_v12  ;;  %1602 = vpow2.f32 %v1263_v5 }
 0x11f   :  { %v1585_v22 = vpop.eup %1584  ;;  %1604 = vrcp.f32 %v868_v35  ;;  %v871_v17 = vadd.f32 1.0, %v1583_v24  ;;  %v1266_v35 = vmul.f32 -1.442695, %v2223_v54 }
 0x120   :  { %v1587_v28 = vpop.eup %1586  ;;  %1606 = vrcp.f32 %v900_v7  ;;  %v903_v10 = vadd.f32 1.0, %v1585_v22  ;;  %v1298_v22 = vmul.f32 -1.442695, %v2230_v57 }
 0x121   :  { %v1589_v39 = vpop.eup %1588  ;;  %1608 = vrcp.f32 %v871_v17  ;;  %v870_v42 = vadd.f32 1.0, %v1587_v28 }
 0x122   :  { %v1591_v20 = vpop.eup %1590  ;;  %1610 = vrcp.f32 %v903_v10  ;;  %v902_v63 = vadd.f32 1.0, %v1589_v39  ;;  %v1265_v10 = vmul.f32 -1.442695, %v2233_v60 }
 0x123   :  { %v1593_v52 = vpop.eup %1592  ;;  %1612 = vrcp.f32 %v870_v42  ;;  %v873_v0 = vadd.f32 1.0, %v1591_v20 }
 0x124   :  { %v1595_v53 = vpop.eup %1594  ;;  %1614 = vrcp.f32 %v902_v63  ;;  %v905_v55 = vadd.f32 1.0, %v1593_v52  ;;  %v1268_v63 = vmul.f32 -1.442695, %v2257_v25 }
 0x125   :  { %v1597_v31 = vpop.eup %1596  ;;  %1616 = vrcp.f32 %v873_v0  ;;  %v872_v27 = vadd.f32 1.0, %v1595_v53  ;;  %v1300_v0 = vmul.f32 -1.442695, %v2260_v36 }
 0x126   :  { %v1599_v40 = vpop.eup %1598  ;;  %1618 = vrcp.f32 %v905_v55  ;;  %v904_v6 = vadd.f32 1.0, %v1597_v31  ;;  %v1267_v55 = vmul.f32 -1.442695, %v2263_v41 }
 0x127   :  { %v1601_v1 = vpop.eup %1600  ;;  %1620 = vrcp.f32 %v872_v27  ;;  %v875_v5 = vadd.f32 1.0, %v1599_v40  ;;  %v1299_v27 = vmul.f32 -1.442695, %v2270_v23 }
 0x128   :  { %v1603_v30 = vpop.eup %1602  ;;  %1622 = vrcp.f32 %v904_v6  ;;  %v907_v58 = vadd.f32 1.0, %v1601_v1  ;;  %v1270_v6 = vmul.f32 -1.442695, %v2283_v33 }
 0x129   :  { %v1605_v62 = vpop.eup %1604  ;;  %1624 = vrcp.f32 %v875_v5  ;;  %v874_v12 = vadd.f32 1.0, %v1603_v30  ;;  %v1302_v5 = vmul.f32 -1.442695, %v2286_v61 }
 0x12a   :  { %v1607_v24 = vpop.eup %1606  ;;  %v1060_v7 = vmul.f32 %v1605_v62, %v2188_v21  ;;  %1626 = vrcp.f32 %v907_v58  ;;  %v1297_v21 = vmul.f32 -1.442695, %v2243_v2  ;;  %v1269_v58 = vmul.f32 -1.442695, %v2289_v4 }
 0x12b   :  { %v1609_v17 = vpop.eup %1608  ;;  %v1092_v28 = vmul.f32 %v1607_v24, %v2215_v49  ;;  %1628 = vrcp.f32 %v874_v12  ;;  %v1301_v62 = vmul.f32 -1.442695, %v2295_v14 }
 0x12c   :  { %v1611_v39 = vpop.eup %1610  ;;  %1124 = vst.msk [vmem:[%s2656_s3 + $0x60] sm:$0xff] %vm86_vm0, %v1060_v7  ;;  %v1063_v42 = vmul.f32 %v1609_v17, %v2250_v11  ;;  %1630 = vpow2.f32 %v1295_v13 }
 0x12d   :  { %v1613_v20 = vpop.eup %1612  ;;  %1156 = vst.msk [vmem:[%s2656_s3 + $0x160] sm:$0xff] %vm86_vm0, %v1092_v28  ;;  %v1095_v49 = vmul.f32 %v1611_v39, %v2254_v18  ;;  %1632 = vpow2.f32 %v1266_v35 }
 0x12e   :  { %v1615_v52 = vpop.eup %1614  ;;  %1127 = vst.msk [vmem:[%s2656_s3 + $0x78] sm:$0xff] %vm86_vm0, %v1063_v42  ;;  %v1062_v11 = vmul.f32 %v1613_v20, %v2267_v46  ;;  %1634 = vpow2.f32 %v1298_v22 }
 0x12f   :  { %v1617_v53 = vpop.eup %1616  ;;  %1159 = vst.msk [vmem:[%s2656_s3 + $0x178] sm:$0xff] %vm86_vm0, %v1095_v49  ;;  %v1094_v18 = vmul.f32 %v1615_v52, %v2277_v32  ;;  %1636 = vpow2.f32 %v1265_v10 }
 0x130   :  { %v1619_v31 = vpop.eup %1618  ;;  %1126 = vst.msk [vmem:[%s2656_s3 + $0x70] sm:$0xff] %vm86_vm0, %v1062_v11  ;;  %v1065_v46 = vmul.f32 %v1617_v53, %v2302_v34  ;;  %1638 = vpow2.f32 %v1297_v21 }
 0x131   :  { %v1621_v40 = vpop.eup %1620  ;;  %1158 = vst.msk [vmem:[%s2656_s3 + $0x170] sm:$0xff] %vm86_vm0, %v1094_v18  ;;  %v1097_v32 = vmul.f32 %v1619_v31, %v2306_v43  ;;  %1640 = vpow2.f32 %v1268_v63 }
 0x132   :  { %v1623_v1 = vpop.eup %1622  ;;  %1129 = vst.msk [vmem:[%s2656_s3 + $0x88] sm:$0xff] %vm86_vm0, %v1065_v46  ;;  %v1064_v34 = vmul.f32 %v1621_v40, %v2320_v59  ;;  %1642 = vpow2.f32 %v1300_v0 }
 0x133   :  { %v1625_v30 = vpop.eup %1624  ;;  %1161 = vst.msk [vmem:[%s2656_s3 + $0x188] sm:$0xff] %vm86_vm0, %v1097_v32  ;;  %v1096_v43 = vmul.f32 %v1623_v1, %v2329_v37  ;;  %1644 = vpow2.f32 %v1267_v55  ;;  %v1272_v32 = vmul.f32 -1.442695, %v2309_v29 }
 0x134   :  { %v1627_v13 = vpop.eup %1626  ;;  %1128 = vst.msk [vmem:[%s2656_s3 + $0x80] sm:$0xff] %vm86_vm0, %v1064_v34  ;;  %v1067_v59 = vmul.f32 %v1625_v30, %v2361_v26  ;;  %1646 = vpow2.f32 %v1299_v27  ;;  %v1304_v34 = vmul.f32 -1.442695, %v2312_v56 }
 0x135   :  { %v1629_v12 = vpop.eup %1628  ;;  %1160 = vst.msk [vmem:[%s2656_s3 + $0x180] sm:$0xff] %vm86_vm0, %v1096_v43  ;;  %v1099_v37 = vmul.f32 %v1627_v13, %v2375_v48  ;;  %1648 = vpow2.f32 %v1270_v6  ;;  %v1271_v43 = vmul.f32 -1.442695, %v2315_v8 }
 0x136   :  { %v1631_v35 = vpop.eup %1630  ;;  %1131 = vst.msk [vmem:[%s2656_s3 + $0x98] sm:$0xff] %vm86_vm0, %v1067_v59  ;;  %v1066_v26 = vmul.f32 %v1629_v12, %v2197_v38  ;;  %1650 = vpow2.f32 %v1302_v5  ;;  %v1303_v59 = vmul.f32 -1.442695, %v2323_v16 }
 0x137   :  { %v1633_v24 = vpop.eup %1632  ;;  %1163 = vst.msk [vmem:[%s2656_s3 + $0x198] sm:$0xff] %vm86_vm0, %v1099_v37  ;;  %v906_v7 = vadd.f32 1.0, %v1631_v35  ;;  %1652 = vpow2.f32 %v1269_v58  ;;  %v1306_v35 = vmul.f32 -1.442695, %v2348_v19 }
 0x138   :  { %v1635_v22 = vpop.eup %1634  ;;  %1130 = vst.msk [vmem:[%s2656_s3 + $0x90] sm:$0xff] %vm86_vm0, %v1066_v26  ;;  %v877_v48 = vadd.f32 1.0, %v1633_v24  ;;  %1654 = vpow2.f32 %v1301_v62  ;;  %v1273_v24 = vmul.f32 -1.442695, %v2351_v9 }
 0x139   :  { %v1637_v17 = vpop.eup %1636  ;;  %1656 = vrcp.f32 %v906_v7  ;;  %v909_v38 = vadd.f32 1.0, %v1635_v22  ;;  %v1305_v22 = vmul.f32 -1.442695, %v2364_v3 }
 0x13a   :  { %v1639_v28 = vpop.eup %1638  ;;  %1658 = vrcp.f32 %v877_v48  ;;  %v876_v10 = vadd.f32 1.0, %v1637_v17  ;;  %v1276_v17 = vmul.f32 -1.442695, %v2385_v47 }
 0x13b   :  { %v1641_v39 = vpop.eup %1640  ;;  %1660 = vrcp.f32 %v909_v38  ;;  %v908_v42 = vadd.f32 1.0, %v1639_v28  ;;  %v1308_v28 = vmul.f32 -1.442695, %v2394_v45 }
 0x13c   :  { %v1643_v21 = vpop.eup %1642  ;;  %1662 = vrcp.f32 %v876_v10  ;;  %v879_v20 = vadd.f32 1.0, %v1641_v39  ;;  %v1275_v39 = vmul.f32 -1.442695, %v2397_v15 }
 0x13d   :  { %v1645_v49 = vpop.eup %1644  ;;  %1664 = vrcp.f32 %v908_v42  ;;  %v911_v63 = vadd.f32 1.0, %v1643_v21  ;;  %v1307_v21 = vmul.f32 -1.442695, %v2406_v51 }
 0x13e   :  { %v1647_v52 = vpop.eup %1646  ;;  %1666 = vrcp.f32 %v879_v20  ;;  %v878_v11 = vadd.f32 1.0, %v1645_v49 }
 0x13f   :  { %v1649_v0 = vpop.eup %1648  ;;  %1668 = vrcp.f32 %v911_v63  ;;  %v910_v53 = vadd.f32 1.0, %v1647_v52 }
 0x140   :  { %v1651_v18 = vpop.eup %1650  ;;  %1670 = vrcp.f32 %v878_v11  ;;  %v881_v55 = vadd.f32 1.0, %v1649_v0 }
 0x141   :  { %v1653_v31 = vpop.eup %1652  ;;  %1672 = vrcp.f32 %v910_v53  ;;  %v913_v46 = vadd.f32 1.0, %v1651_v18 }
 0x142   :  { %v1655_v27 = vpop.eup %1654  ;;  %1674 = vrcp.f32 %v881_v55  ;;  %v880_v40 = vadd.f32 1.0, %v1653_v31 }
 0x143   :  { %v1657_v6 = vpop.eup %1656  ;;  %1676 = vrcp.f32 %v913_v46  ;;  %v912_v1 = vadd.f32 1.0, %v1655_v27 }
 0x144   :  { %v1659_v5 = vpop.eup %1658  ;;  %v1098_v30 = vmul.f32 %v1657_v6, %v2206_v44  ;;  %1678 = vrcp.f32 %v880_v40  ;;  %v1274_v44 = vmul.f32 -1.442695, %v2339_v50 }
 0x145   :  { %v1661_v58 = vpop.eup %1660  ;;  %v1069_v13 = vmul.f32 %v1659_v5, %v2223_v54  ;;  %1680 = vrcp.f32 %v912_v1 }
 0x146   :  { %v1663_v62 = vpop.eup %1662  ;;  %1162 = vst.msk [vmem:[%s2656_s3 + $0x190] sm:$0xff] %vm86_vm0, %v1098_v30  ;;  %v1101_v12 = vmul.f32 %v1661_v58, %v2230_v57  ;;  %1682 = vpow2.f32 %v1272_v32 }
 0x147   :  { %v1665_v37 = vpop.eup %1664  ;;  %1133 = vst.msk [vmem:[%s2656_s3 + $0xa8] sm:$0xff] %vm86_vm0, %v1069_v13  ;;  %v1068_v54 = vmul.f32 %v1663_v62, %v2233_v60  ;;  %1684 = vpow2.f32 %v1304_v34 }
 0x148   :  { %v1667_v26 = vpop.eup %1666  ;;  %1165 = vst.msk [vmem:[%s2656_s3 + $0x1a8] sm:$0xff] %vm86_vm0, %v1101_v12  ;;  %v1100_v57 = vmul.f32 %v1665_v37, %v2243_v2  ;;  %1686 = vpow2.f32 %v1271_v43 }
 0x149   :  { %v1669_v7 = vpop.eup %1668  ;;  %1132 = vst.msk [vmem:[%s2656_s3 + $0xa0] sm:$0xff] %vm86_vm0, %v1068_v54  ;;  %v1071_v60 = vmul.f32 %v1667_v26, %v2257_v25  ;;  %1688 = vpow2.f32 %v1303_v59 }
 0x14a   :  { %v1671_v48 = vpop.eup %1670  ;;  %1164 = vst.msk [vmem:[%s2656_s3 + $0x1a0] sm:$0xff] %vm86_vm0, %v1100_v57  ;;  %v1103_v2 = vmul.f32 %v1669_v7, %v2260_v36  ;;  %1690 = vpow2.f32 %v1274_v44 }
 0x14b   :  { %v1673_v38 = vpop.eup %1672  ;;  %1135 = vst.msk [vmem:[%s2656_s3 + $0xb8] sm:$0xff] %vm86_vm0, %v1071_v60  ;;  %v1070_v25 = vmul.f32 %v1671_v48, %v2263_v41  ;;  %1692 = vpow2.f32 %v1306_v35 }
 0x14c   :  { %v1675_v10 = vpop.eup %1674  ;;  %1167 = vst.msk [vmem:[%s2656_s3 + $0x1b8] sm:$0xff] %vm86_vm0, %v1103_v2  ;;  %v1102_v36 = vmul.f32 %v1673_v38, %v2270_v23  ;;  %1694 = vpow2.f32 %v1273_v24 }
 0x14d   :  { %v1677_v42 = vpop.eup %1676  ;;  %1134 = vst.msk [vmem:[%s2656_s3 + $0xb0] sm:$0xff] %vm86_vm0, %v1070_v25  ;;  %v1073_v41 = vmul.f32 %v1675_v10, %v2283_v33  ;;  %1696 = vpow2.f32 %v1305_v22 }
 0x14e   :  { %v1679_v20 = vpop.eup %1678  ;;  %1166 = vst.msk [vmem:[%s2656_s3 + $0x1b0] sm:$0xff] %vm86_vm0, %v1102_v36  ;;  %v1105_v23 = vmul.f32 %v1677_v42, %v2286_v61  ;;  %1698 = vpow2.f32 %v1276_v17 }
 0x14f   :  { %v1681_v49 = vpop.eup %1680  ;;  %1137 = vst.msk [vmem:[%s2656_s3 + $0xc8] sm:$0xff] %vm86_vm0, %v1073_v41  ;;  %v1072_v33 = vmul.f32 %v1679_v20, %v2289_v4  ;;  %1700 = vpow2.f32 %v1308_v28 }
 0x150   :  { %v1683_v63 = vpop.eup %1682  ;;  %1169 = vst.msk [vmem:[%s2656_s3 + $0x1c8] sm:$0xff] %vm86_vm0, %v1105_v23  ;;  %v1104_v52 = vmul.f32 %v1681_v49, %v2295_v14  ;;  %1702 = vpow2.f32 %v1275_v39 }
 0x151   :  { %v1685_v61 = vpop.eup %1684  ;;  %1136 = vst.msk [vmem:[%s2656_s3 + $0xc0] sm:$0xff] %vm86_vm0, %v1072_v33  ;;  %v883_v11 = vadd.f32 1.0, %v1683_v63  ;;  %1704 = vpow2.f32 %v1307_v21 }
 0x152   :  { %v1687_v0 = vpop.eup %1686  ;;  %1168 = vst.msk [vmem:[%s2656_s3 + $0x1c0] sm:$0xff] %vm86_vm0, %v1104_v52  ;;  %v915_v4 = vadd.f32 1.0, %v1685_v61 }
 0x153   :  { %v1689_v53 = vpop.eup %1688  ;;  %1706 = vrcp.f32 %v883_v11  ;;  %v882_v18 = vadd.f32 1.0, %v1687_v0 }
 0x154   :  { %v1691_v14 = vpop.eup %1690  ;;  %1708 = vrcp.f32 %v915_v4  ;;  %v914_v55 = vadd.f32 1.0, %v1689_v53 }
 0x155   :  { %v1693_v31 = vpop.eup %1692  ;;  %1710 = vrcp.f32 %v882_v18  ;;  %v885_v46 = vadd.f32 1.0, %v1691_v14 }
 0x156   :  { %v1695_v27 = vpop.eup %1694  ;;  %1712 = vrcp.f32 %v914_v55  ;;  %v917_v40 = vadd.f32 1.0, %v1693_v31 }
 0x157   :  { %v1697_v32 = vpop.eup %1696  ;;  %1714 = vrcp.f32 %v885_v46  ;;  %v884_v6 = vadd.f32 1.0, %v1695_v27 }
 0x158   :  { %v1699_v1 = vpop.eup %1698  ;;  %1716 = vrcp.f32 %v917_v40  ;;  %v916_v34 = vadd.f32 1.0, %v1697_v32 }
 0x159   :  { %v1701_v5 = vpop.eup %1700  ;;  %1718 = vrcp.f32 %v884_v6  ;;  %v887_v30 = vadd.f32 1.0, %v1699_v1 }
 0x15a   :  { %v1703_v43 = vpop.eup %1702  ;;  %1720 = vrcp.f32 %v916_v34  ;;  %v919_v58 = vadd.f32 1.0, %v1701_v5 }
 0x15b   :  { %v1705_v13 = vpop.eup %1704  ;;  %1722 = vrcp.f32 %v887_v30  ;;  %v886_v59 = vadd.f32 1.0, %v1703_v43 }
 0x15c   :  { %1724 = vrcp.f32 %v919_v58  ;;  %v918_v62 = vadd.f32 1.0, %v1705_v13 }
 0x15d   :  { %v1707_v12 = vpop.eup %1706  ;;  %1726 = vrcp.f32 %v886_v59 }
 0x15e   :  { %v1709_v44 = vpop.eup %1708  ;;  %v1075_v37 = vmul.f32 %v1707_v12, %v2309_v29  ;;  %1728 = vrcp.f32 %v918_v62 }
 0x15f   :  { %v1711_v54 = vpop.eup %1710  ;;  %v1107_v35 = vmul.f32 %v1709_v44, %v2312_v56 }
 0x160   :  { %v1713_v26 = vpop.eup %1712  ;;  %1139 = vst.msk [vmem:[%s2656_s3 + $0xd8] sm:$0xff] %vm86_vm0, %v1075_v37  ;;  %v1074_v57 = vmul.f32 %v1711_v54, %v2315_v8 }
 0x161   :  { %v1715_v24 = vpop.eup %1714  ;;  %1171 = vst.msk [vmem:[%s2656_s3 + $0x1d8] sm:$0xff] %vm86_vm0, %v1107_v35  ;;  %v1106_v29 = vmul.f32 %v1713_v26, %v2323_v16 }
 0x162   :  { %v1717_v7 = vpop.eup %1716  ;;  %1138 = vst.msk [vmem:[%s2656_s3 + $0xd0] sm:$0xff] %vm86_vm0, %v1074_v57  ;;  %v1077_v56 = vmul.f32 %v1715_v24, %v2339_v50 }
 0x163   :  { %v1719_v60 = vpop.eup %1718  ;;  %1170 = vst.msk [vmem:[%s2656_s3 + $0x1d0] sm:$0xff] %vm86_vm0, %v1106_v29  ;;  %v1109_v8 = vmul.f32 %v1717_v7, %v2348_v19 }
 0x164   :  { %v1721_v22 = vpop.eup %1720  ;;  %1141 = vst.msk [vmem:[%s2656_s3 + $0xe8] sm:$0xff] %vm86_vm0, %v1077_v56  ;;  %v1076_v16 = vmul.f32 %v1719_v60, %v2351_v9 }
 0x165   :  { %v1723_v48 = vpop.eup %1722  ;;  %1173 = vst.msk [vmem:[%s2656_s3 + $0x1e8] sm:$0xff] %vm86_vm0, %v1109_v8  ;;  %v1108_v50 = vmul.f32 %v1721_v22, %v2364_v3 }
 0x166   :  { %v1725_v2 = vpop.eup %1724  ;;  %1140 = vst.msk [vmem:[%s2656_s3 + $0xe0] sm:$0xff] %vm86_vm0, %v1076_v16  ;;  %v1079_v19 = vmul.f32 %v1723_v48, %v2385_v47 }
 0x167   :  { %v1727_v17 = vpop.eup %1726  ;;  %1172 = vst.msk [vmem:[%s2656_s3 + $0x1e0] sm:$0xff] %vm86_vm0, %v1108_v50  ;;  %v1111_v9 = vmul.f32 %v1725_v2, %v2394_v45 }
 0x168   :  { %v1729_v38 = vpop.eup %1728  ;;  %1143 = vst.msk [vmem:[%s2656_s3 + $0xf8] sm:$0xff] %vm86_vm0, %v1079_v19  ;;  %v1078_v3 = vmul.f32 %v1727_v17, %v2397_v15 }
 0x169   :  { %1175 = vst.msk [vmem:[%s2656_s3 + $0x1f8] sm:$0xff] %vm86_vm0, %v1111_v9  ;;  %v1110_v47 = vmul.f32 %v1729_v38, %v2406_v51 }
 0x16a   :  { %1142 = vst.msk [vmem:[%s2656_s3 + $0xf0] sm:$0xff] %vm86_vm0, %v1078_v3 }
 0x16b   :  { %1174 = vst.msk [vmem:[%s2656_s3 + $0x1f0] sm:$0xff] %vm86_vm0, %v1110_v47 }

// kernel: c2f_forward.7
= control target key start
LH: loop header
LB: loop body
LE: loop exit
PB: predicated region body
PF: predicated region fallthrough
CT: control target
= control target key end

     0   :  { %s2517_s22 = smov 8   ;;  %s2518_s6 = smov 12   ;;  %vm724_vm0 = vcmask 64512   ;;  %vm789_vm1 = vcmask 97280   ;;  %vm863_vm2 = vcmask 130048   ;;  %s4021_s1 = inlined_call_operand.vmem [shape: f32[512,4], index: 1, kind: input, shape index: {}]   ;;  %s4022_s2 = inlined_call_operand.vmem [shape: f32[512,4], index: 2, kind: input, shape index: {}]   ;;  %s4023_s3 = inlined_call_operand.vmem [shape: f32[16,8], index: 3, kind: input, shape index: {}]   ;;  %s4024_s0 = inlined_call_operand.vmem [shape: f32[512,8], index: 0, kind: input, shape index: {}]   ;;  %s4025_s4 = inlined_call_operand.vmem [shape: f32[1,8], index: 4, kind: input, shape index: {}]   ;;  %s4026_s5 = inlined_call_operand.vmem [shape: f32[512,8], index: 5, kind: output, shape index: {}]  }
   0x1   :  { %v85_v0 = vld [vmem:[%s4021_s1 + $0x8] sm:$0xff]  ;;  %v84_v1 = vld [vmem:[%s4021_s1] sm:$0xff]  ;;  %v118_v8 = vld [vmem:[%s4021_s1 + $0x110] sm:$0xff] }
   0x2   :  { %278 = vrot.lane.b32.xlu1 %v85_v0, %s2517_s22  ;;  %276 = vrot.lane.b32.xlu0 %v84_v1, %s2517_s22  ;;  %v117_v2 = vld [vmem:[%s4021_s1 + $0x108] sm:$0xff]  ;;  %v116_v3 = vld [vmem:[%s4021_s1 + $0x100] sm:$0xff] }
   0x3   :  { %v180_v4 = vld [vmem:[%s4022_s2 + $0x100] sm:$0xff]  ;;  %v181_v6 = vld [vmem:[%s4022_s2 + $0x108] sm:$0xff]  ;;  %v86_v9 = vld [vmem:[%s4021_s1 + $0x10] sm:$0xff] }
   0x4   :  { %v148_v5 = vld [vmem:[%s4022_s2] sm:$0xff]  ;;  %v149_v7 = vld [vmem:[%s4022_s2 + $0x8] sm:$0xff]  ;;  %v119_v10 = vld [vmem:[%s4021_s1 + $0x118] sm:$0xff] }
   0x5   :  { %v87_v11 = vld [vmem:[%s4021_s1 + $0x18] sm:$0xff]  ;;  %v182_v12 = vld [vmem:[%s4022_s2 + $0x110] sm:$0xff]  ;;  %v854_v14 = vld [vmem:[%s4023_s3] sm:$0xff] }
   0x6   :  { %342 = vrot.lane.b32.xlu1 %v117_v2, %s2517_s22  ;;  %340 = vrot.lane.b32.xlu0 %v116_v3, %s2517_s22  ;;  %v150_v13 = vld [vmem:[%s4022_s2 + $0x10] sm:$0xff]  ;;  %v855_v15 = vld [vmem:[%s4023_s3 + $0x8] sm:$0xff] }
   0x7   :  { %v2252_v16 = vpack.c.bf16 %v855_v15, %v854_v14  ;;  %v183_v17 = vld [vmem:[%s4022_s2 + $0x118] sm:$0xff]  ;;  %v120_v19 = vld [vmem:[%s4021_s1 + $0x120] sm:$0xff]  ;;  %v121_v21 = vld [vmem:[%s4021_s1 + $0x128] sm:$0xff] }
   0x8   :  { %v151_v18 = vld [vmem:[%s4022_s2 + $0x18] sm:$0xff]  ;;  %v88_v20 = vld [vmem:[%s4021_s1 + $0x20] sm:$0xff]  ;;  %v89_v22 = vld [vmem:[%s4021_s1 + $0x28] sm:$0xff] }
   0x9   :  { %2253 = vmatprep.subr.bf16.mxu0 %v2252_v16  ;;  %2256 = vmatprep.subr.bf16.mxu1 %v2252_v16  ;;  %v184_v23 = vld [vmem:[%s4022_s2 + $0x120] sm:$0xff]  ;;  %v185_v25 = vld [vmem:[%s4022_s2 + $0x128] sm:$0xff]  ;;  %v122_v27 = vld [vmem:[%s4021_s1 + $0x130] sm:$0xff] }
   0xa   :  { %596 = vrot.lane.b32.xlu1 %v180_v4, %s2518_s6  ;;  %532 = vrot.lane.b32.xlu0 %v148_v5, %s2518_s6  ;;  %v152_v24 = vld [vmem:[%s4022_s2 + $0x20] sm:$0xff]  ;;  %v153_v26 = vld [vmem:[%s4022_s2 + $0x28] sm:$0xff] }
   0xb   :  { %2255 = vmatpush3.bf16.msra.mxu0 %v2252_v16  ;;  %2257 = vmatpush3.bf16.msra.mxu1 %v2252_v16  ;;  %v90_v28 = vld [vmem:[%s4021_s1 + $0x30] sm:$0xff]  ;;  %v123_v29 = vld [vmem:[%s4021_s1 + $0x138] sm:$0xff]  ;;  %v124_v35 = vld [vmem:[%s4021_s1 + $0x140] sm:$0xff] }
   0xc   :  { %v91_v30 = vld [vmem:[%s4021_s1 + $0x38] sm:$0xff]  ;;  %v186_v31 = vld [vmem:[%s4022_s2 + $0x130] sm:$0xff]  ;;  %v92_v36 = vld [vmem:[%s4021_s1 + $0x40] sm:$0xff] }
   0xd   :  { %v154_v32 = vld [vmem:[%s4022_s2 + $0x30] sm:$0xff]  ;;  %v187_v33 = vld [vmem:[%s4022_s2 + $0x138] sm:$0xff]  ;;  %v125_v37 = vld [vmem:[%s4021_s1 + $0x148] sm:$0xff] }
   0xe   :  { %598 = vrot.lane.b32.xlu1 %v181_v6, %s2518_s6  ;;  %534 = vrot.lane.b32.xlu0 %v149_v7, %s2518_s6  ;;  %v155_v34 = vld [vmem:[%s4022_s2 + $0x38] sm:$0xff]  ;;  %v93_v38 = vld [vmem:[%s4021_s1 + $0x48] sm:$0xff] }
   0xf   :  { %v188_v39 = vld [vmem:[%s4022_s2 + $0x140] sm:$0xff]  ;;  %v189_v41 = vld [vmem:[%s4022_s2 + $0x148] sm:$0xff]  ;;  %v126_v43 = vld [vmem:[%s4021_s1 + $0x150] sm:$0xff] }
  0x10   :  { %v156_v40 = vld [vmem:[%s4022_s2 + $0x40] sm:$0xff]  ;;  %v157_v42 = vld [vmem:[%s4022_s2 + $0x48] sm:$0xff]  ;;  %v94_v44 = vld [vmem:[%s4021_s1 + $0x50] sm:$0xff] }
  0x11   :  { %v127_v45 = vld [vmem:[%s4021_s1 + $0x158] sm:$0xff]  ;;  %v190_v47 = vld [vmem:[%s4022_s2 + $0x150] sm:$0xff]  ;;  %v128_v51 = vld [vmem:[%s4021_s1 + $0x160] sm:$0xff] }
  0x12   :  { %344 = vrot.lane.b32.xlu1 %v118_v8, %s2517_s22  ;;  %280 = vrot.lane.b32.xlu0 %v86_v9, %s2517_s22  ;;  %v95_v46 = vld [vmem:[%s4021_s1 + $0x58] sm:$0xff]  ;;  %v158_v48 = vld [vmem:[%s4022_s2 + $0x50] sm:$0xff] }
  0x13   :  { %v191_v49 = vld [vmem:[%s4022_s2 + $0x158] sm:$0xff]  ;;  %v96_v52 = vld [vmem:[%s4021_s1 + $0x60] sm:$0xff]  ;;  %v129_v53 = vld [vmem:[%s4021_s1 + $0x168] sm:$0xff] }
  0x14   :  { %v159_v50 = vld [vmem:[%s4022_s2 + $0x58] sm:$0xff]  ;;  %v97_v54 = vld [vmem:[%s4021_s1 + $0x68] sm:$0xff]  ;;  %v192_v55 = vld [vmem:[%s4022_s2 + $0x160] sm:$0xff] }
  0x15   :  { %v160_v56 = vld [vmem:[%s4022_s2 + $0x60] sm:$0xff]  ;;  %v193_v57 = vld [vmem:[%s4022_s2 + $0x168] sm:$0xff]  ;;  %v130_v59 = vld [vmem:[%s4021_s1 + $0x170] sm:$0xff] }
  0x16   :  { %346 = vrot.lane.b32.xlu1 %v119_v10, %s2517_s22  ;;  %282 = vrot.lane.b32.xlu0 %v87_v11, %s2517_s22  ;;  %v161_v58 = vld [vmem:[%s4022_s2 + $0x68] sm:$0xff]  ;;  %v98_v60 = vld [vmem:[%s4021_s1 + $0x70] sm:$0xff] }
  0x17   :  { %v131_v61 = vld [vmem:[%s4021_s1 + $0x178] sm:$0xff]  ;;  %v194_v1 = vld [vmem:[%s4022_s2 + $0x170] sm:$0xff]  ;;  %v20_v5 = vld [vmem:[%s4024_s0] sm:$0xff] }
  0x18   :  { %v99_v62 = vld [vmem:[%s4021_s1 + $0x78] sm:$0xff]  ;;  %v162_v2 = vld [vmem:[%s4022_s2 + $0x70] sm:$0xff]  ;;  %v52_v6 = vld [vmem:[%s4024_s0 + $0x100] sm:$0xff] }
  0x19   :  { %v195_v7 = vld [vmem:[%s4022_s2 + $0x178] sm:$0xff]  ;;  %v53_v14 = vld [vmem:[%s4024_s0 + $0x108] sm:$0xff] }
  0x1a   :  { %600 = vrot.lane.b32.xlu1 %v182_v12, %s2518_s6  ;;  %536 = vrot.lane.b32.xlu0 %v150_v13, %s2518_s6  ;;  %v163_v8 = vld [vmem:[%s4022_s2 + $0x78] sm:$0xff]  ;;  %v21_v13 = vld [vmem:[%s4024_s0 + $0x8] sm:$0xff] }
  0x1e   :  { %602 = vrot.lane.b32.xlu1 %v183_v17, %s2518_s6  ;;  %538 = vrot.lane.b32.xlu0 %v151_v18, %s2518_s6  ;;  %v132_v17 = vld [vmem:[%s4021_s1 + $0x180] sm:$0xff] }
  0x1f   :  { %v100_v18 = vld [vmem:[%s4021_s1 + $0x80] sm:$0xff] }
  0x22   :  { %348 = vrot.lane.b32.xlu1 %v120_v19, %s2517_s22  ;;  %284 = vrot.lane.b32.xlu0 %v88_v20, %s2517_s22 }
  0x26   :  { %350 = vrot.lane.b32.xlu1 %v121_v21, %s2517_s22  ;;  %286 = vrot.lane.b32.xlu0 %v89_v22, %s2517_s22 }
  0x2a   :  { %604 = vrot.lane.b32.xlu1 %v184_v23, %s2518_s6  ;;  %540 = vrot.lane.b32.xlu0 %v152_v24, %s2518_s6 }
  0x2e   :  { %606 = vrot.lane.b32.xlu1 %v185_v25, %s2518_s6  ;;  %542 = vrot.lane.b32.xlu0 %v153_v26, %s2518_s6  ;;  %v133_v25 = vld [vmem:[%s4021_s1 + $0x188] sm:$0xff] }
  0x2f   :  { %v101_v26 = vld [vmem:[%s4021_s1 + $0x88] sm:$0xff] }
  0x32   :  { %352 = vrot.lane.b32.xlu1 %v122_v27, %s2517_s22  ;;  %288 = vrot.lane.b32.xlu0 %v90_v28, %s2517_s22 }
  0x36   :  { %354 = vrot.lane.b32.xlu1 %v123_v29, %s2517_s22  ;;  %290 = vrot.lane.b32.xlu0 %v91_v30, %s2517_s22  ;;  %v196_v29 = vld [vmem:[%s4022_s2 + $0x180] sm:$0xff] }
  0x37   :  { %v164_v30 = vld [vmem:[%s4022_s2 + $0x80] sm:$0xff] }
  0x3a   :  { %608 = vrot.lane.b32.xlu1 %v186_v31, %s2518_s6  ;;  %544 = vrot.lane.b32.xlu0 %v154_v32, %s2518_s6 }
  0x3e   :  { %610 = vrot.lane.b32.xlu1 %v187_v33, %s2518_s6  ;;  %546 = vrot.lane.b32.xlu0 %v155_v34, %s2518_s6  ;;  %v54_v33 = vld [vmem:[%s4024_s0 + $0x110] sm:$0xff] }
  0x3f   :  { %v22_v34 = vld [vmem:[%s4024_s0 + $0x10] sm:$0xff] }
  0x42   :  { %356 = vrot.lane.b32.xlu1 %v124_v35, %s2517_s22  ;;  %292 = vrot.lane.b32.xlu0 %v92_v36, %s2517_s22  ;;  %v197_v35 = vld [vmem:[%s4022_s2 + $0x188] sm:$0xff] }
  0x43   :  { %v165_v36 = vld [vmem:[%s4022_s2 + $0x88] sm:$0xff] }
  0x46   :  { %358 = vrot.lane.b32.xlu1 %v125_v37, %s2517_s22  ;;  %294 = vrot.lane.b32.xlu0 %v93_v38, %s2517_s22 }
  0x4a   :  { %612 = vrot.lane.b32.xlu1 %v188_v39, %s2518_s6  ;;  %548 = vrot.lane.b32.xlu0 %v156_v40, %s2518_s6 }
  0x4e   :  { %614 = vrot.lane.b32.xlu1 %v189_v41, %s2518_s6  ;;  %550 = vrot.lane.b32.xlu0 %v157_v42, %s2518_s6  ;;  %v55_v41 = vld [vmem:[%s4024_s0 + $0x118] sm:$0xff] }
  0x4f   :  { %v23_v42 = vld [vmem:[%s4024_s0 + $0x18] sm:$0xff] }
  0x52   :  { %360 = vrot.lane.b32.xlu1 %v126_v43, %s2517_s22  ;;  %296 = vrot.lane.b32.xlu0 %v94_v44, %s2517_s22 }
  0x56   :  { %362 = vrot.lane.b32.xlu1 %v127_v45, %s2517_s22  ;;  %298 = vrot.lane.b32.xlu0 %v95_v46, %s2517_s22  ;;  %v134_v45 = vld [vmem:[%s4021_s1 + $0x190] sm:$0xff] }
  0x57   :  { %v102_v46 = vld [vmem:[%s4021_s1 + $0x90] sm:$0xff] }
  0x5a   :  { %616 = vrot.lane.b32.xlu1 %v190_v47, %s2518_s6  ;;  %552 = vrot.lane.b32.xlu0 %v158_v48, %s2518_s6 }
  0x5e   :  { %618 = vrot.lane.b32.xlu1 %v191_v49, %s2518_s6  ;;  %554 = vrot.lane.b32.xlu0 %v159_v50, %s2518_s6 }
  0x62   :  { %364 = vrot.lane.b32.xlu1 %v128_v51, %s2517_s22  ;;  %300 = vrot.lane.b32.xlu0 %v96_v52, %s2517_s22 }
  0x66   :  { %366 = vrot.lane.b32.xlu1 %v129_v53, %s2517_s22  ;;  %302 = vrot.lane.b32.xlu0 %v97_v54, %s2517_s22  ;;  %v135_v53 = vld [vmem:[%s4021_s1 + $0x198] sm:$0xff] }
  0x67   :  { %v103_v54 = vld [vmem:[%s4021_s1 + $0x98] sm:$0xff] }
  0x6a   :  { %620 = vrot.lane.b32.xlu1 %v192_v55, %s2518_s6  ;;  %556 = vrot.lane.b32.xlu0 %v160_v56, %s2518_s6 }
  0x6e   :  { %622 = vrot.lane.b32.xlu1 %v193_v57, %s2518_s6  ;;  %558 = vrot.lane.b32.xlu0 %v161_v58, %s2518_s6  ;;  %v198_v57 = vld [vmem:[%s4022_s2 + $0x190] sm:$0xff] }
  0x6f   :  { %v166_v58 = vld [vmem:[%s4022_s2 + $0x90] sm:$0xff] }
  0x72   :  { %368 = vrot.lane.b32.xlu1 %v130_v59, %s2517_s22  ;;  %304 = vrot.lane.b32.xlu0 %v98_v60, %s2517_s22 }
  0x74   :  { %v279_v63 = vpop.permute.xlu1 %278  ;;  %v277_v0 = vpop.permute.xlu0 %276 }
  0x75   :  { %v725_v9 = vsel %vm724_vm0, %v20_v5, %v277_v0  ;;  %v726_v19 = vsel %vm724_vm0, %v21_v13, %v279_v63  ;;  %v199_v63 = vld [vmem:[%s4022_s2 + $0x198] sm:$0xff]  ;;  %v57_v5 = vld [vmem:[%s4024_s0 + $0x128] sm:$0xff] }
  0x76   :  { %370 = vrot.lane.b32.xlu1 %v131_v61, %s2517_s22  ;;  %306 = vrot.lane.b32.xlu0 %v99_v62, %s2517_s22  ;;  %v56_v61 = vld [vmem:[%s4024_s0 + $0x120] sm:$0xff]  ;;  %v167_v0 = vld [vmem:[%s4022_s2 + $0x98] sm:$0xff] }
  0x77   :  { %v24_v62 = vld [vmem:[%s4024_s0 + $0x20] sm:$0xff] }
  0x78   :  { %v343_v3 = vpop.permute.xlu1 %342  ;;  %v341_v4 = vpop.permute.xlu0 %340 }
  0x79   :  { %v757_v10 = vsel %vm724_vm0, %v52_v6, %v341_v4  ;;  %v758_v20 = vsel %vm724_vm0, %v53_v14, %v343_v3  ;;  %v25_v6 = vld [vmem:[%s4024_s0 + $0x28] sm:$0xff] }
  0x7a   :  { %624 = vrot.lane.b32.xlu1 %v194_v1, %s2518_s6  ;;  %560 = vrot.lane.b32.xlu0 %v162_v2, %s2518_s6 }
  0x7c   :  { %v597_v11 = vpop.permute.xlu1 %596  ;;  %v533_v12 = vpop.permute.xlu0 %532 }
  0x7d   :  { %v790_v15 = vsel %vm789_vm1, %v725_v9, %v533_v12  ;;  %v822_v16 = vsel %vm789_vm1, %v757_v10, %v597_v11  ;;  %v136_v9 = vld [vmem:[%s4021_s1 + $0x1a0] sm:$0xff] }
  0x7e   :  { %626 = vrot.lane.b32.xlu1 %v195_v7, %s2518_s6  ;;  %562 = vrot.lane.b32.xlu0 %v163_v8, %s2518_s6  ;;  %v104_v10 = vld [vmem:[%s4021_s1 + $0xa0] sm:$0xff] }
  0x7f   :  { %2156 = vmatprep.mubr.msk.f32.mxu0 %vm863_vm2, %v790_v15  ;;  %2204 = vmatprep.mubr.msk.f32.mxu1 %vm863_vm2, %v822_v16 }
  0x80   :  { %v599_v21 = vpop.permute.xlu1 %598  ;;  %v535_v22 = vpop.permute.xlu0 %534 }
  0x81   :  { %v823_v23 = vsel %vm789_vm1, %v758_v20, %v599_v21  ;;  %v791_v24 = vsel %vm789_vm1, %v726_v19, %v535_v22  ;;  %v200_v21 = vld [vmem:[%s4022_s2 + $0x1a0] sm:$0xff] }
  0x82   :  { %372 = vrot.lane.b32.xlu1 %v132_v17, %s2517_s22  ;;  %308 = vrot.lane.b32.xlu0 %v100_v18, %s2517_s22  ;;  %v137_v17 = vld [vmem:[%s4021_s1 + $0x1a8] sm:$0xff]  ;;  %v168_v22 = vld [vmem:[%s4022_s2 + $0xa0] sm:$0xff] }
  0x83   :  { %2157 = vmatmul.mubr.msk.f32.vlgmr.msra.gmra.mrb[0].mxu0 %vm863_vm2, %v791_v24  ;;  %2205 = vmatmul.mubr.msk.f32.vlgmr.msra.gmra.mrb[0].mxu1 %vm863_vm2, %v823_v23  ;;  %v105_v18 = vld [vmem:[%s4021_s1 + $0xa8] sm:$0xff] }
  0x84   :  { %v345_v27 = vpop.permute.xlu1 %344  ;;  %v281_v28 = vpop.permute.xlu0 %280 }
  0x85   :  { %v759_v37 = vsel %vm724_vm0, %v54_v33, %v345_v27  ;;  %v727_v38 = vsel %vm724_vm0, %v22_v34, %v281_v28  ;;  %v201_v27 = vld [vmem:[%s4022_s2 + $0x1a8] sm:$0xff]  ;;  %v59_v33 = vld [vmem:[%s4024_s0 + $0x138] sm:$0xff] }
  0x86   :  { %374 = vrot.lane.b32.xlu1 %v133_v25, %s2517_s22  ;;  %310 = vrot.lane.b32.xlu0 %v101_v26, %s2517_s22  ;;  %v58_v25 = vld [vmem:[%s4024_s0 + $0x130] sm:$0xff]  ;;  %v169_v28 = vld [vmem:[%s4022_s2 + $0xa8] sm:$0xff] }
  0x87   :  { %v26_v26 = vld [vmem:[%s4024_s0 + $0x30] sm:$0xff]  ;;  %v27_v34 = vld [vmem:[%s4024_s0 + $0x38] sm:$0xff] }
  0x88   :  { %v347_v31 = vpop.permute.xlu1 %346  ;;  %v283_v32 = vpop.permute.xlu0 %282 }
  0x89   :  { %v760_v47 = vsel %vm724_vm0, %v55_v41, %v347_v31  ;;  %v728_v48 = vsel %vm724_vm0, %v23_v42, %v283_v32 }
  0x8a   :  { %628 = vrot.lane.b32.xlu1 %v196_v29, %s2518_s6  ;;  %564 = vrot.lane.b32.xlu0 %v164_v30, %s2518_s6 }
  0x8c   :  { %v601_v39 = vpop.permute.xlu1 %600  ;;  %v537_v40 = vpop.permute.xlu0 %536 }
  0x8d   :  { %v824_v43 = vsel %vm789_vm1, %v759_v37, %v601_v39  ;;  %v792_v44 = vsel %vm789_vm1, %v727_v38, %v537_v40  ;;  %v138_v37 = vld [vmem:[%s4021_s1 + $0x1b0] sm:$0xff] }
  0x8e   :  { %630 = vrot.lane.b32.xlu1 %v197_v35, %s2518_s6  ;;  %566 = vrot.lane.b32.xlu0 %v165_v36, %s2518_s6  ;;  %v106_v38 = vld [vmem:[%s4021_s1 + $0xb0] sm:$0xff] }
  0x8f   :  { %2159 = vmatprep.mubr.msk.f32.mxu0 %vm863_vm2, %v792_v44  ;;  %2207 = vmatprep.mubr.msk.f32.mxu1 %vm863_vm2, %v824_v43 }
  0x90   :  { %v603_v49 = vpop.permute.xlu1 %602  ;;  %v539_v50 = vpop.permute.xlu0 %538 }
  0x91   :  { %v825_v51 = vsel %vm789_vm1, %v760_v47, %v603_v49  ;;  %v793_v52 = vsel %vm789_vm1, %v728_v48, %v539_v50  ;;  %v202_v49 = vld [vmem:[%s4022_s2 + $0x1b0] sm:$0xff] }
  0x92   :  { %376 = vrot.lane.b32.xlu1 %v134_v45, %s2517_s22  ;;  %312 = vrot.lane.b32.xlu0 %v102_v46, %s2517_s22  ;;  %v139_v45 = vld [vmem:[%s4021_s1 + $0x1b8] sm:$0xff]  ;;  %v170_v50 = vld [vmem:[%s4022_s2 + $0xb0] sm:$0xff] }
  0x93   :  { %2160 = vmatmul.mubr.msk.f32.gmra.mrb[2].mxu0 %vm863_vm2, %v793_v52  ;;  %2208 = vmatmul.mubr.msk.f32.gmra.mrb[2].mxu1 %vm863_vm2, %v825_v51  ;;  %v107_v46 = vld [vmem:[%s4021_s1 + $0xb8] sm:$0xff] }
  0x94   :  { %v349_v55 = vpop.permute.xlu1 %348  ;;  %v285_v56 = vpop.permute.xlu0 %284 }
  0x95   :  { %v761_v1 = vsel %vm724_vm0, %v56_v61, %v349_v55  ;;  %v729_v2 = vsel %vm724_vm0, %v24_v62, %v285_v56  ;;  %v203_v55 = vld [vmem:[%s4022_s2 + $0x1b8] sm:$0xff]  ;;  %v61_v61 = vld [vmem:[%s4024_s0 + $0x148] sm:$0xff] }
  0x96   :  { %378 = vrot.lane.b32.xlu1 %v135_v53, %s2517_s22  ;;  %314 = vrot.lane.b32.xlu0 %v103_v54, %s2517_s22  ;;  %v60_v53 = vld [vmem:[%s4024_s0 + $0x140] sm:$0xff]  ;;  %v171_v56 = vld [vmem:[%s4022_s2 + $0xb8] sm:$0xff] }
  0x97   :  { %v28_v54 = vld [vmem:[%s4024_s0 + $0x40] sm:$0xff]  ;;  %v29_v62 = vld [vmem:[%s4024_s0 + $0x48] sm:$0xff] }
  0x98   :  { %v351_v59 = vpop.permute.xlu1 %350  ;;  %v287_v60 = vpop.permute.xlu0 %286 }
  0x99   :  { %v762_v11 = vsel %vm724_vm0, %v57_v5, %v351_v59  ;;  %v730_v12 = vsel %vm724_vm0, %v25_v6, %v287_v60 }
  0x9a   :  { %632 = vrot.lane.b32.xlu1 %v198_v57, %s2518_s6  ;;  %568 = vrot.lane.b32.xlu0 %v166_v58, %s2518_s6 }
  0x9c   :  { %v605_v3 = vpop.permute.xlu1 %604  ;;  %v541_v4 = vpop.permute.xlu0 %540 }
  0x9d   :  { %v826_v7 = vsel %vm789_vm1, %v761_v1, %v605_v3  ;;  %v794_v8 = vsel %vm789_vm1, %v729_v2, %v541_v4  ;;  %v140_v1 = vld [vmem:[%s4021_s1 + $0x1c0] sm:$0xff] }
  0x9e   :  { %634 = vrot.lane.b32.xlu1 %v199_v63, %s2518_s6  ;;  %570 = vrot.lane.b32.xlu0 %v167_v0, %s2518_s6  ;;  %v108_v2 = vld [vmem:[%s4021_s1 + $0xc0] sm:$0xff] }
  0x9f   :  { %2162 = vmatprep.mubr.msk.f32.mxu0 %vm863_vm2, %v794_v8  ;;  %2210 = vmatprep.mubr.msk.f32.mxu1 %vm863_vm2, %v826_v7 }
  0xa0   :  { %v607_v13 = vpop.permute.xlu1 %606  ;;  %v543_v14 = vpop.permute.xlu0 %542 }
  0xa1   :  { %v827_v15 = vsel %vm789_vm1, %v762_v11, %v607_v13  ;;  %v795_v16 = vsel %vm789_vm1, %v730_v12, %v543_v14  ;;  %v204_v13 = vld [vmem:[%s4022_s2 + $0x1c0] sm:$0xff] }
  0xa2   :  { %380 = vrot.lane.b32.xlu1 %v136_v9, %s2517_s22  ;;  %316 = vrot.lane.b32.xlu0 %v104_v10, %s2517_s22  ;;  %v141_v9 = vld [vmem:[%s4021_s1 + $0x1c8] sm:$0xff]  ;;  %v172_v14 = vld [vmem:[%s4022_s2 + $0xc0] sm:$0xff] }
  0xa3   :  { %2163 = vmatmul.mubr.msk.f32.gmra.mrb[4].mxu0 %vm863_vm2, %v795_v16  ;;  %2211 = vmatmul.mubr.msk.f32.gmra.mrb[4].mxu1 %vm863_vm2, %v827_v15  ;;  %v109_v10 = vld [vmem:[%s4021_s1 + $0xc8] sm:$0xff] }
  0xa4   :  { %v353_v19 = vpop.permute.xlu1 %352  ;;  %v289_v20 = vpop.permute.xlu0 %288 }
  0xa5   :  { %v763_v29 = vsel %vm724_vm0, %v58_v25, %v353_v19  ;;  %v731_v30 = vsel %vm724_vm0, %v26_v26, %v289_v20  ;;  %v205_v19 = vld [vmem:[%s4022_s2 + $0x1c8] sm:$0xff]  ;;  %v63_v25 = vld [vmem:[%s4024_s0 + $0x158] sm:$0xff] }
  0xa6   :  { %382 = vrot.lane.b32.xlu1 %v137_v17, %s2517_s22  ;;  %318 = vrot.lane.b32.xlu0 %v105_v18, %s2517_s22  ;;  %v62_v17 = vld [vmem:[%s4024_s0 + $0x150] sm:$0xff]  ;;  %v173_v20 = vld [vmem:[%s4022_s2 + $0xc8] sm:$0xff] }
  0xa7   :  { %v30_v18 = vld [vmem:[%s4024_s0 + $0x50] sm:$0xff]  ;;  %v31_v26 = vld [vmem:[%s4024_s0 + $0x58] sm:$0xff] }
  0xa8   :  { %v355_v23 = vpop.permute.xlu1 %354  ;;  %v291_v24 = vpop.permute.xlu0 %290 }
  0xa9   :  { %v764_v39 = vsel %vm724_vm0, %v59_v33, %v355_v23  ;;  %v732_v40 = vsel %vm724_vm0, %v27_v34, %v291_v24 }
  0xaa   :  { %636 = vrot.lane.b32.xlu1 %v200_v21, %s2518_s6  ;;  %572 = vrot.lane.b32.xlu0 %v168_v22, %s2518_s6 }
  0xac   :  { %v609_v31 = vpop.permute.xlu1 %608  ;;  %v545_v32 = vpop.permute.xlu0 %544 }
  0xad   :  { %v828_v35 = vsel %vm789_vm1, %v763_v29, %v609_v31  ;;  %v796_v36 = vsel %vm789_vm1, %v731_v30, %v545_v32  ;;  %v142_v29 = vld [vmem:[%s4021_s1 + $0x1d0] sm:$0xff] }
  0xae   :  { %638 = vrot.lane.b32.xlu1 %v201_v27, %s2518_s6  ;;  %574 = vrot.lane.b32.xlu0 %v169_v28, %s2518_s6  ;;  %v110_v30 = vld [vmem:[%s4021_s1 + $0xd0] sm:$0xff] }
  0xaf   :  { %2165 = vmatprep.mubr.msk.f32.mxu0 %vm863_vm2, %v796_v36  ;;  %2213 = vmatprep.mubr.msk.f32.mxu1 %vm863_vm2, %v828_v35 }
  0xb0   :  { %v611_v41 = vpop.permute.xlu1 %610  ;;  %v547_v42 = vpop.permute.xlu0 %546 }
  0xb1   :  { %v829_v43 = vsel %vm789_vm1, %v764_v39, %v611_v41  ;;  %v797_v44 = vsel %vm789_vm1, %v732_v40, %v547_v42  ;;  %v206_v41 = vld [vmem:[%s4022_s2 + $0x1d0] sm:$0xff] }
  0xb2   :  { %384 = vrot.lane.b32.xlu1 %v138_v37, %s2517_s22  ;;  %320 = vrot.lane.b32.xlu0 %v106_v38, %s2517_s22  ;;  %v143_v37 = vld [vmem:[%s4021_s1 + $0x1d8] sm:$0xff]  ;;  %v174_v42 = vld [vmem:[%s4022_s2 + $0xd0] sm:$0xff] }
  0xb3   :  { %2166 = vmatmul.mubr.msk.f32.gmra.mrb[6].mxu0 %vm863_vm2, %v797_v44  ;;  %2214 = vmatmul.mubr.msk.f32.gmra.mrb[6].mxu1 %vm863_vm2, %v829_v43  ;;  %v111_v38 = vld [vmem:[%s4021_s1 + $0xd8] sm:$0xff] }
  0xb4   :  { %v357_v47 = vpop.permute.xlu1 %356  ;;  %v293_v48 = vpop.permute.xlu0 %292 }
  0xb5   :  { %v765_v57 = vsel %vm724_vm0, %v60_v53, %v357_v47  ;;  %v733_v58 = vsel %vm724_vm0, %v28_v54, %v293_v48  ;;  %v207_v47 = vld [vmem:[%s4022_s2 + $0x1d8] sm:$0xff]  ;;  %v65_v53 = vld [vmem:[%s4024_s0 + $0x168] sm:$0xff] }
  0xb6   :  { %386 = vrot.lane.b32.xlu1 %v139_v45, %s2517_s22  ;;  %322 = vrot.lane.b32.xlu0 %v107_v46, %s2517_s22  ;;  %v64_v45 = vld [vmem:[%s4024_s0 + $0x160] sm:$0xff]  ;;  %v175_v48 = vld [vmem:[%s4022_s2 + $0xd8] sm:$0xff] }
  0xb7   :  { %v32_v46 = vld [vmem:[%s4024_s0 + $0x60] sm:$0xff]  ;;  %v33_v54 = vld [vmem:[%s4024_s0 + $0x68] sm:$0xff] }
  0xb8   :  { %v359_v51 = vpop.permute.xlu1 %358  ;;  %v295_v52 = vpop.permute.xlu0 %294 }
  0xb9   :  { %v766_v3 = vsel %vm724_vm0, %v61_v61, %v359_v51  ;;  %v734_v4 = vsel %vm724_vm0, %v29_v62, %v295_v52 }
  0xba   :  { %640 = vrot.lane.b32.xlu1 %v202_v49, %s2518_s6  ;;  %576 = vrot.lane.b32.xlu0 %v170_v50, %s2518_s6 }
  0xbc   :  { %v613_v59 = vpop.permute.xlu1 %612  ;;  %v549_v60 = vpop.permute.xlu0 %548 }
  0xbd   :  { %v830_v63 = vsel %vm789_vm1, %v765_v57, %v613_v59  ;;  %v798_v0 = vsel %vm789_vm1, %v733_v58, %v549_v60  ;;  %v144_v57 = vld [vmem:[%s4021_s1 + $0x1e0] sm:$0xff] }
  0xbe   :  { %642 = vrot.lane.b32.xlu1 %v203_v55, %s2518_s6  ;;  %578 = vrot.lane.b32.xlu0 %v171_v56, %s2518_s6  ;;  %v112_v58 = vld [vmem:[%s4021_s1 + $0xe0] sm:$0xff] }
  0xbf   :  { %2168 = vmatprep.mubr.msk.f32.mxu0 %vm863_vm2, %v798_v0  ;;  %2216 = vmatprep.mubr.msk.f32.mxu1 %vm863_vm2, %v830_v63 }
  0xc0   :  { %v615_v5 = vpop.permute.xlu1 %614  ;;  %v551_v6 = vpop.permute.xlu0 %550 }
  0xc1   :  { %v831_v7 = vsel %vm789_vm1, %v766_v3, %v615_v5  ;;  %v799_v8 = vsel %vm789_vm1, %v734_v4, %v551_v6  ;;  %v208_v5 = vld [vmem:[%s4022_s2 + $0x1e0] sm:$0xff] }
  0xc2   :  { %388 = vrot.lane.b32.xlu1 %v140_v1, %s2517_s22  ;;  %324 = vrot.lane.b32.xlu0 %v108_v2, %s2517_s22  ;;  %v145_v1 = vld [vmem:[%s4021_s1 + $0x1e8] sm:$0xff]  ;;  %v176_v6 = vld [vmem:[%s4022_s2 + $0xe0] sm:$0xff] }
  0xc3   :  { %2169 = vmatmul.mubr.msk.f32.gmra.mrb[8].mxu0 %vm863_vm2, %v799_v8  ;;  %2217 = vmatmul.mubr.msk.f32.gmra.mrb[8].mxu1 %vm863_vm2, %v831_v7  ;;  %v113_v2 = vld [vmem:[%s4021_s1 + $0xe8] sm:$0xff] }
  0xc4   :  { %v361_v11 = vpop.permute.xlu1 %360  ;;  %v297_v12 = vpop.permute.xlu0 %296 }
  0xc5   :  { %v767_v21 = vsel %vm724_vm0, %v62_v17, %v361_v11  ;;  %v735_v22 = vsel %vm724_vm0, %v30_v18, %v297_v12  ;;  %v209_v11 = vld [vmem:[%s4022_s2 + $0x1e8] sm:$0xff]  ;;  %v67_v17 = vld [vmem:[%s4024_s0 + $0x178] sm:$0xff] }
  0xc6   :  { %390 = vrot.lane.b32.xlu1 %v141_v9, %s2517_s22  ;;  %326 = vrot.lane.b32.xlu0 %v109_v10, %s2517_s22  ;;  %v66_v9 = vld [vmem:[%s4024_s0 + $0x170] sm:$0xff]  ;;  %v177_v12 = vld [vmem:[%s4022_s2 + $0xe8] sm:$0xff] }
  0xc7   :  { %v34_v10 = vld [vmem:[%s4024_s0 + $0x70] sm:$0xff]  ;;  %v35_v18 = vld [vmem:[%s4024_s0 + $0x78] sm:$0xff] }
  0xc8   :  { %v363_v15 = vpop.permute.xlu1 %362  ;;  %v299_v16 = vpop.permute.xlu0 %298 }
  0xc9   :  { %v768_v31 = vsel %vm724_vm0, %v63_v25, %v363_v15  ;;  %v736_v32 = vsel %vm724_vm0, %v31_v26, %v299_v16 }
  0xca   :  { %644 = vrot.lane.b32.xlu1 %v204_v13, %s2518_s6  ;;  %580 = vrot.lane.b32.xlu0 %v172_v14, %s2518_s6 }
  0xcc   :  { %v617_v23 = vpop.permute.xlu1 %616  ;;  %v553_v24 = vpop.permute.xlu0 %552 }
  0xcd   :  { %v832_v27 = vsel %vm789_vm1, %v767_v21, %v617_v23  ;;  %v800_v28 = vsel %vm789_vm1, %v735_v22, %v553_v24  ;;  %v146_v21 = vld [vmem:[%s4021_s1 + $0x1f0] sm:$0xff] }
  0xce   :  { %646 = vrot.lane.b32.xlu1 %v205_v19, %s2518_s6  ;;  %582 = vrot.lane.b32.xlu0 %v173_v20, %s2518_s6  ;;  %v114_v22 = vld [vmem:[%s4021_s1 + $0xf0] sm:$0xff] }
  0xcf   :  { %2171 = vmatprep.mubr.msk.f32.mxu0 %vm863_vm2, %v800_v28  ;;  %2219 = vmatprep.mubr.msk.f32.mxu1 %vm863_vm2, %v832_v27 }
  0xd0   :  { %v619_v33 = vpop.permute.xlu1 %618  ;;  %v555_v34 = vpop.permute.xlu0 %554 }
  0xd1   :  { %v833_v35 = vsel %vm789_vm1, %v768_v31, %v619_v33  ;;  %v801_v36 = vsel %vm789_vm1, %v736_v32, %v555_v34  ;;  %v210_v33 = vld [vmem:[%s4022_s2 + $0x1f0] sm:$0xff] }
  0xd2   :  { %392 = vrot.lane.b32.xlu1 %v142_v29, %s2517_s22  ;;  %328 = vrot.lane.b32.xlu0 %v110_v30, %s2517_s22  ;;  %v147_v29 = vld [vmem:[%s4021_s1 + $0x1f8] sm:$0xff]  ;;  %v178_v34 = vld [vmem:[%s4022_s2 + $0xf0] sm:$0xff] }
  0xd3   :  { %2172 = vmatmul.mubr.msk.f32.gmra.mrb[10].mxu0 %vm863_vm2, %v801_v36  ;;  %2220 = vmatmul.mubr.msk.f32.gmra.mrb[10].mxu1 %vm863_vm2, %v833_v35  ;;  %v115_v30 = vld [vmem:[%s4021_s1 + $0xf8] sm:$0xff] }
  0xd4   :  { %v365_v39 = vpop.permute.xlu1 %364  ;;  %v301_v40 = vpop.permute.xlu0 %300 }
  0xd5   :  { %v769_v49 = vsel %vm724_vm0, %v64_v45, %v365_v39  ;;  %v737_v50 = vsel %vm724_vm0, %v32_v46, %v301_v40  ;;  %v211_v39 = vld [vmem:[%s4022_s2 + $0x1f8] sm:$0xff]  ;;  %v69_v45 = vld [vmem:[%s4024_s0 + $0x188] sm:$0xff] }
  0xd6   :  { %394 = vrot.lane.b32.xlu1 %v143_v37, %s2517_s22  ;;  %330 = vrot.lane.b32.xlu0 %v111_v38, %s2517_s22  ;;  %v68_v37 = vld [vmem:[%s4024_s0 + $0x180] sm:$0xff]  ;;  %v179_v40 = vld [vmem:[%s4022_s2 + $0xf8] sm:$0xff] }
  0xd7   :  { %v36_v38 = vld [vmem:[%s4024_s0 + $0x80] sm:$0xff]  ;;  %v37_v46 = vld [vmem:[%s4024_s0 + $0x88] sm:$0xff] }
  0xd8   :  { %v367_v43 = vpop.permute.xlu1 %366  ;;  %v303_v44 = vpop.permute.xlu0 %302 }
  0xd9   :  { %v770_v59 = vsel %vm724_vm0, %v65_v53, %v367_v43  ;;  %v738_v60 = vsel %vm724_vm0, %v33_v54, %v303_v44 }
  0xda   :  { %648 = vrot.lane.b32.xlu1 %v206_v41, %s2518_s6  ;;  %584 = vrot.lane.b32.xlu0 %v174_v42, %s2518_s6 }
  0xdc   :  { %v621_v51 = vpop.permute.xlu1 %620  ;;  %v557_v52 = vpop.permute.xlu0 %556 }
  0xdd   :  { %v834_v55 = vsel %vm789_vm1, %v769_v49, %v621_v51  ;;  %v802_v56 = vsel %vm789_vm1, %v737_v50, %v557_v52 }
  0xde   :  { %650 = vrot.lane.b32.xlu1 %v207_v47, %s2518_s6  ;;  %586 = vrot.lane.b32.xlu0 %v175_v48, %s2518_s6 }
  0xdf   :  { %2174 = vmatprep.mubr.msk.f32.mxu0 %vm863_vm2, %v802_v56  ;;  %2222 = vmatprep.mubr.msk.f32.mxu1 %vm863_vm2, %v834_v55 }
  0xe0   :  { %v623_v61 = vpop.permute.xlu1 %622  ;;  %v559_v62 = vpop.permute.xlu0 %558 }
  0xe1   :  { %v835_v63 = vsel %vm789_vm1, %v770_v59, %v623_v61  ;;  %v803_v0 = vsel %vm789_vm1, %v738_v60, %v559_v62  ;;  %v70_v59 = vld [vmem:[%s4024_s0 + $0x190] sm:$0xff] }
  0xe2   :  { %396 = vrot.lane.b32.xlu1 %v144_v57, %s2517_s22  ;;  %332 = vrot.lane.b32.xlu0 %v112_v58, %s2517_s22  ;;  %v38_v60 = vld [vmem:[%s4024_s0 + $0x90] sm:$0xff] }
  0xe3   :  { %2175 = vmatmul.mubr.msk.f32.gmra.mrb[12].mxu0 %vm863_vm2, %v803_v0  ;;  %2223 = vmatmul.mubr.msk.f32.gmra.mrb[12].mxu1 %vm863_vm2, %v835_v63 }
  0xe4   :  { %v369_v3 = vpop.permute.xlu1 %368  ;;  %v305_v4 = vpop.permute.xlu0 %304 }
  0xe5   :  { %v771_v13 = vsel %vm724_vm0, %v66_v9, %v369_v3  ;;  %v739_v14 = vsel %vm724_vm0, %v34_v10, %v305_v4 }
  0xe6   :  { %398 = vrot.lane.b32.xlu1 %v145_v1, %s2517_s22  ;;  %334 = vrot.lane.b32.xlu0 %v113_v2, %s2517_s22  ;;  %v71_v1 = vld [vmem:[%s4024_s0 + $0x198] sm:$0xff] }
  0xe7   :  { %v39_v2 = vld [vmem:[%s4024_s0 + $0x98] sm:$0xff] }
  0xe8   :  { %v371_v7 = vpop.permute.xlu1 %370  ;;  %v307_v8 = vpop.permute.xlu0 %306 }
  0xe9   :  { %v772_v23 = vsel %vm724_vm0, %v67_v17, %v371_v7  ;;  %v740_v24 = vsel %vm724_vm0, %v35_v18, %v307_v8 }
  0xea   :  { %652 = vrot.lane.b32.xlu1 %v208_v5, %s2518_s6  ;;  %588 = vrot.lane.b32.xlu0 %v176_v6, %s2518_s6 }
  0xec   :  { %v625_v15 = vpop.permute.xlu1 %624  ;;  %v561_v16 = vpop.permute.xlu0 %560 }
  0xed   :  { %v836_v19 = vsel %vm789_vm1, %v771_v13, %v625_v15  ;;  %v804_v20 = vsel %vm789_vm1, %v739_v14, %v561_v16  ;;  %v72_v15 = vld [vmem:[%s4024_s0 + $0x1a0] sm:$0xff] }
  0xee   :  { %654 = vrot.lane.b32.xlu1 %v209_v11, %s2518_s6  ;;  %590 = vrot.lane.b32.xlu0 %v177_v12, %s2518_s6  ;;  %v40_v16 = vld [vmem:[%s4024_s0 + $0xa0] sm:$0xff] }
  0xef   :  { %2177 = vmatprep.mubr.msk.f32.mxu0 %vm863_vm2, %v804_v20  ;;  %2225 = vmatprep.mubr.msk.f32.mxu1 %vm863_vm2, %v836_v19 }
  0xf0   :  { %v627_v25 = vpop.permute.xlu1 %626  ;;  %v563_v26 = vpop.permute.xlu0 %562 }
  0xf1   :  { %v837_v27 = vsel %vm789_vm1, %v772_v23, %v627_v25  ;;  %v805_v28 = vsel %vm789_vm1, %v740_v24, %v563_v26 }
  0xf2   :  { %400 = vrot.lane.b32.xlu1 %v146_v21, %s2517_s22  ;;  %336 = vrot.lane.b32.xlu0 %v114_v22, %s2517_s22  ;;  %v73_v21 = vld [vmem:[%s4024_s0 + $0x1a8] sm:$0xff] }
  0xf3   :  { %2178 = vmatmul.mubr.msk.f32.gmra.mrb[14].mxu0 %vm863_vm2, %v805_v28  ;;  %2226 = vmatmul.mubr.msk.f32.gmra.mrb[14].mxu1 %vm863_vm2, %v837_v27  ;;  %v41_v22 = vld [vmem:[%s4024_s0 + $0xa8] sm:$0xff] }
  0xf4   :  { %v373_v31 = vpop.permute.xlu1 %372  ;;  %v309_v32 = vpop.permute.xlu0 %308 }
  0xf5   :  { %v773_v41 = vsel %vm724_vm0, %v68_v37, %v373_v31  ;;  %v741_v42 = vsel %vm724_vm0, %v36_v38, %v309_v32 }
  0xf6   :  { %402 = vrot.lane.b32.xlu1 %v147_v29, %s2517_s22  ;;  %338 = vrot.lane.b32.xlu0 %v115_v30, %s2517_s22 }
  0xf8   :  { %v375_v35 = vpop.permute.xlu1 %374  ;;  %v311_v36 = vpop.permute.xlu0 %310 }
  0xf9   :  { %v774_v49 = vsel %vm724_vm0, %v69_v45, %v375_v35  ;;  %v742_v50 = vsel %vm724_vm0, %v37_v46, %v311_v36  ;;  %v74_v35 = vld [vmem:[%s4024_s0 + $0x1b0] sm:$0xff] }
  0xfa   :  { %656 = vrot.lane.b32.xlu1 %v210_v33, %s2518_s6  ;;  %592 = vrot.lane.b32.xlu0 %v178_v34, %s2518_s6  ;;  %v42_v36 = vld [vmem:[%s4024_s0 + $0xb0] sm:$0xff] }
  0xfc   :  { %v629_v43 = vpop.permute.xlu1 %628  ;;  %v565_v44 = vpop.permute.xlu0 %564 }
  0xfd   :  { %v838_v47 = vsel %vm789_vm1, %v773_v41, %v629_v43  ;;  %v806_v48 = vsel %vm789_vm1, %v741_v42, %v565_v44  ;;  %v75_v41 = vld [vmem:[%s4024_s0 + $0x1b8] sm:$0xff] }
  0xfe   :  { %658 = vrot.lane.b32.xlu1 %v211_v39, %s2518_s6  ;;  %594 = vrot.lane.b32.xlu0 %v179_v40, %s2518_s6  ;;  %v43_v42 = vld [vmem:[%s4024_s0 + $0xb8] sm:$0xff] }
  0xff   :  { %2180 = vmatprep.mubr.msk.f32.mxu0 %vm863_vm2, %v806_v48  ;;  %2228 = vmatprep.mubr.msk.f32.mxu1 %vm863_vm2, %v838_v47 }
 0x100   :  { %v631_v51 = vpop.permute.xlu1 %630  ;;  %v567_v52 = vpop.permute.xlu0 %566 }
 0x101   :  { %v839_v53 = vsel %vm789_vm1, %v774_v49, %v631_v51  ;;  %v807_v54 = vsel %vm789_vm1, %v742_v50, %v567_v52 }
 0x102   :  { %2181 = vmatmul.mubr.msk.f32.gmra.mrb[16].mxu0 %vm863_vm2, %v807_v54  ;;  %2229 = vmatmul.mubr.msk.f32.gmra.mrb[16].mxu1 %vm863_vm2, %v839_v53 }
 0x104   :  { %v377_v55 = vpop.permute.xlu1 %376  ;;  %v313_v56 = vpop.permute.xlu0 %312 }
 0x105   :  { %v775_v61 = vsel %vm724_vm0, %v70_v59, %v377_v55  ;;  %v743_v62 = vsel %vm724_vm0, %v38_v60, %v313_v56  ;;  %v76_v55 = vld [vmem:[%s4024_s0 + $0x1c0] sm:$0xff] }
 0x106   :  { %v44_v56 = vld [vmem:[%s4024_s0 + $0xc0] sm:$0xff] }
 0x108   :  { %v379_v57 = vpop.permute.xlu1 %378  ;;  %v315_v58 = vpop.permute.xlu0 %314 }
 0x109   :  { %v776_v5 = vsel %vm724_vm0, %v71_v1, %v379_v57  ;;  %v744_v6 = vsel %vm724_vm0, %v39_v2, %v315_v58 }
 0x10c   :  { %v633_v63 = vpop.permute.xlu1 %632  ;;  %v569_v0 = vpop.permute.xlu0 %568 }
 0x10d   :  { %v840_v3 = vsel %vm789_vm1, %v775_v61, %v633_v63  ;;  %v808_v4 = vsel %vm789_vm1, %v743_v62, %v569_v0  ;;  %v77_v61 = vld [vmem:[%s4024_s0 + $0x1c8] sm:$0xff] }
 0x10e   :  { %2183 = vmatprep.mubr.msk.f32.mxu0 %vm863_vm2, %v808_v4  ;;  %2231 = vmatprep.mubr.msk.f32.mxu1 %vm863_vm2, %v840_v3  ;;  %v45_v62 = vld [vmem:[%s4024_s0 + $0xc8] sm:$0xff] }
 0x110   :  { %v635_v7 = vpop.permute.xlu1 %634  ;;  %v571_v8 = vpop.permute.xlu0 %570 }
 0x111   :  { %v841_v9 = vsel %vm789_vm1, %v776_v5, %v635_v7  ;;  %v809_v10 = vsel %vm789_vm1, %v744_v6, %v571_v8 }
 0x112   :  { %2184 = vmatmul.mubr.msk.f32.gmra.mrb[18].mxu0 %vm863_vm2, %v809_v10  ;;  %2232 = vmatmul.mubr.msk.f32.gmra.mrb[18].mxu1 %vm863_vm2, %v841_v9 }
 0x114   :  { %v381_v11 = vpop.permute.xlu1 %380  ;;  %v317_v12 = vpop.permute.xlu0 %316 }
 0x115   :  { %v777_v17 = vsel %vm724_vm0, %v72_v15, %v381_v11  ;;  %v745_v18 = vsel %vm724_vm0, %v40_v16, %v317_v12  ;;  %v78_v11 = vld [vmem:[%s4024_s0 + $0x1d0] sm:$0xff] }
 0x116   :  { %v46_v12 = vld [vmem:[%s4024_s0 + $0xd0] sm:$0xff] }
 0x118   :  { %v383_v13 = vpop.permute.xlu1 %382  ;;  %v319_v14 = vpop.permute.xlu0 %318 }
 0x119   :  { %v778_v25 = vsel %vm724_vm0, %v73_v21, %v383_v13  ;;  %v746_v26 = vsel %vm724_vm0, %v41_v22, %v319_v14 }
 0x11c   :  { %v637_v19 = vpop.permute.xlu1 %636  ;;  %v573_v20 = vpop.permute.xlu0 %572 }
 0x11d   :  { %v842_v23 = vsel %vm789_vm1, %v777_v17, %v637_v19  ;;  %v810_v24 = vsel %vm789_vm1, %v745_v18, %v573_v20  ;;  %v79_v17 = vld [vmem:[%s4024_s0 + $0x1d8] sm:$0xff] }
 0x11e   :  { %2186 = vmatprep.mubr.msk.f32.mxu0 %vm863_vm2, %v810_v24  ;;  %2234 = vmatprep.mubr.msk.f32.mxu1 %vm863_vm2, %v842_v23  ;;  %v47_v18 = vld [vmem:[%s4024_s0 + $0xd8] sm:$0xff] }
 0x120   :  { %v639_v27 = vpop.permute.xlu1 %638  ;;  %v575_v28 = vpop.permute.xlu0 %574 }
 0x121   :  { %v843_v29 = vsel %vm789_vm1, %v778_v25, %v639_v27  ;;  %v811_v30 = vsel %vm789_vm1, %v746_v26, %v575_v28 }
 0x122   :  { %2187 = vmatmul.mubr.msk.f32.gmra.mrb[20].mxu0 %vm863_vm2, %v811_v30  ;;  %2235 = vmatmul.mubr.msk.f32.gmra.mrb[20].mxu1 %vm863_vm2, %v843_v29  ;;  %v3406_v29 = vld [vmem:[%s4025_s4] ss:$0 sm:$0xff] }
 0x124   :  { %v385_v31 = vpop.permute.xlu1 %384  ;;  %v321_v32 = vpop.permute.xlu0 %320 }
 0x125   :  { %v779_v37 = vsel %vm724_vm0, %v74_v35, %v385_v31  ;;  %v747_v38 = vsel %vm724_vm0, %v42_v36, %v321_v32 }
 0x128   :  { %v387_v33 = vpop.permute.xlu1 %386  ;;  %v323_v34 = vpop.permute.xlu0 %322 }
 0x129   :  { %v780_v45 = vsel %vm724_vm0, %v75_v41, %v387_v33  ;;  %v748_v46 = vsel %vm724_vm0, %v43_v42, %v323_v34  ;;  %v48_v41 = vld [vmem:[%s4024_s0 + $0xe0] sm:$0xff] }
 0x12c   :  { %v641_v39 = vpop.permute.xlu1 %640  ;;  %v577_v40 = vpop.permute.xlu0 %576 }
 0x12d   :  { %v844_v43 = vsel %vm789_vm1, %v779_v37, %v641_v39  ;;  %v812_v44 = vsel %vm789_vm1, %v747_v38, %v577_v40  ;;  %v80_v40 = vld [vmem:[%s4024_s0 + $0x1e0] sm:$0xff] }
 0x12e   :  { %2189 = vmatprep.mubr.msk.f32.mxu0 %vm863_vm2, %v812_v44  ;;  %2237 = vmatprep.mubr.msk.f32.mxu1 %vm863_vm2, %v844_v43 }
 0x130   :  { %v643_v47 = vpop.permute.xlu1 %642  ;;  %v579_v48 = vpop.permute.xlu0 %578 }
 0x131   :  { %v845_v49 = vsel %vm789_vm1, %v780_v45, %v643_v47  ;;  %v813_v50 = vsel %vm789_vm1, %v748_v46, %v579_v48 }
 0x132   :  { %2190 = vmatmul.mubr.msk.f32.gmra.mrb[22].mxu0 %vm863_vm2, %v813_v50  ;;  %2238 = vmatmul.mubr.msk.f32.gmra.mrb[22].mxu1 %vm863_vm2, %v845_v49  ;;  %v81_v50 = vld [vmem:[%s4024_s0 + $0x1e8] sm:$0xff] }
 0x134   :  { %v389_v51 = vpop.permute.xlu1 %388  ;;  %v325_v52 = vpop.permute.xlu0 %324 }
 0x135   :  { %v781_v57 = vsel %vm724_vm0, %v76_v55, %v389_v51  ;;  %v749_v58 = vsel %vm724_vm0, %v44_v56, %v325_v52  ;;  %v49_v51 = vld [vmem:[%s4024_s0 + $0xe8] sm:$0xff] }
 0x138   :  { %v391_v53 = vpop.permute.xlu1 %390  ;;  %v327_v54 = vpop.permute.xlu0 %326 }
 0x139   :  { %v782_v1 = vsel %vm724_vm0, %v77_v61, %v391_v53  ;;  %v750_v2 = vsel %vm724_vm0, %v45_v62, %v327_v54 }
 0x13c   :  { %v645_v59 = vpop.permute.xlu1 %644  ;;  %v581_v60 = vpop.permute.xlu0 %580 }
 0x13d   :  { %v846_v63 = vsel %vm789_vm1, %v781_v57, %v645_v59  ;;  %v814_v0 = vsel %vm789_vm1, %v749_v58, %v581_v60 }
 0x13e   :  { %2192 = vmatprep.mubr.msk.f32.mxu0 %vm863_vm2, %v814_v0  ;;  %2240 = vmatprep.mubr.msk.f32.mxu1 %vm863_vm2, %v846_v63 }
 0x140   :  { %v647_v3 = vpop.permute.xlu1 %646  ;;  %v583_v4 = vpop.permute.xlu0 %582 }
 0x141   :  { %v847_v5 = vsel %vm789_vm1, %v782_v1, %v647_v3  ;;  %v815_v6 = vsel %vm789_vm1, %v750_v2, %v583_v4 }
 0x142   :  { %2193 = vmatmul.mubr.msk.f32.gmra.mrb[24].mxu0 %vm863_vm2, %v815_v6  ;;  %2241 = vmatmul.mubr.msk.f32.gmra.mrb[24].mxu1 %vm863_vm2, %v847_v5 }
 0x144   :  { %v393_v7 = vpop.permute.xlu1 %392  ;;  %v329_v8 = vpop.permute.xlu0 %328 }
 0x145   :  { %v783_v13 = vsel %vm724_vm0, %v78_v11, %v393_v7  ;;  %v751_v14 = vsel %vm724_vm0, %v46_v12, %v329_v8  ;;  %v82_v11 = vld [vmem:[%s4024_s0 + $0x1f0] sm:$0xff] }
 0x148   :  { %v395_v9 = vpop.permute.xlu1 %394  ;;  %v331_v10 = vpop.permute.xlu0 %330 }
 0x149   :  { %v784_v21 = vsel %vm724_vm0, %v79_v17, %v395_v9  ;;  %v752_v22 = vsel %vm724_vm0, %v47_v18, %v331_v10  ;;  %v50_v17 = vld [vmem:[%s4024_s0 + $0xf0] sm:$0xff] }
 0x14c   :  { %v649_v15 = vpop.permute.xlu1 %648  ;;  %v585_v16 = vpop.permute.xlu0 %584 }
 0x14d   :  { %v848_v19 = vsel %vm789_vm1, %v783_v13, %v649_v15  ;;  %v816_v20 = vsel %vm789_vm1, %v751_v14, %v585_v16 }
 0x14e   :  { %2195 = vmatprep.mubr.msk.f32.mxu0 %vm863_vm2, %v816_v20  ;;  %2243 = vmatprep.mubr.msk.f32.mxu1 %vm863_vm2, %v848_v19 }
 0x150   :  { %v651_v23 = vpop.permute.xlu1 %650  ;;  %v587_v24 = vpop.permute.xlu0 %586 }
 0x151   :  { %v849_v25 = vsel %vm789_vm1, %v784_v21, %v651_v23  ;;  %v817_v26 = vsel %vm789_vm1, %v752_v22, %v587_v24 }
 0x152   :  { %2196 = vmatmul.mubr.msk.f32.gmra.mrb[26].mxu0 %vm863_vm2, %v817_v26  ;;  %2244 = vmatmul.mubr.msk.f32.gmra.mrb[26].mxu1 %vm863_vm2, %v849_v25  ;;  %v83_v26 = vld [vmem:[%s4024_s0 + $0x1f8] sm:$0xff] }
 0x154   :  { %v397_v27 = vpop.permute.xlu1 %396  ;;  %v333_v28 = vpop.permute.xlu0 %332 }
 0x155   :  { %v785_v46 = vsel %vm724_vm0, %v80_v40, %v397_v27  ;;  %v753_v47 = vsel %vm724_vm0, %v48_v41, %v333_v28  ;;  %v51_v27 = vld [vmem:[%s4024_s0 + $0xf8] sm:$0xff] }
 0x156   :  { %v2158_v30 = vpop.f32.mrb[0].mxu0  ;;  %v2206_v31 = vpop.f32.mrb[0].mxu1 }
 0x157   :  { %v3409_v32 = vadd.f32 %v2158_v30, %v3406_v29  ;;  %v3412_v33 = vadd.f32 %v2206_v31, %v3406_v29  ;;  %v1122_v34 = vpop.f32.mrb[1].mxu0  ;;  %v1282_v35 = vpop.f32.mrb[1].mxu1 }
 0x158   :  { %v3415_v36 = vadd.f32 %v3406_v29, %v1122_v34  ;;  %v3418_v37 = vadd.f32 %v3406_v29, %v1282_v35  ;;  %v399_v38 = vpop.permute.xlu1 %398  ;;  %v335_v39 = vpop.permute.xlu0 %334 }
 0x159   :  { %v2023_v42 = vmul.f32 -1.442695, %v3409_v32  ;;  %v2055_v43 = vmul.f32 -1.442695, %v3412_v33  ;;  %v786_v54 = vsel %vm724_vm0, %v81_v50, %v399_v38  ;;  %v754_v55 = vsel %vm724_vm0, %v49_v51, %v335_v39 }
 0x15a   :  { %v2022_v44 = vmul.f32 -1.442695, %v3415_v36  ;;  %v2054_v45 = vmul.f32 -1.442695, %v3418_v37 }
 0x15b   :  { %2260 = vpow2.f32 %v2023_v42 }
 0x15c   :  { %2262 = vpow2.f32 %v2055_v43  ;;  %v653_v48 = vpop.permute.xlu1 %652  ;;  %v589_v49 = vpop.permute.xlu0 %588 }
 0x15d   :  { %2264 = vpow2.f32 %v2022_v44  ;;  %v850_v52 = vsel %vm789_vm1, %v785_v46, %v653_v48  ;;  %v818_v53 = vsel %vm789_vm1, %v753_v47, %v589_v49 }
 0x15e   :  { %2266 = vpow2.f32 %v2054_v45  ;;  %2198 = vmatprep.mubr.msk.f32.mxu0 %vm863_vm2, %v818_v53  ;;  %2246 = vmatprep.mubr.msk.f32.mxu1 %vm863_vm2, %v850_v52 }
 0x160   :  { %v655_v56 = vpop.permute.xlu1 %654  ;;  %v591_v57 = vpop.permute.xlu0 %590 }
 0x161   :  { %v851_v58 = vsel %vm789_vm1, %v786_v54, %v655_v56  ;;  %v819_v59 = vsel %vm789_vm1, %v754_v55, %v591_v57 }
 0x162   :  { %2199 = vmatmul.mubr.msk.f32.gmra.mrb[28].mxu0 %vm863_vm2, %v819_v59  ;;  %2247 = vmatmul.mubr.msk.f32.gmra.mrb[28].mxu1 %vm863_vm2, %v851_v58 }
 0x164   :  { %v401_v60 = vpop.permute.xlu1 %400  ;;  %v337_v61 = vpop.permute.xlu0 %336 }
 0x165   :  { %v2261_v62 = vpop.eup %2260  ;;  %v787_v22 = vsel %vm724_vm0, %v82_v11, %v401_v60  ;;  %v755_v23 = vsel %vm724_vm0, %v50_v17, %v337_v61 }
 0x166   :  { %v2263_v63 = vpop.eup %2262  ;;  %v1634_v0 = vadd.f32 1.0, %v2261_v62  ;;  %v2161_v1 = vpop.f32.mrb[2].mxu0 }
 0x167   :  { %v2209_v2 = vpop.f32.mrb[2].mxu1  ;;  %v2265_v3 = vpop.eup %2264  ;;  %v1666_v4 = vadd.f32 1.0, %v2263_v63  ;;  %v3449_v5 = vadd.f32 %v2161_v1, %v3406_v29 }
 0x168   :  { %v3452_v6 = vadd.f32 %v2209_v2, %v3406_v29  ;;  %v1132_v7 = vpop.f32.mrb[3].mxu0  ;;  %v1292_v8 = vpop.f32.mrb[3].mxu1  ;;  %2268 = vrcp.f32 %v1634_v0  ;;  %v1633_v10 = vadd.f32 1.0, %v2265_v3 }
 0x169   :  { %v2267_v9 = vpop.eup %2266  ;;  %v3458_v12 = vadd.f32 %v3406_v29, %v1132_v7  ;;  %v3461_v13 = vadd.f32 %v3406_v29, %v1292_v8  ;;  %v403_v14 = vpop.permute.xlu1 %402  ;;  %2270 = vrcp.f32 %v1666_v4  ;;  %v2025_v18 = vmul.f32 -1.442695, %v3449_v5 }
 0x16a   :  { %v339_v15 = vpop.permute.xlu0 %338  ;;  %v1665_v16 = vadd.f32 1.0, %v2267_v9  ;;  %v2057_v19 = vmul.f32 -1.442695, %v3452_v6  ;;  %2272 = vrcp.f32 %v1633_v10  ;;  %v788_v31 = vsel %vm724_vm0, %v83_v26, %v403_v14 }
 0x16b   :  { %v2024_v20 = vmul.f32 -1.442695, %v3458_v12  ;;  %v2056_v21 = vmul.f32 -1.442695, %v3461_v13  ;;  %v756_v34 = vsel %vm724_vm0, %v51_v27, %v339_v15 }
 0x16c   :  { %2274 = vrcp.f32 %v1665_v16 }
 0x16d   :  { %2276 = vpow2.f32 %v2025_v18  ;;  %v657_v24 = vpop.permute.xlu1 %656 }
 0x16e   :  { %v593_v25 = vpop.permute.xlu0 %592  ;;  %2278 = vpow2.f32 %v2057_v19  ;;  %v852_v28 = vsel %vm789_vm1, %v787_v22, %v657_v24 }
 0x16f   :  { %v820_v30 = vsel %vm789_vm1, %v755_v23, %v593_v25  ;;  %2280 = vpow2.f32 %v2024_v20  ;;  %2249 = vmatprep.mubr.msk.f32.mxu1 %vm863_vm2, %v852_v28 }
 0x170   :  { %2201 = vmatprep.mubr.msk.f32.mxu0 %vm863_vm2, %v820_v30  ;;  %2282 = vpow2.f32 %v2056_v21 }
 0x171   :  { %v659_v35 = vpop.permute.xlu1 %658 }
 0x172   :  { %v595_v38 = vpop.permute.xlu0 %594  ;;  %v853_v39 = vsel %vm789_vm1, %v788_v31, %v659_v35  ;;  %v2269_v41 = vpop.eup %2268 }
 0x173   :  { %v821_v40 = vsel %vm789_vm1, %v756_v34, %v595_v38  ;;  %2250 = vmatmul.mubr.msk.f32.gmra.mrb[30].mxu1 %vm863_vm2, %v853_v39  ;;  %v2271_v42 = vpop.eup %2270  ;;  %v1826_v43 = vmul.f32 %v2269_v41, %v3409_v32 }
 0x174   :  { %2202 = vmatmul.mubr.msk.f32.gmra.mrb[30].mxu0 %vm863_vm2, %v821_v40  ;;  %v2273_v44 = vpop.eup %2272  ;;  %v1858_v45 = vmul.f32 %v2271_v42, %v3412_v33 }
 0x175   :  { %1890 = vst.msk [vmem:[%s4026_s5 + $0x8] sm:$0xff] %vm724_vm0, %v1826_v43  ;;  %v1825_v47 = vmul.f32 %v2273_v44, %v3415_v36 }
 0x176   :  { %v2275_v46 = vpop.eup %2274  ;;  %1922 = vst.msk [vmem:[%s4026_s5 + $0x108] sm:$0xff] %vm724_vm0, %v1858_v45  ;;  %v2164_v32 = vpop.f32.mrb[4].mxu0 }
 0x177   :  { %v2277_v48 = vpop.eup %2276  ;;  %v1857_v49 = vmul.f32 %v2275_v46, %v3418_v37  ;;  %v2212_v50 = vpop.f32.mrb[4].mxu1  ;;  %1889 = vst.msk [vmem:[%s4026_s5] sm:$0xff] %vm724_vm0, %v1825_v47  ;;  %v3505_v52 = vadd.f32 %v2164_v32, %v3406_v29 }
 0x178   :  { %v2279_v51 = vpop.eup %2278  ;;  %v1636_v33 = vadd.f32 1.0, %v2277_v48  ;;  %v3508_v36 = vadd.f32 %v2212_v50, %v3406_v29  ;;  %v1142_v53 = vpop.f32.mrb[5].mxu0 }
 0x179   :  { %v1302_v54 = vpop.f32.mrb[5].mxu1  ;;  %v2281_v55 = vpop.eup %2280  ;;  %1921 = vst.msk [vmem:[%s4026_s5 + $0x100] sm:$0xff] %vm724_vm0, %v1857_v49  ;;  %v1668_v37 = vadd.f32 1.0, %v2279_v51  ;;  %v3515_v56 = vadd.f32 %v3406_v29, %v1142_v53  ;;  %v2027_v60 = vmul.f32 -1.442695, %v3505_v52 }
 0x17a   :  { %v3518_v57 = vadd.f32 %v3406_v29, %v1302_v54  ;;  %v2283_v58 = vpop.eup %2282  ;;  %2284 = vrcp.f32 %v1636_v33  ;;  %v1635_v59 = vadd.f32 1.0, %v2281_v55  ;;  %v2059_v62 = vmul.f32 -1.442695, %v3508_v36 }
 0x17b   :  { %2286 = vrcp.f32 %v1668_v37  ;;  %v1667_v61 = vadd.f32 1.0, %v2283_v58  ;;  %v2026_v63 = vmul.f32 -1.442695, %v3515_v56 }
 0x17c   :  { %2288 = vrcp.f32 %v1635_v59  ;;  %v2058_v0 = vmul.f32 -1.442695, %v3518_v57 }
 0x17d   :  { %2290 = vrcp.f32 %v1667_v61 }
 0x17e   :  { %2292 = vpow2.f32 %v2027_v60 }
 0x17f   :  { %2294 = vpow2.f32 %v2059_v62 }
 0x180   :  { %2296 = vpow2.f32 %v2026_v63 }
 0x181   :  { %2298 = vpow2.f32 %v2058_v0 }
 0x184   :  { %v2285_v1 = vpop.eup %2284 }
 0x185   :  { %v2287_v2 = vpop.eup %2286  ;;  %v1828_v3 = vmul.f32 %v2285_v1, %v3449_v5 }
 0x186   :  { %v2289_v4 = vpop.eup %2288  ;;  %v1860_v7 = vmul.f32 %v2287_v2, %v3452_v6  ;;  %v2167_v10 = vpop.f32.mrb[6].mxu0 }
 0x187   :  { %v2291_v8 = vpop.eup %2290  ;;  %1892 = vst.msk [vmem:[%s4026_s5 + $0x18] sm:$0xff] %vm724_vm0, %v1828_v3  ;;  %v1827_v9 = vmul.f32 %v2289_v4, %v3458_v12  ;;  %v2215_v11 = vpop.f32.mrb[6].mxu1  ;;  %v3537_v6 = vadd.f32 %v2167_v10, %v3406_v29 }
 0x188   :  { %v2293_v14 = vpop.eup %2292  ;;  %1924 = vst.msk [vmem:[%s4026_s5 + $0x118] sm:$0xff] %vm724_vm0, %v1860_v7  ;;  %v1859_v5 = vmul.f32 %v2291_v8, %v3461_v13  ;;  %v3540_v15 = vadd.f32 %v2215_v11, %v3406_v29  ;;  %v1152_v16 = vpop.f32.mrb[7].mxu0 }
 0x189   :  { %v1312_v17 = vpop.f32.mrb[7].mxu1  ;;  %v2295_v18 = vpop.eup %2294  ;;  %1891 = vst.msk [vmem:[%s4026_s5 + $0x10] sm:$0xff] %vm724_vm0, %v1827_v9  ;;  %v1638_v12 = vadd.f32 1.0, %v2293_v14  ;;  %v3547_v19 = vadd.f32 %v3406_v29, %v1152_v16  ;;  %v2029_v24 = vmul.f32 -1.442695, %v3537_v6 }
 0x18a   :  { %v2297_v20 = vpop.eup %2296  ;;  %1923 = vst.msk [vmem:[%s4026_s5 + $0x110] sm:$0xff] %vm724_vm0, %v1859_v5  ;;  %v1670_v13 = vadd.f32 1.0, %v2295_v18  ;;  %v3554_v21 = vadd.f32 %v3406_v29, %v1312_v17  ;;  %v2061_v26 = vmul.f32 -1.442695, %v3540_v15 }
 0x18b   :  { %v2299_v22 = vpop.eup %2298  ;;  %2300 = vrcp.f32 %v1638_v12  ;;  %v1637_v23 = vadd.f32 1.0, %v2297_v20  ;;  %v2028_v27 = vmul.f32 -1.442695, %v3547_v19 }
 0x18c   :  { %2302 = vrcp.f32 %v1670_v13  ;;  %v1669_v25 = vadd.f32 1.0, %v2299_v22  ;;  %v2060_v28 = vmul.f32 -1.442695, %v3554_v21 }
 0x18d   :  { %2304 = vrcp.f32 %v1637_v23 }
 0x18e   :  { %2306 = vrcp.f32 %v1669_v25 }
 0x18f   :  { %2308 = vpow2.f32 %v2029_v24 }
 0x190   :  { %2310 = vpow2.f32 %v2061_v26 }
 0x191   :  { %2312 = vpow2.f32 %v2028_v27 }
 0x192   :  { %2314 = vpow2.f32 %v2060_v28 }
 0x195   :  { %v2301_v30 = vpop.eup %2300 }
 0x196   :  { %v2303_v31 = vpop.eup %2302  ;;  %v1830_v34 = vmul.f32 %v2301_v30, %v3505_v52  ;;  %v2170_v39 = vpop.f32.mrb[8].mxu0 }
 0x197   :  { %v2305_v35 = vpop.eup %2304  ;;  %v1862_v38 = vmul.f32 %v2303_v31, %v3508_v36  ;;  %v2218_v40 = vpop.f32.mrb[8].mxu1  ;;  %v3568_v43 = vadd.f32 %v2170_v39, %v3406_v29 }
 0x198   :  { %v2307_v41 = vpop.eup %2306  ;;  %1894 = vst.msk [vmem:[%s4026_s5 + $0x28] sm:$0xff] %vm724_vm0, %v1830_v34  ;;  %v1829_v42 = vmul.f32 %v2305_v35, %v3515_v56  ;;  %v1162_v44 = vpop.f32.mrb[9].mxu0  ;;  %v3576_v48 = vadd.f32 %v2218_v40, %v3406_v29 }
 0x199   :  { %v1322_v45 = vpop.f32.mrb[9].mxu1  ;;  %v2309_v46 = vpop.eup %2308  ;;  %1926 = vst.msk [vmem:[%s4026_s5 + $0x128] sm:$0xff] %vm724_vm0, %v1862_v38  ;;  %v1861_v47 = vmul.f32 %v2307_v41, %v3518_v57  ;;  %v3583_v50 = vadd.f32 %v3406_v29, %v1162_v44  ;;  %v2031_v54 = vmul.f32 -1.442695, %v3568_v43 }
 0x19a   :  { %v2311_v49 = vpop.eup %2310  ;;  %1893 = vst.msk [vmem:[%s4026_s5 + $0x20] sm:$0xff] %vm724_vm0, %v1829_v42  ;;  %v1640_v32 = vadd.f32 1.0, %v2309_v46  ;;  %v3590_v52 = vadd.f32 %v3406_v29, %v1322_v45  ;;  %v2063_v37 = vmul.f32 -1.442695, %v3576_v48 }
 0x19b   :  { %v2313_v51 = vpop.eup %2312  ;;  %1925 = vst.msk [vmem:[%s4026_s5 + $0x120] sm:$0xff] %vm724_vm0, %v1861_v47  ;;  %v1672_v33 = vadd.f32 1.0, %v2311_v49  ;;  %v2030_v56 = vmul.f32 -1.442695, %v3583_v50 }
 0x19c   :  { %v2315_v36 = vpop.eup %2314  ;;  %2316 = vrcp.f32 %v1640_v32  ;;  %v1639_v53 = vadd.f32 1.0, %v2313_v51  ;;  %v2062_v57 = vmul.f32 -1.442695, %v3590_v52 }
 0x19d   :  { %2318 = vrcp.f32 %v1672_v33  ;;  %v1671_v55 = vadd.f32 1.0, %v2315_v36 }
 0x19e   :  { %2320 = vrcp.f32 %v1639_v53 }
 0x19f   :  { %2322 = vrcp.f32 %v1671_v55 }
 0x1a0   :  { %2324 = vpow2.f32 %v2031_v54 }
 0x1a1   :  { %2326 = vpow2.f32 %v2063_v37 }
 0x1a2   :  { %2328 = vpow2.f32 %v2030_v56 }
 0x1a3   :  { %2330 = vpow2.f32 %v2062_v57 }
 0x1a6   :  { %v2317_v58 = vpop.eup %2316  ;;  %v2173_v61 = vpop.f32.mrb[10].mxu0 }
 0x1a7   :  { %v2319_v59 = vpop.eup %2318  ;;  %v1832_v60 = vmul.f32 %v2317_v58, %v3537_v6  ;;  %v2221_v62 = vpop.f32.mrb[10].mxu1  ;;  %v3599_v1 = vadd.f32 %v2173_v61, %v3406_v29 }
 0x1a8   :  { %v2321_v63 = vpop.eup %2320  ;;  %v1864_v0 = vmul.f32 %v2319_v59, %v3540_v15  ;;  %v1172_v2 = vpop.f32.mrb[11].mxu0  ;;  %v3607_v8 = vadd.f32 %v2221_v62, %v3406_v29 }
 0x1a9   :  { %v1332_v3 = vpop.f32.mrb[11].mxu1  ;;  %v2323_v4 = vpop.eup %2322  ;;  %1896 = vst.msk [vmem:[%s4026_s5 + $0x38] sm:$0xff] %vm724_vm0, %v1832_v60  ;;  %v1831_v7 = vmul.f32 %v2321_v63, %v3547_v19  ;;  %v2033_v11 = vmul.f32 -1.442695, %v3599_v1  ;;  %v3616_v14 = vadd.f32 %v3406_v29, %v1172_v2 }
 0x1aa   :  { %v2325_v9 = vpop.eup %2324  ;;  %1928 = vst.msk [vmem:[%s4026_s5 + $0x138] sm:$0xff] %vm724_vm0, %v1864_v0  ;;  %v1863_v10 = vmul.f32 %v2323_v4, %v3554_v21  ;;  %v3623_v15 = vadd.f32 %v3406_v29, %v1332_v3  ;;  %v2065_v19 = vmul.f32 -1.442695, %v3607_v8 }
 0x1ab   :  { %v2327_v5 = vpop.eup %2326  ;;  %1895 = vst.msk [vmem:[%s4026_s5 + $0x30] sm:$0xff] %vm724_vm0, %v1831_v7  ;;  %v1642_v6 = vadd.f32 1.0, %v2325_v9  ;;  %2332 = vpow2.f32 %v2033_v11  ;;  %v2032_v13 = vmul.f32 -1.442695, %v3616_v14 }
 0x1ac   :  { %v2329_v16 = vpop.eup %2328  ;;  %1927 = vst.msk [vmem:[%s4026_s5 + $0x130] sm:$0xff] %vm724_vm0, %v1863_v10  ;;  %v1674_v17 = vadd.f32 1.0, %v2327_v5  ;;  %v2064_v21 = vmul.f32 -1.442695, %v3623_v15 }
 0x1ad   :  { %v2331_v18 = vpop.eup %2330  ;;  %2334 = vrcp.f32 %v1642_v6  ;;  %v1641_v12 = vadd.f32 1.0, %v2329_v16 }
 0x1ae   :  { %2336 = vrcp.f32 %v1674_v17  ;;  %v1673_v20 = vadd.f32 1.0, %v2331_v18 }
 0x1af   :  { %2338 = vrcp.f32 %v1641_v12 }
 0x1b0   :  { %2340 = vrcp.f32 %v1673_v20 }
 0x1b1   :  { %2342 = vpow2.f32 %v2065_v19 }
 0x1b2   :  { %2344 = vpow2.f32 %v2032_v13 }
 0x1b3   :  { %2346 = vpow2.f32 %v2064_v21 }
 0x1b5   :  { %v2333_v22 = vpop.eup %2332 }
 0x1b6   :  { %v1644_v24 = vadd.f32 1.0, %v2333_v22  ;;  %v2176_v25 = vpop.f32.mrb[12].mxu0  ;;  %v2224_v26 = vpop.f32.mrb[12].mxu1 }
 0x1b7   :  { %v2335_v23 = vpop.eup %2334  ;;  %v3634_v30 = vadd.f32 %v2176_v25, %v3406_v29  ;;  %v3637_v31 = vadd.f32 %v2224_v26, %v3406_v29  ;;  %v1182_v34 = vpop.f32.mrb[13].mxu0 }
 0x1b8   :  { %v2337_v27 = vpop.eup %2336  ;;  %v1834_v28 = vmul.f32 %v2335_v23, %v3568_v43  ;;  %v1342_v35 = vpop.f32.mrb[13].mxu1  ;;  %2348 = vrcp.f32 %v1644_v24  ;;  %v3641_v40 = vadd.f32 %v3406_v29, %v1182_v34 }
 0x1b9   :  { %v2339_v38 = vpop.eup %2338  ;;  %v1866_v39 = vmul.f32 %v2337_v27, %v3576_v48  ;;  %v2035_v43 = vmul.f32 -1.442695, %v3634_v30  ;;  %v2067_v44 = vmul.f32 -1.442695, %v3637_v31  ;;  %v3651_v45 = vadd.f32 %v3406_v29, %v1342_v35 }
 0x1ba   :  { %v2341_v41 = vpop.eup %2340  ;;  %1898 = vst.msk [vmem:[%s4026_s5 + $0x48] sm:$0xff] %vm724_vm0, %v1834_v28  ;;  %v1833_v42 = vmul.f32 %v2339_v38, %v3583_v50  ;;  %v2034_v51 = vmul.f32 -1.442695, %v3641_v40 }
 0x1bb   :  { %v2343_v46 = vpop.eup %2342  ;;  %1930 = vst.msk [vmem:[%s4026_s5 + $0x148] sm:$0xff] %vm724_vm0, %v1866_v39  ;;  %v1865_v47 = vmul.f32 %v2341_v41, %v3590_v52  ;;  %2350 = vpow2.f32 %v2035_v43  ;;  %v2066_v52 = vmul.f32 -1.442695, %v3651_v45 }
 0x1bc   :  { %v2345_v48 = vpop.eup %2344  ;;  %1897 = vst.msk [vmem:[%s4026_s5 + $0x40] sm:$0xff] %vm724_vm0, %v1833_v42  ;;  %v1676_v49 = vadd.f32 1.0, %v2343_v46  ;;  %2352 = vpow2.f32 %v2067_v44 }
 0x1bd   :  { %v2347_v32 = vpop.eup %2346  ;;  %1929 = vst.msk [vmem:[%s4026_s5 + $0x140] sm:$0xff] %vm724_vm0, %v1865_v47  ;;  %v1643_v50 = vadd.f32 1.0, %v2345_v48 }
 0x1be   :  { %2354 = vrcp.f32 %v1676_v49  ;;  %v1675_v33 = vadd.f32 1.0, %v2347_v32 }
 0x1bf   :  { %2356 = vrcp.f32 %v1643_v50 }
 0x1c0   :  { %2358 = vrcp.f32 %v1675_v33 }
 0x1c1   :  { %2360 = vpow2.f32 %v2034_v51 }
 0x1c2   :  { %2362 = vpow2.f32 %v2066_v52  ;;  %v2349_v36 = vpop.eup %2348 }
 0x1c3   :  { %v1836_v53 = vmul.f32 %v2349_v36, %v3599_v1 }
 0x1c5   :  { %v2351_v54 = vpop.eup %2350  ;;  %1900 = vst.msk [vmem:[%s4026_s5 + $0x58] sm:$0xff] %vm724_vm0, %v1836_v53 }
 0x1c6   :  { %v2353_v55 = vpop.eup %2352  ;;  %v1646_v37 = vadd.f32 1.0, %v2351_v54  ;;  %v2179_v56 = vpop.f32.mrb[14].mxu0 }
 0x1c7   :  { %v2227_v57 = vpop.f32.mrb[14].mxu1  ;;  %v1678_v59 = vadd.f32 1.0, %v2353_v55  ;;  %v3674_v60 = vadd.f32 %v2179_v56, %v3406_v29  ;;  %v1192_v62 = vpop.f32.mrb[15].mxu0 }
 0x1c8   :  { %v2355_v58 = vpop.eup %2354  ;;  %v3677_v61 = vadd.f32 %v2227_v57, %v3406_v29  ;;  %v1352_v63 = vpop.f32.mrb[15].mxu1  ;;  %2364 = vrcp.f32 %v1646_v37  ;;  %v3681_v2 = vadd.f32 %v3406_v29, %v1192_v62 }
 0x1c9   :  { %v2357_v0 = vpop.eup %2356  ;;  %v1868_v1 = vmul.f32 %v2355_v58, %v3607_v8  ;;  %v3684_v3 = vadd.f32 %v3406_v29, %v1352_v63  ;;  %2366 = vrcp.f32 %v1678_v59  ;;  %v2037_v9 = vmul.f32 -1.442695, %v3674_v60 }
 0x1ca   :  { %v2359_v4 = vpop.eup %2358  ;;  %v1835_v7 = vmul.f32 %v2357_v0, %v3616_v14  ;;  %v2069_v10 = vmul.f32 -1.442695, %v3677_v61  ;;  %v2036_v6 = vmul.f32 -1.442695, %v3681_v2 }
 0x1cb   :  { %v2361_v11 = vpop.eup %2360  ;;  %1932 = vst.msk [vmem:[%s4026_s5 + $0x158] sm:$0xff] %vm724_vm0, %v1868_v1  ;;  %v1867_v8 = vmul.f32 %v2359_v4, %v3623_v15  ;;  %2368 = vpow2.f32 %v2037_v9  ;;  %v2068_v17 = vmul.f32 -1.442695, %v3684_v3 }
 0x1cc   :  { %v2363_v5 = vpop.eup %2362  ;;  %1899 = vst.msk [vmem:[%s4026_s5 + $0x50] sm:$0xff] %vm724_vm0, %v1835_v7  ;;  %v1645_v14 = vadd.f32 1.0, %v2361_v11  ;;  %2370 = vpow2.f32 %v2069_v10 }
 0x1cd   :  { %1931 = vst.msk [vmem:[%s4026_s5 + $0x150] sm:$0xff] %vm724_vm0, %v1867_v8  ;;  %v1677_v16 = vadd.f32 1.0, %v2363_v5 }
 0x1ce   :  { %2372 = vrcp.f32 %v1645_v14 }
 0x1cf   :  { %2374 = vrcp.f32 %v1677_v16 }
 0x1d0   :  { %2376 = vpow2.f32 %v2036_v6 }
 0x1d1   :  { %2378 = vpow2.f32 %v2068_v17 }
 0x1d2   :  { %v2365_v15 = vpop.eup %2364 }
 0x1d3   :  { %v2367_v18 = vpop.eup %2366  ;;  %v1838_v12 = vmul.f32 %v2365_v15, %v3634_v30 }
 0x1d4   :  { %v1870_v19 = vmul.f32 %v2367_v18, %v3637_v31 }
 0x1d5   :  { %v2369_v20 = vpop.eup %2368  ;;  %1902 = vst.msk [vmem:[%s4026_s5 + $0x68] sm:$0xff] %vm724_vm0, %v1838_v12  ;;  %v2182_v13 = vpop.f32.mrb[16].mxu0 }
 0x1d6   :  { %v2230_v21 = vpop.f32.mrb[16].mxu1  ;;  %v2371_v22 = vpop.eup %2370  ;;  %1934 = vst.msk [vmem:[%s4026_s5 + $0x168] sm:$0xff] %vm724_vm0, %v1870_v19  ;;  %v1648_v23 = vadd.f32 1.0, %v2369_v20  ;;  %v3715_v24 = vadd.f32 %v2182_v13, %v3406_v29 }
 0x1d7   :  { %v3718_v25 = vadd.f32 %v2230_v21, %v3406_v29  ;;  %v1202_v26 = vpop.f32.mrb[17].mxu0  ;;  %v1362_v27 = vpop.f32.mrb[17].mxu1  ;;  %v1680_v30 = vadd.f32 1.0, %v2371_v22 }
 0x1d8   :  { %v2373_v28 = vpop.eup %2372  ;;  %v3721_v31 = vadd.f32 %v3406_v29, %v1202_v26  ;;  %v3724_v34 = vadd.f32 %v3406_v29, %v1362_v27  ;;  %2380 = vrcp.f32 %v1648_v23  ;;  %v2039_v39 = vmul.f32 -1.442695, %v3715_v24 }
 0x1d9   :  { %v2375_v35 = vpop.eup %2374  ;;  %v1837_v38 = vmul.f32 %v2373_v28, %v3641_v40  ;;  %v2071_v41 = vmul.f32 -1.442695, %v3718_v25  ;;  %2382 = vrcp.f32 %v1680_v30 }
 0x1da   :  { %v2377_v42 = vpop.eup %2376  ;;  %v1869_v43 = vmul.f32 %v2375_v35, %v3651_v45  ;;  %2384 = vpow2.f32 %v2039_v39  ;;  %v2038_v47 = vmul.f32 -1.442695, %v3721_v31  ;;  %v2070_v45 = vmul.f32 -1.442695, %v3724_v34 }
 0x1db   :  { %v2379_v44 = vpop.eup %2378  ;;  %1901 = vst.msk [vmem:[%s4026_s5 + $0x60] sm:$0xff] %vm724_vm0, %v1837_v38  ;;  %v1647_v46 = vadd.f32 1.0, %v2377_v42  ;;  %2386 = vpow2.f32 %v2071_v41 }
 0x1dc   :  { %1933 = vst.msk [vmem:[%s4026_s5 + $0x160] sm:$0xff] %vm724_vm0, %v1869_v43  ;;  %v1679_v40 = vadd.f32 1.0, %v2379_v44 }
 0x1dd   :  { %2388 = vrcp.f32 %v1647_v46 }
 0x1de   :  { %2390 = vrcp.f32 %v1679_v40 }
 0x1df   :  { %2392 = vpow2.f32 %v2038_v47 }
 0x1e0   :  { %2394 = vpow2.f32 %v2070_v45 }
 0x1e2   :  { %v2381_v48 = vpop.eup %2380 }
 0x1e3   :  { %v2383_v49 = vpop.eup %2382  ;;  %v1840_v32 = vmul.f32 %v2381_v48, %v3674_v60 }
 0x1e4   :  { %v2385_v50 = vpop.eup %2384  ;;  %v1872_v51 = vmul.f32 %v2383_v49, %v3677_v61 }
 0x1e5   :  { %v2387_v33 = vpop.eup %2386  ;;  %1904 = vst.msk [vmem:[%s4026_s5 + $0x78] sm:$0xff] %vm724_vm0, %v1840_v32  ;;  %v1650_v52 = vadd.f32 1.0, %v2385_v50  ;;  %v2185_v36 = vpop.f32.mrb[18].mxu0 }
 0x1e6   :  { %v2233_v53 = vpop.f32.mrb[18].mxu1  ;;  %1936 = vst.msk [vmem:[%s4026_s5 + $0x178] sm:$0xff] %vm724_vm0, %v1872_v51  ;;  %v1682_v55 = vadd.f32 1.0, %v2387_v33  ;;  %v3751_v37 = vadd.f32 %v2185_v36, %v3406_v29  ;;  %v1212_v57 = vpop.f32.mrb[19].mxu0 }
 0x1e7   :  { %v2389_v54 = vpop.eup %2388  ;;  %v3754_v56 = vadd.f32 %v2233_v53, %v3406_v29  ;;  %v1372_v58 = vpop.f32.mrb[19].mxu1  ;;  %2396 = vrcp.f32 %v1650_v52  ;;  %v3758_v61 = vadd.f32 %v3406_v29, %v1212_v57 }
 0x1e8   :  { %v2391_v59 = vpop.eup %2390  ;;  %v1839_v60 = vmul.f32 %v2389_v54, %v3681_v2  ;;  %v3761_v62 = vadd.f32 %v3406_v29, %v1372_v58  ;;  %2398 = vrcp.f32 %v1682_v55  ;;  %v2041_v1 = vmul.f32 -1.442695, %v3751_v37 }
 0x1e9   :  { %v2393_v63 = vpop.eup %2392  ;;  %v1871_v0 = vmul.f32 %v2391_v59, %v3684_v3  ;;  %v2073_v7 = vmul.f32 -1.442695, %v3754_v56  ;;  %v2040_v3 = vmul.f32 -1.442695, %v3758_v61 }
 0x1ea   :  { %v2395_v4 = vpop.eup %2394  ;;  %1903 = vst.msk [vmem:[%s4026_s5 + $0x70] sm:$0xff] %vm724_vm0, %v1839_v60  ;;  %v1649_v2 = vadd.f32 1.0, %v2393_v63  ;;  %2400 = vpow2.f32 %v2041_v1  ;;  %v2072_v10 = vmul.f32 -1.442695, %v3761_v62 }
 0x1eb   :  { %1935 = vst.msk [vmem:[%s4026_s5 + $0x170] sm:$0xff] %vm724_vm0, %v1871_v0  ;;  %v1681_v9 = vadd.f32 1.0, %v2395_v4 }
 0x1ec   :  { %2402 = vrcp.f32 %v1649_v2 }
 0x1ed   :  { %2404 = vrcp.f32 %v1681_v9 }
 0x1ee   :  { %2406 = vpow2.f32 %v2073_v7 }
 0x1ef   :  { %2408 = vpow2.f32 %v2040_v3 }
 0x1f0   :  { %2410 = vpow2.f32 %v2072_v10 }
 0x1f1   :  { %v2397_v11 = vpop.eup %2396 }
 0x1f2   :  { %v2399_v8 = vpop.eup %2398  ;;  %v1842_v5 = vmul.f32 %v2397_v11, %v3715_v24 }
 0x1f3   :  { %v1874_v14 = vmul.f32 %v2399_v8, %v3718_v25 }
 0x1f4   :  { %v2401_v6 = vpop.eup %2400  ;;  %1906 = vst.msk [vmem:[%s4026_s5 + $0x88] sm:$0xff] %vm724_vm0, %v1842_v5 }
 0x1f5   :  { %1938 = vst.msk [vmem:[%s4026_s5 + $0x188] sm:$0xff] %vm724_vm0, %v1874_v14  ;;  %v1652_v17 = vadd.f32 1.0, %v2401_v6  ;;  %v2188_v15 = vpop.f32.mrb[20].mxu0  ;;  %v2236_v18 = vpop.f32.mrb[20].mxu1 }
 0x1f6   :  { %v2403_v16 = vpop.eup %2402  ;;  %v3788_v20 = vadd.f32 %v2188_v15, %v3406_v29  ;;  %v3791_v13 = vadd.f32 %v2236_v18, %v3406_v29  ;;  %v1222_v21 = vpop.f32.mrb[21].mxu0 }
 0x1f7   :  { %v2405_v12 = vpop.eup %2404  ;;  %v1841_v19 = vmul.f32 %v2403_v16, %v3721_v31  ;;  %v1382_v22 = vpop.f32.mrb[21].mxu1  ;;  %2412 = vrcp.f32 %v1652_v17  ;;  %v3795_v25 = vadd.f32 %v3406_v29, %v1222_v21 }
 0x1f8   :  { %v2407_v23 = vpop.eup %2406  ;;  %v1873_v24 = vmul.f32 %v2405_v12, %v3724_v34  ;;  %v3802_v28 = vadd.f32 %v3406_v29, %v1382_v22  ;;  %v2043_v34 = vmul.f32 -1.442695, %v3788_v20  ;;  %v2075_v38 = vmul.f32 -1.442695, %v3791_v13 }
 0x1f9   :  { %v2409_v26 = vpop.eup %2408  ;;  %1905 = vst.msk [vmem:[%s4026_s5 + $0x80] sm:$0xff] %vm724_vm0, %v1841_v19  ;;  %v1684_v27 = vadd.f32 1.0, %v2407_v23  ;;  %v2042_v39 = vmul.f32 -1.442695, %v3795_v25 }
 0x1fa   :  { %v2411_v30 = vpop.eup %2410  ;;  %1937 = vst.msk [vmem:[%s4026_s5 + $0x180] sm:$0xff] %vm724_vm0, %v1873_v24  ;;  %v1651_v31 = vadd.f32 1.0, %v2409_v26  ;;  %v2074_v41 = vmul.f32 -1.442695, %v3802_v28 }
 0x1fb   :  { %2414 = vrcp.f32 %v1684_v27  ;;  %v1683_v35 = vadd.f32 1.0, %v2411_v30 }
 0x1fc   :  { %2416 = vrcp.f32 %v1651_v31 }
 0x1fd   :  { %2418 = vrcp.f32 %v1683_v35 }
 0x1fe   :  { %2420 = vpow2.f32 %v2043_v34 }
 0x1ff   :  { %2422 = vpow2.f32 %v2075_v38 }
 0x200   :  { %2424 = vpow2.f32 %v2042_v39 }
 0x201   :  { %2426 = vpow2.f32 %v2074_v41  ;;  %v2413_v42 = vpop.eup %2412 }
 0x202   :  { %v1844_v43 = vmul.f32 %v2413_v42, %v3751_v37 }
 0x204   :  { %1908 = vst.msk [vmem:[%s4026_s5 + $0x98] sm:$0xff] %vm724_vm0, %v1844_v43 }
 0x205   :  { %v2415_v44 = vpop.eup %2414  ;;  %v2191_v40 = vpop.f32.mrb[22].mxu0 }
 0x206   :  { %v2417_v46 = vpop.eup %2416  ;;  %v1876_v47 = vmul.f32 %v2415_v44, %v3754_v56  ;;  %v2239_v45 = vpop.f32.mrb[22].mxu1  ;;  %v3820_v32 = vadd.f32 %v2191_v40, %v3406_v29 }
 0x207   :  { %v2419_v48 = vpop.eup %2418  ;;  %v1843_v49 = vmul.f32 %v2417_v46, %v3758_v61  ;;  %v1232_v50 = vpop.f32.mrb[23].mxu0  ;;  %v3828_v36 = vadd.f32 %v2239_v45, %v3406_v29 }
 0x208   :  { %v1392_v51 = vpop.f32.mrb[23].mxu1  ;;  %v2421_v33 = vpop.eup %2420  ;;  %1940 = vst.msk [vmem:[%s4026_s5 + $0x198] sm:$0xff] %vm724_vm0, %v1876_v47  ;;  %v1875_v52 = vmul.f32 %v2419_v48, %v3761_v62  ;;  %v3835_v55 = vadd.f32 %v3406_v29, %v1232_v50  ;;  %v2045_v60 = vmul.f32 -1.442695, %v3820_v32 }
 0x209   :  { %v2423_v53 = vpop.eup %2422  ;;  %1907 = vst.msk [vmem:[%s4026_s5 + $0x90] sm:$0xff] %vm724_vm0, %v1843_v49  ;;  %v1654_v54 = vadd.f32 1.0, %v2421_v33  ;;  %v3842_v57 = vadd.f32 %v3406_v29, %v1392_v51  ;;  %v2077_v62 = vmul.f32 -1.442695, %v3828_v36 }
 0x20a   :  { %v2425_v37 = vpop.eup %2424  ;;  %1939 = vst.msk [vmem:[%s4026_s5 + $0x190] sm:$0xff] %vm724_vm0, %v1875_v52  ;;  %v1686_v56 = vadd.f32 1.0, %v2423_v53  ;;  %v2044_v63 = vmul.f32 -1.442695, %v3835_v55 }
 0x20b   :  { %v2427_v58 = vpop.eup %2426  ;;  %2428 = vrcp.f32 %v1654_v54  ;;  %v1653_v59 = vadd.f32 1.0, %v2425_v37  ;;  %v2076_v0 = vmul.f32 -1.442695, %v3842_v57 }
 0x20c   :  { %2430 = vrcp.f32 %v1686_v56  ;;  %v1685_v61 = vadd.f32 1.0, %v2427_v58 }
 0x20d   :  { %2432 = vrcp.f32 %v1653_v59 }
 0x20e   :  { %2434 = vrcp.f32 %v1685_v61 }
 0x20f   :  { %2436 = vpow2.f32 %v2045_v60 }
 0x210   :  { %2438 = vpow2.f32 %v2077_v62 }
 0x211   :  { %2440 = vpow2.f32 %v2044_v63 }
 0x212   :  { %2442 = vpow2.f32 %v2076_v0 }
 0x215   :  { %v2429_v1 = vpop.eup %2428  ;;  %v2194_v7 = vpop.f32.mrb[24].mxu0 }
 0x216   :  { %v2431_v4 = vpop.eup %2430  ;;  %v1846_v2 = vmul.f32 %v2429_v1, %v3788_v20  ;;  %v2242_v9 = vpop.f32.mrb[24].mxu1  ;;  %v3851_v11 = vadd.f32 %v2194_v7, %v3406_v29 }
 0x217   :  { %v2433_v3 = vpop.eup %2432  ;;  %v1878_v10 = vmul.f32 %v2431_v4, %v3791_v13  ;;  %v1242_v8 = vpop.f32.mrb[25].mxu0  ;;  %v3859_v16 = vadd.f32 %v2242_v9, %v3406_v29  ;;  %v3877_v13 = vld [vmem:[%s4025_s4] ss:$0 sm:$0xff] }
 0x218   :  { %v1402_v5 = vpop.f32.mrb[25].mxu1  ;;  %v2435_v14 = vpop.eup %2434  ;;  %1910 = vst.msk [vmem:[%s4026_s5 + $0xa8] sm:$0xff] %vm724_vm0, %v1846_v2  ;;  %v1845_v6 = vmul.f32 %v2433_v3, %v3795_v25  ;;  %v2047_v18 = vmul.f32 -1.442695, %v3851_v11  ;;  %v3868_v12 = vadd.f32 %v3406_v29, %v1242_v8 }
 0x219   :  { %v2437_v17 = vpop.eup %2436  ;;  %1942 = vst.msk [vmem:[%s4026_s5 + $0x1a8] sm:$0xff] %vm724_vm0, %v1878_v10  ;;  %v1877_v15 = vmul.f32 %v2435_v14, %v3802_v28  ;;  %v3880_v21 = vadd.f32 %v3877_v13, %v1402_v5  ;;  %v2079_v25 = vmul.f32 -1.442695, %v3859_v16 }
 0x21a   :  { %v2439_v19 = vpop.eup %2438  ;;  %1909 = vst.msk [vmem:[%s4026_s5 + $0xa0] sm:$0xff] %vm724_vm0, %v1845_v6  ;;  %v1656_v20 = vadd.f32 1.0, %v2437_v17  ;;  %2444 = vpow2.f32 %v2047_v18  ;;  %v2046_v27 = vmul.f32 -1.442695, %v3868_v12 }
 0x21b   :  { %v2441_v22 = vpop.eup %2440  ;;  %1941 = vst.msk [vmem:[%s4026_s5 + $0x1a0] sm:$0xff] %vm724_vm0, %v1877_v15  ;;  %v1688_v29 = vadd.f32 1.0, %v2439_v19  ;;  %v2078_v28 = vmul.f32 -1.442695, %v3880_v21 }
 0x21c   :  { %v2443_v23 = vpop.eup %2442  ;;  %2446 = vrcp.f32 %v1656_v20  ;;  %v1655_v24 = vadd.f32 1.0, %v2441_v22 }
 0x21d   :  { %2448 = vrcp.f32 %v1688_v29  ;;  %v1687_v26 = vadd.f32 1.0, %v2443_v23 }
 0x21e   :  { %2450 = vrcp.f32 %v1655_v24 }
 0x21f   :  { %2452 = vrcp.f32 %v1687_v26 }
 0x220   :  { %2454 = vpow2.f32 %v2079_v25 }
 0x221   :  { %2456 = vpow2.f32 %v2046_v27 }
 0x222   :  { %2458 = vpow2.f32 %v2078_v28 }
 0x224   :  { %v2445_v30 = vpop.eup %2444 }
 0x225   :  { %v1658_v34 = vadd.f32 1.0, %v2445_v30  ;;  %v2197_v35 = vpop.f32.mrb[26].mxu0  ;;  %v2245_v38 = vpop.f32.mrb[26].mxu1 }
 0x226   :  { %v2447_v31 = vpop.eup %2446  ;;  %v3891_v42 = vadd.f32 %v3877_v13, %v2197_v35  ;;  %v3894_v43 = vadd.f32 %v3877_v13, %v2245_v38  ;;  %v1252_v44 = vpop.f32.mrb[27].mxu0 }
 0x227   :  { %v2449_v39 = vpop.eup %2448  ;;  %v1848_v41 = vmul.f32 %v2447_v31, %v3820_v32  ;;  %v1412_v46 = vpop.f32.mrb[27].mxu1  ;;  %2460 = vrcp.f32 %v1658_v34  ;;  %v3898_v45 = vadd.f32 %v3877_v13, %v1252_v44 }
 0x228   :  { %v2451_v47 = vpop.eup %2450  ;;  %v1880_v40 = vmul.f32 %v2449_v39, %v3828_v36  ;;  %v2049_v32 = vmul.f32 -1.442695, %v3891_v42  ;;  %v2081_v50 = vmul.f32 -1.442695, %v3894_v43  ;;  %v3908_v51 = vadd.f32 %v3877_v13, %v1412_v46 }
 0x229   :  { %v2453_v48 = vpop.eup %2452  ;;  %1912 = vst.msk [vmem:[%s4026_s5 + $0xb8] sm:$0xff] %vm724_vm0, %v1848_v41  ;;  %v1847_v49 = vmul.f32 %v2451_v47, %v3835_v55  ;;  %v2048_v37 = vmul.f32 -1.442695, %v3898_v45 }
 0x22a   :  { %v2455_v33 = vpop.eup %2454  ;;  %1944 = vst.msk [vmem:[%s4026_s5 + $0x1b8] sm:$0xff] %vm724_vm0, %v1880_v40  ;;  %v1879_v52 = vmul.f32 %v2453_v48, %v3842_v57  ;;  %2462 = vpow2.f32 %v2049_v32  ;;  %v2080_v57 = vmul.f32 -1.442695, %v3908_v51 }
 0x22b   :  { %v2457_v36 = vpop.eup %2456  ;;  %1911 = vst.msk [vmem:[%s4026_s5 + $0xb0] sm:$0xff] %vm724_vm0, %v1847_v49  ;;  %v1690_v53 = vadd.f32 1.0, %v2455_v33  ;;  %2464 = vpow2.f32 %v2081_v50 }
 0x22c   :  { %v2459_v54 = vpop.eup %2458  ;;  %1943 = vst.msk [vmem:[%s4026_s5 + $0x1b0] sm:$0xff] %vm724_vm0, %v1879_v52  ;;  %v1657_v55 = vadd.f32 1.0, %v2457_v36 }
 0x22d   :  { %2466 = vrcp.f32 %v1690_v53  ;;  %v1689_v56 = vadd.f32 1.0, %v2459_v54 }
 0x22e   :  { %2468 = vrcp.f32 %v1657_v55 }
 0x22f   :  { %2470 = vrcp.f32 %v1689_v56 }
 0x230   :  { %2472 = vpow2.f32 %v2048_v37 }
 0x231   :  { %2474 = vpow2.f32 %v2080_v57  ;;  %v2461_v58 = vpop.eup %2460 }
 0x232   :  { %v1850_v59 = vmul.f32 %v2461_v58, %v3851_v11 }
 0x234   :  { %v2463_v60 = vpop.eup %2462  ;;  %1914 = vst.msk [vmem:[%s4026_s5 + $0xc8] sm:$0xff] %vm724_vm0, %v1850_v59 }
 0x235   :  { %v2465_v61 = vpop.eup %2464  ;;  %v1660_v62 = vadd.f32 1.0, %v2463_v60  ;;  %v2200_v63 = vpop.f32.mrb[28].mxu0 }
 0x236   :  { %v2248_v0 = vpop.f32.mrb[28].mxu1  ;;  %v1692_v4 = vadd.f32 1.0, %v2465_v61  ;;  %v3931_v2 = vadd.f32 %v3877_v13, %v2200_v63  ;;  %v1262_v9 = vpop.f32.mrb[29].mxu0 }
 0x237   :  { %v2467_v1 = vpop.eup %2466  ;;  %v3934_v7 = vadd.f32 %v3877_v13, %v2248_v0  ;;  %v1422_v3 = vpop.f32.mrb[29].mxu1  ;;  %2476 = vrcp.f32 %v1660_v62  ;;  %v3938_v8 = vadd.f32 %v3877_v13, %v1262_v9 }
 0x238   :  { %v2469_v10 = vpop.eup %2468  ;;  %v1882_v11 = vmul.f32 %v2467_v1, %v3859_v16  ;;  %v3941_v5 = vadd.f32 %v3877_v13, %v1422_v3  ;;  %2478 = vrcp.f32 %v1692_v4  ;;  %v2051_v17 = vmul.f32 -1.442695, %v3931_v2 }
 0x239   :  { %v2471_v14 = vpop.eup %2470  ;;  %v1849_v6 = vmul.f32 %v2469_v10, %v3868_v12  ;;  %v2083_v15 = vmul.f32 -1.442695, %v3934_v7  ;;  %v2050_v20 = vmul.f32 -1.442695, %v3938_v8 }
 0x23a   :  { %v2473_v18 = vpop.eup %2472  ;;  %1946 = vst.msk [vmem:[%s4026_s5 + $0x1c8] sm:$0xff] %vm724_vm0, %v1882_v11  ;;  %v1881_v16 = vmul.f32 %v2471_v14, %v3880_v21  ;;  %2480 = vpow2.f32 %v2051_v17  ;;  %v2082_v29 = vmul.f32 -1.442695, %v3941_v5 }
 0x23b   :  { %v2475_v19 = vpop.eup %2474  ;;  %1913 = vst.msk [vmem:[%s4026_s5 + $0xc0] sm:$0xff] %vm724_vm0, %v1849_v6  ;;  %v1659_v12 = vadd.f32 1.0, %v2473_v18  ;;  %2482 = vpow2.f32 %v2083_v15 }
 0x23c   :  { %1945 = vst.msk [vmem:[%s4026_s5 + $0x1c0] sm:$0xff] %vm724_vm0, %v1881_v16  ;;  %v1691_v22 = vadd.f32 1.0, %v2475_v19 }
 0x23d   :  { %2484 = vrcp.f32 %v1659_v12 }
 0x23e   :  { %2486 = vrcp.f32 %v1691_v22 }
 0x23f   :  { %2488 = vpow2.f32 %v2050_v20 }
 0x240   :  { %2490 = vpow2.f32 %v2082_v29 }
 0x241   :  { %v2477_v21 = vpop.eup %2476 }
 0x242   :  { %v2479_v23 = vpop.eup %2478  ;;  %v1852_v24 = vmul.f32 %v2477_v21, %v3891_v42 }
 0x243   :  { %v1884_v25 = vmul.f32 %v2479_v23, %v3894_v43 }
 0x244   :  { %v2481_v26 = vpop.eup %2480  ;;  %1916 = vst.msk [vmem:[%s4026_s5 + $0xd8] sm:$0xff] %vm724_vm0, %v1852_v24 }
 0x245   :  { %v2483_v27 = vpop.eup %2482  ;;  %1948 = vst.msk [vmem:[%s4026_s5 + $0x1d8] sm:$0xff] %vm724_vm0, %v1884_v25  ;;  %v1662_v28 = vadd.f32 1.0, %v2481_v26 }
 0x246   :  { %v2251_v31 = vpop.f32.mrb[30].mxu1  ;;  %v1694_v35 = vadd.f32 1.0, %v2483_v27 }
 0x247   :  { %v2203_v30 = vpop.f32.mrb[30].mxu0  ;;  %v2485_v34 = vpop.eup %2484  ;;  %v1438_v39 = vadd.f32 %v3877_v13, %v2251_v31  ;;  %2492 = vrcp.f32 %v1662_v28 }
 0x248   :  { %v1278_v38 = vadd.f32 %v3877_v13, %v2203_v30  ;;  %v1272_v41 = vpop.f32.mrb[31].mxu0  ;;  %v1432_v42 = vpop.f32.mrb[31].mxu1  ;;  %v1851_v44 = vmul.f32 %v2485_v34, %v3898_v45  ;;  %2494 = vrcp.f32 %v1694_v35 }
 0x249   :  { %v2487_v43 = vpop.eup %2486  ;;  %v1273_v46 = vadd.f32 %v3877_v13, %v1272_v41  ;;  %v1433_v47 = vadd.f32 %v3877_v13, %v1432_v42  ;;  %v2085_v33 = vmul.f32 -1.442695, %v1438_v39 }
 0x24a   :  { %v2489_v40 = vpop.eup %2488  ;;  %v1883_v48 = vmul.f32 %v2487_v43, %v3908_v51  ;;  %v2053_v49 = vmul.f32 -1.442695, %v1278_v38  ;;  %1915 = vst.msk [vmem:[%s4026_s5 + $0xd0] sm:$0xff] %vm724_vm0, %v1851_v44 }
 0x24b   :  { %v2491_v32 = vpop.eup %2490  ;;  %v1661_v50 = vadd.f32 1.0, %v2489_v40  ;;  %v2052_v13 = vmul.f32 -1.442695, %v1273_v46  ;;  %v2084_v51 = vmul.f32 -1.442695, %v1433_v47 }
 0x24c   :  { %1947 = vst.msk [vmem:[%s4026_s5 + $0x1d0] sm:$0xff] %vm724_vm0, %v1883_v48  ;;  %v1693_v45 = vadd.f32 1.0, %v2491_v32  ;;  %2496 = vpow2.f32 %v2053_v49 }
 0x24d   :  { %2498 = vrcp.f32 %v1661_v50 }
 0x24e   :  { %2500 = vrcp.f32 %v1693_v45 }
 0x24f   :  { %2502 = vpow2.f32 %v2085_v33 }
 0x250   :  { %2504 = vpow2.f32 %v2052_v13 }
 0x251   :  { %2506 = vpow2.f32 %v2084_v51  ;;  %v2493_v52 = vpop.eup %2492 }
 0x252   :  { %v2495_v36 = vpop.eup %2494  ;;  %v1854_v53 = vmul.f32 %v2493_v52, %v3931_v2 }
 0x253   :  { %v1886_v54 = vmul.f32 %v2495_v36, %v3934_v7 }
 0x254   :  { %1918 = vst.msk [vmem:[%s4026_s5 + $0xe8] sm:$0xff] %vm724_vm0, %v1854_v53 }
 0x255   :  { %1950 = vst.msk [vmem:[%s4026_s5 + $0x1e8] sm:$0xff] %vm724_vm0, %v1886_v54 }
 0x256   :  { %v2497_v55 = vpop.eup %2496 }
 0x257   :  { %v2499_v37 = vpop.eup %2498  ;;  %v1664_v56 = vadd.f32 1.0, %v2497_v55 }
 0x258   :  { %v2501_v57 = vpop.eup %2500  ;;  %v1853_v58 = vmul.f32 %v2499_v37, %v3938_v8 }
 0x259   :  { %v2503_v59 = vpop.eup %2502  ;;  %v1885_v60 = vmul.f32 %v2501_v57, %v3941_v5  ;;  %2508 = vrcp.f32 %v1664_v56 }
 0x25a   :  { %v2505_v61 = vpop.eup %2504  ;;  %1917 = vst.msk [vmem:[%s4026_s5 + $0xe0] sm:$0xff] %vm724_vm0, %v1853_v58  ;;  %v1696_v62 = vadd.f32 1.0, %v2503_v59 }
 0x25b   :  { %v2507_v63 = vpop.eup %2506  ;;  %1949 = vst.msk [vmem:[%s4026_s5 + $0x1e0] sm:$0xff] %vm724_vm0, %v1885_v60  ;;  %v1663_v0 = vadd.f32 1.0, %v2505_v61 }
 0x25c   :  { %2510 = vrcp.f32 %v1696_v62  ;;  %v1695_v1 = vadd.f32 1.0, %v2507_v63 }
 0x25d   :  { %2512 = vrcp.f32 %v1663_v0 }
 0x25e   :  { %2514 = vrcp.f32 %v1695_v1 }
 0x263   :  { %v2509_v4 = vpop.eup %2508 }
 0x264   :  { %v1856_v2 = vmul.f32 %v2509_v4, %v1278_v38 }
 0x266   :  { %v2511_v7 = vpop.eup %2510  ;;  %1920 = vst.msk [vmem:[%s4026_s5 + $0xf8] sm:$0xff] %vm724_vm0, %v1856_v2 }
 0x267   :  { %v2513_v9 = vpop.eup %2512  ;;  %v1888_v3 = vmul.f32 %v2511_v7, %v1438_v39 }
 0x268   :  { %v2515_v10 = vpop.eup %2514  ;;  %v1855_v11 = vmul.f32 %v2513_v9, %v1273_v46 }
 0x269   :  { %1952 = vst.msk [vmem:[%s4026_s5 + $0x1f8] sm:$0xff] %vm724_vm0, %v1888_v3  ;;  %v1887_v8 = vmul.f32 %v2515_v10, %v1433_v47 }
 0x26a   :  { %1919 = vst.msk [vmem:[%s4026_s5 + $0xf0] sm:$0xff] %vm724_vm0, %v1855_v11 }
 0x26b   :  { %1951 = vst.msk [vmem:[%s4026_s5 + $0x1f0] sm:$0xff] %vm724_vm0, %v1887_v8 }

// kernel: c2f_forward.5
= control target key start
LH: loop header
LB: loop body
LE: loop exit
PB: predicated region body
PF: predicated region fallthrough
CT: control target
= control target key end

     0   :  { %s2694_s24 = smov 0   ;;  %s2696_s25 = smov 0   ;;  %s3452_s0 = inlined_call_operand.vmem [shape: f32[2,16,16,8], index: 0, kind: input, shape index: {}, may-alias: {0,1,2}]   ;;  %s3453_s1 = inlined_call_operand.vmem [shape: f32[2,16,16,8], index: 1, kind: input, shape index: {}, may-alias: {0,1,2}]   ;;  %s3454_s2 = inlined_call_operand.vmem [shape: f32[2,16,16,8], index: 2, kind: input, shape index: {}, may-alias: {0,1,2}]   ;;  %s3455_s3 = inlined_call_operand.vmem [shape: f32[8,4], index: 3, kind: input, shape index: {}]   ;;  %s3456_s4 = inlined_call_operand.vmem [shape: f32[1,4], index: 4, kind: input, shape index: {}]   ;;  %s3457_s5 = inlined_call_operand.vmem [shape: f32[36,4], index: 5, kind: input, shape index: {}]   ;;  %s3458_s6 = inlined_call_operand.vmem [shape: f32[1,4], index: 6, kind: input, shape index: {}]   ;;  %s3459_s7 = inlined_call_operand.vmem [shape: f32[2,16,16,4], index: 7, kind: output, shape index: {}]  }
   0x1   :  { %s2698_s26 = smov 0   ;;  %s2700_s27 = smov 0  }
   0x2   :  { %s2702_s28 = smov 0  }
   0x3 LB: > { %s26_s29 = sadd.s32 1, %s2633_s26  ;;  %s29_s30 = sadd.s32 1, %s2637_s27  ;;  %s2641_s28 = sphi %s2702_s28, %s17_s28   ;;  %s2637_s27 = sphi %s2700_s27, %s3464_s27   ;;  %s2633_s26 = sphi %s2698_s26, %s3463_s26   ;;  %s2629_s25 = sphi %s2696_s25, %s3462_s25   ;;  %s2625_s24 = sphi %s2694_s24, %s3461_s24  }
   0x4   : > { %p27_p0 = scmp.ge.s32.totalorder %s26_s29, 2  ;;  %p2179_p1 = scmp.ge.s32.totalorder %s2641_s28, 1 }
   0x5   : > { %p323_p2 = scmp.lt.s32.totalorder %s2641_s28, 5 }
   0x6   : > { %s3466_s29 = smov (%p27_p0, %s26_s29), 0  ;;  %s3468_s30 = smov (!%p27_p0, %s29_s30), %s2637_s27 }
   0x7   : > { %p324_p3 = pnand %p2179_p1, %p323_p2  ;;  %p31_p4 = scmp.ge.s32.totalorder %s3468_s30, 2 }
   0x8   : > { %v467_v0 = vld [vmem:[%s3455_s3] sm:$0xff] (!%p324_p3)  ;;  %s2730_s10 = sshll.u32 (!%p324_p3), %s2625_s24, 3  ;;  %p392_p5 = scmp.lt.s32.totalorder (!%p324_p3), %s2629_s25, 1  ;;  %vm475_vm0 = vcmask (!%p324_p3), 64512   ;;  %vm862_vm1 = vcmask (!%p324_p3), 24576   ;;  %v2643_v21 = vmov (!%p324_p3), 0.0  }
   0x9   : > { %s3470_s30 = smov (%p31_p4, %s3468_s30), 0  ;;  %327 = sbr.rel (%p324_p3) target bundleno = 935 (0x3a7), region = 48 }
   0xa   : > { %2334 = vmatprep.subr.mxu0 (!%p324_p3), %v467_v0  ;;  %p394_p6 = scmp.lt.s32.totalorder (!%p324_p3), %s2730_s10, 15  ;;  %s2185_s11 = sadd.s32 (!%p324_p3), 4294967295, %s2730_s10  ;;  %863 = vst.msk [vmem:[#allocation2] sm:$0x1] (!%p324_p3), %vm862_vm1, %v2643_v21  ;;  %864 = vst.msk [vmem:[#allocation2 + $0x18] sm:$0x1] (!%p324_p3), %vm862_vm1, %v2643_v21 }
   0xb   : > { %2335 = vmatpush3.msra.mxu0 (!%p324_p3), %v467_v0  ;;  %p404_p7 = scmp.gt.s32.totalorder (!%p324_p3), %s2185_s11, 0  ;;  %p2186_p8 = scmp.lt.s32.totalorder (!%p324_p3), %s2185_s11, 15  ;;  %865 = vst.msk [vmem:[#allocation2 + $0x30] sm:$0x1] (!%p324_p3), %vm862_vm1, %v2643_v21  ;;  %866 = vst.msk [vmem:[#allocation2 + $0x48] sm:$0x1] (!%p324_p3), %vm862_vm1, %v2643_v21 }
   0xc   : > { %867 = vst.msk [vmem:[#allocation2 + $0x60] sm:$0x1] (!%p324_p3), %vm862_vm1, %v2643_v21  ;;  %868 = vst.msk [vmem:[#allocation2 + $0x78] sm:$0x1] (!%p324_p3), %vm862_vm1, %v2643_v21  ;;  %v2824_v22 = vld [vmem:[%s3456_s4] ss:$0 sm:$0xff] (!%p324_p3) }
   0xd   : > { %869 = vst.msk [vmem:[#allocation2 + $0x90] sm:$0x1] (!%p324_p3), %vm862_vm1, %v2643_v21  ;;  %870 = vst.msk [vmem:[#allocation2 + $0xa8] sm:$0x1] (!%p324_p3), %vm862_vm1, %v2643_v21  ;;  %vm841_vm2 = vcmask (!%p324_p3), 31744   ;;  %p2246_p10 = scmp.ne.s32.totalorder (!%p324_p3), %s2625_s24, 0 }
   0xe   : > { %871 = vst.msk [vmem:[#allocation2 + $0xc0] sm:$0x1] (!%p324_p3), %vm862_vm1, %v2643_v21  ;;  %872 = vst.msk [vmem:[#allocation2 + $0xd8] sm:$0x1] (!%p324_p3), %vm862_vm1, %v2643_v21 }
   0xf   : > { %873 = vst.msk [vmem:[#allocation2 + $0x11] sm:$0x1] (!%p324_p3), %vm862_vm1, %v2643_v21  ;;  %874 = vst.msk [vmem:[#allocation2 + $0x29] sm:$0x1] (!%p324_p3), %vm862_vm1, %v2643_v21 }
  0x10   : > { %s3472_s25 = smov (!%p392_p5, %s2629_s25), 1  ;;  %s3474_s11 = smov (!%p404_p7, %s2185_s11), 0  ;;  %875 = vst.msk [vmem:[#allocation2 + $0x41] sm:$0x1] %vm862_vm1, %v2643_v21  ;;  %876 = vst.msk [vmem:[#allocation2 + $0x59] sm:$0x1] %vm862_vm1, %v2643_v21 }
  0x11   : > { %s395_s12 = scalar_select %p394_p6, %s2730_s10, 15  ;;  %877 = vst.msk [vmem:[#allocation2 + $0x71] sm:$0x1] %vm862_vm1, %v2643_v21  ;;  %878 = vst.msk [vmem:[#allocation2 + $0x89] sm:$0x1] %vm862_vm1, %v2643_v21 }
  0x12   : > { %s2735_s13 = sshll.u32 %s3472_s25, 5  ;;  %s3476_s11 = smov (!%p2186_p8, %s3474_s11), 15  ;;  %879 = vst.msk [vmem:[#allocation2 + $0xa1] sm:$0x1] %vm862_vm1, %v2643_v21  ;;  %880 = vst.msk [vmem:[#allocation2 + $0xb9] sm:$0x1] %vm862_vm1, %v2643_v21 }
  0x13   : > { %s2181_s14 = sshll.u32 %s395_s12, 1  ;;  %s2191_s20 = sshll.u32 %s3476_s11, 1  ;;  %881 = vst.msk [vmem:[#allocation2 + $0xd1] sm:$0x1] %vm862_vm1, %v2643_v21  ;;  %882 = vst.msk [vmem:[#allocation2 + $0xe9] sm:$0x1] %vm862_vm1, %v2643_v21 }
  0x14   : > { %s398_s15 = sadd.s32 %s2735_s13, %s2181_s14  ;;  %s412_s25 = sadd.s32 %s2191_s20, %s2735_s13 }
  0x15   : > { %s2183_s16 = sshll.u32 %s398_s15, 3  ;;  %s2193_s8 = sshll.u32 %s412_s25, 3 }
  0x16   : > { %s2741_s19 = scalar_lea.vmem %s3459_s7, %s2183_s16  ;;  %s2746_s23 = scalar_lea.vmem %s3452_s0, %s2183_s16 }
  0x17   : > { %s414_s14 = scalar_lea.vmem %s3453_s1, %s2193_s8  ;;  %v449_v3 = vld [vmem:[%s2746_s23] sm:$0xff]  ;;  %v450_v4 = vld [vmem:[%s2746_s23 + $0x8] sm:$0xff]  ;;  %v451_v5 = vld [vmem:[%s2746_s23 + $0x10] sm:$0xff]  ;;  %s2291_s11 = sadd.s32 8, %s2730_s10 }
  0x18   : > { %v447_v1 = vld [vmem:[%s414_s14] sm:$0xff]  ;;  %v448_v2 = vld [vmem:[%s414_s14 + $0x8] sm:$0xff]  ;;  %v452_v6 = vld [vmem:[%s2746_s23 + $0x18] sm:$0xff]  ;;  %p2763_p9 = scmp.lt.s32.totalorder %s2291_s11, 15 }
  0x19   : > { %2336 = vmatprep.mubr.msk.f32.mxu0 %vm475_vm0, %v447_v1  ;;  %v453_v7 = vld [vmem:[%s2746_s23 + $0x20] sm:$0xff]  ;;  %v454_v8 = vld [vmem:[%s2746_s23 + $0x28] sm:$0xff]  ;;  %v455_v9 = vld [vmem:[%s2746_s23 + $0x30] sm:$0xff] }
  0x1a   : > { %2337 = vmatmul.mubr.msk.f32.vlgmr.msra.gmra.mrb[0].mxu0 %vm475_vm0, %v448_v2  ;;  %s3478_s11 = smov (!%p2763_p9, %s2291_s11), 15  ;;  %v456_v10 = vld [vmem:[%s2746_s23 + $0x38] sm:$0xff]  ;;  %v457_v11 = vld [vmem:[%s2746_s23 + $0x40] sm:$0xff]  ;;  %v458_v12 = vld [vmem:[%s2746_s23 + $0x48] sm:$0xff] }
  0x1b   : > { %2339 = vmatprep.mubr.msk.f32.mxu0 %vm475_vm0, %v449_v3  ;;  %s3480_s11 = smov (!%p2763_p9, %s3478_s11), 15  ;;  %v459_v13 = vld [vmem:[%s2746_s23 + $0x50] sm:$0xff]  ;;  %v460_v14 = vld [vmem:[%s2746_s23 + $0x58] sm:$0xff]  ;;  %v461_v15 = vld [vmem:[%s2746_s23 + $0x60] sm:$0xff] }
  0x1c   : > { %s2198_s10 = sshll.u32 %s3480_s11, 1  ;;  %v462_v16 = vld [vmem:[%s2746_s23 + $0x68] sm:$0xff]  ;;  %v463_v17 = vld [vmem:[%s2746_s23 + $0x70] sm:$0xff]  ;;  %v464_v18 = vld [vmem:[%s2746_s23 + $0x78] sm:$0xff] }
  0x1d   : > { %s429_s16 = sadd.s32 %s2198_s10, %s2735_s13 }
  0x1e   : > { %2340 = vmatmul.mubr.msk.f32.gmra.mrb[2].mxu0 %vm475_vm0, %v450_v4  ;;  %s2200_s17 = sshll.u32 %s429_s16, 3 }
  0x1f   : > { %2342 = vmatprep.mubr.msk.f32.mxu0 %vm475_vm0, %v451_v5  ;;  %s431_s21 = scalar_lea.vmem %s3454_s2, %s2200_s17 }
  0x20   : > { %v465_v19 = vld [vmem:[%s431_s21] sm:$0xff]  ;;  %v466_v20 = vld [vmem:[%s431_s21 + $0x8] sm:$0xff] }
  0x22   : > { %2343 = vmatmul.mubr.msk.f32.gmra.mrb[4].mxu0 %vm475_vm0, %v452_v6 }
  0x23   : > { %2345 = vmatprep.mubr.msk.f32.mxu0 %vm475_vm0, %v453_v7 }
  0x26   : > { %2346 = vmatmul.mubr.msk.f32.gmra.mrb[6].mxu0 %vm475_vm0, %v454_v8 }
  0x27   : > { %2348 = vmatprep.mubr.msk.f32.mxu0 %vm475_vm0, %v455_v9 }
  0x2a   : > { %2349 = vmatmul.mubr.msk.f32.gmra.mrb[8].mxu0 %vm475_vm0, %v456_v10 }
  0x2b   : > { %2351 = vmatprep.mubr.msk.f32.mxu0 %vm475_vm0, %v457_v11 }
  0x2e   : > { %2352 = vmatmul.mubr.msk.f32.gmra.mrb[10].mxu0 %vm475_vm0, %v458_v12 }
  0x2f   : > { %2354 = vmatprep.mubr.msk.f32.mxu0 %vm475_vm0, %v459_v13 }
  0x32   : > { %2355 = vmatmul.mubr.msk.f32.gmra.mrb[12].mxu0 %vm475_vm0, %v460_v14 }
  0x33   : > { %2357 = vmatprep.mubr.msk.f32.mxu0 %vm475_vm0, %v461_v15 }
  0x36   : > { %2358 = vmatmul.mubr.msk.f32.gmra.mrb[14].mxu0 %vm475_vm0, %v462_v16 }
  0x37   : > { %2360 = vmatprep.mubr.msk.f32.mxu0 %vm475_vm0, %v463_v17 }
  0x3a   : > { %2361 = vmatmul.mubr.msk.f32.gmra.mrb[16].mxu0 %vm475_vm0, %v464_v18 }
  0x3b   : > { %2363 = vmatprep.mubr.msk.f32.mxu0 %vm475_vm0, %v465_v19 }
  0x3e   : > { %2364 = vmatmul.mubr.msk.f32.gmra.mrb[18].mxu0 %vm475_vm0, %v466_v20 }
  0xed   : > { %v2338_v23 = vpop.f32.mrb[0].mxu0 }
  0xee   : > { %v2827_v24 = vadd.f32 %v2338_v23, %v2824_v22  ;;  %v602_v25 = vpop.f32.mrb[1].mxu0 }
  0xef   : > { %v2830_v26 = vadd.f32 %v2824_v22, %v602_v25 }
  0xf0   : > { %v2227_v27 = vmul.f32 -1.442695, %v2827_v24 }
  0xf1   : > { %v2226_v28 = vmul.f32 -1.442695, %v2830_v26  ;;  %v2341_v29 = vpop.f32.mrb[2].mxu0 }
  0xf2   : > { %2459 = vpow2.f32 %v2227_v27  ;;  %v2835_v30 = vadd.f32 %v2341_v29, %v2824_v22  ;;  %v612_v31 = vpop.f32.mrb[3].mxu0 }
  0xf3   : > { %2461 = vpow2.f32 %v2226_v28  ;;  %v2838_v32 = vadd.f32 %v2824_v22, %v612_v31 }
  0xf4   : > { %v2229_v33 = vmul.f32 -1.442695, %v2835_v30 }
  0xf5   : > { %v2228_v34 = vmul.f32 -1.442695, %v2838_v32  ;;  %v2344_v35 = vpop.f32.mrb[4].mxu0 }
  0xf6   : > { %2463 = vpow2.f32 %v2229_v33  ;;  %v2843_v36 = vadd.f32 %v2344_v35, %v2824_v22  ;;  %v622_v37 = vpop.f32.mrb[5].mxu0 }
  0xf7   : > { %2465 = vpow2.f32 %v2228_v34  ;;  %v2846_v38 = vadd.f32 %v2824_v22, %v622_v37 }
  0xf8   : > { %v2231_v39 = vmul.f32 -1.442695, %v2843_v36 }
  0xf9   : > { %v2230_v40 = vmul.f32 -1.442695, %v2846_v38  ;;  %v2347_v41 = vpop.f32.mrb[6].mxu0 }
  0xfa   : > { %2467 = vpow2.f32 %v2231_v39  ;;  %v2851_v42 = vadd.f32 %v2347_v41, %v2824_v22  ;;  %v632_v43 = vpop.f32.mrb[7].mxu0 }
  0xfb   : > { %2469 = vpow2.f32 %v2230_v40  ;;  %v2854_v44 = vadd.f32 %v2824_v22, %v632_v43 }
  0xfc   : > { %v2460_v45 = vpop.eup %2459  ;;  %v2233_v46 = vmul.f32 -1.442695, %v2851_v42 }
  0xfd   : > { %v2462_v47 = vpop.eup %2461  ;;  %v762_v48 = vadd.f32 1.0, %v2460_v45  ;;  %v2232_v49 = vmul.f32 -1.442695, %v2854_v44  ;;  %v2350_v50 = vpop.f32.mrb[8].mxu0 }
  0xfe   : > { %v761_v51 = vadd.f32 1.0, %v2462_v47  ;;  %2471 = vpow2.f32 %v2233_v46  ;;  %v2859_v52 = vadd.f32 %v2350_v50, %v2824_v22  ;;  %v642_v53 = vpop.f32.mrb[9].mxu0 }
  0xff   : > { %2473 = vrcp.f32 %v762_v48  ;;  %v2862_v54 = vadd.f32 %v2824_v22, %v642_v53 }
 0x100   : > { %v2464_v55 = vpop.eup %2463  ;;  %2475 = vrcp.f32 %v761_v51  ;;  %v2235_v56 = vmul.f32 -1.442695, %v2859_v52 }
 0x101   : > { %v2466_v57 = vpop.eup %2465  ;;  %v764_v58 = vadd.f32 1.0, %v2464_v55  ;;  %2477 = vpow2.f32 %v2232_v49  ;;  %v2234_v59 = vmul.f32 -1.442695, %v2862_v54  ;;  %v2353_v60 = vpop.f32.mrb[10].mxu0 }
 0x102   : > { %v763_v61 = vadd.f32 1.0, %v2466_v57  ;;  %2479 = vpow2.f32 %v2235_v56  ;;  %v2867_v62 = vadd.f32 %v2353_v60, %v2824_v22  ;;  %v652_v63 = vpop.f32.mrb[11].mxu0 }
 0x103   : > { %2481 = vrcp.f32 %v764_v58  ;;  %v2870_v0 = vadd.f32 %v2824_v22, %v652_v63 }
 0x104   : > { %v2468_v1 = vpop.eup %2467  ;;  %2483 = vrcp.f32 %v763_v61  ;;  %v2237_v2 = vmul.f32 -1.442695, %v2867_v62 }
 0x105   : > { %v2470_v3 = vpop.eup %2469  ;;  %v766_v4 = vadd.f32 1.0, %v2468_v1  ;;  %2485 = vpow2.f32 %v2234_v59  ;;  %v2236_v5 = vmul.f32 -1.442695, %v2870_v0  ;;  %v2356_v6 = vpop.f32.mrb[12].mxu0 }
 0x106   : > { %v765_v7 = vadd.f32 1.0, %v2470_v3  ;;  %2487 = vpow2.f32 %v2237_v2  ;;  %v2875_v8 = vadd.f32 %v2356_v6, %v2824_v22  ;;  %v662_v9 = vpop.f32.mrb[13].mxu0 }
 0x107   : > { %2489 = vrcp.f32 %v766_v4  ;;  %v2878_v10 = vadd.f32 %v2824_v22, %v662_v9 }
 0x108   : > { %v2472_v11 = vpop.eup %2471  ;;  %2491 = vrcp.f32 %v765_v7  ;;  %v2239_v12 = vmul.f32 -1.442695, %v2875_v8 }
 0x109   : > { %v2474_v13 = vpop.eup %2473  ;;  %v768_v14 = vadd.f32 1.0, %v2472_v11  ;;  %2493 = vpow2.f32 %v2236_v5  ;;  %v2238_v15 = vmul.f32 -1.442695, %v2878_v10  ;;  %v2359_v16 = vpop.f32.mrb[14].mxu0 }
 0x10a   : > { %v2476_v17 = vpop.eup %2475  ;;  %v822_v18 = vmul.f32 %v2474_v13, %v2827_v24  ;;  %2495 = vpow2.f32 %v2239_v12  ;;  %v2884_v19 = vadd.f32 %v2359_v16, %v2824_v22  ;;  %v672_v20 = vpop.f32.mrb[15].mxu0 }
 0x10b   : > { %v2478_v21 = vpop.eup %2477  ;;  %v821_v23 = vmul.f32 %v2476_v17, %v2830_v26  ;;  %2497 = vrcp.f32 %v768_v14  ;;  %v2888_v25 = vadd.f32 %v2824_v22, %v672_v20 }
 0x10c   : > { %v2480_v27 = vpop.eup %2479  ;;  %843 = vst.msk [vmem:[#allocation2 + $0x9] sm:$0xff] %vm841_vm2, %v822_v18  ;;  %v767_v28 = vadd.f32 1.0, %v2478_v21  ;;  %2499 = vpow2.f32 %v2238_v15  ;;  %v2241_v29 = vmul.f32 -1.442695, %v2884_v19 }
 0x10d   : > { %v2482_v24 = vpop.eup %2481  ;;  %842 = vst.msk [vmem:[#allocation2 + $0x1] sm:$0xff] %vm841_vm2, %v821_v23  ;;  %v770_v31 = vadd.f32 1.0, %v2480_v27  ;;  %v2240_v33 = vmul.f32 -1.442695, %v2888_v25  ;;  %v2362_v34 = vpop.f32.mrb[16].mxu0 }
 0x10e   : > { %v2484_v35 = vpop.eup %2483  ;;  %v824_v26 = vmul.f32 %v2482_v24, %v2835_v30  ;;  %2501 = vrcp.f32 %v767_v28  ;;  %v2896_v37 = vadd.f32 %v2362_v34, %v2824_v22  ;;  %v682_v39 = vpop.f32.mrb[17].mxu0 }
 0x10f   : > { %v2486_v40 = vpop.eup %2485  ;;  %v823_v41 = vmul.f32 %v2484_v35, %v2838_v32  ;;  %2503 = vrcp.f32 %v770_v31  ;;  %v2900_v43 = vadd.f32 %v2824_v22, %v682_v39 }
 0x110   : > { %v2488_v45 = vpop.eup %2487  ;;  %845 = vst.msk [vmem:[#allocation2 + $0x21] sm:$0xff] %vm841_vm2, %v824_v26  ;;  %v769_v46 = vadd.f32 1.0, %v2486_v40  ;;  %2505 = vpow2.f32 %v2241_v29  ;;  %v2243_v47 = vmul.f32 -1.442695, %v2896_v37 }
 0x111   : > { %v2490_v30 = vpop.eup %2489  ;;  %844 = vst.msk [vmem:[#allocation2 + $0x19] sm:$0xff] %vm841_vm2, %v823_v41  ;;  %v772_v48 = vadd.f32 1.0, %v2488_v45  ;;  %2507 = vpow2.f32 %v2240_v33  ;;  %v2242_v49 = vmul.f32 -1.442695, %v2900_v43  ;;  %v2365_v50 = vpop.f32.mrb[18].mxu0 }
 0x112   : > { %v2492_v32 = vpop.eup %2491  ;;  %v826_v51 = vmul.f32 %v2490_v30, %v2843_v36  ;;  %2509 = vrcp.f32 %v769_v46  ;;  %v2908_v53 = vadd.f32 %v2365_v50, %v2824_v22  ;;  %v692_v55 = vpop.f32.mrb[19].mxu0 }
 0x113   : > { %v2494_v56 = vpop.eup %2493  ;;  %v825_v57 = vmul.f32 %v2492_v32, %v2846_v38  ;;  %2511 = vrcp.f32 %v772_v48  ;;  %v2912_v58 = vadd.f32 %v2824_v22, %v692_v55 }
 0x114   : > { %v2496_v59 = vpop.eup %2495  ;;  %847 = vst.msk [vmem:[#allocation2 + $0x39] sm:$0xff] %vm841_vm2, %v826_v51  ;;  %v771_v60 = vadd.f32 1.0, %v2494_v56  ;;  %2513 = vpow2.f32 %v2243_v47  ;;  %v2245_v61 = vmul.f32 -1.442695, %v2908_v53 }
 0x115   : > { %v2498_v36 = vpop.eup %2497  ;;  %846 = vst.msk [vmem:[#allocation2 + $0x31] sm:$0xff] %vm841_vm2, %v825_v57  ;;  %v774_v63 = vadd.f32 1.0, %v2496_v59  ;;  %2515 = vpow2.f32 %v2242_v49  ;;  %v2244_v38 = vmul.f32 -1.442695, %v2912_v58 }
 0x116   : > { %v2500_v1 = vpop.eup %2499  ;;  %v828_v2 = vmul.f32 %v2498_v36, %v2851_v42  ;;  %2517 = vrcp.f32 %v771_v60 }
 0x117   : > { %2519 = vrcp.f32 %v774_v63  ;;  %v773_v22 = vadd.f32 1.0, %v2500_v1 }
 0x118   : > { %v2502_v3 = vpop.eup %2501  ;;  %849 = vst.msk [vmem:[#allocation2 + $0x51] sm:$0xff] %vm841_vm2, %v828_v2  ;;  %2521 = vpow2.f32 %v2245_v61 }
 0x119   : > { %v2504_v4 = vpop.eup %2503  ;;  %v827_v5 = vmul.f32 %v2502_v3, %v2854_v44  ;;  %2523 = vrcp.f32 %v773_v22 }
 0x11a   : > { %v2506_v6 = vpop.eup %2505  ;;  %v830_v7 = vmul.f32 %v2504_v4, %v2859_v52  ;;  %2525 = vpow2.f32 %v2244_v38 }
 0x11b   : > { %v2508_v9 = vpop.eup %2507  ;;  %848 = vst.msk [vmem:[#allocation2 + $0x49] sm:$0xff] %vm841_vm2, %v827_v5  ;;  %v776_v42 = vadd.f32 1.0, %v2506_v6 }
 0x11c   : > { %v2510_v11 = vpop.eup %2509  ;;  %851 = vst.msk [vmem:[#allocation2 + $0x69] sm:$0xff] %vm841_vm2, %v830_v7  ;;  %v775_v12 = vadd.f32 1.0, %v2508_v9 }
 0x11d   : > { %v2512_v13 = vpop.eup %2511  ;;  %v829_v14 = vmul.f32 %v2510_v11, %v2862_v54  ;;  %2527 = vrcp.f32 %v776_v42 }
 0x11e   : > { %v2514_v15 = vpop.eup %2513  ;;  %v832_v44 = vmul.f32 %v2512_v13, %v2867_v62  ;;  %2529 = vrcp.f32 %v775_v12 }
 0x11f   : > { %v2516_v16 = vpop.eup %2515  ;;  %850 = vst.msk [vmem:[#allocation2 + $0x61] sm:$0xff] %vm841_vm2, %v829_v14  ;;  %v778_v52 = vadd.f32 1.0, %v2514_v15 }
 0x120   : > { %v2518_v17 = vpop.eup %2517  ;;  %853 = vst.msk [vmem:[#allocation2 + $0x81] sm:$0xff] %vm841_vm2, %v832_v44  ;;  %v777_v18 = vadd.f32 1.0, %v2516_v16 }
 0x121   : > { %v2520_v20 = vpop.eup %2519  ;;  %v831_v21 = vmul.f32 %v2518_v17, %v2870_v0  ;;  %2531 = vrcp.f32 %v778_v52 }
 0x122   : > { %v2522_v23 = vpop.eup %2521  ;;  %v834_v54 = vmul.f32 %v2520_v20, %v2875_v8  ;;  %2533 = vrcp.f32 %v777_v18 }
 0x123   : > { %v2524_v27 = vpop.eup %2523  ;;  %852 = vst.msk [vmem:[#allocation2 + $0x79] sm:$0xff] %vm841_vm2, %v831_v21  ;;  %v780_v62 = vadd.f32 1.0, %v2522_v23 }
 0x124   : > { %v2526_v28 = vpop.eup %2525  ;;  %855 = vst.msk [vmem:[#allocation2 + $0x99] sm:$0xff] %vm841_vm2, %v834_v54  ;;  %v833_v29 = vmul.f32 %v2524_v27, %v2878_v10 }
 0x125   : > { %2535 = vrcp.f32 %v780_v62  ;;  %v779_v24 = vadd.f32 1.0, %v2526_v28 }
 0x126   : > { %854 = vst.msk [vmem:[#allocation2 + $0x91] sm:$0xff] %vm841_vm2, %v833_v29 }
 0x127   : > { %v2528_v31 = vpop.eup %2527  ;;  %2537 = vrcp.f32 %v779_v24 }
 0x128   : > { %v2530_v0 = vpop.eup %2529  ;;  %v836_v33 = vmul.f32 %v2528_v31, %v2884_v19 }
 0x129   : > { %v835_v8 = vmul.f32 %v2530_v0, %v2888_v25 }
 0x12a   : > { %857 = vst.msk [vmem:[#allocation2 + $0xb1] sm:$0xff] %vm841_vm2, %v836_v33 }
 0x12b   : > { %v2532_v34 = vpop.eup %2531  ;;  %856 = vst.msk [vmem:[#allocation2 + $0xa9] sm:$0xff] %vm841_vm2, %v835_v8 }
 0x12c   : > { %v2534_v35 = vpop.eup %2533  ;;  %v838_v26 = vmul.f32 %v2532_v34, %v2896_v37  ;;  %v2644_v37 = vmov (!%p2246_p10), 0.0  }
 0x12d   : > { %v837_v10 = vmul.f32 %v2534_v35, %v2900_v43  ;;  %887 = vst.msk [vmem:[#allocation2] sm:$0xff] (!%p2246_p10), %vm841_vm2, %v2644_v37  ;;  %888 = vst.msk [vmem:[#allocation2 + $0x8] sm:$0xff] (!%p2246_p10), %vm841_vm2, %v2644_v37 }
 0x12e   : > { %859 = vst.msk [vmem:[#allocation2 + $0xc9] sm:$0xff] %vm841_vm2, %v838_v26  ;;  %886 = sbr.rel (%p2246_p10) target bundleno = 309 (0x135), region = 52  ;;  %889 = vst.msk [vmem:[#allocation2 + $0x10] sm:$0xff] (!%p2246_p10), %vm841_vm2, %v2644_v37 }
 0x12f   : > { %v2536_v39 = vpop.eup %2535  ;;  %858 = vst.msk [vmem:[#allocation2 + $0xc1] sm:$0xff] %vm841_vm2, %v837_v10 }
 0x130   : > { %v840_v40 = vmul.f32 %v2536_v39, %v2908_v53 }
 0x131   : > { %v2538_v19 = vpop.eup %2537 }
 0x132   : > { %861 = vst.msk [vmem:[#allocation2 + $0xe1] sm:$0xff] %vm841_vm2, %v840_v40  ;;  %v839_v25 = vmul.f32 %v2538_v19, %v2912_v58 }
 0x134   : > { %860 = vst.msk [vmem:[#allocation2 + $0xd9] sm:$0xff] %vm841_vm2, %v839_v25 }
 0x135 PF: > { %p2247_p11 = scmp.ne.s32.totalorder %s2625_s24, 1 }
 0x136   : > { %v2645_v41 = vmov (!%p2247_p11), 0.0  }
 0x137   : > { %893 = sbr.rel (%p2247_p11) target bundleno = 318 (0x13e), region = 56  ;;  %895 = vst.msk [vmem:[#allocation2 + $0xd8] sm:$0xff] (!%p2247_p11), %vm841_vm2, %v2645_v41  ;;  %896 = vst.msk [vmem:[#allocation2 + $0xe0] sm:$0xff] (!%p2247_p11), %vm841_vm2, %v2645_v41 }
 0x138   : > { %897 = vst.msk [vmem:[#allocation2 + $0xe8] sm:$0xff] (!%p2247_p11), %vm841_vm2, %v2645_v41 }
 0x13e PF: > { %v930_v43 = vld [vmem:[#allocation2 + $0x2] sm:$0xff]  ;;  %s2646_s23 = smov 8   ;;  %s2647_s25 = smov 4   ;;  %v931_v46 = vld [vmem:[#allocation2 + $0xa] sm:$0xff]  ;;  %v2960_v48 = vld [vmem:[#allocation2 + $0x18] sm:$0xff]  ;;  %vm1751_vm3 = vcmask 1043456  }
 0x13f   : > { %v914_v45 = vld [vmem:[#allocation2 + $0x1] sm:$0xff]  ;;  %1124 = vrot.lane.b32.xlu1 %v930_v43, %s2646_s23  ;;  %v915_v47 = vld [vmem:[#allocation2 + $0x9] sm:$0xff]  ;;  %s2648_s24 = smov 12   ;;  %v916_v49 = vld [vmem:[#allocation2 + $0x19] sm:$0xff]  ;;  %s2649_s8 = smov 16   ;;  %vm1588_vm4 = vcmask 97280  }
 0x140   : > { %1060 = vrot.lane.b32.xlu0 %v914_v45, %s2647_s25  ;;  %v2958_v30 = vld [vmem:[#allocation2 + $0x20] sm:$0xff]  ;;  %s2650_s9 = smov 20   ;;  %v2972_v51 = vld [vmem:[#allocation2 + $0x30] sm:$0xff]  ;;  %v1691_v56 = vld [vmem:[%s3457_s5 + $0x8] sm:$0xff]  ;;  %s2651_s10 = smov 24   ;;  %vm1605_vm5 = vcmask 130048  }
 0x141   : > { %v979_v50 = vld [vmem:[#allocation2 + $0x1a] sm:$0xff]  ;;  %v980_v53 = vld [vmem:[#allocation2 + $0x22] sm:$0xff]  ;;  %v1692_v58 = vld [vmem:[%s3457_s5 + $0x10] sm:$0xff]  ;;  %s2652_s21 = smov 28   ;;  %s2653_s12 = smov 32   ;;  %vm1622_vm6 = vcmask 162816  }
 0x142   : > { %v964_v32 = vld [vmem:[#allocation2 + $0x21] sm:$0xff]  ;;  %v1693_v59 = vld [vmem:[%s3457_s5 + $0x18] sm:$0xff]  ;;  %v1014_v3 = vld [vmem:[#allocation2 + $0x49] sm:$0xff]  ;;  %vm1639_vm7 = vcmask 195584   ;;  %vm1656_vm8 = vcmask 228352   ;;  %vm1673_vm9 = vcmask 261120  }
 0x143   : > { %1126 = vrot.lane.b32.xlu1 %v931_v46, %s2646_s23  ;;  %v1690_v55 = vld [vmem:[%s3457_s5] sm:$0xff]  ;;  %v1012_v60 = vld [vmem:[#allocation2 + $0x31] sm:$0xff]  ;;  %v2404_v36 = vpack.c.bf16 %v1693_v59, %v1692_v58  ;;  %v3011_v22 = vld [vmem:[#allocation2 + $0x48] sm:$0xff]  ;;  %vm1702_vm10 = vcmask 293888  }
 0x144   : > { %1062 = vrot.lane.b32.xlu0 %v915_v47, %s2647_s25  ;;  %v2400_v57 = vpack.c.bf16 %v1691_v56, %v1690_v55  ;;  %v2992_v61 = vld [vmem:[#allocation2 + $0x38] sm:$0xff]  ;;  %v1694_v63 = vld [vmem:[%s3457_s5 + $0x20] sm:$0xf]  ;;  %v3019_v4 = vld [vmem:[#allocation2 + $0x50] sm:$0xff] }
 0x145   : > { %v1028_v1 = vld [vmem:[#allocation2 + $0x32] sm:$0xff]  ;;  %v1029_v38 = vld [vmem:[#allocation2 + $0x3a] sm:$0xff]  ;;  %v1030_v5 = vld [vmem:[#allocation2 + $0x4a] sm:$0xff] }
 0x146   : > { %2401 = vmatprep.subr.bf16.mxu1 %v2400_v57  ;;  %v1013_v2 = vld [vmem:[#allocation2 + $0x39] sm:$0xff]  ;;  %v1015_v6 = vld [vmem:[#allocation2 + $0x51] sm:$0xff]  ;;  %v1016_v42 = vld [vmem:[#allocation2 + $0x61] sm:$0xff] }
 0x147   : > { %1190 = vrot.lane.b32.xlu1 %v2958_v30, %s2648_s24  ;;  %2403 = vmatpush3.bf16.msra.mxu1 %v2400_v57  ;;  %v1031_v7 = vld [vmem:[#allocation2 + $0x52] sm:$0xff]  ;;  %v3035_v9 = vld [vmem:[#allocation2 + $0x60] sm:$0xff]  ;;  %v3043_v11 = vld [vmem:[#allocation2 + $0x68] sm:$0xff] }
 0x148   : > { %1188 = vrot.lane.b32.xlu0 %v2960_v48, %s2648_s24  ;;  %2405 = vmatprep.subr.bf16.mxu1 %v2404_v36  ;;  %v1032_v12 = vld [vmem:[#allocation2 + $0x62] sm:$0xff]  ;;  %v1033_v14 = vld [vmem:[#allocation2 + $0x6a] sm:$0xff]  ;;  %v3059_v16 = vld [vmem:[#allocation2 + $0x78] sm:$0xff] }
 0x149   : > { %v1017_v13 = vld [vmem:[#allocation2 + $0x69] sm:$0xff]  ;;  %v1018_v21 = vld [vmem:[#allocation2 + $0x79] sm:$0xff]  ;;  %v1019_v24 = vld [vmem:[#allocation2 + $0x81] sm:$0xff] }
 0x14a   : > { %v3071_v23 = vld [vmem:[#allocation2 + $0x80] sm:$0xff]  ;;  %v3099_v37 = vld [vmem:[#allocation2 + $0x90] sm:$0xff]  ;;  %v899_v46 = vld [vmem:[#allocation2 + $0x8] sm:$0xff] }
 0x14b   : > { %1064 = vrot.lane.b32.xlu1 %v916_v49, %s2647_s25  ;;  %2407 = vmatpush3.bf16.msra.mxu1 %v2404_v36  ;;  %v1034_v29 = vld [vmem:[#allocation2 + $0x7a] sm:$0xff]  ;;  %v1035_v34 = vld [vmem:[#allocation2 + $0x82] sm:$0xff]  ;;  %v1020_v59 = vld [vmem:[#allocation2 + $0x91] sm:$0xff] }
 0x14c   : > { %1252 = vrot.lane.b32.xlu0 %v916_v49, %s2649_s8  ;;  %2374 = vmatprep.subr.msk.mxu1 %vm1751_vm3, %v1694_v63  ;;  %v898_v10 = vld [vmem:[#allocation2] sm:$0xff] }
 0x14f   : > { %1316 = vrot.lane.b32.xlu1 %v979_v50, %s2650_s9  ;;  %2375 = vmatpush3.msk.msra.mxu1 %vm1751_vm3, %v1694_v63 }
 0x150   : > { %1254 = vrot.lane.b32.xlu0 %v964_v32, %s2649_s8 }
 0x153   : > { %1128 = vrot.lane.b32.xlu1 %v979_v50, %s2646_s23 }
 0x154   : > { %1066 = vrot.lane.b32.xlu0 %v964_v32, %s2647_s25 }
 0x157   : > { %1380 = vrot.lane.b32.xlu1 %v2972_v51, %s2651_s10 }
 0x158   : > { %1318 = vrot.lane.b32.xlu0 %v980_v53, %s2650_s9 }
 0x15b   : > { %1192 = vrot.lane.b32.xlu1 %v2972_v51, %s2648_s24 }
 0x15c   : > { %1130 = vrot.lane.b32.xlu0 %v980_v53, %s2646_s23 }
 0x15f   : > { %1444 = vrot.lane.b32.xlu1 %v1012_v60, %s2652_s21 }
 0x160   : > { %1382 = vrot.lane.b32.xlu0 %v2992_v61, %s2651_s10 }
 0x163   : > { %1256 = vrot.lane.b32.xlu1 %v1012_v60, %s2649_s8 }
 0x164   : > { %1194 = vrot.lane.b32.xlu0 %v2992_v61, %s2648_s24 }
 0x167   : > { %1508 = vrot.lane.b32.xlu1 %v1028_v1, %s2653_s12 }
 0x168   : > { %1446 = vrot.lane.b32.xlu0 %v1013_v2, %s2652_s21 }
 0x16b   : > { %1258 = vrot.lane.b32.xlu1 %v1013_v2, %s2649_s8 }
 0x16c   : > { %1068 = vrot.lane.b32.xlu0 %v1012_v60, %s2647_s25  ;;  %v3121_v60 = vld [vmem:[#allocation2 + $0x98] sm:$0xff] }
 0x16f   : > { %1510 = vrot.lane.b32.xlu1 %v1029_v38, %s2653_s12 }
 0x170   : > { %1320 = vrot.lane.b32.xlu0 %v1028_v1, %s2650_s9 }
 0x173   : > { %1132 = vrot.lane.b32.xlu1 %v1028_v1, %s2646_s23 }
 0x174   : > { %1070 = vrot.lane.b32.xlu0 %v1013_v2, %s2647_s25 }
 0x177   : > { %1384 = vrot.lane.b32.xlu1 %v3011_v22, %s2651_s10 }
 0x178   : > { %1322 = vrot.lane.b32.xlu0 %v1029_v38, %s2650_s9 }
 0x17b   : > { %1196 = vrot.lane.b32.xlu1 %v3011_v22, %s2648_s24 }
 0x17c   : > { %1134 = vrot.lane.b32.xlu0 %v1029_v38, %s2646_s23 }
 0x17f   : > { %1448 = vrot.lane.b32.xlu1 %v1014_v3, %s2652_s21 }
 0x180   : > { %1386 = vrot.lane.b32.xlu0 %v3019_v4, %s2651_s10 }
 0x183   : > { %1260 = vrot.lane.b32.xlu1 %v1014_v3, %s2649_s8 }
 0x184   : > { %1198 = vrot.lane.b32.xlu0 %v3019_v4, %s2648_s24 }
 0x187   : > { %1512 = vrot.lane.b32.xlu1 %v1030_v5, %s2653_s12 }
 0x188   : > { %1450 = vrot.lane.b32.xlu0 %v1015_v6, %s2652_s21 }
 0x18b   : > { %1262 = vrot.lane.b32.xlu1 %v1015_v6, %s2649_s8 }
 0x18c   : > { %1072 = vrot.lane.b32.xlu0 %v1014_v3, %s2647_s25 }
 0x18f   : > { %1514 = vrot.lane.b32.xlu1 %v1031_v7, %s2653_s12 }
 0x190   : > { %1324 = vrot.lane.b32.xlu0 %v1030_v5, %s2650_s9 }
 0x193   : > { %1136 = vrot.lane.b32.xlu1 %v1030_v5, %s2646_s23 }
 0x194   : > { %1074 = vrot.lane.b32.xlu0 %v1015_v6, %s2647_s25 }
 0x197   : > { %1388 = vrot.lane.b32.xlu1 %v3035_v9, %s2651_s10 }
 0x198   : > { %1326 = vrot.lane.b32.xlu0 %v1031_v7, %s2650_s9 }
 0x19b   : > { %1200 = vrot.lane.b32.xlu1 %v3035_v9, %s2648_s24 }
 0x19c   : > { %1138 = vrot.lane.b32.xlu0 %v1031_v7, %s2646_s23 }
 0x19f   : > { %1452 = vrot.lane.b32.xlu1 %v1016_v42, %s2652_s21 }
 0x1a0   : > { %1390 = vrot.lane.b32.xlu0 %v3043_v11, %s2651_s10 }
 0x1a3   : > { %1264 = vrot.lane.b32.xlu1 %v1016_v42, %s2649_s8 }
 0x1a4   : > { %1202 = vrot.lane.b32.xlu0 %v3043_v11, %s2648_s24 }
 0x1a7   : > { %1516 = vrot.lane.b32.xlu1 %v1032_v12, %s2653_s12 }
 0x1a8   : > { %1454 = vrot.lane.b32.xlu0 %v1017_v13, %s2652_s21 }
 0x1ab   : > { %1266 = vrot.lane.b32.xlu1 %v1017_v13, %s2649_s8 }
 0x1ac   : > { %1076 = vrot.lane.b32.xlu0 %v1016_v42, %s2647_s25 }
 0x1af   : > { %1518 = vrot.lane.b32.xlu1 %v1033_v14, %s2653_s12 }
 0x1b0   : > { %1328 = vrot.lane.b32.xlu0 %v1032_v12, %s2650_s9 }
 0x1b1   : > { %v1125_v15 = vpop.permute.xlu1 %1124 }
 0x1b2   : > { %v1061_v44 = vpop.permute.xlu0 %1060 }
 0x1b3   : > { %1140 = vrot.lane.b32.xlu1 %v1032_v12, %s2646_s23  ;;  %v1556_v39 = vsel %vm841_vm2, %v898_v10, %v1061_v44  ;;  %v1036_v12 = vld [vmem:[#allocation2 + $0x92] sm:$0xff] }
 0x1b4   : > { %1078 = vrot.lane.b32.xlu0 %v1017_v13, %s2647_s25  ;;  %v1572_v25 = vsel %vm475_vm0, %v1556_v39, %v1125_v15  ;;  %v1021_v13 = vld [vmem:[#allocation2 + $0x99] sm:$0xff] }
 0x1b5   : > { %v3061_v52 = vpop.permute.xlu1 %1126 }
 0x1b6   : > { %v1063_v17 = vpop.permute.xlu0 %1062 }
 0x1b7   : > { %1392 = vrot.lane.b32.xlu1 %v3059_v16, %s2651_s10  ;;  %v1557_v32 = vsel %vm841_vm2, %v899_v46, %v1063_v17  ;;  %v1037_v17 = vld [vmem:[#allocation2 + $0x9a] sm:$0xff] }
 0x1b8   : > { %1330 = vrot.lane.b32.xlu0 %v1033_v14, %s2650_s9  ;;  %v1573_v58 = vsel %vm475_vm0, %v1557_v32, %v3061_v52 }
 0x1b9   : > { %v3066_v18 = vpop.permute.xlu1 %1190 }
 0x1ba   : > { %v1189_v20 = vpop.permute.xlu0 %1188  ;;  %v1590_v36 = vsel %vm1588_vm4, %v1573_v58, %v3066_v18 }
 0x1bb   : > { %1204 = vrot.lane.b32.xlu1 %v3059_v16, %s2648_s24  ;;  %v1589_v41 = vsel %vm1588_vm4, %v1572_v25, %v1189_v20  ;;  %v1022_v25 = vld [vmem:[#allocation2 + $0xa9] sm:$0xff] }
 0x1bc   : > { %1142 = vrot.lane.b32.xlu0 %v1033_v14, %s2646_s23 }
 0x1bd   : > { %v3073_v54 = vpop.permute.xlu1 %1064 }
 0x1be   : > { %v1253_v27 = vpop.permute.xlu0 %1252 }
 0x1bf   : > { %1456 = vrot.lane.b32.xlu1 %v1018_v21, %s2652_s21  ;;  %v1606_v47 = vsel %vm1605_vm5, %v1589_v41, %v1253_v27  ;;  %v3184_v41 = vld [vmem:[#allocation2 + $0xb0] sm:$0xff] }
 0x1c0   : > { %1394 = vrot.lane.b32.xlu0 %v3071_v23, %s2651_s10 }
 0x1c1   : > { %v1317_v62 = vpop.permute.xlu1 %1316 }
 0x1c2   : > { %v1255_v28 = vpop.permute.xlu0 %1254  ;;  %v1623_v49 = vsel %vm1622_vm6, %v1606_v47, %v1317_v62  ;;  %v1558_v62 = vsel %vm841_vm2, %v2960_v48, %v3073_v54 }
 0x1c3   : > { %1268 = vrot.lane.b32.xlu1 %v1018_v21, %s2649_s8  ;;  %v1607_v2 = vsel %vm1605_vm5, %v1590_v36, %v1255_v28  ;;  %v1039_v36 = vld [vmem:[#allocation2 + $0xb2] sm:$0xff] }
 0x1c4   : > { %1206 = vrot.lane.b32.xlu0 %v3071_v23, %s2648_s24 }
 0x1c5   : > { %v3081_v31 = vpop.permute.xlu1 %1128 }
 0x1c6   : > { %v3083_v0 = vpop.permute.xlu0 %1066  ;;  %v1574_v28 = vsel %vm475_vm0, %v1558_v62, %v3081_v31  ;;  %v1024_v62 = vld [vmem:[#allocation2 + $0xc1] sm:$0xff] }
 0x1c7   : > { %1520 = vrot.lane.b32.xlu1 %v1034_v29, %s2653_s12 }
 0x1c8   : > { %1458 = vrot.lane.b32.xlu0 %v1019_v24, %s2652_s21 }
 0x1c9   : > { %v1381_v33 = vpop.permute.xlu1 %1380 }
 0x1ca   : > { %v1319_v8 = vpop.permute.xlu0 %1318  ;;  %v1640_v50 = vsel %vm1639_vm7, %v1623_v49, %v1381_v33 }
 0x1cb   : > { %1270 = vrot.lane.b32.xlu1 %v1019_v24, %s2649_s8  ;;  %v1624_v38 = vsel %vm1622_vm6, %v1607_v2, %v1319_v8 }
 0x1cc   : > { %1080 = vrot.lane.b32.xlu0 %v1018_v21, %s2647_s25 }
 0x1cd   : > { %v3089_v35 = vpop.permute.xlu1 %1192 }
 0x1ce   : > { %v3091_v26 = vpop.permute.xlu0 %1130 }
 0x1cf   : > { %1522 = vrot.lane.b32.xlu1 %v1035_v34, %s2653_s12 }
 0x1d0   : > { %1332 = vrot.lane.b32.xlu0 %v1034_v29, %s2650_s9 }
 0x1d1   : > { %v1445_v40 = vpop.permute.xlu1 %1444 }
 0x1d2   : > { %v1383_v19 = vpop.permute.xlu0 %1382  ;;  %v1657_v53 = vsel %vm1656_vm8, %v1640_v50, %v1445_v40  ;;  %v1559_v40 = vsel %vm841_vm2, %v2958_v30, %v3083_v0 }
 0x1d3   : > { %1144 = vrot.lane.b32.xlu1 %v1034_v29, %s2646_s23  ;;  %v1641_v3 = vsel %vm1639_vm7, %v1624_v38, %v1383_v19  ;;  %v3160_v29 = vld [vmem:[#allocation2 + $0xa8] sm:$0xff]  ;;  %v1575_v19 = vsel %vm475_vm0, %v1559_v40, %v3091_v26 }
 0x1d4   : > { %1082 = vrot.lane.b32.xlu0 %v1019_v24, %s2647_s25  ;;  %v1591_v24 = vsel %vm1588_vm4, %v1574_v28, %v3089_v35  ;;  %v1009_v28 = vld [vmem:[#allocation2 + $0xc8] sm:$0xff] }
 0x1d5   : > { %v3102_v43 = vpop.permute.xlu1 %1256 }
 0x1d6   : > { %v3104_v45 = vpop.permute.xlu0 %1194 }
 0x1d7   : > { %1396 = vrot.lane.b32.xlu1 %v3099_v37, %s2651_s10 }
 0x1d8   : > { %1334 = vrot.lane.b32.xlu0 %v1035_v34, %s2650_s9 }
 0x1d9   : > { %v1509_v55 = vpop.permute.xlu1 %1508 }
 0x1da   : > { %v1447_v56 = vpop.permute.xlu0 %1446  ;;  %v1674_v57 = vsel %vm1673_vm9, %v1657_v53, %v1509_v55  ;;  %v1038_v53 = vld [vmem:[#allocation2 + $0xaa] sm:$0xff] }
 0x1db   : > { %1208 = vrot.lane.b32.xlu1 %v3099_v37, %s2648_s24  ;;  %2376 = vmatprep.mubr.msk.f32.mxu1 %vm1702_vm10, %v1674_v57  ;;  %v1658_v5 = vsel %vm1656_vm8, %v1641_v3, %v1447_v56  ;;  %v1023_v55 = vld [vmem:[#allocation2 + $0xb1] sm:$0xff] }
 0x1dc   : > { %1146 = vrot.lane.b32.xlu0 %v1035_v34, %s2646_s23  ;;  %v1608_v34 = vsel %vm1605_vm5, %v1591_v24, %v3102_v43  ;;  %v1592_v43 = vsel %vm1588_vm4, %v1575_v19, %v3104_v45 }
 0x1dd   : > { %v1259_v63 = vpop.permute.xlu1 %1258 }
 0x1de   : > { %v3125_v1 = vpop.permute.xlu0 %1068  ;;  %v1609_v30 = vsel %vm1605_vm5, %v1592_v43, %v1259_v63  ;;  %v994_v43 = vld [vmem:[#allocation2 + $0xca] sm:$0xff] }
 0x1df   : > { %1460 = vrot.lane.b32.xlu1 %v1020_v59, %s2652_s21 }
 0x1e0   : > { %1398 = vrot.lane.b32.xlu0 %v3121_v60, %s2651_s10 }
 0x1e1   : > { %v1511_v6 = vpop.permute.xlu1 %1510 }
 0x1e2   : > { %v1321_v7 = vpop.permute.xlu0 %1320  ;;  %v1675_v42 = vsel %vm1673_vm9, %v1658_v5, %v1511_v6  ;;  %v1560_v5 = vsel %vm841_vm2, %v2972_v51, %v3125_v1 }
 0x1e3   : > { %1272 = vrot.lane.b32.xlu1 %v1020_v59, %s2649_s8  ;;  %2377 = vmatmul.mubr.msk.f32.vlgmr.msra.gmra.mrb[0].mxu1 %vm1702_vm10, %v1675_v42  ;;  %v1625_v48 = vsel %vm1622_vm6, %v1608_v34, %v1321_v7  ;;  %v1008_v7 = vld [vmem:[#allocation2 + $0xc0] sm:$0xff] }
 0x1e4   : > { %1210 = vrot.lane.b32.xlu0 %v3121_v60, %s2648_s24 }
 0x1e5   : > { %v3139_v14 = vpop.permute.xlu1 %1132 }
 0x1e6   : > { %v3141_v15 = vpop.permute.xlu0 %1070  ;;  %v1576_v6 = vsel %vm475_vm0, %v1560_v5, %v3139_v14  ;;  %v1042_v5 = vld [vmem:[#allocation2 + $0xda] sm:$0xff] }
 0x1e7   : > { %1524 = vrot.lane.b32.xlu1 %v1036_v12, %s2653_s12 }
 0x1e8   : > { %1462 = vrot.lane.b32.xlu0 %v1021_v13, %s2652_s21 }
 0x1e9   : > { %v1385_v44 = vpop.permute.xlu1 %1384 }
 0x1ea   : > { %v1323_v52 = vpop.permute.xlu0 %1322  ;;  %v1642_v54 = vsel %vm1639_vm7, %v1625_v48, %v1385_v44 }
 0x1eb   : > { %1274 = vrot.lane.b32.xlu1 %v1021_v13, %s2649_s8  ;;  %v1626_v0 = vsel %vm1622_vm6, %v1609_v30, %v1323_v52 }
 0x1ec   : > { %1084 = vrot.lane.b32.xlu0 %v1020_v59, %s2647_s25 }
 0x1ed   : > { %v3147_v18 = vpop.permute.xlu1 %1196 }
 0x1ee   : > { %v3149_v20 = vpop.permute.xlu0 %1134  ;;  %v1593_v42 = vsel %vm1588_vm4, %v1576_v6, %v3147_v18  ;;  %v1561_v18 = vsel %vm841_vm2, %v2992_v61, %v3141_v15 }
 0x1ef   : > { %1526 = vrot.lane.b32.xlu1 %v1037_v17, %s2653_s12 }
 0x1f0   : > { %1336 = vrot.lane.b32.xlu0 %v1036_v12, %s2650_s9 }
 0x1f1   : > { %v1449_v21 = vpop.permute.xlu1 %1448 }
 0x1f2   : > { %v1387_v27 = vpop.permute.xlu0 %1386  ;;  %v1659_v31 = vsel %vm1656_vm8, %v1642_v54, %v1449_v21 }
 0x1f3   : > { %1148 = vrot.lane.b32.xlu1 %v1036_v12, %s2646_s23  ;;  %v1643_v26 = vsel %vm1639_vm7, %v1626_v0, %v1387_v27  ;;  %v1577_v27 = vsel %vm475_vm0, %v1561_v18, %v3149_v20  ;;  %v1011_v0 = vld [vmem:[#allocation2 + $0xe0] sm:$0xff] }
 0x1f4   : > { %1086 = vrot.lane.b32.xlu0 %v1021_v13, %s2647_s25 }
 0x1f5   : > { %v1261_v33 = vpop.permute.xlu1 %1260 }
 0x1f6   : > { %v3164_v8 = vpop.permute.xlu0 %1198  ;;  %v1610_v44 = vsel %vm1605_vm5, %v1593_v42, %v1261_v33 }
 0x1f7   : > { %1400 = vrot.lane.b32.xlu1 %v3160_v29, %s2651_s10  ;;  %v1594_v24 = vsel %vm1588_vm4, %v1577_v27, %v3164_v8  ;;  %v1040_v8 = vld [vmem:[#allocation2 + $0xc2] sm:$0xff] }
 0x1f8   : > { %1338 = vrot.lane.b32.xlu0 %v1037_v17, %s2650_s9 }
 0x1f9   : > { %v1513_v10 = vpop.permute.xlu1 %1512 }
 0x1fa   : > { %v1451_v39 = vpop.permute.xlu0 %1450  ;;  %v1676_v35 = vsel %vm1673_vm9, %v1659_v31, %v1513_v10 }
 0x1fb   : > { %1212 = vrot.lane.b32.xlu1 %v3160_v29, %s2648_s24  ;;  %2379 = vmatprep.mubr.msk.f32.mxu1 %vm1702_vm10, %v1676_v35  ;;  %v1660_v49 = vsel %vm1656_vm8, %v1643_v26, %v1451_v39  ;;  %v1025_v39 = vld [vmem:[#allocation2 + $0xc9] sm:$0xff]  ;;  %v1010_v26 = vld [vmem:[#allocation2 + $0xd8] sm:$0xff] }
 0x1fc   : > { %1150 = vrot.lane.b32.xlu0 %v1037_v17, %s2646_s23 }
 0x1fd   : > { %v1263_v46 = vpop.permute.xlu1 %1262 }
 0x1fe   : > { %v3188_v47 = vpop.permute.xlu0 %1072  ;;  %v1611_v48 = vsel %vm1605_vm5, %v1594_v24, %v1263_v46 }
 0x1ff   : > { %1464 = vrot.lane.b32.xlu1 %v1022_v25, %s2652_s21 }
 0x200   : > { %1402 = vrot.lane.b32.xlu0 %v3184_v41, %s2651_s10 }
 0x201   : > { %v1515_v50 = vpop.permute.xlu1 %1514 }
 0x202   : > { %v1325_v32 = vpop.permute.xlu0 %1324  ;;  %v1677_v45 = vsel %vm1673_vm9, %v1660_v49, %v1515_v50 }
 0x203   : > { %1276 = vrot.lane.b32.xlu1 %v1022_v25, %s2649_s8  ;;  %2380 = vmatmul.mubr.msk.f32.gmra.mrb[2].mxu1 %vm1702_vm10, %v1677_v45  ;;  %v1627_v52 = vsel %vm1622_vm6, %v1610_v44, %v1325_v32  ;;  %v1562_v32 = vsel %vm841_vm2, %v3011_v22, %v3188_v47  ;;  %v1043_v47 = vld [vmem:[#allocation2 + $0xe2] sm:$0xff] }
 0x204   : > { %1214 = vrot.lane.b32.xlu0 %v3184_v41, %s2648_s24 }
 0x205   : > { %v3202_v56 = vpop.permute.xlu1 %1136 }
 0x206   : > { %v3204_v57 = vpop.permute.xlu0 %1074  ;;  %v1578_v45 = vsel %vm475_vm0, %v1562_v32, %v3202_v56 }
 0x207   : > { %1528 = vrot.lane.b32.xlu1 %v1038_v53, %s2653_s12  ;;  %v1563_v42 = vsel %vm841_vm2, %v3019_v4, %v3204_v57 }
 0x208   : > { %1466 = vrot.lane.b32.xlu0 %v1023_v55, %s2652_s21 }
 0x209   : > { %v1389_v58 = vpop.permute.xlu1 %1388 }
 0x20a   : > { %v1327_v59 = vpop.permute.xlu0 %1326  ;;  %v1644_v51 = vsel %vm1639_vm7, %v1627_v52, %v1389_v58 }
 0x20b   : > { %1278 = vrot.lane.b32.xlu1 %v1023_v55, %s2649_s8  ;;  %v1628_v61 = vsel %vm1622_vm6, %v1611_v48, %v1327_v59 }
 0x20c   : > { %1088 = vrot.lane.b32.xlu0 %v1022_v25, %s2647_s25 }
 0x20d   : > { %v3210_v63 = vpop.permute.xlu1 %1200 }
 0x20e   : > { %v3212_v2 = vpop.permute.xlu0 %1138  ;;  %v1595_v58 = vsel %vm1588_vm4, %v1578_v45, %v3210_v63 }
 0x20f   : > { %1530 = vrot.lane.b32.xlu1 %v1039_v36, %s2653_s12 }
 0x210   : > { %1340 = vrot.lane.b32.xlu0 %v1038_v53, %s2650_s9 }
 0x211   : > { %v1453_v38 = vpop.permute.xlu1 %1452 }
 0x212   : > { %v1391_v3 = vpop.permute.xlu0 %1390  ;;  %v1661_v1 = vsel %vm1656_vm8, %v1644_v51, %v1453_v38 }
 0x213   : > { %1152 = vrot.lane.b32.xlu1 %v1038_v53, %s2646_s23  ;;  %v1645_v15 = vsel %vm1639_vm7, %v1628_v61, %v1391_v3  ;;  %v1027_v53 = vld [vmem:[#allocation2 + $0xe1] sm:$0xff] }
 0x214   : > { %1090 = vrot.lane.b32.xlu0 %v1023_v55, %s2647_s25  ;;  %v1026_v55 = vld [vmem:[#allocation2 + $0xd9] sm:$0xff] }
 0x215   : > { %v1265_v12 = vpop.permute.xlu1 %1264 }
 0x216   : > { %v3225_v13 = vpop.permute.xlu0 %1202  ;;  %v1612_v38 = vsel %vm1605_vm5, %v1595_v58, %v1265_v12  ;;  %v1579_v12 = vsel %vm475_vm0, %v1563_v42, %v3212_v2 }
 0x217   : > { %1404 = vrot.lane.b32.xlu1 %v1008_v7, %s2651_s10  ;;  %v1596_v44 = vsel %vm1588_vm4, %v1579_v12, %v3225_v13 }
 0x218   : > { %1342 = vrot.lane.b32.xlu0 %v1039_v36, %s2650_s9 }
 0x219   : > { %v1517_v14 = vpop.permute.xlu1 %1516 }
 0x21a   : > { %v1455_v17 = vpop.permute.xlu0 %1454  ;;  %v1678_v21 = vsel %vm1673_vm9, %v1661_v1, %v1517_v14 }
 0x21b   : > { %1216 = vrot.lane.b32.xlu1 %v1008_v7, %s2648_s24  ;;  %2382 = vmatprep.mubr.msk.f32.mxu1 %vm1702_vm10, %v1678_v21  ;;  %v1662_v20 = vsel %vm1656_vm8, %v1645_v15, %v1455_v17 }
 0x21c   : > { %1154 = vrot.lane.b32.xlu0 %v1039_v36, %s2646_s23 }
 0x21d   : > { %v1267_v33 = vpop.permute.xlu1 %1266 }
 0x21e   : > { %v3244_v34 = vpop.permute.xlu0 %1076  ;;  %v1613_v1 = vsel %vm1605_vm5, %v1596_v44, %v1267_v33 }
 0x21f   : > { %1468 = vrot.lane.b32.xlu1 %v1024_v62, %s2652_s21  ;;  %v1564_v61 = vsel %vm841_vm2, %v3035_v9, %v3244_v34 }
 0x220   : > { %1406 = vrot.lane.b32.xlu0 %v1009_v28, %s2651_s10 }
 0x221   : > { %v1519_v54 = vpop.permute.xlu1 %1518 }
 0x222   : > { %v1329_v31 = vpop.permute.xlu0 %1328  ;;  %v1679_v10 = vsel %vm1673_vm9, %v1662_v20, %v1519_v54 }
 0x223   : > { %1280 = vrot.lane.b32.xlu1 %v1024_v62, %s2649_s8  ;;  %2383 = vmatmul.mubr.msk.f32.gmra.mrb[4].mxu1 %vm1702_vm10, %v1679_v10  ;;  %v1629_v3 = vsel %vm1622_vm6, %v1612_v38, %v1329_v31 }
 0x224   : > { %1218 = vrot.lane.b32.xlu0 %v1009_v28, %s2648_s24 }
 0x225   : > { %v3256_v35 = vpop.permute.xlu1 %1140 }
 0x226   : > { %v3258_v40 = vpop.permute.xlu0 %1078  ;;  %v1580_v15 = vsel %vm475_vm0, %v1564_v61, %v3256_v35 }
 0x227   : > { %1532 = vrot.lane.b32.xlu1 %v1040_v8, %s2653_s12  ;;  %v1565_v9 = vsel %vm841_vm2, %v3043_v11, %v3258_v40 }
 0x228   : > { %1470 = vrot.lane.b32.xlu0 %v1025_v39, %s2652_s21 }
 0x229   : > { %v1393_v19 = vpop.permute.xlu1 %1392 }
 0x22a   : > { %v1331_v25 = vpop.permute.xlu0 %1330  ;;  %v1646_v22 = vsel %vm1639_vm7, %v1629_v3, %v1393_v19 }
 0x22b   : > { %1344 = vrot.lane.b32.xlu1 %v1040_v8, %s2650_s9  ;;  %v1630_v14 = vsel %vm1622_vm6, %v1613_v1, %v1331_v25 }
 0x22c   : > { %1282 = vrot.lane.b32.xlu0 %v1025_v39, %s2649_s8 }
 0x22d   : > { %v1205_v46 = vpop.permute.xlu1 %1204 }
 0x22e   : > { %v3264_v30 = vpop.permute.xlu0 %1142  ;;  %v1597_v20 = vsel %vm1588_vm4, %v1580_v15, %v1205_v46 }
 0x22f   : > { %1346 = vrot.lane.b32.xlu1 %v994_v43, %s2650_s9  ;;  %v1581_v34 = vsel %vm475_vm0, %v1565_v9, %v3264_v30 }
 0x230   : > { %1534 = vrot.lane.b32.xlu0 %v994_v43, %s2653_s12 }
 0x231   : > { %v1457_v49 = vpop.permute.xlu1 %1456 }
 0x232   : > { %v1395_v50 = vpop.permute.xlu0 %1394  ;;  %v1663_v56 = vsel %vm1656_vm8, %v1646_v22, %v1457_v49 }
 0x233   : > { %1410 = vrot.lane.b32.xlu1 %v1011_v0, %s2651_s10  ;;  %v1647_v4 = vsel %vm1639_vm7, %v1630_v14, %v1395_v50 }
 0x234   : > { %1408 = vrot.lane.b32.xlu0 %v1010_v26, %s2651_s10 }
 0x235   : > { %v1269_v59 = vpop.permute.xlu1 %1268 }
 0x236   : > { %v1207_v36 = vpop.permute.xlu0 %1206  ;;  %v1614_v10 = vsel %vm1605_vm5, %v1597_v20, %v1269_v59 }
 0x237   : > { %1474 = vrot.lane.b32.xlu1 %v1027_v53, %s2652_s21  ;;  %v1598_v35 = vsel %vm1588_vm4, %v1581_v34, %v1207_v36 }
 0x238   : > { %1472 = vrot.lane.b32.xlu0 %v1026_v55, %s2652_s21 }
 0x239   : > { %v1521_v6 = vpop.permute.xlu1 %1520 }
 0x23a   : > { %v1459_v7 = vpop.permute.xlu0 %1458  ;;  %v1680_v63 = vsel %vm1673_vm9, %v1663_v56, %v1521_v6 }
 0x23b   : > { %1538 = vrot.lane.b32.xlu1 %v1043_v47, %s2653_s12  ;;  %2385 = vmatprep.mubr.msk.f32.mxu1 %vm1702_vm10, %v1680_v63  ;;  %v1664_v57 = vsel %vm1656_vm8, %v1647_v4, %v1459_v7 }
 0x23c   : > { %1536 = vrot.lane.b32.xlu0 %v1042_v5, %s2653_s12 }
 0x23d   : > { %v1271_v52 = vpop.permute.xlu1 %1270 }
 0x23e   : > { %v1081_v51 = vpop.permute.xlu0 %1080  ;;  %v1615_v49 = vsel %vm1605_vm5, %v1598_v35, %v1271_v52 }
 0x23f   : > { %v1566_v47 = vsel %vm841_vm2, %v3059_v16, %v1081_v51 }
 0x241   : > { %v1523_v17 = vpop.permute.xlu1 %1522 }
 0x242   : > { %v1333_v21 = vpop.permute.xlu0 %1332  ;;  %v1681_v18 = vsel %vm1673_vm9, %v1664_v57, %v1523_v17 }
 0x243   : > { %2386 = vmatmul.mubr.msk.f32.gmra.mrb[6].mxu1 %vm1702_vm10, %v1681_v18  ;;  %v1631_v8 = vsel %vm1622_vm6, %v1614_v10, %v1333_v21 }
 0x245   : > { %v1145_v2 = vpop.permute.xlu1 %1144 }
 0x246   : > { %v1083_v27 = vpop.permute.xlu0 %1082  ;;  %v1582_v5 = vsel %vm475_vm0, %v1566_v47, %v1145_v2 }
 0x247   : > { %v1567_v16 = vsel %vm841_vm2, %v3071_v23, %v1083_v27 }
 0x249   : > { %v1397_v62 = vpop.permute.xlu1 %1396 }
 0x24a   : > { %v1335_v13 = vpop.permute.xlu0 %1334  ;;  %v1648_v39 = vsel %vm1639_vm7, %v1631_v8, %v1397_v62 }
 0x24b   : > { %v1632_v50 = vsel %vm1622_vm6, %v1615_v49, %v1335_v13 }
 0x24d   : > { %v1209_v28 = vpop.permute.xlu1 %1208 }
 0x24e   : > { %v1147_v24 = vpop.permute.xlu0 %1146  ;;  %v1599_v56 = vsel %vm1588_vm4, %v1582_v5, %v1209_v28 }
 0x24f   : > { %v1583_v51 = vsel %vm475_vm0, %v1567_v16, %v1147_v24 }
 0x251   : > { %v1461_v48 = vpop.permute.xlu1 %1460 }
 0x252   : > { %v1399_v33 = vpop.permute.xlu0 %1398  ;;  %v1665_v19 = vsel %vm1656_vm8, %v1648_v39, %v1461_v48 }
 0x253   : > { %v1649_v32 = vsel %vm1639_vm7, %v1632_v50, %v1399_v33 }
 0x255   : > { %v1273_v54 = vpop.permute.xlu1 %1272 }
 0x256   : > { %v1211_v31 = vpop.permute.xlu0 %1210  ;;  %v1616_v63 = vsel %vm1605_vm5, %v1599_v56, %v1273_v54 }
 0x257   : > { %v1600_v4 = vsel %vm1588_vm4, %v1583_v51, %v1211_v31 }
 0x259   : > { %v1525_v25 = vpop.permute.xlu1 %1524 }
 0x25a   : > { %v1463_v43 = vpop.permute.xlu0 %1462  ;;  %v1682_v0 = vsel %vm1673_vm9, %v1665_v19, %v1525_v25 }
 0x25b   : > { %2388 = vmatprep.mubr.msk.f32.mxu1 %vm1702_vm10, %v1682_v0  ;;  %v1666_v45 = vsel %vm1656_vm8, %v1649_v32, %v1463_v43 }
 0x25d   : > { %v1275_v46 = vpop.permute.xlu1 %1274 }
 0x25e   : > { %v1085_v26 = vpop.permute.xlu0 %1084  ;;  %v1617_v21 = vsel %vm1605_vm5, %v1600_v4, %v1275_v46  ;;  %v3387_v4 = vld [vmem:[%s3458_s6] ss:$0 sm:$0xff] }
 0x25f   : > { %v1568_v31 = vsel %vm841_vm2, %v3099_v37, %v1085_v26 }
 0x261   : > { %v1527_v53 = vpop.permute.xlu1 %1526 }
 0x262   : > { %v1337_v55 = vpop.permute.xlu0 %1336  ;;  %v1683_v11 = vsel %vm1673_vm9, %v1666_v45, %v1527_v53 }
 0x263   : > { %2389 = vmatmul.mubr.msk.f32.gmra.mrb[8].mxu1 %vm1702_vm10, %v1683_v11  ;;  %v1633_v42 = vsel %vm1622_vm6, %v1616_v63, %v1337_v55 }
 0x265   : > { %v1149_v40 = vpop.permute.xlu1 %1148 }
 0x266   : > { %v1087_v30 = vpop.permute.xlu0 %1086  ;;  %v1584_v10 = vsel %vm475_vm0, %v1568_v31, %v1149_v40 }
 0x267   : > { %v1569_v37 = vsel %vm841_vm2, %v3121_v60, %v1087_v30 }
 0x269   : > { %v1401_v58 = vpop.permute.xlu1 %1400 }
 0x26a   : > { %v1339_v59 = vpop.permute.xlu0 %1338  ;;  %v1650_v12 = vsel %vm1639_vm7, %v1633_v42, %v1401_v58 }
 0x26b   : > { %v1634_v18 = vsel %vm1622_vm6, %v1617_v21, %v1339_v59 }
 0x26d   : > { %v1213_v36 = vpop.permute.xlu1 %1212 }
 0x26e   : > { %v1151_v38 = vpop.permute.xlu0 %1150  ;;  %v1601_v8 = vsel %vm1588_vm4, %v1584_v10, %v1213_v36 }
 0x26f   : > { %v1585_v26 = vsel %vm475_vm0, %v1569_v37, %v1151_v38 }
 0x271   : > { %v1465_v3 = vpop.permute.xlu1 %1464 }
 0x272   : > { %v1403_v22 = vpop.permute.xlu0 %1402  ;;  %v1667_v44 = vsel %vm1656_vm8, %v1650_v12, %v1465_v3 }
 0x273   : > { %v1651_v2 = vsel %vm1639_vm7, %v1634_v18, %v1403_v22 }
 0x275   : > { %v1277_v6 = vpop.permute.xlu1 %1276 }
 0x276   : > { %v1215_v7 = vpop.permute.xlu0 %1214  ;;  %v1618_v25 = vsel %vm1605_vm5, %v1601_v8, %v1277_v6 }
 0x277   : > { %v1602_v49 = vsel %vm1588_vm4, %v1585_v26, %v1215_v7 }
 0x279   : > { %v1529_v52 = vpop.permute.xlu1 %1528 }
 0x27a   : > { %v1467_v1 = vpop.permute.xlu0 %1466  ;;  %v1684_v14 = vsel %vm1673_vm9, %v1667_v44, %v1529_v52 }
 0x27b   : > { %2391 = vmatprep.mubr.msk.f32.mxu1 %vm1702_vm10, %v1684_v14  ;;  %v1668_v62 = vsel %vm1656_vm8, %v1651_v2, %v1467_v1 }
 0x27d   : > { %v1279_v57 = vpop.permute.xlu1 %1278 }
 0x27e   : > { %v1089_v17 = vpop.permute.xlu0 %1088  ;;  %v1619_v45 = vsel %vm1605_vm5, %v1602_v49, %v1279_v57 }
 0x27f   : > { %v1570_v36 = vsel %vm841_vm2, %v3160_v29, %v1089_v17 }
 0x281   : > { %v1531_v13 = vpop.permute.xlu1 %1530 }
 0x282   : > { %v1341_v28 = vpop.permute.xlu0 %1340  ;;  %v1685_v23 = vsel %vm1673_vm9, %v1668_v62, %v1531_v13 }
 0x283   : > { %2392 = vmatmul.mubr.msk.f32.gmra.mrb[10].mxu1 %vm1702_vm10, %v1685_v23  ;;  %v1635_v43 = vsel %vm1622_vm6, %v1618_v25, %v1341_v28 }
 0x285   : > { %v1153_v27 = vpop.permute.xlu1 %1152 }
 0x286   : > { %v1091_v24 = vpop.permute.xlu0 %1090  ;;  %v1586_v3 = vsel %vm475_vm0, %v1570_v36, %v1153_v27 }
 0x287   : > { %v1571_v38 = vsel %vm841_vm2, %v3184_v41, %v1091_v24 }
 0x289   : > { %v1405_v48 = vpop.permute.xlu1 %1404 }
 0x28a   : > { %v1343_v33 = vpop.permute.xlu0 %1342  ;;  %v1652_v0 = vsel %vm1639_vm7, %v1635_v43, %v1405_v48 }
 0x28b   : > { %v1636_v53 = vsel %vm1622_vm6, %v1619_v45, %v1343_v33 }
 0x28d   : > { %v1217_v61 = vpop.permute.xlu1 %1216 }
 0x28e   : > { %v1155_v15 = vpop.permute.xlu0 %1154  ;;  %v1603_v47 = vsel %vm1588_vm4, %v1586_v3, %v1217_v61 }
 0x28f   : > { %v1587_v22 = vsel %vm475_vm0, %v1571_v38, %v1155_v15 }
 0x291   : > { %v1469_v20 = vpop.permute.xlu1 %1468 }
 0x292   : > { %v1407_v54 = vpop.permute.xlu0 %1406  ;;  %v1669_v9 = vsel %vm1656_vm8, %v1652_v0, %v1469_v20 }
 0x293   : > { %v1653_v55 = vsel %vm1639_vm7, %v1636_v53, %v1407_v54 }
 0x295   : > { %v1281_v39 = vpop.permute.xlu1 %1280 }
 0x296   : > { %v1219_v19 = vpop.permute.xlu0 %1218  ;;  %v1620_v7 = vsel %vm1605_vm5, %v1603_v47, %v1281_v39 }
 0x297   : > { %v1604_v5 = vsel %vm1588_vm4, %v1587_v22, %v1219_v19 }
 0x299   : > { %v1533_v34 = vpop.permute.xlu1 %1532 }
 0x29a   : > { %v1471_v35 = vpop.permute.xlu0 %1470  ;;  %v1686_v46 = vsel %vm1673_vm9, %v1669_v9, %v1533_v34 }
 0x29b   : > { %2394 = vmatprep.mubr.msk.f32.mxu1 %vm1702_vm10, %v1686_v46  ;;  %v1670_v11 = vsel %vm1656_vm8, %v1653_v55, %v1471_v35 }
 0x29d   : > { %v1345_v50 = vpop.permute.xlu1 %1344 }
 0x29e   : > { %v1283_v32 = vpop.permute.xlu0 %1282  ;;  %v1637_v42 = vsel %vm1622_vm6, %v1620_v7, %v1345_v50 }
 0x29f   : > { %v1621_v63 = vsel %vm1605_vm5, %v1604_v5, %v1283_v32 }
 0x2a1   : > { %v1347_v40 = vpop.permute.xlu1 %1346 }
 0x2a2   : > { %v1535_v58 = vpop.permute.xlu0 %1534  ;;  %v1638_v29 = vsel %vm1622_vm6, %v1621_v63, %v1347_v40 }
 0x2a3   : > { %v1687_v60 = vsel %vm1673_vm9, %v1670_v11, %v1535_v58 }
 0x2a4   : > { %2395 = vmatmul.mubr.msk.f32.gmra.mrb[12].mxu1 %vm1702_vm10, %v1687_v60 }
 0x2a5   : > { %v1411_v30 = vpop.permute.xlu1 %1410 }
 0x2a6   : > { %v1409_v59 = vpop.permute.xlu0 %1408  ;;  %v1655_v41 = vsel %vm1639_vm7, %v1638_v29, %v1411_v30 }
 0x2a7   : > { %v1654_v12 = vsel %vm1639_vm7, %v1637_v42, %v1409_v59 }
 0x2a9   : > { %v1475_v56 = vpop.permute.xlu1 %1474 }
 0x2aa   : > { %v1473_v6 = vpop.permute.xlu0 %1472  ;;  %v1672_v44 = vsel %vm1656_vm8, %v1655_v41, %v1475_v56 }
 0x2ab   : > { %v1671_v52 = vsel %vm1656_vm8, %v1654_v12, %v1473_v6 }
 0x2ad   : > { %v1539_v1 = vpop.permute.xlu1 %1538 }
 0x2ae   : > { %v1537_v14 = vpop.permute.xlu0 %1536  ;;  %v1689_v16 = vsel %vm1673_vm9, %v1672_v44, %v1539_v1 }
 0x2af   : > { %v1688_v51 = vsel %vm1673_vm9, %v1671_v52, %v1537_v14 }
 0x2b0   : > { %2397 = vmatprep.mubr.msk.f32.mxu1 %vm1702_vm10, %v1688_v51 }
 0x2b1   : > { %2398 = vmatmul.mubr.msk.f32.gmra.mrb[14].mxu1 %vm1702_vm10, %v1689_v16 }
 0x2b6   : > { %v2378_v57 = vpop.f32.mrb[0].mxu1 }
 0x2b7   : > { %v1827_v17 = vadd.f32 %v2378_v57, %v3387_v4  ;;  %v1821_v21 = vpop.f32.mrb[1].mxu1 }
 0x2b8   : > { %v1822_v18 = vadd.f32 %v3387_v4, %v1821_v21 }
 0x2b9   : > { %v2267_v2 = vmul.f32 -1.442695, %v1827_v17 }
 0x2ba   : > { %v2266_v62 = vmul.f32 -1.442695, %v1822_v18 }
 0x2bb   : > { %2539 = vpow2.f32 %v2267_v2 }
 0x2bc   : > { %2541 = vpow2.f32 %v2266_v62 }
 0x2c5   : > { %v2540_v13 = vpop.eup %2539 }
 0x2c6   : > { %v2542_v28 = vpop.eup %2541  ;;  %v1949_v23 = vadd.f32 1.0, %v2540_v13 }
 0x2c7   : > { %v1948_v27 = vadd.f32 1.0, %v2542_v28 }
 0x2c8   : > { %2543 = vrcp.f32 %v1949_v23 }
 0x2c9   : > { %2545 = vrcp.f32 %v1948_v27 }
 0x2d2   : > { %v2544_v24 = vpop.eup %2543 }
 0x2d3   : > { %v2546_v48 = vpop.eup %2545  ;;  %v1997_v33 = vmul.f32 %v2544_v24, %v1827_v17 }
 0x2d4   : > { %v1996_v61 = vmul.f32 %v2546_v48, %v1822_v18 }
 0x2d5   : > { %2013 = vst.msk [vmem:[%s2741_s19 + $0x8] sm:$0xff] %vm841_vm2, %v1997_v33 }
 0x2d6   : > { %2012 = vst.msk [vmem:[%s2741_s19] sm:$0xff] %vm841_vm2, %v1996_v61  ;;  %v2381_v15 = vpop.f32.mrb[2].mxu1 }
 0x2d7   : > { %v1837_v20 = vadd.f32 %v2381_v15, %v3387_v4  ;;  %v1831_v54 = vpop.f32.mrb[3].mxu1 }
 0x2d8   : > { %v1832_v31 = vadd.f32 %v3387_v4, %v1831_v54 }
 0x2d9   : > { %v2269_v10 = vmul.f32 -1.442695, %v1837_v20 }
 0x2da   : > { %v2268_v8 = vmul.f32 -1.442695, %v1832_v31 }
 0x2db   : > { %2547 = vpow2.f32 %v2269_v10 }
 0x2dc   : > { %2549 = vpow2.f32 %v2268_v8 }
 0x2e5   : > { %v2548_v39 = vpop.eup %2547 }
 0x2e6   : > { %v2550_v19 = vpop.eup %2549  ;;  %v1951_v25 = vadd.f32 1.0, %v2548_v39 }
 0x2e7   : > { %v1950_v43 = vadd.f32 1.0, %v2550_v19 }
 0x2e8   : > { %2551 = vrcp.f32 %v1951_v25 }
 0x2e9   : > { %2553 = vrcp.f32 %v1950_v43 }
 0x2f2   : > { %v2552_v0 = vpop.eup %2551 }
 0x2f3   : > { %v2554_v9 = vpop.eup %2553  ;;  %v1999_v34 = vmul.f32 %v2552_v0, %v1837_v20 }
 0x2f4   : > { %v1998_v35 = vmul.f32 %v2554_v9, %v1832_v31 }
 0x2f5   : > { %2015 = vst.msk [vmem:[%s2741_s19 + $0x18] sm:$0xff] %vm841_vm2, %v1999_v34 }
 0x2f6   : > { %2014 = vst.msk [vmem:[%s2741_s19 + $0x10] sm:$0xff] %vm841_vm2, %v1998_v35  ;;  %v2384_v46 = vpop.f32.mrb[4].mxu1 }
 0x2f7   : > { %v1847_v37 = vadd.f32 %v2384_v46, %v3387_v4  ;;  %v1841_v26 = vpop.f32.mrb[5].mxu1 }
 0x2f8   : > { %v1842_v49 = vadd.f32 %v3387_v4, %v1841_v26 }
 0x2f9   : > { %v2271_v50 = vmul.f32 -1.442695, %v1847_v37 }
 0x2fa   : > { %v2270_v32 = vmul.f32 -1.442695, %v1842_v49 }
 0x2fb   : > { %2555 = vpow2.f32 %v2271_v50 }
 0x2fc   : > { %2557 = vpow2.f32 %v2270_v32 }
 0x305   : > { %v2556_v45 = vpop.eup %2555 }
 0x306   : > { %v2558_v53 = vpop.eup %2557  ;;  %v1953_v55 = vadd.f32 1.0, %v2556_v45 }
 0x307   : > { %v1952_v11 = vadd.f32 1.0, %v2558_v53 }
 0x308   : > { %2559 = vrcp.f32 %v1953_v55 }
 0x309   : > { %2561 = vrcp.f32 %v1952_v11 }
 0x312   : > { %v2560_v40 = vpop.eup %2559 }
 0x313   : > { %v2562_v58 = vpop.eup %2561  ;;  %v2001_v60 = vmul.f32 %v2560_v40, %v1847_v37 }
 0x314   : > { %v2000_v30 = vmul.f32 %v2562_v58, %v1842_v49 }
 0x315   : > { %2017 = vst.msk [vmem:[%s2741_s19 + $0x28] sm:$0xff] %vm841_vm2, %v2001_v60 }
 0x316   : > { %v2387_v59 = vpop.f32.mrb[6].mxu1  ;;  %2016 = vst.msk [vmem:[%s2741_s19 + $0x20] sm:$0xff] %vm841_vm2, %v2000_v30 }
 0x317   : > { %v1857_v36 = vadd.f32 %v2387_v59, %v3387_v4  ;;  %v1851_v38 = vpop.f32.mrb[7].mxu1 }
 0x318   : > { %v1852_v3 = vadd.f32 %v3387_v4, %v1851_v38 }
 0x319   : > { %v2273_v22 = vmul.f32 -1.442695, %v1857_v36 }
 0x31a   : > { %v2272_v47 = vmul.f32 -1.442695, %v1852_v3 }
 0x31b   : > { %2563 = vpow2.f32 %v2273_v22 }
 0x31c   : > { %2565 = vpow2.f32 %v2272_v47 }
 0x325   : > { %v2564_v5 = vpop.eup %2563 }
 0x326   : > { %v2566_v56 = vpop.eup %2565  ;;  %v1955_v6 = vadd.f32 1.0, %v2564_v5 }
 0x327   : > { %v1954_v7 = vadd.f32 1.0, %v2566_v56 }
 0x328   : > { %2567 = vrcp.f32 %v1955_v6 }
 0x329   : > { %2569 = vrcp.f32 %v1954_v7 }
 0x332   : > { %v2568_v63 = vpop.eup %2567 }
 0x333   : > { %v2570_v42 = vpop.eup %2569  ;;  %v2003_v29 = vmul.f32 %v2568_v63, %v1857_v36 }
 0x334   : > { %v2002_v41 = vmul.f32 %v2570_v42, %v1852_v3 }
 0x335   : > { %2019 = vst.msk [vmem:[%s2741_s19 + $0x38] sm:$0xff] %vm841_vm2, %v2003_v29 }
 0x336   : > { %2018 = vst.msk [vmem:[%s2741_s19 + $0x30] sm:$0xff] %vm841_vm2, %v2002_v41  ;;  %v2390_v12 = vpop.f32.mrb[8].mxu1 }
 0x337   : > { %v1867_v44 = vadd.f32 %v2390_v12, %v3387_v4  ;;  %v1861_v52 = vpop.f32.mrb[9].mxu1 }
 0x338   : > { %v1862_v1 = vadd.f32 %v3387_v4, %v1861_v52 }
 0x339   : > { %v2275_v14 = vmul.f32 -1.442695, %v1867_v44 }
 0x33a   : > { %v2274_v16 = vmul.f32 -1.442695, %v1862_v1 }
 0x33b   : > { %2571 = vpow2.f32 %v2275_v14 }
 0x33c   : > { %2573 = vpow2.f32 %v2274_v16 }
 0x345   : > { %v2572_v51 = vpop.eup %2571 }
 0x346   : > { %v2574_v57 = vpop.eup %2573  ;;  %v1957_v17 = vadd.f32 1.0, %v2572_v51 }
 0x347   : > { %v1956_v21 = vadd.f32 1.0, %v2574_v57 }
 0x348   : > { %2575 = vrcp.f32 %v1957_v17 }
 0x349   : > { %2577 = vrcp.f32 %v1956_v21 }
 0x352   : > { %v2576_v18 = vpop.eup %2575 }
 0x353   : > { %v2578_v2 = vpop.eup %2577  ;;  %v2005_v62 = vmul.f32 %v2576_v18, %v1867_v44 }
 0x354   : > { %v2004_v13 = vmul.f32 %v2578_v2, %v1862_v1 }
 0x355   : > { %2021 = vst.msk [vmem:[%s2741_s19 + $0x48] sm:$0xff] %vm841_vm2, %v2005_v62 }
 0x356   : > { %2020 = vst.msk [vmem:[%s2741_s19 + $0x40] sm:$0xff] %vm841_vm2, %v2004_v13  ;;  %v2393_v28 = vpop.f32.mrb[10].mxu1 }
 0x357   : > { %v1877_v23 = vadd.f32 %v2393_v28, %v3387_v4  ;;  %v1871_v27 = vpop.f32.mrb[11].mxu1 }
 0x358   : > { %v1872_v24 = vadd.f32 %v3387_v4, %v1871_v27 }
 0x359   : > { %v2277_v48 = vmul.f32 -1.442695, %v1877_v23 }
 0x35a   : > { %v2276_v33 = vmul.f32 -1.442695, %v1872_v24 }
 0x35b   : > { %2579 = vpow2.f32 %v2277_v48 }
 0x35c   : > { %2581 = vpow2.f32 %v2276_v33 }
 0x365   : > { %v2580_v61 = vpop.eup %2579 }
 0x366   : > { %v2582_v15 = vpop.eup %2581  ;;  %v1959_v20 = vadd.f32 1.0, %v2580_v61 }
 0x367   : > { %v1958_v54 = vadd.f32 1.0, %v2582_v15 }
 0x368   : > { %2583 = vrcp.f32 %v1959_v20 }
 0x369   : > { %2585 = vrcp.f32 %v1958_v54 }
 0x372   : > { %v2584_v31 = vpop.eup %2583 }
 0x373   : > { %v2586_v10 = vpop.eup %2585  ;;  %v2007_v8 = vmul.f32 %v2584_v31, %v1877_v23 }
 0x374   : > { %v2006_v39 = vmul.f32 %v2586_v10, %v1872_v24 }
 0x375   : > { %2023 = vst.msk [vmem:[%s2741_s19 + $0x58] sm:$0xff] %vm841_vm2, %v2007_v8 }
 0x376   : > { %2022 = vst.msk [vmem:[%s2741_s19 + $0x50] sm:$0xff] %vm841_vm2, %v2006_v39 }
 0x377   : > { %v2396_v19 = vpop.f32.mrb[12].mxu1 }
 0x378   : > { %v1887_v25 = vadd.f32 %v2396_v19, %v3387_v4  ;;  %v1881_v43 = vpop.f32.mrb[13].mxu1 }
 0x379   : > { %v1882_v0 = vadd.f32 %v3387_v4, %v1881_v43 }
 0x37a   : > { %v2279_v9 = vmul.f32 -1.442695, %v1887_v25 }
 0x37b   : > { %v2278_v34 = vmul.f32 -1.442695, %v1882_v0 }
 0x37c   : > { %2587 = vpow2.f32 %v2279_v9 }
 0x37d   : > { %2589 = vpow2.f32 %v2278_v34 }
 0x384   : > { %v2399_v35 = vpop.f32.mrb[14].mxu1 }
 0x385   : > { %v1897_v46 = vadd.f32 %v2399_v35, %v3387_v4  ;;  %v1891_v37 = vpop.f32.mrb[15].mxu1 }
 0x386   : > { %v2588_v26 = vpop.eup %2587  ;;  %v1892_v49 = vadd.f32 %v3387_v4, %v1891_v37 }
 0x387   : > { %v2590_v50 = vpop.eup %2589  ;;  %v1961_v32 = vadd.f32 1.0, %v2588_v26  ;;  %v2281_v45 = vmul.f32 -1.442695, %v1897_v46 }
 0x388   : > { %v1960_v53 = vadd.f32 1.0, %v2590_v50  ;;  %v2280_v55 = vmul.f32 -1.442695, %v1892_v49 }
 0x389   : > { %2591 = vrcp.f32 %v1961_v32 }
 0x38a   : > { %2593 = vrcp.f32 %v1960_v53 }
 0x38b   : > { %2595 = vpow2.f32 %v2281_v45 }
 0x38c   : > { %2597 = vpow2.f32 %v2280_v55 }
 0x393   : > { %v2592_v11 = vpop.eup %2591 }
 0x394   : > { %v2594_v40 = vpop.eup %2593  ;;  %v2009_v58 = vmul.f32 %v2592_v11, %v1887_v25 }
 0x395   : > { %v2596_v60 = vpop.eup %2595  ;;  %v2008_v30 = vmul.f32 %v2594_v40, %v1882_v0 }
 0x396   : > { %v2598_v59 = vpop.eup %2597  ;;  %2025 = vst.msk [vmem:[%s2741_s19 + $0x68] sm:$0xff] %vm841_vm2, %v2009_v58  ;;  %v1963_v4 = vadd.f32 1.0, %v2596_v60 }
 0x397   : > { %2024 = vst.msk [vmem:[%s2741_s19 + $0x60] sm:$0xff] %vm841_vm2, %v2008_v30  ;;  %v1962_v36 = vadd.f32 1.0, %v2598_v59 }
 0x398   : > { %2599 = vrcp.f32 %v1963_v4 }
 0x399   : > { %2601 = vrcp.f32 %v1962_v36 }
 0x3a2   : > { %v2600_v38 = vpop.eup %2599 }
 0x3a3   : > { %v2602_v3 = vpop.eup %2601  ;;  %v2011_v22 = vmul.f32 %v2600_v38, %v1897_v46 }
 0x3a4   : > { %v2010_v47 = vmul.f32 %v2602_v3, %v1892_v49 }
 0x3a5   : > { %2027 = vst.msk [vmem:[%s2741_s19 + $0x78] sm:$0xff] %vm841_vm2, %v2011_v22 }
 0x3a6   : > { %2026 = vst.msk [vmem:[%s2741_s19 + $0x70] sm:$0xff] %vm841_vm2, %v2010_v47 }
 0x3a7 PF: > { %s17_s28 = sadd.s32 1, %s2641_s28   ;;  %s3461_s24 = smov %s2633_s26 }
 0x3a8   : > { %p14_p12 = scmp.ge.s32.totalorder %s17_s28, 6   ;;  %s3462_s25 = smov %s2637_s27 }
 0x3a9   : > { %s3463_s26 = smov %s3466_s29  ;;  %s3464_s27 = smov %s3470_s30 }
 0x3aa   :  { %16 = sbr.rel (!%p14_p12) target bundleno = 3 (0x3), region = 95 }

// kernel: c2f_forward.6
= control target key start
LH: loop header
LB: loop body
LE: loop exit
PB: predicated region body
PF: predicated region fallthrough
CT: control target
= control target key end

     0   :  { %s2698_s24 = smov 0   ;;  %s2700_s25 = smov 0   ;;  %s3460_s0 = inlined_call_operand.vmem [shape: f32[2,16,16,4], index: 0, kind: input, shape index: {}, may-alias: {0,1,2}]   ;;  %s3461_s1 = inlined_call_operand.vmem [shape: f32[2,16,16,4], index: 1, kind: input, shape index: {}, may-alias: {0,1,2}]   ;;  %s3462_s2 = inlined_call_operand.vmem [shape: f32[2,16,16,4], index: 2, kind: input, shape index: {}, may-alias: {0,1,2}]   ;;  %s3463_s3 = inlined_call_operand.vmem [shape: f32[4,4], index: 3, kind: input, shape index: {}]   ;;  %s3464_s4 = inlined_call_operand.vmem [shape: f32[1,4], index: 4, kind: input, shape index: {}]   ;;  %s3465_s5 = inlined_call_operand.vmem [shape: f32[36,4], index: 5, kind: input, shape index: {}]   ;;  %s3466_s6 = inlined_call_operand.vmem [shape: f32[1,4], index: 6, kind: input, shape index: {}]   ;;  %s3467_s7 = inlined_call_operand.vmem [shape: f32[2,16,16,4], index: 7, kind: output, shape index: {}]  }
   0x1   :  { %s2702_s26 = smov 0   ;;  %s2704_s27 = smov 0  }
   0x2   :  { %s2706_s28 = smov 0  }
   0x3 LB: > { %s26_s29 = sadd.s32 1, %s2637_s26  ;;  %s29_s30 = sadd.s32 1, %s2641_s27  ;;  %s2645_s28 = sphi %s2706_s28, %s17_s28   ;;  %s2641_s27 = sphi %s2704_s27, %s3472_s27   ;;  %s2637_s26 = sphi %s2702_s26, %s3471_s26   ;;  %s2633_s25 = sphi %s2700_s25, %s3470_s25   ;;  %s2629_s24 = sphi %s2698_s24, %s3469_s24  }
   0x4   : > { %p27_p0 = scmp.ge.s32.totalorder %s26_s29, 2  ;;  %p2182_p1 = scmp.ge.s32.totalorder %s2645_s28, 1 }
   0x5   : > { %p323_p2 = scmp.lt.s32.totalorder %s2645_s28, 5 }
   0x6   : > { %s3474_s29 = smov (%p27_p0, %s26_s29), 0  ;;  %s3476_s30 = smov (!%p27_p0, %s29_s30), %s2641_s27 }
   0x7   : > { %p324_p3 = pnand %p2182_p1, %p323_p2  ;;  %p31_p4 = scmp.ge.s32.totalorder %s3476_s30, 2 }
   0x8   : > { %v467_v0 = vld [vmem:[%s3463_s3] sm:$0xf] (!%p324_p3)  ;;  %vm536_vm0 = vcmask (!%p324_p3), 1043456   ;;  %s2734_s10 = sshll.u32 (!%p324_p3), %s2629_s24, 3  ;;  %p392_p5 = scmp.lt.s32.totalorder (!%p324_p3), %s2633_s25, 1  ;;  %vm475_vm1 = vcmask (!%p324_p3), 31744  }
   0x9   : > { %s3478_s30 = smov (%p31_p4, %s3476_s30), 0  ;;  %327 = sbr.rel (%p324_p3) target bundleno = 935 (0x3a7), region = 48 }
   0xa   : > { %2338 = vmatprep.subr.msk.mxu0 (!%p324_p3), %vm536_vm0, %v467_v0  ;;  %p394_p6 = scmp.lt.s32.totalorder (!%p324_p3), %s2734_s10, 15  ;;  %s2188_s11 = sadd.s32 (!%p324_p3), 4294967295, %s2734_s10  ;;  %vm865_vm2 = vcmask (!%p324_p3), 24576   ;;  %v2647_v21 = vmov (!%p324_p3), 0.0   ;;  %v2830_v22 = vld [vmem:[%s3464_s4] ss:$0 sm:$0xff] (!%p324_p3) }
   0xb   : > { %2339 = vmatpush3.msk.msra.mxu0 (!%p324_p3), %vm536_vm0, %v467_v0  ;;  %p404_p7 = scmp.gt.s32.totalorder (!%p324_p3), %s2188_s11, 0  ;;  %p2189_p8 = scmp.lt.s32.totalorder (!%p324_p3), %s2188_s11, 15  ;;  %866 = vst.msk [vmem:[#allocation2] sm:$0x1] (!%p324_p3), %vm865_vm2, %v2647_v21  ;;  %867 = vst.msk [vmem:[#allocation2 + $0x18] sm:$0x1] (!%p324_p3), %vm865_vm2, %v2647_v21 }
   0xc   : > { %868 = vst.msk [vmem:[#allocation2 + $0x30] sm:$0x1] (!%p324_p3), %vm865_vm2, %v2647_v21  ;;  %869 = vst.msk [vmem:[#allocation2 + $0x48] sm:$0x1] (!%p324_p3), %vm865_vm2, %v2647_v21  ;;  %p2250_p10 = scmp.ne.s32.totalorder (!%p324_p3), %s2629_s24, 0 }
   0xd   : > { %870 = vst.msk [vmem:[#allocation2 + $0x60] sm:$0x1] (!%p324_p3), %vm865_vm2, %v2647_v21  ;;  %871 = vst.msk [vmem:[#allocation2 + $0x78] sm:$0x1] (!%p324_p3), %vm865_vm2, %v2647_v21 }
   0xe   : > { %872 = vst.msk [vmem:[#allocation2 + $0x90] sm:$0x1] (!%p324_p3), %vm865_vm2, %v2647_v21  ;;  %873 = vst.msk [vmem:[#allocation2 + $0xa8] sm:$0x1] (!%p324_p3), %vm865_vm2, %v2647_v21 }
   0xf   : > { %874 = vst.msk [vmem:[#allocation2 + $0xc0] sm:$0x1] (!%p324_p3), %vm865_vm2, %v2647_v21  ;;  %875 = vst.msk [vmem:[#allocation2 + $0xd8] sm:$0x1] (!%p324_p3), %vm865_vm2, %v2647_v21 }
  0x10   : > { %s3480_s25 = smov (!%p392_p5, %s2633_s25), 1  ;;  %s3482_s11 = smov (!%p404_p7, %s2188_s11), 0  ;;  %876 = vst.msk [vmem:[#allocation2 + $0x11] sm:$0x1] %vm865_vm2, %v2647_v21  ;;  %877 = vst.msk [vmem:[#allocation2 + $0x29] sm:$0x1] %vm865_vm2, %v2647_v21 }
  0x11   : > { %s395_s12 = scalar_select %p394_p6, %s2734_s10, 15  ;;  %878 = vst.msk [vmem:[#allocation2 + $0x41] sm:$0x1] %vm865_vm2, %v2647_v21  ;;  %879 = vst.msk [vmem:[#allocation2 + $0x59] sm:$0x1] %vm865_vm2, %v2647_v21 }
  0x12   : > { %s2741_s13 = sshll.u32 %s3480_s25, 5  ;;  %s3484_s11 = smov (!%p2189_p8, %s3482_s11), 15  ;;  %880 = vst.msk [vmem:[#allocation2 + $0x71] sm:$0x1] %vm865_vm2, %v2647_v21  ;;  %881 = vst.msk [vmem:[#allocation2 + $0x89] sm:$0x1] %vm865_vm2, %v2647_v21 }
  0x13   : > { %s2184_s14 = sshll.u32 %s395_s12, 1  ;;  %s2194_s20 = sshll.u32 %s3484_s11, 1  ;;  %882 = vst.msk [vmem:[#allocation2 + $0xa1] sm:$0x1] %vm865_vm2, %v2647_v21  ;;  %883 = vst.msk [vmem:[#allocation2 + $0xb9] sm:$0x1] %vm865_vm2, %v2647_v21 }
  0x14   : > { %s398_s15 = sadd.s32 %s2741_s13, %s2184_s14  ;;  %s412_s25 = sadd.s32 %s2194_s20, %s2741_s13  ;;  %884 = vst.msk [vmem:[#allocation2 + $0xd1] sm:$0x1] %vm865_vm2, %v2647_v21  ;;  %885 = vst.msk [vmem:[#allocation2 + $0xe9] sm:$0x1] %vm865_vm2, %v2647_v21 }
  0x15   : > { %s2186_s16 = sshll.u32 %s398_s15, 3  ;;  %s2196_s8 = sshll.u32 %s412_s25, 3 }
  0x16   : > { %s2747_s19 = scalar_lea.vmem %s3467_s7, %s2186_s16  ;;  %s2752_s23 = scalar_lea.vmem %s3460_s0, %s2186_s16 }
  0x17   : > { %s414_s14 = scalar_lea.vmem %s3461_s1, %s2196_s8  ;;  %v449_v3 = vld [vmem:[%s2752_s23] sm:$0xff]  ;;  %v450_v4 = vld [vmem:[%s2752_s23 + $0x8] sm:$0xff]  ;;  %v451_v5 = vld [vmem:[%s2752_s23 + $0x10] sm:$0xff]  ;;  %s2295_s11 = sadd.s32 8, %s2734_s10 }
  0x18   : > { %v447_v1 = vld [vmem:[%s414_s14] sm:$0xff]  ;;  %v448_v2 = vld [vmem:[%s414_s14 + $0x8] sm:$0xff]  ;;  %v452_v6 = vld [vmem:[%s2752_s23 + $0x18] sm:$0xff]  ;;  %p2769_p9 = scmp.lt.s32.totalorder %s2295_s11, 15 }
  0x19   : > { %2340 = vmatprep.mubr.msk.f32.mxu0 %vm475_vm1, %v447_v1  ;;  %v453_v7 = vld [vmem:[%s2752_s23 + $0x20] sm:$0xff]  ;;  %v454_v8 = vld [vmem:[%s2752_s23 + $0x28] sm:$0xff]  ;;  %v455_v9 = vld [vmem:[%s2752_s23 + $0x30] sm:$0xff] }
  0x1a   : > { %2341 = vmatmul.mubr.msk.f32.vlgmr.msra.gmra.mrb[0].mxu0 %vm475_vm1, %v448_v2  ;;  %s3486_s11 = smov (!%p2769_p9, %s2295_s11), 15  ;;  %v456_v10 = vld [vmem:[%s2752_s23 + $0x38] sm:$0xff]  ;;  %v457_v11 = vld [vmem:[%s2752_s23 + $0x40] sm:$0xff]  ;;  %v458_v12 = vld [vmem:[%s2752_s23 + $0x48] sm:$0xff] }
  0x1b   : > { %2343 = vmatprep.mubr.msk.f32.mxu0 %vm475_vm1, %v449_v3  ;;  %s3488_s11 = smov (!%p2769_p9, %s3486_s11), 15  ;;  %v459_v13 = vld [vmem:[%s2752_s23 + $0x50] sm:$0xff]  ;;  %v460_v14 = vld [vmem:[%s2752_s23 + $0x58] sm:$0xff]  ;;  %v461_v15 = vld [vmem:[%s2752_s23 + $0x60] sm:$0xff] }
  0x1c   : > { %s2201_s10 = sshll.u32 %s3488_s11, 1  ;;  %v462_v16 = vld [vmem:[%s2752_s23 + $0x68] sm:$0xff]  ;;  %v463_v17 = vld [vmem:[%s2752_s23 + $0x70] sm:$0xff]  ;;  %v464_v18 = vld [vmem:[%s2752_s23 + $0x78] sm:$0xff] }
  0x1d   : > { %s429_s16 = sadd.s32 %s2201_s10, %s2741_s13 }
  0x1e   : > { %2344 = vmatmul.mubr.msk.f32.gmra.mrb[2].mxu0 %vm475_vm1, %v450_v4  ;;  %s2203_s17 = sshll.u32 %s429_s16, 3 }
  0x1f   : > { %2346 = vmatprep.mubr.msk.f32.mxu0 %vm475_vm1, %v451_v5  ;;  %s431_s21 = scalar_lea.vmem %s3462_s2, %s2203_s17 }
  0x20   : > { %v465_v19 = vld [vmem:[%s431_s21] sm:$0xff]  ;;  %v466_v20 = vld [vmem:[%s431_s21 + $0x8] sm:$0xff] }
  0x22   : > { %2347 = vmatmul.mubr.msk.f32.gmra.mrb[4].mxu0 %vm475_vm1, %v452_v6 }
  0x23   : > { %2349 = vmatprep.mubr.msk.f32.mxu0 %vm475_vm1, %v453_v7 }
  0x26   : > { %2350 = vmatmul.mubr.msk.f32.gmra.mrb[6].mxu0 %vm475_vm1, %v454_v8 }
  0x27   : > { %2352 = vmatprep.mubr.msk.f32.mxu0 %vm475_vm1, %v455_v9 }
  0x2a   : > { %2353 = vmatmul.mubr.msk.f32.gmra.mrb[8].mxu0 %vm475_vm1, %v456_v10 }
  0x2b   : > { %2355 = vmatprep.mubr.msk.f32.mxu0 %vm475_vm1, %v457_v11 }
  0x2e   : > { %2356 = vmatmul.mubr.msk.f32.gmra.mrb[10].mxu0 %vm475_vm1, %v458_v12 }
  0x2f   : > { %2358 = vmatprep.mubr.msk.f32.mxu0 %vm475_vm1, %v459_v13 }
  0x32   : > { %2359 = vmatmul.mubr.msk.f32.gmra.mrb[12].mxu0 %vm475_vm1, %v460_v14 }
  0x33   : > { %2361 = vmatprep.mubr.msk.f32.mxu0 %vm475_vm1, %v461_v15 }
  0x36   : > { %2362 = vmatmul.mubr.msk.f32.gmra.mrb[14].mxu0 %vm475_vm1, %v462_v16 }
  0x37   : > { %2364 = vmatprep.mubr.msk.f32.mxu0 %vm475_vm1, %v463_v17 }
  0x3a   : > { %2365 = vmatmul.mubr.msk.f32.gmra.mrb[16].mxu0 %vm475_vm1, %v464_v18 }
  0x3b   : > { %2367 = vmatprep.mubr.msk.f32.mxu0 %vm475_vm1, %v465_v19 }
  0x3e   : > { %2368 = vmatmul.mubr.msk.f32.gmra.mrb[18].mxu0 %vm475_vm1, %v466_v20 }
  0xed   : > { %v2342_v23 = vpop.f32.mrb[0].mxu0 }
  0xee   : > { %v2833_v24 = vadd.f32 %v2342_v23, %v2830_v22  ;;  %v606_v25 = vpop.f32.mrb[1].mxu0 }
  0xef   : > { %v2836_v26 = vadd.f32 %v2830_v22, %v606_v25 }
  0xf0   : > { %v2231_v27 = vmul.f32 -1.442695, %v2833_v24 }
  0xf1   : > { %v2230_v28 = vmul.f32 -1.442695, %v2836_v26  ;;  %v2345_v29 = vpop.f32.mrb[2].mxu0 }
  0xf2   : > { %2463 = vpow2.f32 %v2231_v27  ;;  %v2841_v30 = vadd.f32 %v2345_v29, %v2830_v22  ;;  %v616_v31 = vpop.f32.mrb[3].mxu0 }
  0xf3   : > { %2465 = vpow2.f32 %v2230_v28  ;;  %v2844_v32 = vadd.f32 %v2830_v22, %v616_v31 }
  0xf4   : > { %v2233_v33 = vmul.f32 -1.442695, %v2841_v30 }
  0xf5   : > { %v2232_v34 = vmul.f32 -1.442695, %v2844_v32  ;;  %v2348_v35 = vpop.f32.mrb[4].mxu0 }
  0xf6   : > { %2467 = vpow2.f32 %v2233_v33  ;;  %v2849_v36 = vadd.f32 %v2348_v35, %v2830_v22  ;;  %v626_v37 = vpop.f32.mrb[5].mxu0 }
  0xf7   : > { %2469 = vpow2.f32 %v2232_v34  ;;  %v2852_v38 = vadd.f32 %v2830_v22, %v626_v37 }
  0xf8   : > { %v2235_v39 = vmul.f32 -1.442695, %v2849_v36 }
  0xf9   : > { %v2234_v40 = vmul.f32 -1.442695, %v2852_v38  ;;  %v2351_v41 = vpop.f32.mrb[6].mxu0 }
  0xfa   : > { %2471 = vpow2.f32 %v2235_v39  ;;  %v2857_v42 = vadd.f32 %v2351_v41, %v2830_v22  ;;  %v636_v43 = vpop.f32.mrb[7].mxu0 }
  0xfb   : > { %2473 = vpow2.f32 %v2234_v40  ;;  %v2860_v44 = vadd.f32 %v2830_v22, %v636_v43 }
  0xfc   : > { %v2464_v45 = vpop.eup %2463  ;;  %v2237_v46 = vmul.f32 -1.442695, %v2857_v42 }
  0xfd   : > { %v2466_v47 = vpop.eup %2465  ;;  %v766_v48 = vadd.f32 1.0, %v2464_v45  ;;  %v2236_v49 = vmul.f32 -1.442695, %v2860_v44  ;;  %v2354_v50 = vpop.f32.mrb[8].mxu0 }
  0xfe   : > { %v765_v51 = vadd.f32 1.0, %v2466_v47  ;;  %2475 = vpow2.f32 %v2237_v46  ;;  %v2865_v52 = vadd.f32 %v2354_v50, %v2830_v22  ;;  %v646_v53 = vpop.f32.mrb[9].mxu0 }
  0xff   : > { %2477 = vrcp.f32 %v766_v48  ;;  %v2868_v54 = vadd.f32 %v2830_v22, %v646_v53 }
 0x100   : > { %v2468_v55 = vpop.eup %2467  ;;  %2479 = vrcp.f32 %v765_v51  ;;  %v2239_v56 = vmul.f32 -1.442695, %v2865_v52 }
 0x101   : > { %v2470_v57 = vpop.eup %2469  ;;  %v768_v58 = vadd.f32 1.0, %v2468_v55  ;;  %2481 = vpow2.f32 %v2236_v49  ;;  %v2238_v59 = vmul.f32 -1.442695, %v2868_v54  ;;  %v2357_v60 = vpop.f32.mrb[10].mxu0 }
 0x102   : > { %v767_v61 = vadd.f32 1.0, %v2470_v57  ;;  %2483 = vpow2.f32 %v2239_v56  ;;  %v2873_v62 = vadd.f32 %v2357_v60, %v2830_v22  ;;  %v656_v63 = vpop.f32.mrb[11].mxu0 }
 0x103   : > { %2485 = vrcp.f32 %v768_v58  ;;  %v2876_v0 = vadd.f32 %v2830_v22, %v656_v63 }
 0x104   : > { %v2472_v1 = vpop.eup %2471  ;;  %2487 = vrcp.f32 %v767_v61  ;;  %v2241_v2 = vmul.f32 -1.442695, %v2873_v62 }
 0x105   : > { %v2474_v3 = vpop.eup %2473  ;;  %v770_v4 = vadd.f32 1.0, %v2472_v1  ;;  %2489 = vpow2.f32 %v2238_v59  ;;  %v2240_v5 = vmul.f32 -1.442695, %v2876_v0  ;;  %v2360_v6 = vpop.f32.mrb[12].mxu0 }
 0x106   : > { %v769_v7 = vadd.f32 1.0, %v2474_v3  ;;  %2491 = vpow2.f32 %v2241_v2  ;;  %v2881_v8 = vadd.f32 %v2360_v6, %v2830_v22  ;;  %v666_v9 = vpop.f32.mrb[13].mxu0 }
 0x107   : > { %2493 = vrcp.f32 %v770_v4  ;;  %v2884_v10 = vadd.f32 %v2830_v22, %v666_v9 }
 0x108   : > { %v2476_v11 = vpop.eup %2475  ;;  %2495 = vrcp.f32 %v769_v7  ;;  %v2243_v12 = vmul.f32 -1.442695, %v2881_v8 }
 0x109   : > { %v2478_v13 = vpop.eup %2477  ;;  %v772_v14 = vadd.f32 1.0, %v2476_v11  ;;  %2497 = vpow2.f32 %v2240_v5  ;;  %v2242_v15 = vmul.f32 -1.442695, %v2884_v10  ;;  %v2363_v16 = vpop.f32.mrb[14].mxu0 }
 0x10a   : > { %v2480_v17 = vpop.eup %2479  ;;  %v826_v18 = vmul.f32 %v2478_v13, %v2833_v24  ;;  %2499 = vpow2.f32 %v2243_v12  ;;  %v2890_v19 = vadd.f32 %v2363_v16, %v2830_v22  ;;  %v676_v20 = vpop.f32.mrb[15].mxu0 }
 0x10b   : > { %v2482_v21 = vpop.eup %2481  ;;  %v825_v23 = vmul.f32 %v2480_v17, %v2836_v26  ;;  %2501 = vrcp.f32 %v772_v14  ;;  %v2894_v25 = vadd.f32 %v2830_v22, %v676_v20 }
 0x10c   : > { %v2484_v27 = vpop.eup %2483  ;;  %846 = vst.msk [vmem:[#allocation2 + $0x9] sm:$0xff] %vm475_vm1, %v826_v18  ;;  %v771_v28 = vadd.f32 1.0, %v2482_v21  ;;  %2503 = vpow2.f32 %v2242_v15  ;;  %v2245_v29 = vmul.f32 -1.442695, %v2890_v19 }
 0x10d   : > { %v2486_v24 = vpop.eup %2485  ;;  %845 = vst.msk [vmem:[#allocation2 + $0x1] sm:$0xff] %vm475_vm1, %v825_v23  ;;  %v774_v31 = vadd.f32 1.0, %v2484_v27  ;;  %v2244_v33 = vmul.f32 -1.442695, %v2894_v25  ;;  %v2366_v34 = vpop.f32.mrb[16].mxu0 }
 0x10e   : > { %v2488_v35 = vpop.eup %2487  ;;  %v828_v26 = vmul.f32 %v2486_v24, %v2841_v30  ;;  %2505 = vrcp.f32 %v771_v28  ;;  %v2902_v37 = vadd.f32 %v2366_v34, %v2830_v22  ;;  %v686_v39 = vpop.f32.mrb[17].mxu0 }
 0x10f   : > { %v2490_v40 = vpop.eup %2489  ;;  %v827_v41 = vmul.f32 %v2488_v35, %v2844_v32  ;;  %2507 = vrcp.f32 %v774_v31  ;;  %v2906_v43 = vadd.f32 %v2830_v22, %v686_v39 }
 0x110   : > { %v2492_v45 = vpop.eup %2491  ;;  %848 = vst.msk [vmem:[#allocation2 + $0x21] sm:$0xff] %vm475_vm1, %v828_v26  ;;  %v773_v46 = vadd.f32 1.0, %v2490_v40  ;;  %2509 = vpow2.f32 %v2245_v29  ;;  %v2247_v47 = vmul.f32 -1.442695, %v2902_v37 }
 0x111   : > { %v2494_v30 = vpop.eup %2493  ;;  %847 = vst.msk [vmem:[#allocation2 + $0x19] sm:$0xff] %vm475_vm1, %v827_v41  ;;  %v776_v48 = vadd.f32 1.0, %v2492_v45  ;;  %2511 = vpow2.f32 %v2244_v33  ;;  %v2246_v49 = vmul.f32 -1.442695, %v2906_v43  ;;  %v2369_v50 = vpop.f32.mrb[18].mxu0 }
 0x112   : > { %v2496_v32 = vpop.eup %2495  ;;  %v830_v51 = vmul.f32 %v2494_v30, %v2849_v36  ;;  %2513 = vrcp.f32 %v773_v46  ;;  %v2914_v53 = vadd.f32 %v2369_v50, %v2830_v22  ;;  %v696_v55 = vpop.f32.mrb[19].mxu0 }
 0x113   : > { %v2498_v56 = vpop.eup %2497  ;;  %v829_v57 = vmul.f32 %v2496_v32, %v2852_v38  ;;  %2515 = vrcp.f32 %v776_v48  ;;  %v2918_v58 = vadd.f32 %v2830_v22, %v696_v55 }
 0x114   : > { %v2500_v59 = vpop.eup %2499  ;;  %850 = vst.msk [vmem:[#allocation2 + $0x39] sm:$0xff] %vm475_vm1, %v830_v51  ;;  %v775_v60 = vadd.f32 1.0, %v2498_v56  ;;  %2517 = vpow2.f32 %v2247_v47  ;;  %v2249_v61 = vmul.f32 -1.442695, %v2914_v53 }
 0x115   : > { %v2502_v36 = vpop.eup %2501  ;;  %849 = vst.msk [vmem:[#allocation2 + $0x31] sm:$0xff] %vm475_vm1, %v829_v57  ;;  %v778_v63 = vadd.f32 1.0, %v2500_v59  ;;  %2519 = vpow2.f32 %v2246_v49  ;;  %v2248_v38 = vmul.f32 -1.442695, %v2918_v58 }
 0x116   : > { %v2504_v1 = vpop.eup %2503  ;;  %v832_v2 = vmul.f32 %v2502_v36, %v2857_v42  ;;  %2521 = vrcp.f32 %v775_v60 }
 0x117   : > { %2523 = vrcp.f32 %v778_v63  ;;  %v777_v22 = vadd.f32 1.0, %v2504_v1 }
 0x118   : > { %v2506_v3 = vpop.eup %2505  ;;  %852 = vst.msk [vmem:[#allocation2 + $0x51] sm:$0xff] %vm475_vm1, %v832_v2  ;;  %2525 = vpow2.f32 %v2249_v61 }
 0x119   : > { %v2508_v4 = vpop.eup %2507  ;;  %v831_v5 = vmul.f32 %v2506_v3, %v2860_v44  ;;  %2527 = vrcp.f32 %v777_v22 }
 0x11a   : > { %v2510_v6 = vpop.eup %2509  ;;  %v834_v7 = vmul.f32 %v2508_v4, %v2865_v52  ;;  %2529 = vpow2.f32 %v2248_v38 }
 0x11b   : > { %v2512_v9 = vpop.eup %2511  ;;  %851 = vst.msk [vmem:[#allocation2 + $0x49] sm:$0xff] %vm475_vm1, %v831_v5  ;;  %v780_v42 = vadd.f32 1.0, %v2510_v6 }
 0x11c   : > { %v2514_v11 = vpop.eup %2513  ;;  %854 = vst.msk [vmem:[#allocation2 + $0x69] sm:$0xff] %vm475_vm1, %v834_v7  ;;  %v779_v12 = vadd.f32 1.0, %v2512_v9 }
 0x11d   : > { %v2516_v13 = vpop.eup %2515  ;;  %v833_v14 = vmul.f32 %v2514_v11, %v2868_v54  ;;  %2531 = vrcp.f32 %v780_v42 }
 0x11e   : > { %v2518_v15 = vpop.eup %2517  ;;  %v836_v44 = vmul.f32 %v2516_v13, %v2873_v62  ;;  %2533 = vrcp.f32 %v779_v12 }
 0x11f   : > { %v2520_v16 = vpop.eup %2519  ;;  %853 = vst.msk [vmem:[#allocation2 + $0x61] sm:$0xff] %vm475_vm1, %v833_v14  ;;  %v782_v52 = vadd.f32 1.0, %v2518_v15 }
 0x120   : > { %v2522_v17 = vpop.eup %2521  ;;  %856 = vst.msk [vmem:[#allocation2 + $0x81] sm:$0xff] %vm475_vm1, %v836_v44  ;;  %v781_v18 = vadd.f32 1.0, %v2520_v16 }
 0x121   : > { %v2524_v20 = vpop.eup %2523  ;;  %v835_v21 = vmul.f32 %v2522_v17, %v2876_v0  ;;  %2535 = vrcp.f32 %v782_v52 }
 0x122   : > { %v2526_v23 = vpop.eup %2525  ;;  %v838_v54 = vmul.f32 %v2524_v20, %v2881_v8  ;;  %2537 = vrcp.f32 %v781_v18 }
 0x123   : > { %v2528_v27 = vpop.eup %2527  ;;  %855 = vst.msk [vmem:[#allocation2 + $0x79] sm:$0xff] %vm475_vm1, %v835_v21  ;;  %v784_v62 = vadd.f32 1.0, %v2526_v23 }
 0x124   : > { %v2530_v28 = vpop.eup %2529  ;;  %858 = vst.msk [vmem:[#allocation2 + $0x99] sm:$0xff] %vm475_vm1, %v838_v54  ;;  %v837_v29 = vmul.f32 %v2528_v27, %v2884_v10 }
 0x125   : > { %2539 = vrcp.f32 %v784_v62  ;;  %v783_v24 = vadd.f32 1.0, %v2530_v28 }
 0x126   : > { %857 = vst.msk [vmem:[#allocation2 + $0x91] sm:$0xff] %vm475_vm1, %v837_v29 }
 0x127   : > { %v2532_v31 = vpop.eup %2531  ;;  %2541 = vrcp.f32 %v783_v24 }
 0x128   : > { %v2534_v0 = vpop.eup %2533  ;;  %v840_v33 = vmul.f32 %v2532_v31, %v2890_v19 }
 0x129   : > { %v839_v8 = vmul.f32 %v2534_v0, %v2894_v25 }
 0x12a   : > { %860 = vst.msk [vmem:[#allocation2 + $0xb1] sm:$0xff] %vm475_vm1, %v840_v33 }
 0x12b   : > { %v2536_v34 = vpop.eup %2535  ;;  %859 = vst.msk [vmem:[#allocation2 + $0xa9] sm:$0xff] %vm475_vm1, %v839_v8 }
 0x12c   : > { %v2538_v35 = vpop.eup %2537  ;;  %v842_v26 = vmul.f32 %v2536_v34, %v2902_v37  ;;  %v2648_v37 = vmov (!%p2250_p10), 0.0  }
 0x12d   : > { %v841_v10 = vmul.f32 %v2538_v35, %v2906_v43  ;;  %890 = vst.msk [vmem:[#allocation2] sm:$0xff] (!%p2250_p10), %vm475_vm1, %v2648_v37  ;;  %891 = vst.msk [vmem:[#allocation2 + $0x8] sm:$0xff] (!%p2250_p10), %vm475_vm1, %v2648_v37 }
 0x12e   : > { %862 = vst.msk [vmem:[#allocation2 + $0xc9] sm:$0xff] %vm475_vm1, %v842_v26  ;;  %889 = sbr.rel (%p2250_p10) target bundleno = 309 (0x135), region = 52  ;;  %892 = vst.msk [vmem:[#allocation2 + $0x10] sm:$0xff] (!%p2250_p10), %vm475_vm1, %v2648_v37 }
 0x12f   : > { %v2540_v39 = vpop.eup %2539  ;;  %861 = vst.msk [vmem:[#allocation2 + $0xc1] sm:$0xff] %vm475_vm1, %v841_v10 }
 0x130   : > { %v844_v40 = vmul.f32 %v2540_v39, %v2914_v53 }
 0x131   : > { %v2542_v19 = vpop.eup %2541 }
 0x132   : > { %864 = vst.msk [vmem:[#allocation2 + $0xe1] sm:$0xff] %vm475_vm1, %v844_v40  ;;  %v843_v25 = vmul.f32 %v2542_v19, %v2918_v58 }
 0x134   : > { %863 = vst.msk [vmem:[#allocation2 + $0xd9] sm:$0xff] %vm475_vm1, %v843_v25 }
 0x135 PF: > { %p2251_p11 = scmp.ne.s32.totalorder %s2629_s24, 1 }
 0x136   : > { %v2649_v41 = vmov (!%p2251_p11), 0.0  }
 0x137   : > { %896 = sbr.rel (%p2251_p11) target bundleno = 318 (0x13e), region = 56  ;;  %898 = vst.msk [vmem:[#allocation2 + $0xd8] sm:$0xff] (!%p2251_p11), %vm475_vm1, %v2649_v41  ;;  %899 = vst.msk [vmem:[#allocation2 + $0xe0] sm:$0xff] (!%p2251_p11), %vm475_vm1, %v2649_v41 }
 0x138   : > { %900 = vst.msk [vmem:[#allocation2 + $0xe8] sm:$0xff] (!%p2251_p11), %vm475_vm1, %v2649_v41 }
 0x13e PF: > { %v933_v43 = vld [vmem:[#allocation2 + $0x2] sm:$0xff]  ;;  %s2650_s23 = smov 8   ;;  %s2651_s25 = smov 4   ;;  %v934_v46 = vld [vmem:[#allocation2 + $0xa] sm:$0xff]  ;;  %v2966_v48 = vld [vmem:[#allocation2 + $0x18] sm:$0xff]  ;;  %vm1575_vm3 = vcmask 64512  }
 0x13f   : > { %v917_v45 = vld [vmem:[#allocation2 + $0x1] sm:$0xff]  ;;  %1127 = vrot.lane.b32.xlu1 %v933_v43, %s2650_s23  ;;  %v918_v47 = vld [vmem:[#allocation2 + $0x9] sm:$0xff]  ;;  %s2652_s24 = smov 12   ;;  %v919_v49 = vld [vmem:[#allocation2 + $0x19] sm:$0xff]  ;;  %s2653_s8 = smov 16   ;;  %vm1592_vm4 = vcmask 97280  }
 0x140   : > { %1063 = vrot.lane.b32.xlu0 %v917_v45, %s2651_s25  ;;  %v2964_v30 = vld [vmem:[#allocation2 + $0x20] sm:$0xff]  ;;  %s2654_s9 = smov 20   ;;  %v2978_v51 = vld [vmem:[#allocation2 + $0x30] sm:$0xff]  ;;  %v1695_v56 = vld [vmem:[%s3465_s5 + $0x8] sm:$0xff]  ;;  %s2655_s10 = smov 24   ;;  %vm1609_vm5 = vcmask 130048  }
 0x141   : > { %v982_v50 = vld [vmem:[#allocation2 + $0x1a] sm:$0xff]  ;;  %v983_v53 = vld [vmem:[#allocation2 + $0x22] sm:$0xff]  ;;  %v1696_v58 = vld [vmem:[%s3465_s5 + $0x10] sm:$0xff]  ;;  %s2656_s21 = smov 28   ;;  %s2657_s12 = smov 32   ;;  %vm1626_vm6 = vcmask 162816  }
 0x142   : > { %v967_v32 = vld [vmem:[#allocation2 + $0x21] sm:$0xff]  ;;  %v1697_v59 = vld [vmem:[%s3465_s5 + $0x18] sm:$0xff]  ;;  %v1017_v3 = vld [vmem:[#allocation2 + $0x49] sm:$0xff]  ;;  %vm1643_vm7 = vcmask 195584   ;;  %vm1660_vm8 = vcmask 228352   ;;  %vm1677_vm9 = vcmask 261120  }
 0x143   : > { %1129 = vrot.lane.b32.xlu1 %v934_v46, %s2650_s23  ;;  %v1694_v55 = vld [vmem:[%s3465_s5] sm:$0xff]  ;;  %v1015_v60 = vld [vmem:[#allocation2 + $0x31] sm:$0xff]  ;;  %v2408_v36 = vpack.c.bf16 %v1697_v59, %v1696_v58  ;;  %v3019_v22 = vld [vmem:[#allocation2 + $0x48] sm:$0xff]  ;;  %vm1706_vm10 = vcmask 293888  }
 0x144   : > { %1065 = vrot.lane.b32.xlu0 %v918_v47, %s2651_s25  ;;  %v2404_v57 = vpack.c.bf16 %v1695_v56, %v1694_v55  ;;  %v2998_v61 = vld [vmem:[#allocation2 + $0x38] sm:$0xff]  ;;  %v1698_v63 = vld [vmem:[%s3465_s5 + $0x20] sm:$0xf]  ;;  %v3027_v4 = vld [vmem:[#allocation2 + $0x50] sm:$0xff] }
 0x145   : > { %v1031_v1 = vld [vmem:[#allocation2 + $0x32] sm:$0xff]  ;;  %v1032_v38 = vld [vmem:[#allocation2 + $0x3a] sm:$0xff]  ;;  %v1033_v5 = vld [vmem:[#allocation2 + $0x4a] sm:$0xff] }
 0x146   : > { %2405 = vmatprep.subr.bf16.mxu1 %v2404_v57  ;;  %v1016_v2 = vld [vmem:[#allocation2 + $0x39] sm:$0xff]  ;;  %v1018_v6 = vld [vmem:[#allocation2 + $0x51] sm:$0xff]  ;;  %v1019_v42 = vld [vmem:[#allocation2 + $0x61] sm:$0xff] }
 0x147   : > { %1193 = vrot.lane.b32.xlu1 %v2964_v30, %s2652_s24  ;;  %2407 = vmatpush3.bf16.msra.mxu1 %v2404_v57  ;;  %v1034_v7 = vld [vmem:[#allocation2 + $0x52] sm:$0xff]  ;;  %v3043_v9 = vld [vmem:[#allocation2 + $0x60] sm:$0xff]  ;;  %v3051_v11 = vld [vmem:[#allocation2 + $0x68] sm:$0xff] }
 0x148   : > { %1191 = vrot.lane.b32.xlu0 %v2966_v48, %s2652_s24  ;;  %2409 = vmatprep.subr.bf16.mxu1 %v2408_v36  ;;  %v1035_v12 = vld [vmem:[#allocation2 + $0x62] sm:$0xff]  ;;  %v1036_v14 = vld [vmem:[#allocation2 + $0x6a] sm:$0xff]  ;;  %v3067_v16 = vld [vmem:[#allocation2 + $0x78] sm:$0xff] }
 0x149   : > { %v1020_v13 = vld [vmem:[#allocation2 + $0x69] sm:$0xff]  ;;  %v1021_v21 = vld [vmem:[#allocation2 + $0x79] sm:$0xff]  ;;  %v1022_v24 = vld [vmem:[#allocation2 + $0x81] sm:$0xff] }
 0x14a   : > { %v3079_v23 = vld [vmem:[#allocation2 + $0x80] sm:$0xff]  ;;  %v3107_v37 = vld [vmem:[#allocation2 + $0x90] sm:$0xff]  ;;  %v902_v46 = vld [vmem:[#allocation2 + $0x8] sm:$0xff] }
 0x14b   : > { %1067 = vrot.lane.b32.xlu1 %v919_v49, %s2651_s25  ;;  %2411 = vmatpush3.bf16.msra.mxu1 %v2408_v36  ;;  %v1037_v29 = vld [vmem:[#allocation2 + $0x7a] sm:$0xff]  ;;  %v1038_v34 = vld [vmem:[#allocation2 + $0x82] sm:$0xff]  ;;  %v1023_v59 = vld [vmem:[#allocation2 + $0x91] sm:$0xff] }
 0x14c   : > { %1255 = vrot.lane.b32.xlu0 %v919_v49, %s2653_s8  ;;  %2378 = vmatprep.subr.msk.mxu1 %vm536_vm0, %v1698_v63  ;;  %v901_v10 = vld [vmem:[#allocation2] sm:$0xff] }
 0x14f   : > { %1319 = vrot.lane.b32.xlu1 %v982_v50, %s2654_s9  ;;  %2379 = vmatpush3.msk.msra.mxu1 %vm536_vm0, %v1698_v63 }
 0x150   : > { %1257 = vrot.lane.b32.xlu0 %v967_v32, %s2653_s8 }
 0x153   : > { %1131 = vrot.lane.b32.xlu1 %v982_v50, %s2650_s23 }
 0x154   : > { %1069 = vrot.lane.b32.xlu0 %v967_v32, %s2651_s25 }
 0x157   : > { %1383 = vrot.lane.b32.xlu1 %v2978_v51, %s2655_s10 }
 0x158   : > { %1321 = vrot.lane.b32.xlu0 %v983_v53, %s2654_s9 }
 0x15b   : > { %1195 = vrot.lane.b32.xlu1 %v2978_v51, %s2652_s24 }
 0x15c   : > { %1133 = vrot.lane.b32.xlu0 %v983_v53, %s2650_s23 }
 0x15f   : > { %1447 = vrot.lane.b32.xlu1 %v1015_v60, %s2656_s21 }
 0x160   : > { %1385 = vrot.lane.b32.xlu0 %v2998_v61, %s2655_s10 }
 0x163   : > { %1259 = vrot.lane.b32.xlu1 %v1015_v60, %s2653_s8 }
 0x164   : > { %1197 = vrot.lane.b32.xlu0 %v2998_v61, %s2652_s24 }
 0x167   : > { %1511 = vrot.lane.b32.xlu1 %v1031_v1, %s2657_s12 }
 0x168   : > { %1449 = vrot.lane.b32.xlu0 %v1016_v2, %s2656_s21 }
 0x16b   : > { %1261 = vrot.lane.b32.xlu1 %v1016_v2, %s2653_s8 }
 0x16c   : > { %1071 = vrot.lane.b32.xlu0 %v1015_v60, %s2651_s25  ;;  %v3129_v60 = vld [vmem:[#allocation2 + $0x98] sm:$0xff] }
 0x16f   : > { %1513 = vrot.lane.b32.xlu1 %v1032_v38, %s2657_s12 }
 0x170   : > { %1323 = vrot.lane.b32.xlu0 %v1031_v1, %s2654_s9 }
 0x173   : > { %1135 = vrot.lane.b32.xlu1 %v1031_v1, %s2650_s23 }
 0x174   : > { %1073 = vrot.lane.b32.xlu0 %v1016_v2, %s2651_s25 }
 0x177   : > { %1387 = vrot.lane.b32.xlu1 %v3019_v22, %s2655_s10 }
 0x178   : > { %1325 = vrot.lane.b32.xlu0 %v1032_v38, %s2654_s9 }
 0x17b   : > { %1199 = vrot.lane.b32.xlu1 %v3019_v22, %s2652_s24 }
 0x17c   : > { %1137 = vrot.lane.b32.xlu0 %v1032_v38, %s2650_s23 }
 0x17f   : > { %1451 = vrot.lane.b32.xlu1 %v1017_v3, %s2656_s21 }
 0x180   : > { %1389 = vrot.lane.b32.xlu0 %v3027_v4, %s2655_s10 }
 0x183   : > { %1263 = vrot.lane.b32.xlu1 %v1017_v3, %s2653_s8 }
 0x184   : > { %1201 = vrot.lane.b32.xlu0 %v3027_v4, %s2652_s24 }
 0x187   : > { %1515 = vrot.lane.b32.xlu1 %v1033_v5, %s2657_s12 }
 0x188   : > { %1453 = vrot.lane.b32.xlu0 %v1018_v6, %s2656_s21 }
 0x18b   : > { %1265 = vrot.lane.b32.xlu1 %v1018_v6, %s2653_s8 }
 0x18c   : > { %1075 = vrot.lane.b32.xlu0 %v1017_v3, %s2651_s25 }
 0x18f   : > { %1517 = vrot.lane.b32.xlu1 %v1034_v7, %s2657_s12 }
 0x190   : > { %1327 = vrot.lane.b32.xlu0 %v1033_v5, %s2654_s9 }
 0x193   : > { %1139 = vrot.lane.b32.xlu1 %v1033_v5, %s2650_s23 }
 0x194   : > { %1077 = vrot.lane.b32.xlu0 %v1018_v6, %s2651_s25 }
 0x197   : > { %1391 = vrot.lane.b32.xlu1 %v3043_v9, %s2655_s10 }
 0x198   : > { %1329 = vrot.lane.b32.xlu0 %v1034_v7, %s2654_s9 }
 0x19b   : > { %1203 = vrot.lane.b32.xlu1 %v3043_v9, %s2652_s24 }
 0x19c   : > { %1141 = vrot.lane.b32.xlu0 %v1034_v7, %s2650_s23 }
 0x19f   : > { %1455 = vrot.lane.b32.xlu1 %v1019_v42, %s2656_s21 }
 0x1a0   : > { %1393 = vrot.lane.b32.xlu0 %v3051_v11, %s2655_s10 }
 0x1a3   : > { %1267 = vrot.lane.b32.xlu1 %v1019_v42, %s2653_s8 }
 0x1a4   : > { %1205 = vrot.lane.b32.xlu0 %v3051_v11, %s2652_s24 }
 0x1a7   : > { %1519 = vrot.lane.b32.xlu1 %v1035_v12, %s2657_s12 }
 0x1a8   : > { %1457 = vrot.lane.b32.xlu0 %v1020_v13, %s2656_s21 }
 0x1ab   : > { %1269 = vrot.lane.b32.xlu1 %v1020_v13, %s2653_s8 }
 0x1ac   : > { %1079 = vrot.lane.b32.xlu0 %v1019_v42, %s2651_s25 }
 0x1af   : > { %1521 = vrot.lane.b32.xlu1 %v1036_v14, %s2657_s12 }
 0x1b0   : > { %1331 = vrot.lane.b32.xlu0 %v1035_v12, %s2654_s9 }
 0x1b1   : > { %v1128_v15 = vpop.permute.xlu1 %1127 }
 0x1b2   : > { %v1064_v44 = vpop.permute.xlu0 %1063 }
 0x1b3   : > { %1143 = vrot.lane.b32.xlu1 %v1035_v12, %s2650_s23  ;;  %v1559_v39 = vsel %vm475_vm1, %v901_v10, %v1064_v44  ;;  %v1039_v12 = vld [vmem:[#allocation2 + $0x92] sm:$0xff] }
 0x1b4   : > { %1081 = vrot.lane.b32.xlu0 %v1020_v13, %s2651_s25  ;;  %v1576_v25 = vsel %vm1575_vm3, %v1559_v39, %v1128_v15  ;;  %v1024_v13 = vld [vmem:[#allocation2 + $0x99] sm:$0xff] }
 0x1b5   : > { %v3069_v52 = vpop.permute.xlu1 %1129 }
 0x1b6   : > { %v1066_v17 = vpop.permute.xlu0 %1065 }
 0x1b7   : > { %1395 = vrot.lane.b32.xlu1 %v3067_v16, %s2655_s10  ;;  %v1560_v32 = vsel %vm475_vm1, %v902_v46, %v1066_v17  ;;  %v1040_v17 = vld [vmem:[#allocation2 + $0x9a] sm:$0xff] }
 0x1b8   : > { %1333 = vrot.lane.b32.xlu0 %v1036_v14, %s2654_s9  ;;  %v1577_v58 = vsel %vm1575_vm3, %v1560_v32, %v3069_v52 }
 0x1b9   : > { %v3074_v18 = vpop.permute.xlu1 %1193 }
 0x1ba   : > { %v1192_v20 = vpop.permute.xlu0 %1191  ;;  %v1594_v36 = vsel %vm1592_vm4, %v1577_v58, %v3074_v18 }
 0x1bb   : > { %1207 = vrot.lane.b32.xlu1 %v3067_v16, %s2652_s24  ;;  %v1593_v41 = vsel %vm1592_vm4, %v1576_v25, %v1192_v20  ;;  %v1025_v25 = vld [vmem:[#allocation2 + $0xa9] sm:$0xff] }
 0x1bc   : > { %1145 = vrot.lane.b32.xlu0 %v1036_v14, %s2650_s23 }
 0x1bd   : > { %v3081_v54 = vpop.permute.xlu1 %1067 }
 0x1be   : > { %v1256_v27 = vpop.permute.xlu0 %1255 }
 0x1bf   : > { %1459 = vrot.lane.b32.xlu1 %v1021_v21, %s2656_s21  ;;  %v1610_v47 = vsel %vm1609_vm5, %v1593_v41, %v1256_v27  ;;  %v3192_v41 = vld [vmem:[#allocation2 + $0xb0] sm:$0xff] }
 0x1c0   : > { %1397 = vrot.lane.b32.xlu0 %v3079_v23, %s2655_s10 }
 0x1c1   : > { %v1320_v62 = vpop.permute.xlu1 %1319 }
 0x1c2   : > { %v1258_v28 = vpop.permute.xlu0 %1257  ;;  %v1627_v49 = vsel %vm1626_vm6, %v1610_v47, %v1320_v62  ;;  %v1561_v62 = vsel %vm475_vm1, %v2966_v48, %v3081_v54 }
 0x1c3   : > { %1271 = vrot.lane.b32.xlu1 %v1021_v21, %s2653_s8  ;;  %v1611_v2 = vsel %vm1609_vm5, %v1594_v36, %v1258_v28  ;;  %v1042_v36 = vld [vmem:[#allocation2 + $0xb2] sm:$0xff] }
 0x1c4   : > { %1209 = vrot.lane.b32.xlu0 %v3079_v23, %s2652_s24 }
 0x1c5   : > { %v3089_v31 = vpop.permute.xlu1 %1131 }
 0x1c6   : > { %v3091_v0 = vpop.permute.xlu0 %1069  ;;  %v1578_v28 = vsel %vm1575_vm3, %v1561_v62, %v3089_v31  ;;  %v1027_v62 = vld [vmem:[#allocation2 + $0xc1] sm:$0xff] }
 0x1c7   : > { %1523 = vrot.lane.b32.xlu1 %v1037_v29, %s2657_s12 }
 0x1c8   : > { %1461 = vrot.lane.b32.xlu0 %v1022_v24, %s2656_s21 }
 0x1c9   : > { %v1384_v33 = vpop.permute.xlu1 %1383 }
 0x1ca   : > { %v1322_v8 = vpop.permute.xlu0 %1321  ;;  %v1644_v50 = vsel %vm1643_vm7, %v1627_v49, %v1384_v33 }
 0x1cb   : > { %1273 = vrot.lane.b32.xlu1 %v1022_v24, %s2653_s8  ;;  %v1628_v38 = vsel %vm1626_vm6, %v1611_v2, %v1322_v8 }
 0x1cc   : > { %1083 = vrot.lane.b32.xlu0 %v1021_v21, %s2651_s25 }
 0x1cd   : > { %v3097_v35 = vpop.permute.xlu1 %1195 }
 0x1ce   : > { %v3099_v26 = vpop.permute.xlu0 %1133 }
 0x1cf   : > { %1525 = vrot.lane.b32.xlu1 %v1038_v34, %s2657_s12 }
 0x1d0   : > { %1335 = vrot.lane.b32.xlu0 %v1037_v29, %s2654_s9 }
 0x1d1   : > { %v1448_v40 = vpop.permute.xlu1 %1447 }
 0x1d2   : > { %v1386_v19 = vpop.permute.xlu0 %1385  ;;  %v1661_v53 = vsel %vm1660_vm8, %v1644_v50, %v1448_v40  ;;  %v1562_v40 = vsel %vm475_vm1, %v2964_v30, %v3091_v0 }
 0x1d3   : > { %1147 = vrot.lane.b32.xlu1 %v1037_v29, %s2650_s23  ;;  %v1645_v3 = vsel %vm1643_vm7, %v1628_v38, %v1386_v19  ;;  %v3168_v29 = vld [vmem:[#allocation2 + $0xa8] sm:$0xff]  ;;  %v1579_v19 = vsel %vm1575_vm3, %v1562_v40, %v3099_v26 }
 0x1d4   : > { %1085 = vrot.lane.b32.xlu0 %v1022_v24, %s2651_s25  ;;  %v1595_v24 = vsel %vm1592_vm4, %v1578_v28, %v3097_v35  ;;  %v1012_v28 = vld [vmem:[#allocation2 + $0xc8] sm:$0xff] }
 0x1d5   : > { %v3110_v43 = vpop.permute.xlu1 %1259 }
 0x1d6   : > { %v3112_v45 = vpop.permute.xlu0 %1197 }
 0x1d7   : > { %1399 = vrot.lane.b32.xlu1 %v3107_v37, %s2655_s10 }
 0x1d8   : > { %1337 = vrot.lane.b32.xlu0 %v1038_v34, %s2654_s9 }
 0x1d9   : > { %v1512_v55 = vpop.permute.xlu1 %1511 }
 0x1da   : > { %v1450_v56 = vpop.permute.xlu0 %1449  ;;  %v1678_v57 = vsel %vm1677_vm9, %v1661_v53, %v1512_v55  ;;  %v1041_v53 = vld [vmem:[#allocation2 + $0xaa] sm:$0xff] }
 0x1db   : > { %1211 = vrot.lane.b32.xlu1 %v3107_v37, %s2652_s24  ;;  %2380 = vmatprep.mubr.msk.f32.mxu1 %vm1706_vm10, %v1678_v57  ;;  %v1662_v5 = vsel %vm1660_vm8, %v1645_v3, %v1450_v56  ;;  %v1026_v55 = vld [vmem:[#allocation2 + $0xb1] sm:$0xff] }
 0x1dc   : > { %1149 = vrot.lane.b32.xlu0 %v1038_v34, %s2650_s23  ;;  %v1612_v34 = vsel %vm1609_vm5, %v1595_v24, %v3110_v43  ;;  %v1596_v43 = vsel %vm1592_vm4, %v1579_v19, %v3112_v45 }
 0x1dd   : > { %v1262_v63 = vpop.permute.xlu1 %1261 }
 0x1de   : > { %v3133_v1 = vpop.permute.xlu0 %1071  ;;  %v1613_v30 = vsel %vm1609_vm5, %v1596_v43, %v1262_v63  ;;  %v997_v43 = vld [vmem:[#allocation2 + $0xca] sm:$0xff] }
 0x1df   : > { %1463 = vrot.lane.b32.xlu1 %v1023_v59, %s2656_s21 }
 0x1e0   : > { %1401 = vrot.lane.b32.xlu0 %v3129_v60, %s2655_s10 }
 0x1e1   : > { %v1514_v6 = vpop.permute.xlu1 %1513 }
 0x1e2   : > { %v1324_v7 = vpop.permute.xlu0 %1323  ;;  %v1679_v42 = vsel %vm1677_vm9, %v1662_v5, %v1514_v6  ;;  %v1563_v5 = vsel %vm475_vm1, %v2978_v51, %v3133_v1 }
 0x1e3   : > { %1275 = vrot.lane.b32.xlu1 %v1023_v59, %s2653_s8  ;;  %2381 = vmatmul.mubr.msk.f32.vlgmr.msra.gmra.mrb[0].mxu1 %vm1706_vm10, %v1679_v42  ;;  %v1629_v48 = vsel %vm1626_vm6, %v1612_v34, %v1324_v7  ;;  %v1011_v7 = vld [vmem:[#allocation2 + $0xc0] sm:$0xff] }
 0x1e4   : > { %1213 = vrot.lane.b32.xlu0 %v3129_v60, %s2652_s24 }
 0x1e5   : > { %v3147_v14 = vpop.permute.xlu1 %1135 }
 0x1e6   : > { %v3149_v15 = vpop.permute.xlu0 %1073  ;;  %v1580_v6 = vsel %vm1575_vm3, %v1563_v5, %v3147_v14  ;;  %v1045_v5 = vld [vmem:[#allocation2 + $0xda] sm:$0xff] }
 0x1e7   : > { %1527 = vrot.lane.b32.xlu1 %v1039_v12, %s2657_s12 }
 0x1e8   : > { %1465 = vrot.lane.b32.xlu0 %v1024_v13, %s2656_s21 }
 0x1e9   : > { %v1388_v44 = vpop.permute.xlu1 %1387 }
 0x1ea   : > { %v1326_v52 = vpop.permute.xlu0 %1325  ;;  %v1646_v54 = vsel %vm1643_vm7, %v1629_v48, %v1388_v44 }
 0x1eb   : > { %1277 = vrot.lane.b32.xlu1 %v1024_v13, %s2653_s8  ;;  %v1630_v0 = vsel %vm1626_vm6, %v1613_v30, %v1326_v52 }
 0x1ec   : > { %1087 = vrot.lane.b32.xlu0 %v1023_v59, %s2651_s25 }
 0x1ed   : > { %v3155_v18 = vpop.permute.xlu1 %1199 }
 0x1ee   : > { %v3157_v20 = vpop.permute.xlu0 %1137  ;;  %v1597_v42 = vsel %vm1592_vm4, %v1580_v6, %v3155_v18  ;;  %v1564_v18 = vsel %vm475_vm1, %v2998_v61, %v3149_v15 }
 0x1ef   : > { %1529 = vrot.lane.b32.xlu1 %v1040_v17, %s2657_s12 }
 0x1f0   : > { %1339 = vrot.lane.b32.xlu0 %v1039_v12, %s2654_s9 }
 0x1f1   : > { %v1452_v21 = vpop.permute.xlu1 %1451 }
 0x1f2   : > { %v1390_v27 = vpop.permute.xlu0 %1389  ;;  %v1663_v31 = vsel %vm1660_vm8, %v1646_v54, %v1452_v21 }
 0x1f3   : > { %1151 = vrot.lane.b32.xlu1 %v1039_v12, %s2650_s23  ;;  %v1647_v26 = vsel %vm1643_vm7, %v1630_v0, %v1390_v27  ;;  %v1581_v27 = vsel %vm1575_vm3, %v1564_v18, %v3157_v20  ;;  %v1014_v0 = vld [vmem:[#allocation2 + $0xe0] sm:$0xff] }
 0x1f4   : > { %1089 = vrot.lane.b32.xlu0 %v1024_v13, %s2651_s25 }
 0x1f5   : > { %v1264_v33 = vpop.permute.xlu1 %1263 }
 0x1f6   : > { %v3172_v8 = vpop.permute.xlu0 %1201  ;;  %v1614_v44 = vsel %vm1609_vm5, %v1597_v42, %v1264_v33 }
 0x1f7   : > { %1403 = vrot.lane.b32.xlu1 %v3168_v29, %s2655_s10  ;;  %v1598_v24 = vsel %vm1592_vm4, %v1581_v27, %v3172_v8  ;;  %v1043_v8 = vld [vmem:[#allocation2 + $0xc2] sm:$0xff] }
 0x1f8   : > { %1341 = vrot.lane.b32.xlu0 %v1040_v17, %s2654_s9 }
 0x1f9   : > { %v1516_v10 = vpop.permute.xlu1 %1515 }
 0x1fa   : > { %v1454_v39 = vpop.permute.xlu0 %1453  ;;  %v1680_v35 = vsel %vm1677_vm9, %v1663_v31, %v1516_v10 }
 0x1fb   : > { %1215 = vrot.lane.b32.xlu1 %v3168_v29, %s2652_s24  ;;  %2383 = vmatprep.mubr.msk.f32.mxu1 %vm1706_vm10, %v1680_v35  ;;  %v1664_v49 = vsel %vm1660_vm8, %v1647_v26, %v1454_v39  ;;  %v1028_v39 = vld [vmem:[#allocation2 + $0xc9] sm:$0xff]  ;;  %v1013_v26 = vld [vmem:[#allocation2 + $0xd8] sm:$0xff] }
 0x1fc   : > { %1153 = vrot.lane.b32.xlu0 %v1040_v17, %s2650_s23 }
 0x1fd   : > { %v1266_v46 = vpop.permute.xlu1 %1265 }
 0x1fe   : > { %v3196_v47 = vpop.permute.xlu0 %1075  ;;  %v1615_v48 = vsel %vm1609_vm5, %v1598_v24, %v1266_v46 }
 0x1ff   : > { %1467 = vrot.lane.b32.xlu1 %v1025_v25, %s2656_s21 }
 0x200   : > { %1405 = vrot.lane.b32.xlu0 %v3192_v41, %s2655_s10 }
 0x201   : > { %v1518_v50 = vpop.permute.xlu1 %1517 }
 0x202   : > { %v1328_v32 = vpop.permute.xlu0 %1327  ;;  %v1681_v45 = vsel %vm1677_vm9, %v1664_v49, %v1518_v50 }
 0x203   : > { %1279 = vrot.lane.b32.xlu1 %v1025_v25, %s2653_s8  ;;  %2384 = vmatmul.mubr.msk.f32.gmra.mrb[2].mxu1 %vm1706_vm10, %v1681_v45  ;;  %v1631_v52 = vsel %vm1626_vm6, %v1614_v44, %v1328_v32  ;;  %v1565_v32 = vsel %vm475_vm1, %v3019_v22, %v3196_v47  ;;  %v1046_v47 = vld [vmem:[#allocation2 + $0xe2] sm:$0xff] }
 0x204   : > { %1217 = vrot.lane.b32.xlu0 %v3192_v41, %s2652_s24 }
 0x205   : > { %v3210_v56 = vpop.permute.xlu1 %1139 }
 0x206   : > { %v3212_v57 = vpop.permute.xlu0 %1077  ;;  %v1582_v45 = vsel %vm1575_vm3, %v1565_v32, %v3210_v56 }
 0x207   : > { %1531 = vrot.lane.b32.xlu1 %v1041_v53, %s2657_s12  ;;  %v1566_v42 = vsel %vm475_vm1, %v3027_v4, %v3212_v57 }
 0x208   : > { %1469 = vrot.lane.b32.xlu0 %v1026_v55, %s2656_s21 }
 0x209   : > { %v1392_v58 = vpop.permute.xlu1 %1391 }
 0x20a   : > { %v1330_v59 = vpop.permute.xlu0 %1329  ;;  %v1648_v51 = vsel %vm1643_vm7, %v1631_v52, %v1392_v58 }
 0x20b   : > { %1281 = vrot.lane.b32.xlu1 %v1026_v55, %s2653_s8  ;;  %v1632_v61 = vsel %vm1626_vm6, %v1615_v48, %v1330_v59 }
 0x20c   : > { %1091 = vrot.lane.b32.xlu0 %v1025_v25, %s2651_s25 }
 0x20d   : > { %v3218_v63 = vpop.permute.xlu1 %1203 }
 0x20e   : > { %v3220_v2 = vpop.permute.xlu0 %1141  ;;  %v1599_v58 = vsel %vm1592_vm4, %v1582_v45, %v3218_v63 }
 0x20f   : > { %1533 = vrot.lane.b32.xlu1 %v1042_v36, %s2657_s12 }
 0x210   : > { %1343 = vrot.lane.b32.xlu0 %v1041_v53, %s2654_s9 }
 0x211   : > { %v1456_v38 = vpop.permute.xlu1 %1455 }
 0x212   : > { %v1394_v3 = vpop.permute.xlu0 %1393  ;;  %v1665_v1 = vsel %vm1660_vm8, %v1648_v51, %v1456_v38 }
 0x213   : > { %1155 = vrot.lane.b32.xlu1 %v1041_v53, %s2650_s23  ;;  %v1649_v15 = vsel %vm1643_vm7, %v1632_v61, %v1394_v3  ;;  %v1030_v53 = vld [vmem:[#allocation2 + $0xe1] sm:$0xff] }
 0x214   : > { %1093 = vrot.lane.b32.xlu0 %v1026_v55, %s2651_s25  ;;  %v1029_v55 = vld [vmem:[#allocation2 + $0xd9] sm:$0xff] }
 0x215   : > { %v1268_v12 = vpop.permute.xlu1 %1267 }
 0x216   : > { %v3233_v13 = vpop.permute.xlu0 %1205  ;;  %v1616_v38 = vsel %vm1609_vm5, %v1599_v58, %v1268_v12  ;;  %v1583_v12 = vsel %vm1575_vm3, %v1566_v42, %v3220_v2 }
 0x217   : > { %1407 = vrot.lane.b32.xlu1 %v1011_v7, %s2655_s10  ;;  %v1600_v44 = vsel %vm1592_vm4, %v1583_v12, %v3233_v13 }
 0x218   : > { %1345 = vrot.lane.b32.xlu0 %v1042_v36, %s2654_s9 }
 0x219   : > { %v1520_v14 = vpop.permute.xlu1 %1519 }
 0x21a   : > { %v1458_v17 = vpop.permute.xlu0 %1457  ;;  %v1682_v21 = vsel %vm1677_vm9, %v1665_v1, %v1520_v14 }
 0x21b   : > { %1219 = vrot.lane.b32.xlu1 %v1011_v7, %s2652_s24  ;;  %2386 = vmatprep.mubr.msk.f32.mxu1 %vm1706_vm10, %v1682_v21  ;;  %v1666_v20 = vsel %vm1660_vm8, %v1649_v15, %v1458_v17 }
 0x21c   : > { %1157 = vrot.lane.b32.xlu0 %v1042_v36, %s2650_s23 }
 0x21d   : > { %v1270_v33 = vpop.permute.xlu1 %1269 }
 0x21e   : > { %v3252_v34 = vpop.permute.xlu0 %1079  ;;  %v1617_v1 = vsel %vm1609_vm5, %v1600_v44, %v1270_v33 }
 0x21f   : > { %1471 = vrot.lane.b32.xlu1 %v1027_v62, %s2656_s21  ;;  %v1567_v61 = vsel %vm475_vm1, %v3043_v9, %v3252_v34 }
 0x220   : > { %1409 = vrot.lane.b32.xlu0 %v1012_v28, %s2655_s10 }
 0x221   : > { %v1522_v54 = vpop.permute.xlu1 %1521 }
 0x222   : > { %v1332_v31 = vpop.permute.xlu0 %1331  ;;  %v1683_v10 = vsel %vm1677_vm9, %v1666_v20, %v1522_v54 }
 0x223   : > { %1283 = vrot.lane.b32.xlu1 %v1027_v62, %s2653_s8  ;;  %2387 = vmatmul.mubr.msk.f32.gmra.mrb[4].mxu1 %vm1706_vm10, %v1683_v10  ;;  %v1633_v3 = vsel %vm1626_vm6, %v1616_v38, %v1332_v31 }
 0x224   : > { %1221 = vrot.lane.b32.xlu0 %v1012_v28, %s2652_s24 }
 0x225   : > { %v3264_v35 = vpop.permute.xlu1 %1143 }
 0x226   : > { %v3266_v40 = vpop.permute.xlu0 %1081  ;;  %v1584_v15 = vsel %vm1575_vm3, %v1567_v61, %v3264_v35 }
 0x227   : > { %1535 = vrot.lane.b32.xlu1 %v1043_v8, %s2657_s12  ;;  %v1568_v9 = vsel %vm475_vm1, %v3051_v11, %v3266_v40 }
 0x228   : > { %1473 = vrot.lane.b32.xlu0 %v1028_v39, %s2656_s21 }
 0x229   : > { %v1396_v19 = vpop.permute.xlu1 %1395 }
 0x22a   : > { %v1334_v25 = vpop.permute.xlu0 %1333  ;;  %v1650_v22 = vsel %vm1643_vm7, %v1633_v3, %v1396_v19 }
 0x22b   : > { %1347 = vrot.lane.b32.xlu1 %v1043_v8, %s2654_s9  ;;  %v1634_v14 = vsel %vm1626_vm6, %v1617_v1, %v1334_v25 }
 0x22c   : > { %1285 = vrot.lane.b32.xlu0 %v1028_v39, %s2653_s8 }
 0x22d   : > { %v1208_v46 = vpop.permute.xlu1 %1207 }
 0x22e   : > { %v3272_v30 = vpop.permute.xlu0 %1145  ;;  %v1601_v20 = vsel %vm1592_vm4, %v1584_v15, %v1208_v46 }
 0x22f   : > { %1349 = vrot.lane.b32.xlu1 %v997_v43, %s2654_s9  ;;  %v1585_v34 = vsel %vm1575_vm3, %v1568_v9, %v3272_v30 }
 0x230   : > { %1537 = vrot.lane.b32.xlu0 %v997_v43, %s2657_s12 }
 0x231   : > { %v1460_v49 = vpop.permute.xlu1 %1459 }
 0x232   : > { %v1398_v50 = vpop.permute.xlu0 %1397  ;;  %v1667_v56 = vsel %vm1660_vm8, %v1650_v22, %v1460_v49 }
 0x233   : > { %1413 = vrot.lane.b32.xlu1 %v1014_v0, %s2655_s10  ;;  %v1651_v4 = vsel %vm1643_vm7, %v1634_v14, %v1398_v50 }
 0x234   : > { %1411 = vrot.lane.b32.xlu0 %v1013_v26, %s2655_s10 }
 0x235   : > { %v1272_v59 = vpop.permute.xlu1 %1271 }
 0x236   : > { %v1210_v36 = vpop.permute.xlu0 %1209  ;;  %v1618_v10 = vsel %vm1609_vm5, %v1601_v20, %v1272_v59 }
 0x237   : > { %1477 = vrot.lane.b32.xlu1 %v1030_v53, %s2656_s21  ;;  %v1602_v35 = vsel %vm1592_vm4, %v1585_v34, %v1210_v36 }
 0x238   : > { %1475 = vrot.lane.b32.xlu0 %v1029_v55, %s2656_s21 }
 0x239   : > { %v1524_v6 = vpop.permute.xlu1 %1523 }
 0x23a   : > { %v1462_v7 = vpop.permute.xlu0 %1461  ;;  %v1684_v63 = vsel %vm1677_vm9, %v1667_v56, %v1524_v6 }
 0x23b   : > { %1541 = vrot.lane.b32.xlu1 %v1046_v47, %s2657_s12  ;;  %2389 = vmatprep.mubr.msk.f32.mxu1 %vm1706_vm10, %v1684_v63  ;;  %v1668_v57 = vsel %vm1660_vm8, %v1651_v4, %v1462_v7 }
 0x23c   : > { %1539 = vrot.lane.b32.xlu0 %v1045_v5, %s2657_s12 }
 0x23d   : > { %v1274_v52 = vpop.permute.xlu1 %1273 }
 0x23e   : > { %v1084_v51 = vpop.permute.xlu0 %1083  ;;  %v1619_v49 = vsel %vm1609_vm5, %v1602_v35, %v1274_v52 }
 0x23f   : > { %v1569_v47 = vsel %vm475_vm1, %v3067_v16, %v1084_v51 }
 0x241   : > { %v1526_v17 = vpop.permute.xlu1 %1525 }
 0x242   : > { %v1336_v21 = vpop.permute.xlu0 %1335  ;;  %v1685_v18 = vsel %vm1677_vm9, %v1668_v57, %v1526_v17 }
 0x243   : > { %2390 = vmatmul.mubr.msk.f32.gmra.mrb[6].mxu1 %vm1706_vm10, %v1685_v18  ;;  %v1635_v8 = vsel %vm1626_vm6, %v1618_v10, %v1336_v21 }
 0x245   : > { %v1148_v2 = vpop.permute.xlu1 %1147 }
 0x246   : > { %v1086_v27 = vpop.permute.xlu0 %1085  ;;  %v1586_v5 = vsel %vm1575_vm3, %v1569_v47, %v1148_v2 }
 0x247   : > { %v1570_v16 = vsel %vm475_vm1, %v3079_v23, %v1086_v27 }
 0x249   : > { %v1400_v62 = vpop.permute.xlu1 %1399 }
 0x24a   : > { %v1338_v13 = vpop.permute.xlu0 %1337  ;;  %v1652_v39 = vsel %vm1643_vm7, %v1635_v8, %v1400_v62 }
 0x24b   : > { %v1636_v50 = vsel %vm1626_vm6, %v1619_v49, %v1338_v13 }
 0x24d   : > { %v1212_v28 = vpop.permute.xlu1 %1211 }
 0x24e   : > { %v1150_v24 = vpop.permute.xlu0 %1149  ;;  %v1603_v56 = vsel %vm1592_vm4, %v1586_v5, %v1212_v28 }
 0x24f   : > { %v1587_v51 = vsel %vm1575_vm3, %v1570_v16, %v1150_v24 }
 0x251   : > { %v1464_v48 = vpop.permute.xlu1 %1463 }
 0x252   : > { %v1402_v33 = vpop.permute.xlu0 %1401  ;;  %v1669_v19 = vsel %vm1660_vm8, %v1652_v39, %v1464_v48 }
 0x253   : > { %v1653_v32 = vsel %vm1643_vm7, %v1636_v50, %v1402_v33 }
 0x255   : > { %v1276_v54 = vpop.permute.xlu1 %1275 }
 0x256   : > { %v1214_v31 = vpop.permute.xlu0 %1213  ;;  %v1620_v63 = vsel %vm1609_vm5, %v1603_v56, %v1276_v54 }
 0x257   : > { %v1604_v4 = vsel %vm1592_vm4, %v1587_v51, %v1214_v31 }
 0x259   : > { %v1528_v25 = vpop.permute.xlu1 %1527 }
 0x25a   : > { %v1466_v43 = vpop.permute.xlu0 %1465  ;;  %v1686_v0 = vsel %vm1677_vm9, %v1669_v19, %v1528_v25 }
 0x25b   : > { %2392 = vmatprep.mubr.msk.f32.mxu1 %vm1706_vm10, %v1686_v0  ;;  %v1670_v45 = vsel %vm1660_vm8, %v1653_v32, %v1466_v43 }
 0x25d   : > { %v1278_v46 = vpop.permute.xlu1 %1277 }
 0x25e   : > { %v1088_v26 = vpop.permute.xlu0 %1087  ;;  %v1621_v21 = vsel %vm1609_vm5, %v1604_v4, %v1278_v46  ;;  %v3395_v4 = vld [vmem:[%s3466_s6] ss:$0 sm:$0xff] }
 0x25f   : > { %v1571_v31 = vsel %vm475_vm1, %v3107_v37, %v1088_v26 }
 0x261   : > { %v1530_v53 = vpop.permute.xlu1 %1529 }
 0x262   : > { %v1340_v55 = vpop.permute.xlu0 %1339  ;;  %v1687_v11 = vsel %vm1677_vm9, %v1670_v45, %v1530_v53 }
 0x263   : > { %2393 = vmatmul.mubr.msk.f32.gmra.mrb[8].mxu1 %vm1706_vm10, %v1687_v11  ;;  %v1637_v42 = vsel %vm1626_vm6, %v1620_v63, %v1340_v55 }
 0x265   : > { %v1152_v40 = vpop.permute.xlu1 %1151 }
 0x266   : > { %v1090_v30 = vpop.permute.xlu0 %1089  ;;  %v1588_v10 = vsel %vm1575_vm3, %v1571_v31, %v1152_v40 }
 0x267   : > { %v1572_v37 = vsel %vm475_vm1, %v3129_v60, %v1090_v30 }
 0x269   : > { %v1404_v58 = vpop.permute.xlu1 %1403 }
 0x26a   : > { %v1342_v59 = vpop.permute.xlu0 %1341  ;;  %v1654_v12 = vsel %vm1643_vm7, %v1637_v42, %v1404_v58 }
 0x26b   : > { %v1638_v18 = vsel %vm1626_vm6, %v1621_v21, %v1342_v59 }
 0x26d   : > { %v1216_v36 = vpop.permute.xlu1 %1215 }
 0x26e   : > { %v1154_v38 = vpop.permute.xlu0 %1153  ;;  %v1605_v8 = vsel %vm1592_vm4, %v1588_v10, %v1216_v36 }
 0x26f   : > { %v1589_v26 = vsel %vm1575_vm3, %v1572_v37, %v1154_v38 }
 0x271   : > { %v1468_v3 = vpop.permute.xlu1 %1467 }
 0x272   : > { %v1406_v22 = vpop.permute.xlu0 %1405  ;;  %v1671_v44 = vsel %vm1660_vm8, %v1654_v12, %v1468_v3 }
 0x273   : > { %v1655_v2 = vsel %vm1643_vm7, %v1638_v18, %v1406_v22 }
 0x275   : > { %v1280_v6 = vpop.permute.xlu1 %1279 }
 0x276   : > { %v1218_v7 = vpop.permute.xlu0 %1217  ;;  %v1622_v25 = vsel %vm1609_vm5, %v1605_v8, %v1280_v6 }
 0x277   : > { %v1606_v49 = vsel %vm1592_vm4, %v1589_v26, %v1218_v7 }
 0x279   : > { %v1532_v52 = vpop.permute.xlu1 %1531 }
 0x27a   : > { %v1470_v1 = vpop.permute.xlu0 %1469  ;;  %v1688_v14 = vsel %vm1677_vm9, %v1671_v44, %v1532_v52 }
 0x27b   : > { %2395 = vmatprep.mubr.msk.f32.mxu1 %vm1706_vm10, %v1688_v14  ;;  %v1672_v62 = vsel %vm1660_vm8, %v1655_v2, %v1470_v1 }
 0x27d   : > { %v1282_v57 = vpop.permute.xlu1 %1281 }
 0x27e   : > { %v1092_v17 = vpop.permute.xlu0 %1091  ;;  %v1623_v45 = vsel %vm1609_vm5, %v1606_v49, %v1282_v57 }
 0x27f   : > { %v1573_v36 = vsel %vm475_vm1, %v3168_v29, %v1092_v17 }
 0x281   : > { %v1534_v13 = vpop.permute.xlu1 %1533 }
 0x282   : > { %v1344_v28 = vpop.permute.xlu0 %1343  ;;  %v1689_v23 = vsel %vm1677_vm9, %v1672_v62, %v1534_v13 }
 0x283   : > { %2396 = vmatmul.mubr.msk.f32.gmra.mrb[10].mxu1 %vm1706_vm10, %v1689_v23  ;;  %v1639_v43 = vsel %vm1626_vm6, %v1622_v25, %v1344_v28 }
 0x285   : > { %v1156_v27 = vpop.permute.xlu1 %1155 }
 0x286   : > { %v1094_v24 = vpop.permute.xlu0 %1093  ;;  %v1590_v3 = vsel %vm1575_vm3, %v1573_v36, %v1156_v27 }
 0x287   : > { %v1574_v38 = vsel %vm475_vm1, %v3192_v41, %v1094_v24 }
 0x289   : > { %v1408_v48 = vpop.permute.xlu1 %1407 }
 0x28a   : > { %v1346_v33 = vpop.permute.xlu0 %1345  ;;  %v1656_v0 = vsel %vm1643_vm7, %v1639_v43, %v1408_v48 }
 0x28b   : > { %v1640_v53 = vsel %vm1626_vm6, %v1623_v45, %v1346_v33 }
 0x28d   : > { %v1220_v61 = vpop.permute.xlu1 %1219 }
 0x28e   : > { %v1158_v15 = vpop.permute.xlu0 %1157  ;;  %v1607_v47 = vsel %vm1592_vm4, %v1590_v3, %v1220_v61 }
 0x28f   : > { %v1591_v22 = vsel %vm1575_vm3, %v1574_v38, %v1158_v15 }
 0x291   : > { %v1472_v20 = vpop.permute.xlu1 %1471 }
 0x292   : > { %v1410_v54 = vpop.permute.xlu0 %1409  ;;  %v1673_v9 = vsel %vm1660_vm8, %v1656_v0, %v1472_v20 }
 0x293   : > { %v1657_v55 = vsel %vm1643_vm7, %v1640_v53, %v1410_v54 }
 0x295   : > { %v1284_v39 = vpop.permute.xlu1 %1283 }
 0x296   : > { %v1222_v19 = vpop.permute.xlu0 %1221  ;;  %v1624_v7 = vsel %vm1609_vm5, %v1607_v47, %v1284_v39 }
 0x297   : > { %v1608_v5 = vsel %vm1592_vm4, %v1591_v22, %v1222_v19 }
 0x299   : > { %v1536_v34 = vpop.permute.xlu1 %1535 }
 0x29a   : > { %v1474_v35 = vpop.permute.xlu0 %1473  ;;  %v1690_v46 = vsel %vm1677_vm9, %v1673_v9, %v1536_v34 }
 0x29b   : > { %2398 = vmatprep.mubr.msk.f32.mxu1 %vm1706_vm10, %v1690_v46  ;;  %v1674_v11 = vsel %vm1660_vm8, %v1657_v55, %v1474_v35 }
 0x29d   : > { %v1348_v50 = vpop.permute.xlu1 %1347 }
 0x29e   : > { %v1286_v32 = vpop.permute.xlu0 %1285  ;;  %v1641_v42 = vsel %vm1626_vm6, %v1624_v7, %v1348_v50 }
 0x29f   : > { %v1625_v63 = vsel %vm1609_vm5, %v1608_v5, %v1286_v32 }
 0x2a1   : > { %v1350_v40 = vpop.permute.xlu1 %1349 }
 0x2a2   : > { %v1538_v58 = vpop.permute.xlu0 %1537  ;;  %v1642_v29 = vsel %vm1626_vm6, %v1625_v63, %v1350_v40 }
 0x2a3   : > { %v1691_v60 = vsel %vm1677_vm9, %v1674_v11, %v1538_v58 }
 0x2a4   : > { %2399 = vmatmul.mubr.msk.f32.gmra.mrb[12].mxu1 %vm1706_vm10, %v1691_v60 }
 0x2a5   : > { %v1414_v30 = vpop.permute.xlu1 %1413 }
 0x2a6   : > { %v1412_v59 = vpop.permute.xlu0 %1411  ;;  %v1659_v41 = vsel %vm1643_vm7, %v1642_v29, %v1414_v30 }
 0x2a7   : > { %v1658_v12 = vsel %vm1643_vm7, %v1641_v42, %v1412_v59 }
 0x2a9   : > { %v1478_v56 = vpop.permute.xlu1 %1477 }
 0x2aa   : > { %v1476_v6 = vpop.permute.xlu0 %1475  ;;  %v1676_v44 = vsel %vm1660_vm8, %v1659_v41, %v1478_v56 }
 0x2ab   : > { %v1675_v52 = vsel %vm1660_vm8, %v1658_v12, %v1476_v6 }
 0x2ad   : > { %v1542_v1 = vpop.permute.xlu1 %1541 }
 0x2ae   : > { %v1540_v14 = vpop.permute.xlu0 %1539  ;;  %v1693_v16 = vsel %vm1677_vm9, %v1676_v44, %v1542_v1 }
 0x2af   : > { %v1692_v51 = vsel %vm1677_vm9, %v1675_v52, %v1540_v14 }
 0x2b0   : > { %2401 = vmatprep.mubr.msk.f32.mxu1 %vm1706_vm10, %v1692_v51 }
 0x2b1   : > { %2402 = vmatmul.mubr.msk.f32.gmra.mrb[14].mxu1 %vm1706_vm10, %v1693_v16 }
 0x2b6   : > { %v2382_v57 = vpop.f32.mrb[0].mxu1 }
 0x2b7   : > { %v1830_v17 = vadd.f32 %v2382_v57, %v3395_v4  ;;  %v1824_v21 = vpop.f32.mrb[1].mxu1 }
 0x2b8   : > { %v1825_v18 = vadd.f32 %v3395_v4, %v1824_v21 }
 0x2b9   : > { %v2271_v2 = vmul.f32 -1.442695, %v1830_v17 }
 0x2ba   : > { %v2270_v62 = vmul.f32 -1.442695, %v1825_v18 }
 0x2bb   : > { %2543 = vpow2.f32 %v2271_v2 }
 0x2bc   : > { %2545 = vpow2.f32 %v2270_v62 }
 0x2c5   : > { %v2544_v13 = vpop.eup %2543 }
 0x2c6   : > { %v2546_v28 = vpop.eup %2545  ;;  %v1952_v23 = vadd.f32 1.0, %v2544_v13 }
 0x2c7   : > { %v1951_v27 = vadd.f32 1.0, %v2546_v28 }
 0x2c8   : > { %2547 = vrcp.f32 %v1952_v23 }
 0x2c9   : > { %2549 = vrcp.f32 %v1951_v27 }
 0x2d2   : > { %v2548_v24 = vpop.eup %2547 }
 0x2d3   : > { %v2550_v48 = vpop.eup %2549  ;;  %v2000_v33 = vmul.f32 %v2548_v24, %v1830_v17 }
 0x2d4   : > { %v1999_v61 = vmul.f32 %v2550_v48, %v1825_v18 }
 0x2d5   : > { %2016 = vst.msk [vmem:[%s2747_s19 + $0x8] sm:$0xff] %vm475_vm1, %v2000_v33 }
 0x2d6   : > { %2015 = vst.msk [vmem:[%s2747_s19] sm:$0xff] %vm475_vm1, %v1999_v61  ;;  %v2385_v15 = vpop.f32.mrb[2].mxu1 }
 0x2d7   : > { %v1840_v20 = vadd.f32 %v2385_v15, %v3395_v4  ;;  %v1834_v54 = vpop.f32.mrb[3].mxu1 }
 0x2d8   : > { %v1835_v31 = vadd.f32 %v3395_v4, %v1834_v54 }
 0x2d9   : > { %v2273_v10 = vmul.f32 -1.442695, %v1840_v20 }
 0x2da   : > { %v2272_v8 = vmul.f32 -1.442695, %v1835_v31 }
 0x2db   : > { %2551 = vpow2.f32 %v2273_v10 }
 0x2dc   : > { %2553 = vpow2.f32 %v2272_v8 }
 0x2e5   : > { %v2552_v39 = vpop.eup %2551 }
 0x2e6   : > { %v2554_v19 = vpop.eup %2553  ;;  %v1954_v25 = vadd.f32 1.0, %v2552_v39 }
 0x2e7   : > { %v1953_v43 = vadd.f32 1.0, %v2554_v19 }
 0x2e8   : > { %2555 = vrcp.f32 %v1954_v25 }
 0x2e9   : > { %2557 = vrcp.f32 %v1953_v43 }
 0x2f2   : > { %v2556_v0 = vpop.eup %2555 }
 0x2f3   : > { %v2558_v9 = vpop.eup %2557  ;;  %v2002_v34 = vmul.f32 %v2556_v0, %v1840_v20 }
 0x2f4   : > { %v2001_v35 = vmul.f32 %v2558_v9, %v1835_v31 }
 0x2f5   : > { %2018 = vst.msk [vmem:[%s2747_s19 + $0x18] sm:$0xff] %vm475_vm1, %v2002_v34 }
 0x2f6   : > { %2017 = vst.msk [vmem:[%s2747_s19 + $0x10] sm:$0xff] %vm475_vm1, %v2001_v35  ;;  %v2388_v46 = vpop.f32.mrb[4].mxu1 }
 0x2f7   : > { %v1850_v37 = vadd.f32 %v2388_v46, %v3395_v4  ;;  %v1844_v26 = vpop.f32.mrb[5].mxu1 }
 0x2f8   : > { %v1845_v49 = vadd.f32 %v3395_v4, %v1844_v26 }
 0x2f9   : > { %v2275_v50 = vmul.f32 -1.442695, %v1850_v37 }
 0x2fa   : > { %v2274_v32 = vmul.f32 -1.442695, %v1845_v49 }
 0x2fb   : > { %2559 = vpow2.f32 %v2275_v50 }
 0x2fc   : > { %2561 = vpow2.f32 %v2274_v32 }
 0x305   : > { %v2560_v45 = vpop.eup %2559 }
 0x306   : > { %v2562_v53 = vpop.eup %2561  ;;  %v1956_v55 = vadd.f32 1.0, %v2560_v45 }
 0x307   : > { %v1955_v11 = vadd.f32 1.0, %v2562_v53 }
 0x308   : > { %2563 = vrcp.f32 %v1956_v55 }
 0x309   : > { %2565 = vrcp.f32 %v1955_v11 }
 0x312   : > { %v2564_v40 = vpop.eup %2563 }
 0x313   : > { %v2566_v58 = vpop.eup %2565  ;;  %v2004_v60 = vmul.f32 %v2564_v40, %v1850_v37 }
 0x314   : > { %v2003_v30 = vmul.f32 %v2566_v58, %v1845_v49 }
 0x315   : > { %2020 = vst.msk [vmem:[%s2747_s19 + $0x28] sm:$0xff] %vm475_vm1, %v2004_v60 }
 0x316   : > { %v2391_v59 = vpop.f32.mrb[6].mxu1  ;;  %2019 = vst.msk [vmem:[%s2747_s19 + $0x20] sm:$0xff] %vm475_vm1, %v2003_v30 }
 0x317   : > { %v1860_v36 = vadd.f32 %v2391_v59, %v3395_v4  ;;  %v1854_v38 = vpop.f32.mrb[7].mxu1 }
 0x318   : > { %v1855_v3 = vadd.f32 %v3395_v4, %v1854_v38 }
 0x319   : > { %v2277_v22 = vmul.f32 -1.442695, %v1860_v36 }
 0x31a   : > { %v2276_v47 = vmul.f32 -1.442695, %v1855_v3 }
 0x31b   : > { %2567 = vpow2.f32 %v2277_v22 }
 0x31c   : > { %2569 = vpow2.f32 %v2276_v47 }
 0x325   : > { %v2568_v5 = vpop.eup %2567 }
 0x326   : > { %v2570_v56 = vpop.eup %2569  ;;  %v1958_v6 = vadd.f32 1.0, %v2568_v5 }
 0x327   : > { %v1957_v7 = vadd.f32 1.0, %v2570_v56 }
 0x328   : > { %2571 = vrcp.f32 %v1958_v6 }
 0x329   : > { %2573 = vrcp.f32 %v1957_v7 }
 0x332   : > { %v2572_v63 = vpop.eup %2571 }
 0x333   : > { %v2574_v42 = vpop.eup %2573  ;;  %v2006_v29 = vmul.f32 %v2572_v63, %v1860_v36 }
 0x334   : > { %v2005_v41 = vmul.f32 %v2574_v42, %v1855_v3 }
 0x335   : > { %2022 = vst.msk [vmem:[%s2747_s19 + $0x38] sm:$0xff] %vm475_vm1, %v2006_v29 }
 0x336   : > { %2021 = vst.msk [vmem:[%s2747_s19 + $0x30] sm:$0xff] %vm475_vm1, %v2005_v41  ;;  %v2394_v12 = vpop.f32.mrb[8].mxu1 }
 0x337   : > { %v1870_v44 = vadd.f32 %v2394_v12, %v3395_v4  ;;  %v1864_v52 = vpop.f32.mrb[9].mxu1 }
 0x338   : > { %v1865_v1 = vadd.f32 %v3395_v4, %v1864_v52 }
 0x339   : > { %v2279_v14 = vmul.f32 -1.442695, %v1870_v44 }
 0x33a   : > { %v2278_v16 = vmul.f32 -1.442695, %v1865_v1 }
 0x33b   : > { %2575 = vpow2.f32 %v2279_v14 }
 0x33c   : > { %2577 = vpow2.f32 %v2278_v16 }
 0x345   : > { %v2576_v51 = vpop.eup %2575 }
 0x346   : > { %v2578_v57 = vpop.eup %2577  ;;  %v1960_v17 = vadd.f32 1.0, %v2576_v51 }
 0x347   : > { %v1959_v21 = vadd.f32 1.0, %v2578_v57 }
 0x348   : > { %2579 = vrcp.f32 %v1960_v17 }
 0x349   : > { %2581 = vrcp.f32 %v1959_v21 }
 0x352   : > { %v2580_v18 = vpop.eup %2579 }
 0x353   : > { %v2582_v2 = vpop.eup %2581  ;;  %v2008_v62 = vmul.f32 %v2580_v18, %v1870_v44 }
 0x354   : > { %v2007_v13 = vmul.f32 %v2582_v2, %v1865_v1 }
 0x355   : > { %2024 = vst.msk [vmem:[%s2747_s19 + $0x48] sm:$0xff] %vm475_vm1, %v2008_v62 }
 0x356   : > { %2023 = vst.msk [vmem:[%s2747_s19 + $0x40] sm:$0xff] %vm475_vm1, %v2007_v13  ;;  %v2397_v28 = vpop.f32.mrb[10].mxu1 }
 0x357   : > { %v1880_v23 = vadd.f32 %v2397_v28, %v3395_v4  ;;  %v1874_v27 = vpop.f32.mrb[11].mxu1 }
 0x358   : > { %v1875_v24 = vadd.f32 %v3395_v4, %v1874_v27 }
 0x359   : > { %v2281_v48 = vmul.f32 -1.442695, %v1880_v23 }
 0x35a   : > { %v2280_v33 = vmul.f32 -1.442695, %v1875_v24 }
 0x35b   : > { %2583 = vpow2.f32 %v2281_v48 }
 0x35c   : > { %2585 = vpow2.f32 %v2280_v33 }
 0x365   : > { %v2584_v61 = vpop.eup %2583 }
 0x366   : > { %v2586_v15 = vpop.eup %2585  ;;  %v1962_v20 = vadd.f32 1.0, %v2584_v61 }
 0x367   : > { %v1961_v54 = vadd.f32 1.0, %v2586_v15 }
 0x368   : > { %2587 = vrcp.f32 %v1962_v20 }
 0x369   : > { %2589 = vrcp.f32 %v1961_v54 }
 0x372   : > { %v2588_v31 = vpop.eup %2587 }
 0x373   : > { %v2590_v10 = vpop.eup %2589  ;;  %v2010_v8 = vmul.f32 %v2588_v31, %v1880_v23 }
 0x374   : > { %v2009_v39 = vmul.f32 %v2590_v10, %v1875_v24 }
 0x375   : > { %2026 = vst.msk [vmem:[%s2747_s19 + $0x58] sm:$0xff] %vm475_vm1, %v2010_v8 }
 0x376   : > { %2025 = vst.msk [vmem:[%s2747_s19 + $0x50] sm:$0xff] %vm475_vm1, %v2009_v39 }
 0x377   : > { %v2400_v19 = vpop.f32.mrb[12].mxu1 }
 0x378   : > { %v1890_v25 = vadd.f32 %v2400_v19, %v3395_v4  ;;  %v1884_v43 = vpop.f32.mrb[13].mxu1 }
 0x379   : > { %v1885_v0 = vadd.f32 %v3395_v4, %v1884_v43 }
 0x37a   : > { %v2283_v9 = vmul.f32 -1.442695, %v1890_v25 }
 0x37b   : > { %v2282_v34 = vmul.f32 -1.442695, %v1885_v0 }
 0x37c   : > { %2591 = vpow2.f32 %v2283_v9 }
 0x37d   : > { %2593 = vpow2.f32 %v2282_v34 }
 0x384   : > { %v2403_v35 = vpop.f32.mrb[14].mxu1 }
 0x385   : > { %v1900_v46 = vadd.f32 %v2403_v35, %v3395_v4  ;;  %v1894_v37 = vpop.f32.mrb[15].mxu1 }
 0x386   : > { %v2592_v26 = vpop.eup %2591  ;;  %v1895_v49 = vadd.f32 %v3395_v4, %v1894_v37 }
 0x387   : > { %v2594_v50 = vpop.eup %2593  ;;  %v1964_v32 = vadd.f32 1.0, %v2592_v26  ;;  %v2285_v45 = vmul.f32 -1.442695, %v1900_v46 }
 0x388   : > { %v1963_v53 = vadd.f32 1.0, %v2594_v50  ;;  %v2284_v55 = vmul.f32 -1.442695, %v1895_v49 }
 0x389   : > { %2595 = vrcp.f32 %v1964_v32 }
 0x38a   : > { %2597 = vrcp.f32 %v1963_v53 }
 0x38b   : > { %2599 = vpow2.f32 %v2285_v45 }
 0x38c   : > { %2601 = vpow2.f32 %v2284_v55 }
 0x393   : > { %v2596_v11 = vpop.eup %2595 }
 0x394   : > { %v2598_v40 = vpop.eup %2597  ;;  %v2012_v58 = vmul.f32 %v2596_v11, %v1890_v25 }
 0x395   : > { %v2600_v60 = vpop.eup %2599  ;;  %v2011_v30 = vmul.f32 %v2598_v40, %v1885_v0 }
 0x396   : > { %v2602_v59 = vpop.eup %2601  ;;  %2028 = vst.msk [vmem:[%s2747_s19 + $0x68] sm:$0xff] %vm475_vm1, %v2012_v58  ;;  %v1966_v4 = vadd.f32 1.0, %v2600_v60 }
 0x397   : > { %2027 = vst.msk [vmem:[%s2747_s19 + $0x60] sm:$0xff] %vm475_vm1, %v2011_v30  ;;  %v1965_v36 = vadd.f32 1.0, %v2602_v59 }
 0x398   : > { %2603 = vrcp.f32 %v1966_v4 }
 0x399   : > { %2605 = vrcp.f32 %v1965_v36 }
 0x3a2   : > { %v2604_v38 = vpop.eup %2603 }
 0x3a3   : > { %v2606_v3 = vpop.eup %2605  ;;  %v2014_v22 = vmul.f32 %v2604_v38, %v1900_v46 }
 0x3a4   : > { %v2013_v47 = vmul.f32 %v2606_v3, %v1895_v49 }
 0x3a5   : > { %2030 = vst.msk [vmem:[%s2747_s19 + $0x78] sm:$0xff] %vm475_vm1, %v2014_v22 }
 0x3a6   : > { %2029 = vst.msk [vmem:[%s2747_s19 + $0x70] sm:$0xff] %vm475_vm1, %v2013_v47 }
 0x3a7 PF: > { %s17_s28 = sadd.s32 1, %s2645_s28   ;;  %s3469_s24 = smov %s2637_s26 }
 0x3a8   : > { %p14_p12 = scmp.ge.s32.totalorder %s17_s28, 6   ;;  %s3470_s25 = smov %s2641_s27 }
 0x3a9   : > { %s3471_s26 = smov %s3474_s29  ;;  %s3472_s27 = smov %s3478_s30 }
 0x3aa   :  { %16 = sbr.rel (!%p14_p12) target bundleno = 3 (0x3), region = 95 }

</bundles_post_ra>
